<compile_context>
chip_gen: v7x
topology: tpu7x:2x2x1
jax: 0.10.0
libtpu: 0.0.40
codegen_flags: <defaults>
</compile_context>

<pallas_src>
import functools
import math

import jax
import jax.numpy as jnp
from jax import lax
from jax.experimental import pallas as pl
from jax.experimental.pallas import tpu as pltpu


# ----------------------------------------------------------------------------
# Fused PatchExpand kernel: expand Linear + 2x2 rearrange + LayerNorm(dim//2)
# ----------------------------------------------------------------------------

def _patch_expand_kernel(x_ref, w_ref, g_ref, b_ref, o_ref, *, c, eps):
    # x_ref: (rows, dim)        rows = row_block * W   (flattened (b, h, w) positions)
    # w_ref: (2, dim, 2c)       chunk p1 = expand-weight columns [p1*2c : (p1+1)*2c]
    # g_ref, b_ref: (1, 2c)     LayerNorm affine params tiled twice ([g, g], [b, b])
    # o_ref: (row_block, 2, W, 2c)
    row_block, _, W, two_c = o_ref.shape
    x = x_ref[...]
    g = g_ref[...]
    b = b_ref[...]
    inv_c = jnp.float32(1.0 / c)
    zero = jnp.float32(0.0)
    # Lane mask selecting the p2 == 1 half of the fused 2c-wide row (hoisted out of the
    # p1 loop — JAX does not CSE broadcasts).
    hi = lax.broadcasted_iota(jnp.int32, (1, two_c), 1) >= c

    for p1 in range(2):                          # static unroll: 2 MXU dots per tile
        # (rows, dim) x (dim, 2c) -> (rows, 2c), f32 accumulation on the MXU.
        y = jnp.dot(x, w_ref[p1], preferred_element_type=jnp.float32)

        # Two LayerNorms (one per p2 half) via lane masks: value stays full 2c wide,
        # so the store below is a single lane-dense write (no p2*c lane offsets).
        mu0 = jnp.sum(jnp.where(hi, zero, y), axis=-1, keepdims=True) * inv_c
        mu1 = jnp.sum(jnp.where(hi, y, zero), axis=-1, keepdims=True) * inv_c
        yc = y - jnp.where(hi, mu1, mu0)
        sq = yc * yc
        r0 = lax.rsqrt(jnp.sum(jnp.where(hi, zero, sq), axis=-1, keepdims=True) * inv_c + eps)
        r1 = lax.rsqrt(jnp.sum(jnp.where(hi, sq, zero), axis=-1, keepdims=True) * inv_c + eps)
        yn = yc * jnp.where(hi, r1, r0) * g + b

        # One full-width store per p1; the only reshape is the sublane split
        # (row_block*W, 2c) -> (row_block, W, 2c), free when W is sublane-aligned.
        o_ref[:, p1] = yn.reshape(row_block, W, two_c).astype(o_ref.dtype)


# ----------------------------------------------------------------------------
# Tiling heuristic
# ----------------------------------------------------------------------------

def _pick_row_block(BH, W, dim, two_c, in_b, out_b, requested, vmem_budget=28 << 20):
    """Number of image rows (of W pixels each) processed per grid step."""
    sub = {1: 32, 2: 16}.get(in_b, 8)            # dtype-aware sublane granule of the x block
    if requested is None:
        per_row = (2 * W * dim * in_b            # x tile, double-buffered
                   + 2 * 2 * W * two_c * out_b   # out tile, double-buffered
                   + 4 * W * two_c * 4)          # f32 matmul/LN live values (headroom)
        fixed = 2 * (2 * dim * two_c * in_b) + 4 * two_c * 4
        cap = max(1, (vmem_budget - fixed) // per_row)
        cap = min(cap, max(1, 2048 // max(W, 1)))  # ~2k matmul rows already at HBM roofline
    else:
        cap = requested
    cap = max(1, min(cap, BH))
    # Prefer a divisor of B*H with sublane-aligned row_block*W: no input padding and no
    # post-kernel output-slice copy (which would re-read/write the whole output via HBM).
    for r in range(cap, 0, -1):
        if BH % r == 0 and ((r * W) % sub == 0 or r == BH):
            if 2 * r >= cap:                     # accept if within 2x of the target tile
                return r
            break
    # Fallback: round up to the alignment granule; padded whole image rows are sliced off.
    q = sub // math.gcd(W, sub)
    return min(-(-cap // q) * q, -(-BH // q) * q)


# ----------------------------------------------------------------------------
# Wrapper
# ----------------------------------------------------------------------------

def patch_expand_forward(x, w_expand, gamma, beta, *, eps=1e-5, row_block=None,
                         matmul_dtype=jnp.bfloat16, out_dtype=None):
    """PatchExpand forward.

    x:        (B, H, W, dim)   channels-last, as in the torch module
    w_expand: (dim, 2*dim)     == torch expand.weight.T  (Linear, bias=False)
    gamma/beta: (dim // 2,)    LayerNorm affine params (eps defaults to 1e-5)
    matmul_dtype: dtype for the MXU operands (default bf16; accumulation stays f32).
                  Pass None to keep x.dtype.
    out_dtype: output dtype (default x.dtype; pass bf16 to halve output HBM traffic).
    returns:  (B, 2H, 2W, dim // 2)
    """
    B, H, W, dim = x.shape
    assert dim % 2 == 0 and w_expand.shape == (dim, 2 * dim)
    c = dim // 2
    two_c = dim
    BH = B * H
    M = BH * W

    out_dt = jnp.dtype(out_dtype) if out_dtype is not None else jnp.dtype(x.dtype)
    mm_dt = jnp.dtype(matmul_dtype) if matmul_dtype is not None else jnp.dtype(x.dtype)
    in_b, out_b = mm_dt.itemsize, out_dt.itemsize

    # Expand-weight columns for each p1 chunk are contiguous: W_expand[:, p1*2c:(p1+1)*2c].
    w2 = jnp.transpose(w_expand.reshape(dim, 2, two_c), (1, 0, 2)).astype(mm_dt)  # (2,dim,2c)
    xm = x.astype(mm_dt)

    row_block = _pick_row_block(BH, W, dim, two_c, in_b, out_b, row_block)
    n_blocks = pl.cdiv(BH, row_block)
    BH_pad = n_blocks * row_block

    x_flat = xm.reshape(M, dim)
    if BH_pad != BH:
        # Rare fallback (no aligned divisor of B*H): pad whole image rows, slice them off below.
        x_flat = jnp.pad(x_flat, ((0, BH_pad * W - M), (0, 0)))

    # LayerNorm affine params tiled twice so one 2c-wide row covers both p2 halves.
    g2 = jnp.concatenate([gamma, gamma]).reshape(1, two_c).astype(jnp.float32)
    b2 = jnp.concatenate([beta, beta]).reshape(1, two_c).astype(jnp.float32)

    # Explicit VMEM limit: double-buffered x/out tiles + resident weights + f32 temporaries.
    est = (2 * row_block * W * dim * in_b
           + 2 * row_block * 2 * W * two_c * out_b
           + 2 * 2 * dim * two_c * in_b
           + 4 * two_c * 4
           + 6 * row_block * W * two_c * 4)
    vmem_limit = int(min(max(est * 5 // 4, 32 << 20), 64 << 20))

    flops = 4 * M * dim * dim + 20 * M * two_c
    bytes_accessed = (M * dim * in_b + 2 * dim * two_c * in_b
                      + 2 * M * two_c * out_b + 4 * two_c * 4)

    out4 = pl.pallas_call(
        functools.partial(_patch_expand_kernel, c=c, eps=float(eps)),
        out_shape=jax.ShapeDtypeStruct((BH_pad, 2, W, two_c), out_dt),
        grid=(n_blocks,),
        in_specs=[
            pl.BlockSpec((row_block * W, dim), lambda i: (i, 0)),
            pl.BlockSpec((2, dim, two_c), lambda i: (0, 0, 0)),   # resident across grid steps
            pl.BlockSpec((1, two_c), lambda i: (0, 0)),
            pl.BlockSpec((1, two_c), lambda i: (0, 0)),
        ],
        out_specs=pl.BlockSpec((row_block, 2, W, two_c), lambda i: (i, 0, 0, 0)),
        compiler_params=pltpu.CompilerParams(
            dimension_semantics=("parallel",),
            vmem_limit_bytes=vmem_limit),
        cost_estimate=pl.CostEstimate(flops=flops, transcendentals=4 * M,
                                      bytes_accessed=bytes_accessed),
    )(x_flat, w2, g2, b2)

    if BH_pad != BH:
        out4 = out4[:BH]
    # (BH, 2, W, 2c) is row-major-identical to (B, 2H, 2W, c): free, contiguous reshape.
    return out4.reshape(B, 2 * H, 2 * W, c)


# ----------------------------------------------------------------------------
# Plain-JAX reference for verification
# ----------------------------------------------------------------------------

def patch_expand_reference(x, w_expand, gamma, beta, eps=1e-5):
    B, H, W, dim = x.shape
    c = dim // 2
    y = jnp.einsum('bhwd,de->bhwe', x, w_expand, precision='highest')        # (B,H,W,2*dim)
    y = y.reshape(B, H, W, 2, 2, c).transpose(0, 1, 3, 2, 4, 5).reshape(B, 2 * H, 2 * W, c)
    mu = jnp.mean(y, axis=-1, keepdims=True)
    var = jnp.mean((y - mu) ** 2, axis=-1, keepdims=True)
    return (y - mu) / jnp.sqrt(var + eps) * gamma + beta


if __name__ == "__main__":
    key = jax.random.PRNGKey(0)
    kx, kw, kg, kb = jax.random.split(key, 4)

    B, H, W, dim = 2, 16, 16, 32                       # output: (2, 32, 32, 16)
    x = jax.random.normal(kx, (B, H, W, dim), jnp.float32)
    w_expand = jax.random.normal(kw, (dim, 2 * dim), jnp.float32) / jnp.sqrt(float(dim))
    gamma = 1.0 + 0.1 * jax.random.normal(kg, (dim // 2,), jnp.float32)
    beta = 0.1 * jax.random.normal(kb, (dim // 2,), jnp.float32)

    # Reference computed from the same bf16-quantized matmul inputs the kernel uses.
    xq = x.astype(jnp.bfloat16).astype(jnp.float32)
    wq = w_expand.astype(jnp.bfloat16).astype(jnp.float32)
    ref = patch_expand_reference(xq, wq, gamma, beta)

    # Default config: VMEM-budget-derived row_block, bf16 MXU inputs, f32 (x.dtype) output.
    fwd = jax.jit(patch_expand_forward)
    out = jax.block_until_ready(fwd(x, w_expand, gamma, beta))
    assert out.shape == (B, 2 * H, 2 * W, dim // 2), out.shape
    assert bool(jnp.all(jnp.isfinite(out)))
    err = float(jnp.max(jnp.abs(out - ref)))
    assert err < 2e-2, f"max abs err vs reference = {err}"

    # Multi-step pipelined path (4 grid steps of 128 matmul rows) with a bf16 output.
    fwd8 = jax.jit(functools.partial(patch_expand_forward, row_block=8,
                                     out_dtype=jnp.bfloat16))
    out8 = jax.block_until_ready(fwd8(x, w_expand, gamma, beta))
    assert out8.dtype == jnp.bfloat16
    err8 = float(jnp.max(jnp.abs(out8.astype(jnp.float32) - ref)))
    assert err8 < 5e-2, f"max abs err (bf16 out) vs reference = {err8}"

    print("KERNEL_OK")
</pallas_src>

<mosaic_0001>
module attributes {stable_mosaic.version = 11 : i64} {
  func.func @_patch_expand_kernel(%arg0: i32, %arg1: memref<512x32xbf16, #tpu.memory_space<vmem>>, %arg2: memref<2x32x32xbf16, #tpu.memory_space<vmem>>, %arg3: memref<1x32xf32, #tpu.memory_space<vmem>>, %arg4: memref<1x32xf32, #tpu.memory_space<vmem>>, %arg5: memref<32x2x16x32xf32, #tpu.memory_space<vmem>>) attributes {dimension_semantics = [#tpu.dimension_semantics<parallel>], iteration_bounds = array<i64: 1>, scalar_prefetch = 0 : i64, scratch_operands = 0 : i64, tpu.core_type = #tpu.core_type<tc>, window_params = [{transform_indices = @transform_0, window_bounds = array<i64: 512, 32>}, {pipeline_mode = #tpu.pipeline_mode<synchronous>, transform_indices = @transform_1, window_bounds = array<i64: 2, 32, 32>}, {pipeline_mode = #tpu.pipeline_mode<synchronous>, transform_indices = @transform_2, window_bounds = array<i64: 1, 32>}, {pipeline_mode = #tpu.pipeline_mode<synchronous>, transform_indices = @transform_3, window_bounds = array<i64: 1, 32>}, {transform_indices = @transform_4, window_bounds = array<i64: 32, 2, 16, 32>}]} {
    %c0 = arith.constant 0 : index
    %c0_0 = arith.constant 0 : index
    %0 = vector.load %arg1[%c0, %c0_0] : memref<512x32xbf16, #tpu.memory_space<vmem>>, vector<512x32xbf16>
    %c0_1 = arith.constant 0 : index
    %c0_2 = arith.constant 0 : index
    %1 = vector.load %arg3[%c0_1, %c0_2] : memref<1x32xf32, #tpu.memory_space<vmem>>, vector<1x32xf32>
    %c0_3 = arith.constant 0 : index
    %c0_4 = arith.constant 0 : index
    %2 = vector.load %arg4[%c0_3, %c0_4] : memref<1x32xf32, #tpu.memory_space<vmem>>, vector<1x32xf32>
    %3 = tpu.iota {dimensions = array<i32: 1>} : vector<1x32xi32>
    %c16_i32 = arith.constant 16 : i32
    %4 = vector.broadcast %c16_i32 : i32 to vector<1x32xi32>
    %5 = arith.cmpi sge, %3, %4 : vector<1x32xi32>
    %c0_5 = arith.constant 0 : index
    %c0_6 = arith.constant 0 : index
    %c0_7 = arith.constant 0 : index
    %6 = vector.load %arg2[%c0_5, %c0_6, %c0_7] : memref<2x32x32xbf16, #tpu.memory_space<vmem>>, vector<1x32x32xbf16>
    %7 = vector.shape_cast %6 : vector<1x32x32xbf16> to vector<32x32xbf16>
    %cst = arith.constant dense<0.000000e+00> : vector<512x32xf32>
    %8 = tpu.matmul %0, %7, %cst {dimension_numbers = #tpu.dot_dimension_numbers<[1], [0], [0], [1], [0, 0, 1, 1], [], []>} : vector<512x32xbf16>, vector<32x32xbf16>, vector<512x32xf32> -> vector<512x32xf32>
    %cst_8 = arith.constant 0.000000e+00 : f32
    %9 = vector.shape_cast %5 : vector<1x32xi1> to vector<1x32xi1>
    %10 = vector.broadcast %9 : vector<1x32xi1> to vector<512x32xi1>
    %11 = vector.broadcast %cst_8 : f32 to vector<512x32xf32>
    %12 = arith.select %10, %11, %8 : vector<512x32xi1>, vector<512x32xf32>
    %cst_9 = arith.constant dense<0.000000e+00> : vector<512xf32>
    %13 = vector.multi_reduction <add>, %12, %cst_9 [1] : vector<512x32xf32> to vector<512xf32>
    %14 = vector.shape_cast %13 : vector<512xf32> to vector<512x1xf32>
    %cst_10 = arith.constant 6.250000e-02 : f32
    %15 = vector.broadcast %cst_10 : f32 to vector<512x1xf32>
    %16 = arith.mulf %14, %15 : vector<512x1xf32>
    %cst_11 = arith.constant 0.000000e+00 : f32
    %17 = vector.shape_cast %5 : vector<1x32xi1> to vector<1x32xi1>
    %18 = vector.broadcast %17 : vector<1x32xi1> to vector<512x32xi1>
    %19 = vector.broadcast %cst_11 : f32 to vector<512x32xf32>
    %20 = arith.select %18, %8, %19 : vector<512x32xi1>, vector<512x32xf32>
    %cst_12 = arith.constant dense<0.000000e+00> : vector<512xf32>
    %21 = vector.multi_reduction <add>, %20, %cst_12 [1] : vector<512x32xf32> to vector<512xf32>
    %22 = vector.shape_cast %21 : vector<512xf32> to vector<512x1xf32>
    %cst_13 = arith.constant 6.250000e-02 : f32
    %23 = vector.broadcast %cst_13 : f32 to vector<512x1xf32>
    %24 = arith.mulf %22, %23 : vector<512x1xf32>
    %25 = vector.shape_cast %5 : vector<1x32xi1> to vector<1x32xi1>
    %26 = vector.broadcast %25 : vector<1x32xi1> to vector<512x32xi1>
    %27 = vector.shape_cast %24 : vector<512x1xf32> to vector<512x1xf32>
    %28 = vector.broadcast %27 : vector<512x1xf32> to vector<512x32xf32>
    %29 = vector.shape_cast %16 : vector<512x1xf32> to vector<512x1xf32>
    %30 = vector.broadcast %29 : vector<512x1xf32> to vector<512x32xf32>
    %31 = arith.select %26, %28, %30 : vector<512x32xi1>, vector<512x32xf32>
    %32 = arith.subf %8, %31 : vector<512x32xf32>
    %33 = arith.mulf %32, %32 : vector<512x32xf32>
    %cst_14 = arith.constant 0.000000e+00 : f32
    %34 = vector.shape_cast %5 : vector<1x32xi1> to vector<1x32xi1>
    %35 = vector.broadcast %34 : vector<1x32xi1> to vector<512x32xi1>
    %36 = vector.broadcast %cst_14 : f32 to vector<512x32xf32>
    %37 = arith.select %35, %36, %33 : vector<512x32xi1>, vector<512x32xf32>
    %cst_15 = arith.constant dense<0.000000e+00> : vector<512xf32>
    %38 = vector.multi_reduction <add>, %37, %cst_15 [1] : vector<512x32xf32> to vector<512xf32>
    %39 = vector.shape_cast %38 : vector<512xf32> to vector<512x1xf32>
    %cst_16 = arith.constant 6.250000e-02 : f32
    %40 = vector.broadcast %cst_16 : f32 to vector<512x1xf32>
    %41 = arith.mulf %39, %40 : vector<512x1xf32>
    %cst_17 = arith.constant 9.99999974E-6 : f32
    %42 = vector.broadcast %cst_17 : f32 to vector<512x1xf32>
    %43 = arith.addf %41, %42 : vector<512x1xf32>
    %44 = math.rsqrt %43 : vector<512x1xf32>
    %cst_18 = arith.constant 0.000000e+00 : f32
    %45 = vector.shape_cast %5 : vector<1x32xi1> to vector<1x32xi1>
    %46 = vector.broadcast %45 : vector<1x32xi1> to vector<512x32xi1>
    %47 = vector.broadcast %cst_18 : f32 to vector<512x32xf32>
    %48 = arith.select %46, %33, %47 : vector<512x32xi1>, vector<512x32xf32>
    %cst_19 = arith.constant dense<0.000000e+00> : vector<512xf32>
    %49 = vector.multi_reduction <add>, %48, %cst_19 [1] : vector<512x32xf32> to vector<512xf32>
    %50 = vector.shape_cast %49 : vector<512xf32> to vector<512x1xf32>
    %cst_20 = arith.constant 6.250000e-02 : f32
    %51 = vector.broadcast %cst_20 : f32 to vector<512x1xf32>
    %52 = arith.mulf %50, %51 : vector<512x1xf32>
    %cst_21 = arith.constant 9.99999974E-6 : f32
    %53 = vector.broadcast %cst_21 : f32 to vector<512x1xf32>
    %54 = arith.addf %52, %53 : vector<512x1xf32>
    %55 = math.rsqrt %54 : vector<512x1xf32>
    %56 = vector.shape_cast %5 : vector<1x32xi1> to vector<1x32xi1>
    %57 = vector.broadcast %56 : vector<1x32xi1> to vector<512x32xi1>
    %58 = vector.shape_cast %55 : vector<512x1xf32> to vector<512x1xf32>
    %59 = vector.broadcast %58 : vector<512x1xf32> to vector<512x32xf32>
    %60 = vector.shape_cast %44 : vector<512x1xf32> to vector<512x1xf32>
    %61 = vector.broadcast %60 : vector<512x1xf32> to vector<512x32xf32>
    %62 = arith.select %57, %59, %61 : vector<512x32xi1>, vector<512x32xf32>
    %63 = arith.mulf %32, %62 : vector<512x32xf32>
    %64 = vector.broadcast %1 : vector<1x32xf32> to vector<512x32xf32>
    %65 = arith.mulf %63, %64 : vector<512x32xf32>
    %66 = vector.broadcast %2 : vector<1x32xf32> to vector<512x32xf32>
    %67 = arith.addf %65, %66 : vector<512x32xf32>
    %68 = vector.shape_cast %67 : vector<512x32xf32> to vector<32x16x32xf32>
    %c0_22 = arith.constant 0 : index
    %c0_23 = arith.constant 0 : index
    %c0_24 = arith.constant 0 : index
    %c0_25 = arith.constant 0 : index
    %69 = vector.load %arg5[%c0_22, %c0_23, %c0_24, %c0_25] : memref<32x2x16x32xf32, #tpu.memory_space<vmem>>, vector<32x1x16x32xf32>
    %70 = vector.shape_cast %69 : vector<32x1x16x32xf32> to vector<32x16x32xf32>
    %71 = vector.shape_cast %68 : vector<32x16x32xf32> to vector<32x1x16x32xf32>
    tpu.vector_store %arg5[%c0_22, %c0_23, %c0_24, %c0_25], %71 {strides = array<i32>} : memref<32x2x16x32xf32, #tpu.memory_space<vmem>>, vector<32x1x16x32xf32>,
    %c1 = arith.constant 1 : index
    %c0_26 = arith.constant 0 : index
    %c0_27 = arith.constant 0 : index
    %72 = vector.load %arg2[%c1, %c0_26, %c0_27] : memref<2x32x32xbf16, #tpu.memory_space<vmem>>, vector<1x32x32xbf16>
    %73 = vector.shape_cast %72 : vector<1x32x32xbf16> to vector<32x32xbf16>
    %cst_28 = arith.constant dense<0.000000e+00> : vector<512x32xf32>
    %74 = tpu.matmul %0, %73, %cst_28 {dimension_numbers = #tpu.dot_dimension_numbers<[1], [0], [0], [1], [0, 0, 1, 1], [], []>} : vector<512x32xbf16>, vector<32x32xbf16>, vector<512x32xf32> -> vector<512x32xf32>
    %cst_29 = arith.constant 0.000000e+00 : f32
    %75 = vector.shape_cast %5 : vector<1x32xi1> to vector<1x32xi1>
    %76 = vector.broadcast %75 : vector<1x32xi1> to vector<512x32xi1>
    %77 = vector.broadcast %cst_29 : f32 to vector<512x32xf32>
    %78 = arith.select %76, %77, %74 : vector<512x32xi1>, vector<512x32xf32>
    %cst_30 = arith.constant dense<0.000000e+00> : vector<512xf32>
    %79 = vector.multi_reduction <add>, %78, %cst_30 [1] : vector<512x32xf32> to vector<512xf32>
    %80 = vector.shape_cast %79 : vector<512xf32> to vector<512x1xf32>
    %cst_31 = arith.constant 6.250000e-02 : f32
    %81 = vector.broadcast %cst_31 : f32 to vector<512x1xf32>
    %82 = arith.mulf %80, %81 : vector<512x1xf32>
    %cst_32 = arith.constant 0.000000e+00 : f32
    %83 = vector.shape_cast %5 : vector<1x32xi1> to vector<1x32xi1>
    %84 = vector.broadcast %83 : vector<1x32xi1> to vector<512x32xi1>
    %85 = vector.broadcast %cst_32 : f32 to vector<512x32xf32>
    %86 = arith.select %84, %74, %85 : vector<512x32xi1>, vector<512x32xf32>
    %cst_33 = arith.constant dense<0.000000e+00> : vector<512xf32>
    %87 = vector.multi_reduction <add>, %86, %cst_33 [1] : vector<512x32xf32> to vector<512xf32>
    %88 = vector.shape_cast %87 : vector<512xf32> to vector<512x1xf32>
    %cst_34 = arith.constant 6.250000e-02 : f32
    %89 = vector.broadcast %cst_34 : f32 to vector<512x1xf32>
    %90 = arith.mulf %88, %89 : vector<512x1xf32>
    %91 = vector.shape_cast %5 : vector<1x32xi1> to vector<1x32xi1>
    %92 = vector.broadcast %91 : vector<1x32xi1> to vector<512x32xi1>
    %93 = vector.shape_cast %90 : vector<512x1xf32> to vector<512x1xf32>
    %94 = vector.broadcast %93 : vector<512x1xf32> to vector<512x32xf32>
    %95 = vector.shape_cast %82 : vector<512x1xf32> to vector<512x1xf32>
    %96 = vector.broadcast %95 : vector<512x1xf32> to vector<512x32xf32>
    %97 = arith.select %92, %94, %96 : vector<512x32xi1>, vector<512x32xf32>
    %98 = arith.subf %74, %97 : vector<512x32xf32>
    %99 = arith.mulf %98, %98 : vector<512x32xf32>
    %cst_35 = arith.constant 0.000000e+00 : f32
    %100 = vector.shape_cast %5 : vector<1x32xi1> to vector<1x32xi1>
    %101 = vector.broadcast %100 : vector<1x32xi1> to vector<512x32xi1>
    %102 = vector.broadcast %cst_35 : f32 to vector<512x32xf32>
    %103 = arith.select %101, %102, %99 : vector<512x32xi1>, vector<512x32xf32>
    %cst_36 = arith.constant dense<0.000000e+00> : vector<512xf32>
    %104 = vector.multi_reduction <add>, %103, %cst_36 [1] : vector<512x32xf32> to vector<512xf32>
    %105 = vector.shape_cast %104 : vector<512xf32> to vector<512x1xf32>
    %cst_37 = arith.constant 6.250000e-02 : f32
    %106 = vector.broadcast %cst_37 : f32 to vector<512x1xf32>
    %107 = arith.mulf %105, %106 : vector<512x1xf32>
    %cst_38 = arith.constant 9.99999974E-6 : f32
    %108 = vector.broadcast %cst_38 : f32 to vector<512x1xf32>
    %109 = arith.addf %107, %108 : vector<512x1xf32>
    %110 = math.rsqrt %109 : vector<512x1xf32>
    %cst_39 = arith.constant 0.000000e+00 : f32
    %111 = vector.shape_cast %5 : vector<1x32xi1> to vector<1x32xi1>
    %112 = vector.broadcast %111 : vector<1x32xi1> to vector<512x32xi1>
    %113 = vector.broadcast %cst_39 : f32 to vector<512x32xf32>
    %114 = arith.select %112, %99, %113 : vector<512x32xi1>, vector<512x32xf32>
    %cst_40 = arith.constant dense<0.000000e+00> : vector<512xf32>
    %115 = vector.multi_reduction <add>, %114, %cst_40 [1] : vector<512x32xf32> to vector<512xf32>
    %116 = vector.shape_cast %115 : vector<512xf32> to vector<512x1xf32>
    %cst_41 = arith.constant 6.250000e-02 : f32
    %117 = vector.broadcast %cst_41 : f32 to vector<512x1xf32>
    %118 = arith.mulf %116, %117 : vector<512x1xf32>
    %cst_42 = arith.constant 9.99999974E-6 : f32
    %119 = vector.broadcast %cst_42 : f32 to vector<512x1xf32>
    %120 = arith.addf %118, %119 : vector<512x1xf32>
    %121 = math.rsqrt %120 : vector<512x1xf32>
    %122 = vector.shape_cast %5 : vector<1x32xi1> to vector<1x32xi1>
    %123 = vector.broadcast %122 : vector<1x32xi1> to vector<512x32xi1>
    %124 = vector.shape_cast %121 : vector<512x1xf32> to vector<512x1xf32>
    %125 = vector.broadcast %124 : vector<512x1xf32> to vector<512x32xf32>
    %126 = vector.shape_cast %110 : vector<512x1xf32> to vector<512x1xf32>
    %127 = vector.broadcast %126 : vector<512x1xf32> to vector<512x32xf32>
    %128 = arith.select %123, %125, %127 : vector<512x32xi1>, vector<512x32xf32>
    %129 = arith.mulf %98, %128 : vector<512x32xf32>
    %130 = vector.broadcast %1 : vector<1x32xf32> to vector<512x32xf32>
    %131 = arith.mulf %129, %130 : vector<512x32xf32>
    %132 = vector.broadcast %2 : vector<1x32xf32> to vector<512x32xf32>
    %133 = arith.addf %131, %132 : vector<512x32xf32>
    %134 = vector.shape_cast %133 : vector<512x32xf32> to vector<32x16x32xf32>
    %c0_43 = arith.constant 0 : index
    %c1_44 = arith.constant 1 : index
    %c0_45 = arith.constant 0 : index
    %c0_46 = arith.constant 0 : index
    %135 = vector.load %arg5[%c0_43, %c1_44, %c0_45, %c0_46] : memref<32x2x16x32xf32, #tpu.memory_space<vmem>>, vector<32x1x16x32xf32>
    %136 = vector.shape_cast %135 : vector<32x1x16x32xf32> to vector<32x16x32xf32>
    %137 = vector.shape_cast %134 : vector<32x16x32xf32> to vector<32x1x16x32xf32>
    tpu.vector_store %arg5[%c0_43, %c1_44, %c0_45, %c0_46], %137 {strides = array<i32>} : memref<32x2x16x32xf32, #tpu.memory_space<vmem>>, vector<32x1x16x32xf32>,
    return
  }
  func.func @transform_0(%arg0: i32) -> (i32, i32) {
    %c0_i32 = arith.constant 0 : i32
    %c0_i32_0 = arith.constant 0 : i32
    return %arg0, %c0_i32 : i32, i32
  }
  func.func @transform_1(%arg0: i32) -> (i32, i32, i32) {
    %c0_i32 = arith.constant 0 : i32
    %c0_i32_0 = arith.constant 0 : i32
    %c0_i32_1 = arith.constant 0 : i32
    %c0_i32_2 = arith.constant 0 : i32
    return %c0_i32, %c0_i32_0, %c0_i32_1 : i32, i32, i32
  }
  func.func @transform_2(%arg0: i32) -> (i32, i32) {
    %c0_i32 = arith.constant 0 : i32
    %c0_i32_0 = arith.constant 0 : i32
    %c0_i32_1 = arith.constant 0 : i32
    return %c0_i32, %c0_i32_0 : i32, i32
  }
  func.func @transform_3(%arg0: i32) -> (i32, i32) {
    %c0_i32 = arith.constant 0 : i32
    %c0_i32_0 = arith.constant 0 : i32
    %c0_i32_1 = arith.constant 0 : i32
    return %c0_i32, %c0_i32_0 : i32, i32
  }
  func.func @transform_4(%arg0: i32) -> (i32, i32, i32, i32) {
    %c0_i32 = arith.constant 0 : i32
    %c0_i32_0 = arith.constant 0 : i32
    %c0_i32_1 = arith.constant 0 : i32
    %c0_i32_2 = arith.constant 0 : i32
    return %arg0, %c0_i32, %c0_i32_0, %c0_i32_1 : i32, i32, i32, i32
  }
}

</mosaic_0001>

<bundles_post_ra>
// kernel: patch_expand_forward.1
= control target key start
LH: loop header
LB: loop body
LE: loop exit
PB: predicated region body
PF: predicated region fallthrough
CT: control target
= control target key end

     0   :  { %vm263_vm0 = vcmask 261120   ;;  %v84_v34 = vlaneseq  ;;  %s11311_s1 = inlined_call_operand.vmem [shape: bf16[2,32,32], index: 1, kind: input, shape index: {}]   ;;  %s11312_s0 = inlined_call_operand.vmem [shape: bf16[512,32], index: 0, kind: input, shape index: {}]   ;;  %s11313_s2 = inlined_call_operand.vmem [shape: f32[1,32], index: 2, kind: input, shape index: {}]   ;;  %s11314_s3 = inlined_call_operand.vmem [shape: f32[1,32], index: 3, kind: input, shape index: {}]   ;;  %s11315_s4 = inlined_call_operand.vmem [shape: f32[32,2,16,32], index: 4, kind: output, shape index: {}]  }
   0x1   :  { %v5444_v0 = vld [vmem:[%s11311_s1] sm:$0xff]   ;;  %v5445_v1 = vld [vmem:[%s11311_s1 + $0x8] sm:$0xff]   ;;  %v6067_v4 = vld [vmem:[%s11312_s0 + $0x10] sm:$0xff]  }
   0x2   :  { %5308 = vmatprep.subr.bf16.mxu0 %v5444_v0  ;;  %v5446_v2 = vld [vmem:[%s11312_s0] sm:$0xff]   ;;  %v6062_v3 = vld [vmem:[%s11312_s0 + $0x8] sm:$0xff]   ;;  %v6076_v5 = vld [vmem:[%s11312_s0 + $0x18] sm:$0xff]   ;;  %v6207_v35 = vand.u32 127, %v84_v34 }
   0x3   :  { %5309 = vmatpush3.bf16.msra.mxu0 %v5444_v0  ;;  %5312 = vmatprep.mubr.msk.bf16.mxu0 %vm263_vm0, %v5446_v2  ;;  %v6081_v6 = vld [vmem:[%s11312_s0 + $0x20] sm:$0xff]   ;;  %v6090_v7 = vld [vmem:[%s11312_s0 + $0x28] sm:$0xff]   ;;  %v6095_v8 = vld [vmem:[%s11312_s0 + $0x30] sm:$0xff]  }
   0x4   :  { %5310 = vmatprep.subr.bf16.mxu0 %v5445_v1  ;;  %5380 = vmatprep.mubr.msk.bf16.mxu1 %vm263_vm0, %v5446_v2  ;;  %v6104_v9 = vld [vmem:[%s11312_s0 + $0x38] sm:$0xff]   ;;  %v6109_v10 = vld [vmem:[%s11312_s0 + $0x40] sm:$0xff]   ;;  %v5455_v11 = vld [vmem:[%s11312_s0 + $0x48] sm:$0xff]   ;;  %vm86_vm1 = vcmp.ge.s32.totalorder %v6207_v35, 16 }
   0x5   :  { %v5456_v12 = vld [vmem:[%s11312_s0 + $0x50] sm:$0xff]   ;;  %v5457_v13 = vld [vmem:[%s11312_s0 + $0x58] sm:$0xff]   ;;  %v5458_v14 = vld [vmem:[%s11312_s0 + $0x60] sm:$0xff]  }
   0x6   :  { %v5459_v15 = vld [vmem:[%s11312_s0 + $0x68] sm:$0xff]   ;;  %v5460_v16 = vld [vmem:[%s11312_s0 + $0x70] sm:$0xff]   ;;  %v5461_v17 = vld [vmem:[%s11312_s0 + $0x78] sm:$0xff]  }
   0x7   :  { %5311 = vmatpush3.bf16.msra.mxu0 %v5445_v1  ;;  %v5462_v18 = vld [vmem:[%s11312_s0 + $0x80] sm:$0xff]   ;;  %v5463_v19 = vld [vmem:[%s11312_s0 + $0x88] sm:$0xff]   ;;  %v5464_v20 = vld [vmem:[%s11312_s0 + $0x90] sm:$0xff]  }
   0x8   :  { %v5465_v21 = vld [vmem:[%s11312_s0 + $0x98] sm:$0xff]   ;;  %v5466_v22 = vld [vmem:[%s11312_s0 + $0xa0] sm:$0xff]   ;;  %v5467_v23 = vld [vmem:[%s11312_s0 + $0xa8] sm:$0xff]  }
   0x9   :  { %v5468_v24 = vld [vmem:[%s11312_s0 + $0xb0] sm:$0xff]   ;;  %v5469_v25 = vld [vmem:[%s11312_s0 + $0xb8] sm:$0xff]   ;;  %v5470_v26 = vld [vmem:[%s11312_s0 + $0xc0] sm:$0xff]  }
   0xa   :  { %5313 = vmatmul.mubr.msk.bf16.vlgmr.msra.gmra.mrb[0].mxu0 %vm263_vm0, %v6062_v3  ;;  %v5471_v27 = vld [vmem:[%s11312_s0 + $0xc8] sm:$0xff]   ;;  %v5472_v28 = vld [vmem:[%s11312_s0 + $0xd0] sm:$0xff]   ;;  %v5473_v29 = vld [vmem:[%s11312_s0 + $0xd8] sm:$0xff]  }
   0xb   :  { %5316 = vmatprep.mubr.msk.bf16.mxu0 %vm263_vm0, %v6067_v4  ;;  %v5474_v30 = vld [vmem:[%s11312_s0 + $0xe0] sm:$0xff]   ;;  %v5475_v31 = vld [vmem:[%s11312_s0 + $0xe8] sm:$0xff]   ;;  %v5476_v32 = vld [vmem:[%s11312_s0 + $0xf0] sm:$0xff]  }
   0xc   :  { %v5477_v33 = vld [vmem:[%s11312_s0 + $0xf8] sm:$0xff]  }
  0x12   :  { %5317 = vmatmul.mubr.msk.bf16.gmra.mrb[4].mxu0 %vm263_vm0, %v6076_v5 }
  0x13   :  { %5320 = vmatprep.mubr.msk.bf16.mxu0 %vm263_vm0, %v6081_v6 }
  0x1a   :  { %5321 = vmatmul.mubr.msk.bf16.gmra.mrb[8].mxu0 %vm263_vm0, %v6090_v7 }
  0x1b   :  { %5324 = vmatprep.mubr.msk.bf16.mxu0 %vm263_vm0, %v6095_v8 }
  0x22   :  { %5325 = vmatmul.mubr.msk.bf16.gmra.mrb[12].mxu0 %vm263_vm0, %v6104_v9 }
  0x23   :  { %5328 = vmatprep.mubr.msk.bf16.mxu0 %vm263_vm0, %v6109_v10 }
  0x2a   :  { %5329 = vmatmul.mubr.msk.bf16.gmra.mrb[16].mxu0 %vm263_vm0, %v5455_v11 }
  0x2b   :  { %5332 = vmatprep.mubr.msk.bf16.mxu0 %vm263_vm0, %v5456_v12 }
  0x32   :  { %5333 = vmatmul.mubr.msk.bf16.gmra.mrb[20].mxu0 %vm263_vm0, %v5457_v13 }
  0x33   :  { %5336 = vmatprep.mubr.msk.bf16.mxu0 %vm263_vm0, %v5458_v14 }
  0x3a   :  { %5337 = vmatmul.mubr.msk.bf16.gmra.mrb[24].mxu0 %vm263_vm0, %v5459_v15 }
  0x3b   :  { %5340 = vmatprep.mubr.msk.bf16.mxu0 %vm263_vm0, %v5460_v16 }
  0x42   :  { %5341 = vmatmul.mubr.msk.bf16.gmra.mrb[28].mxu0 %vm263_vm0, %v5461_v17 }
  0x43   :  { %5344 = vmatprep.mubr.msk.bf16.mxu0 %vm263_vm0, %v5462_v18 }
  0x4a   :  { %5345 = vmatmul.mubr.msk.bf16.gmra.mrb[32].mxu0 %vm263_vm0, %v5463_v19 }
  0x4b   :  { %5348 = vmatprep.mubr.msk.bf16.mxu0 %vm263_vm0, %v5464_v20 }
  0x52   :  { %5349 = vmatmul.mubr.msk.bf16.gmra.mrb[36].mxu0 %vm263_vm0, %v5465_v21 }
  0x53   :  { %5352 = vmatprep.mubr.msk.bf16.mxu0 %vm263_vm0, %v5466_v22 }
  0x5a   :  { %5353 = vmatmul.mubr.msk.bf16.gmra.mrb[40].mxu0 %vm263_vm0, %v5467_v23 }
  0x5b   :  { %5356 = vmatprep.mubr.msk.bf16.mxu0 %vm263_vm0, %v5468_v24 }
  0x62   :  { %5357 = vmatmul.mubr.msk.bf16.gmra.mrb[44].mxu0 %vm263_vm0, %v5469_v25 }
  0x63   :  { %5360 = vmatprep.mubr.msk.bf16.mxu0 %vm263_vm0, %v5470_v26 }
  0x6a   :  { %5361 = vmatmul.mubr.msk.bf16.gmra.mrb[48].mxu0 %vm263_vm0, %v5471_v27 }
  0x6b   :  { %5364 = vmatprep.mubr.msk.bf16.mxu0 %vm263_vm0, %v5472_v28 }
  0x72   :  { %5365 = vmatmul.mubr.msk.bf16.gmra.mrb[52].mxu0 %vm263_vm0, %v5473_v29 }
  0x73   :  { %5368 = vmatprep.mubr.msk.bf16.mxu0 %vm263_vm0, %v5474_v30 }
  0x7a   :  { %5369 = vmatmul.mubr.msk.bf16.gmra.mrb[56].mxu0 %vm263_vm0, %v5475_v31 }
  0x7b   :  { %5372 = vmatprep.mubr.msk.bf16.mxu0 %vm263_vm0, %v5476_v32 }
  0x82   :  { %5373 = vmatmul.mubr.msk.bf16.gmra.mrb[60].mxu0 %vm263_vm0, %v5477_v33 }
  0xdd   :  { %v6210_v36 = vpop.f32.mrb[0].mxu0 }
  0xde   :  { %v6212_v37 = vpop.f32.mrb[1].mxu0  ;;  %v973_v38 = vsel %vm86_vm1, %v6210_v36, 0.0  ;;  %v653_v39 = vsel %vm86_vm1, 0.0, %v6210_v36 }
  0xdf   :  { %v6220_v40 = vpop.f32.mrb[2].mxu0  ;;  %v1041_v41 = vsel %vm263_vm0, %v973_v38, 0.0  ;;  %v721_v42 = vsel %vm263_vm0, %v653_v39, 0.0  ;;  %v651_v44 = vsel %vm86_vm1, 0.0, %v6212_v37  ;;  %v971_v48 = vsel %vm86_vm1, %v6212_v37, 0.0 }
  0xe0   :  { %1042 = vadd.xlane.f32.xlu0 %v1041_v41  ;;  %722 = vadd.xlane.f32.xlu1 %v721_v42  ;;  %v6224_v43 = vpop.f32.mrb[3].mxu0  ;;  %v654_v45 = vsel %vm86_vm1, 0.0, %v6220_v40  ;;  %v715_v46 = vsel %vm263_vm0, %v651_v44, 0.0  ;;  %v974_v49 = vsel %vm86_vm1, %v6220_v40, 0.0  ;;  %v1035_v52 = vsel %vm263_vm0, %v971_v48, 0.0 }
  0xe1   :  { %v724_v47 = vsel %vm263_vm0, %v654_v45, 0.0  ;;  %v1044_v53 = vsel %vm263_vm0, %v974_v49, 0.0  ;;  %v972_v56 = vsel %vm86_vm1, %v6224_v43, 0.0  ;;  %v652_v57 = vsel %vm86_vm1, 0.0, %v6224_v43 }
  0xe2   :  { %v1038_v58 = vsel %vm263_vm0, %v972_v56, 0.0  ;;  %v718_v59 = vsel %vm263_vm0, %v652_v57, 0.0 }
  0xe4   :  { %716 = vadd.xlane.f32.xlu0 %v715_v46  ;;  %725 = vadd.xlane.f32.xlu1 %v724_v47 }
  0xe5   :  { %v6240_v50 = vpop.f32.mrb[4].mxu0 }
  0xe6   :  { %v6242_v51 = vpop.f32.mrb[5].mxu0  ;;  %v657_v60 = vsel %vm86_vm1, 0.0, %v6240_v50  ;;  %v977_v11 = vsel %vm86_vm1, %v6240_v50, 0.0 }
  0xe7   :  { %v6246_v54 = vpop.f32.mrb[6].mxu0  ;;  %v733_v0 = vsel %vm263_vm0, %v657_v60, 0.0  ;;  %v1053_v14 = vsel %vm263_vm0, %v977_v11, 0.0  ;;  %v655_v16 = vsel %vm86_vm1, 0.0, %v6242_v51  ;;  %v975_v23 = vsel %vm86_vm1, %v6242_v51, 0.0 }
  0xe8   :  { %1036 = vadd.xlane.f32.xlu0 %v1035_v52  ;;  %1045 = vadd.xlane.f32.xlu1 %v1044_v53  ;;  %v6248_v55 = vpop.f32.mrb[7].mxu0  ;;  %v658_v61 = vsel %vm86_vm1, 0.0, %v6246_v54  ;;  %v978_v12 = vsel %vm86_vm1, %v6246_v54, 0.0  ;;  %v727_v20 = vsel %vm263_vm0, %v655_v16, 0.0  ;;  %v1047_v26 = vsel %vm263_vm0, %v975_v23, 0.0 }
  0xe9   :  { %v736_v1 = vsel %vm263_vm0, %v658_v61, 0.0  ;;  %v1056_v15 = vsel %vm263_vm0, %v978_v12, 0.0  ;;  %v656_v17 = vsel %vm86_vm1, 0.0, %v6248_v55  ;;  %v976_v24 = vsel %vm86_vm1, %v6248_v55, 0.0 }
  0xea   :  { %v730_v21 = vsel %vm263_vm0, %v656_v17, 0.0  ;;  %v1050_v27 = vsel %vm263_vm0, %v976_v24, 0.0 }
  0xec   :  { %1039 = vadd.xlane.f32.xlu1 %v1038_v58  ;;  %719 = vadd.xlane.f32.xlu0 %v718_v59 }
  0xed   :  { %v6264_v62 = vpop.f32.mrb[8].mxu0 }
  0xee   :  { %v6266_v63 = vpop.f32.mrb[9].mxu0  ;;  %v661_v28 = vsel %vm86_vm1, 0.0, %v6264_v62  ;;  %v981_v38 = vsel %vm86_vm1, %v6264_v62, 0.0 }
  0xef   :  { %v6270_v2 = vpop.f32.mrb[10].mxu0  ;;  %v745_v32 = vsel %vm263_vm0, %v661_v28, 0.0  ;;  %v1065_v42 = vsel %vm263_vm0, %v981_v38, 0.0  ;;  %v659_v45 = vsel %vm86_vm1, 0.0, %v6266_v63  ;;  %v979_v56 = vsel %vm86_vm1, %v6266_v63, 0.0 }
  0xf0   :  { %734 = vadd.xlane.f32.xlu0 %v733_v0  ;;  %737 = vadd.xlane.f32.xlu1 %v736_v1  ;;  %v6278_v13 = vpop.f32.mrb[11].mxu0  ;;  %v662_v29 = vsel %vm86_vm1, 0.0, %v6270_v2  ;;  %v982_v39 = vsel %vm86_vm1, %v6270_v2, 0.0  ;;  %v739_v49 = vsel %vm263_vm0, %v659_v45, 0.0  ;;  %v1059_v59 = vsel %vm263_vm0, %v979_v56, 0.0 }
  0xf1   :  { %v748_v33 = vsel %vm263_vm0, %v662_v29, 0.0  ;;  %v1068_v44 = vsel %vm263_vm0, %v982_v39, 0.0  ;;  %v660_v46 = vsel %vm86_vm1, 0.0, %v6278_v13  ;;  %v980_v57 = vsel %vm86_vm1, %v6278_v13, 0.0 }
  0xf2   :  { %v742_v52 = vsel %vm263_vm0, %v660_v46, 0.0  ;;  %v1062_v60 = vsel %vm263_vm0, %v980_v57, 0.0 }
  0xf4   :  { %1054 = vadd.xlane.f32.xlu0 %v1053_v14  ;;  %1057 = vadd.xlane.f32.xlu1 %v1056_v15 }
  0xf5   :  { %v6288_v18 = vpop.f32.mrb[12].mxu0 }
  0xf6   :  { %v6290_v19 = vpop.f32.mrb[13].mxu0  ;;  %v665_v61 = vsel %vm86_vm1, 0.0, %v6288_v18  ;;  %v985_v16 = vsel %vm86_vm1, %v6288_v18, 0.0 }
  0xf7   :  { %v6294_v22 = vpop.f32.mrb[14].mxu0  ;;  %v757_v12 = vsel %vm263_vm0, %v665_v61, 0.0  ;;  %v663_v24 = vsel %vm86_vm1, 0.0, %v6290_v19  ;;  %v983_v38 = vsel %vm86_vm1, %v6290_v19, 0.0 }
  0xf8   :  { %728 = vadd.xlane.f32.xlu0 %v727_v20  ;;  %731 = vadd.xlane.f32.xlu1 %v730_v21  ;;  %v6302_v25 = vpop.f32.mrb[15].mxu0  ;;  %v666_v0 = vsel %vm86_vm1, 0.0, %v6294_v22  ;;  %v986_v17 = vsel %vm86_vm1, %v6294_v22, 0.0  ;;  %v1077_v21 = vsel %vm263_vm0, %v985_v16, 0.0  ;;  %v751_v29 = vsel %vm263_vm0, %v663_v24, 0.0 }
  0xf9   :  { %v760_v14 = vsel %vm263_vm0, %v666_v0, 0.0  ;;  %v1080_v23 = vsel %vm263_vm0, %v986_v17, 0.0  ;;  %v984_v39 = vsel %vm86_vm1, %v6302_v25, 0.0 }
  0xfa   :  { %v1074_v45 = vsel %vm263_vm0, %v984_v39, 0.0 }
  0xfc   :  { %1048 = vadd.xlane.f32.xlu0 %v1047_v26  ;;  %1051 = vadd.xlane.f32.xlu1 %v1050_v27  ;;  %v664_v26 = vsel %vm86_vm1, 0.0, %v6302_v25 }
  0xfd   :  { %v6312_v30 = vpop.f32.mrb[16].mxu0 }
  0xfe   :  { %v6314_v31 = vpop.f32.mrb[17].mxu0  ;;  %v669_v46 = vsel %vm86_vm1, 0.0, %v6312_v30  ;;  %v989_v61 = vsel %vm86_vm1, %v6312_v30, 0.0 }
  0xff   :  { %11543 = vst [vmem:[#allocation2_spill] sm:$0xff] %v6314_v31  ;;  %v6318_v34 = vpop.f32.mrb[18].mxu0  ;;  %v769_v57 = vsel %vm263_vm0, %v669_v46, 0.0  ;;  %v667_v17 = vsel %vm86_vm1, 0.0, %v6314_v31 }
 0x100   :  { %11544 = vst [vmem:[#allocation3_spill] sm:$0xff] %v6318_v34  ;;  %746 = vadd.xlane.f32.xlu0 %v745_v32  ;;  %749 = vadd.xlane.f32.xlu1 %v748_v33  ;;  %v6326_v41 = vpop.f32.mrb[19].mxu0  ;;  %v754_v32 = vsel %vm263_vm0, %v664_v26, 0.0  ;;  %v990_v0 = vsel %vm86_vm1, %v6318_v34, 0.0  ;;  %v763_v26 = vsel %vm263_vm0, %v667_v17, 0.0 }
 0x101   :  { %11545 = vst [vmem:[#allocation4_spill] sm:$0xff] %v6326_v41  ;;  %v1092_v16 = vsel %vm263_vm0, %v990_v0, 0.0  ;;  %v988_v39 = vsel %vm86_vm1, %v6326_v41, 0.0 }
 0x102   :  { %v1086_v46 = vsel %vm263_vm0, %v988_v39, 0.0 }
 0x104   :  { %1066 = vadd.xlane.f32.xlu0 %v1065_v42  ;;  %1069 = vadd.xlane.f32.xlu1 %v1068_v44  ;;  %v1071_v44 = vsel %vm263_vm0, %v983_v38, 0.0  ;;  %v987_v38 = vsel %vm86_vm1, %v6314_v31, 0.0 }
 0x105   :  { %v6336_v47 = vpop.f32.mrb[20].mxu0 }
 0x106   :  { %11546 = vst [vmem:[#allocation5_spill] sm:$0xff] %v6336_v47  ;;  %v6338_v48 = vpop.f32.mrb[21].mxu0  ;;  %v993_v17 = vsel %vm86_vm1, %v6336_v47, 0.0 }
 0x107   :  { %11547 = vst [vmem:[#allocation6_spill] sm:$0xff] %v6338_v48  ;;  %v6342_v53 = vpop.f32.mrb[22].mxu0  ;;  %v671_v39 = vsel %vm86_vm1, 0.0, %v6338_v48 }
 0x108   :  { %11548 = vst [vmem:[#allocation7_spill] sm:$0xff] %v6342_v53  ;;  %740 = vadd.xlane.f32.xlu0 %v739_v49  ;;  %743 = vadd.xlane.f32.xlu1 %v742_v52  ;;  %v6350_v58 = vpop.f32.mrb[23].mxu0  ;;  %v670_v49 = vsel %vm86_vm1, 0.0, %v6318_v34 }
 0x109   :  { %11549 = vst [vmem:[#allocation8_spill] sm:$0xff] %v6350_v58 }
 0x10c   :  { %1060 = vadd.xlane.f32.xlu0 %v1059_v59  ;;  %1063 = vadd.xlane.f32.xlu1 %v1062_v60  ;;  %v772_v59 = vsel %vm263_vm0, %v670_v49, 0.0  ;;  %v673_v49 = vsel %vm86_vm1, 0.0, %v6336_v47 }
 0x10d   :  { %v6360_v1 = vpop.f32.mrb[24].mxu0  ;;  %v781_v0 = vsel %vm263_vm0, %v673_v49, 0.0 }
 0x10e   :  { %11550 = vst [vmem:[#allocation9_spill] sm:$0xff] %v6360_v1  ;;  %v6362_v11 = vpop.f32.mrb[25].mxu0 }
 0x10f   :  { %11551 = vst [vmem:[#allocation10_spill] sm:$0xff] %v6362_v11  ;;  %v6366_v15 = vpop.f32.mrb[26].mxu0 }
 0x110   :  { %11552 = vst [vmem:[#allocation11_spill] sm:$0xff] %v6366_v15  ;;  %758 = vadd.xlane.f32.xlu0 %v757_v12  ;;  %761 = vadd.xlane.f32.xlu1 %v760_v14  ;;  %v6374_v20 = vpop.f32.mrb[27].mxu0  ;;  %v1089_v14 = vsel %vm263_vm0, %v989_v61, 0.0 }
 0x111   :  { %11553 = vst [vmem:[#allocation12_spill] sm:$0xff] %v6374_v20 }
 0x114   :  { %1078 = vadd.xlane.f32.xlu0 %v1077_v21  ;;  %1081 = vadd.xlane.f32.xlu1 %v1080_v23  ;;  %v668_v21 = vsel %vm86_vm1, 0.0, %v6326_v41 }
 0x115   :  { %v6384_v27 = vpop.f32.mrb[28].mxu0 }
 0x116   :  { %11554 = vst [vmem:[#allocation13_spill] sm:$0xff] %v6384_v27  ;;  %v6386_v28 = vpop.f32.mrb[29].mxu0 }
 0x117   :  { %11555 = vst [vmem:[#allocation14_spill] sm:$0xff] %v6386_v28  ;;  %v6390_v33 = vpop.f32.mrb[30].mxu0 }
 0x118   :  { %11556 = vst [vmem:[#allocation15_spill] sm:$0xff] %v6390_v33  ;;  %752 = vadd.xlane.f32.xlu0 %v751_v29  ;;  %755 = vadd.xlane.f32.xlu1 %v754_v32  ;;  %v6398_v42 = vpop.f32.mrb[31].mxu0  ;;  %v766_v29 = vsel %vm263_vm0, %v668_v21, 0.0  ;;  %v994_v21 = vsel %vm86_vm1, %v6342_v53, 0.0 }
 0x119   :  { %11557 = vst [vmem:[#allocation16_spill] sm:$0xff] %v6398_v42 }
 0x11c   :  { %1072 = vadd.xlane.f32.xlu0 %v1071_v44  ;;  %1075 = vadd.xlane.f32.xlu1 %v1074_v45  ;;  %v1083_v45 = vsel %vm263_vm0, %v987_v38, 0.0  ;;  %v1104_v38 = vsel %vm263_vm0, %v994_v21, 0.0  ;;  %v992_v21 = vsel %vm86_vm1, %v6350_v58, 0.0 }
 0x11d   :  { %v6408_v52 = vpop.f32.mrb[32].mxu0 }
 0x11e   :  { %11558 = vst [vmem:[#allocation17_spill] sm:$0xff] %v6408_v52  ;;  %v6410_v56 = vpop.f32.mrb[33].mxu0 }
 0x11f   :  { %11559 = vst [vmem:[#allocation18_spill] sm:$0xff] %v6410_v56  ;;  %v6414_v60 = vpop.f32.mrb[34].mxu0 }
 0x120   :  { %11560 = vst [vmem:[#allocation19_spill] sm:$0xff] %v6414_v60  ;;  %770 = vadd.xlane.f32.xlu0 %v769_v57  ;;  %773 = vadd.xlane.f32.xlu1 %v772_v59  ;;  %v6422_v12 = vpop.f32.mrb[35].mxu0  ;;  %v674_v57 = vsel %vm86_vm1, 0.0, %v6342_v53 }
 0x121   :  { %11561 = vst [vmem:[#allocation20_spill] sm:$0xff] %v6422_v12 }
 0x124   :  { %1090 = vadd.xlane.f32.xlu0 %v1089_v14  ;;  %1093 = vadd.xlane.f32.xlu1 %v1092_v16  ;;  %v784_v14 = vsel %vm263_vm0, %v674_v57, 0.0  ;;  %v775_v57 = vsel %vm263_vm0, %v671_v39, 0.0  ;;  %v1098_v39 = vsel %vm263_vm0, %v992_v21, 0.0  ;;  %v997_v21 = vsel %vm86_vm1, %v6360_v1, 0.0 }
 0x125   :  { %v6432_v23 = vpop.f32.mrb[36].mxu0  ;;  %v1113_v47 = vsel %vm263_vm0, %v997_v21, 0.0 }
 0x126   :  { %11562 = vst [vmem:[#allocation21_spill] sm:$0xff] %v6432_v23  ;;  %v6434_v24 = vpop.f32.mrb[37].mxu0 }
 0x127   :  { %v6438_v32 = vpop.f32.mrb[38].mxu0 }
 0x128   :  { %11563 = vst [vmem:[#allocation22_spill] sm:$0xff] %v6438_v32  ;;  %764 = vadd.xlane.f32.xlu0 %v763_v26  ;;  %767 = vadd.xlane.f32.xlu1 %v766_v29  ;;  %v6446_v44 = vpop.f32.mrb[39].mxu0  ;;  %v1101_v29 = vsel %vm263_vm0, %v993_v17, 0.0  ;;  %v991_v17 = vsel %vm86_vm1, %v6338_v48, 0.0 }
 0x12c   :  { %1084 = vadd.xlane.f32.xlu0 %v1083_v45  ;;  %1087 = vadd.xlane.f32.xlu1 %v1086_v46  ;;  %v672_v45 = vsel %vm86_vm1, 0.0, %v6350_v58 }
 0x12d   :  { %v6456_v59 = vpop.f32.mrb[40].mxu0 }
 0x12e   :  { %v6458_v61 = vpop.f32.mrb[41].mxu0 }
 0x12f   :  { %v6462_v16 = vpop.f32.mrb[42].mxu0 }
 0x130   :  { %782 = vadd.xlane.f32.xlu0 %v781_v0  ;;  %785 = vadd.xlane.f32.xlu1 %v784_v14  ;;  %v6470_v26 = vpop.f32.mrb[43].mxu0  ;;  %v778_v0 = vsel %vm263_vm0, %v672_v45, 0.0  ;;  %v677_v45 = vsel %vm86_vm1, 0.0, %v6360_v1 }
 0x131   :  { %v793_v58 = vsel %vm263_vm0, %v677_v45, 0.0 }
 0x134   :  { %1102 = vadd.xlane.f32.xlu0 %v1101_v29  ;;  %1105 = vadd.xlane.f32.xlu1 %v1104_v38  ;;  %v1095_v38 = vsel %vm263_vm0, %v991_v17, 0.0 }
 0x135   :  { %v6480_v46 = vpop.f32.mrb[44].mxu0 }
 0x136   :  { %v6482_v49 = vpop.f32.mrb[45].mxu0 }
 0x137   :  { %v6486_v14 = vpop.f32.mrb[46].mxu0 }
 0x138   :  { %776 = vadd.xlane.f32.xlu0 %v775_v57  ;;  %779 = vadd.xlane.f32.xlu1 %v778_v0  ;;  %v6494_v29 = vpop.f32.mrb[47].mxu0  ;;  %v678_v57 = vsel %vm86_vm1, 0.0, %v6366_v15 }
 0x139   :  { %v796_v17 = vsel %vm263_vm0, %v678_v57, 0.0  ;;  %v676_v57 = vsel %vm86_vm1, 0.0, %v6374_v20 }
 0x13a   :  { %v790_v21 = vsel %vm263_vm0, %v676_v57, 0.0  ;;  %v682_v57 = vsel %vm86_vm1, 0.0, %v6390_v33 }
 0x13c   :  { %1096 = vadd.xlane.f32.xlu0 %v1095_v38  ;;  %1099 = vadd.xlane.f32.xlu1 %v1098_v39  ;;  %v998_v38 = vsel %vm86_vm1, %v6366_v15, 0.0 }
 0x13d   :  { %v6504_v0 = vpop.f32.mrb[48].mxu0  ;;  %v1116_v45 = vsel %vm263_vm0, %v998_v38, 0.0  ;;  %v996_v38 = vsel %vm86_vm1, %v6374_v20, 0.0 }
 0x13e   :  { %v6506_v48 = vpop.f32.mrb[49].mxu0 }
 0x13f   :  { %v6510_v53 = vpop.f32.mrb[50].mxu0 }
 0x140   :  { %794 = vadd.xlane.f32.xlu0 %v793_v58  ;;  %797 = vadd.xlane.f32.xlu1 %v796_v17  ;;  %v6518_v39 = vpop.f32.mrb[51].mxu0  ;;  %v675_v58 = vsel %vm86_vm1, 0.0, %v6362_v11 }
 0x141   :  { %v787_v15 = vsel %vm263_vm0, %v675_v58, 0.0  ;;  %v1110_v58 = vsel %vm263_vm0, %v996_v38, 0.0  ;;  %v1002_v38 = vsel %vm86_vm1, %v6390_v33, 0.0 }
 0x144   :  { %1114 = vadd.xlane.f32.xlu0 %v1113_v47  ;;  %1117 = vadd.xlane.f32.xlu1 %v1116_v45  ;;  %v995_v47 = vsel %vm86_vm1, %v6362_v11, 0.0 }
 0x145   :  { %v6528_v17 = vpop.f32.mrb[52].mxu0  ;;  %v1107_v31 = vsel %vm263_vm0, %v995_v47, 0.0  ;;  %v808_v47 = vsel %vm263_vm0, %v682_v57, 0.0  ;;  %v680_v57 = vsel %vm86_vm1, 0.0, %v6398_v42 }
 0x146   :  { %v6530_v1 = vpop.f32.mrb[53].mxu0 }
 0x147   :  { %v6534_v41 = vpop.f32.mrb[54].mxu0 }
 0x148   :  { %788 = vadd.xlane.f32.xlu0 %v787_v15  ;;  %791 = vadd.xlane.f32.xlu1 %v790_v21  ;;  %v6542_v45 = vpop.f32.mrb[55].mxu0  ;;  %v681_v15 = vsel %vm86_vm1, 0.0, %v6384_v27 }
 0x149   :  { %v805_v20 = vsel %vm263_vm0, %v681_v15, 0.0  ;;  %v1128_v15 = vsel %vm263_vm0, %v1002_v38, 0.0  ;;  %v1000_v38 = vsel %vm86_vm1, %v6398_v42, 0.0 }
 0x14c   :  { %1108 = vadd.xlane.f32.xlu0 %v1107_v31  ;;  %1111 = vadd.xlane.f32.xlu1 %v1110_v58  ;;  %v1001_v31 = vsel %vm86_vm1, %v6384_v27, 0.0 }
 0x14d   :  { %v6552_v21 = vpop.f32.mrb[56].mxu0 }
 0x14e   :  { %v6554_v11 = vpop.f32.mrb[57].mxu0 }
 0x14f   :  { %11564 = vst [vmem:[#allocation23_spill] sm:$0xff] %v6554_v11  ;;  %v6558_v34 = vpop.f32.mrb[58].mxu0  ;;  %v1125_v11 = vsel %vm263_vm0, %v1001_v31, 0.0  ;;  %v802_v31 = vsel %vm263_vm0, %v680_v57, 0.0  ;;  %v686_v57 = vsel %vm86_vm1, 0.0, %v6414_v60 }
 0x150   :  { %806 = vadd.xlane.f32.xlu0 %v805_v20  ;;  %809 = vadd.xlane.f32.xlu1 %v808_v47  ;;  %v6566_v58 = vpop.f32.mrb[59].mxu0  ;;  %v679_v20 = vsel %vm86_vm1, 0.0, %v6386_v28  ;;  %v820_v42 = vsel %vm263_vm0, %v686_v57, 0.0 }
 0x151   :  { %11565 = vst [vmem:[#allocation24_spill] sm:$0xff] %v6566_v58  ;;  %v799_v33 = vsel %vm263_vm0, %v679_v20, 0.0  ;;  %v1122_v20 = vsel %vm263_vm0, %v1000_v38, 0.0 }
 0x154   :  { %1126 = vadd.xlane.f32.xlu0 %v1125_v11  ;;  %1129 = vadd.xlane.f32.xlu1 %v1128_v15  ;;  %v999_v11 = vsel %vm86_vm1, %v6386_v28, 0.0  ;;  %v1007_v28 = vsel %vm86_vm1, %v6434_v24, 0.0 }
 0x155   :  { %v6576_v47 = vpop.f32.mrb[60].mxu0 }
 0x156   :  { %11566 = vst [vmem:[#allocation25_spill] sm:$0xff] %v6576_v47  ;;  %v6578_v27 = vpop.f32.mrb[61].mxu0 }
 0x157   :  { %11567 = vst [vmem:[#allocation26_spill] sm:$0xff] %v6578_v27  ;;  %v6582_v58 = vpop.f32.mrb[62].mxu0  ;;  %v1119_v27 = vsel %vm263_vm0, %v999_v11, 0.0  ;;  %v1005_v11 = vsel %vm86_vm1, %v6408_v52, 0.0 }
 0x158   :  { %11568 = vst [vmem:[#allocation27_spill] sm:$0xff] %v6582_v58  ;;  %800 = vadd.xlane.f32.xlu0 %v799_v33  ;;  %803 = vadd.xlane.f32.xlu1 %v802_v31  ;;  %v6590_v15 = vpop.f32.mrb[63].mxu0  ;;  %v685_v33 = vsel %vm86_vm1, 0.0, %v6408_v52  ;;  %v1137_v38 = vsel %vm263_vm0, %v1005_v11, 0.0  ;;  %v1003_v11 = vsel %vm86_vm1, %v6410_v56, 0.0 }
 0x159   :  { %11569 = vst [vmem:[#allocation28_spill] sm:$0xff] %v6590_v15  ;;  %v817_v31 = vsel %vm263_vm0, %v685_v33, 0.0  ;;  %v683_v33 = vsel %vm86_vm1, 0.0, %v6410_v56 }
 0x15a   :  { %v811_v57 = vsel %vm263_vm0, %v683_v33, 0.0  ;;  %v689_v33 = vsel %vm86_vm1, 0.0, %v6432_v23 }
 0x15c   :  { %1120 = vadd.xlane.f32.xlu0 %v1119_v27  ;;  %1123 = vadd.xlane.f32.xlu1 %v1122_v20  ;;  %v1006_v27 = vsel %vm86_vm1, %v6414_v60, 0.0 }
 0x15d   :  { %v1140_v20 = vsel %vm263_vm0, %v1006_v27, 0.0  ;;  %v1004_v27 = vsel %vm86_vm1, %v6422_v12, 0.0 }
 0x160   :  { %818 = vadd.xlane.f32.xlu0 %v817_v31  ;;  %821 = vadd.xlane.f32.xlu1 %v820_v42  ;;  %v684_v42 = vsel %vm86_vm1, 0.0, %v6422_v12  ;;  %v829_v12 = vsel %vm263_vm0, %v689_v33, 0.0 }
 0x161   :  { %v814_v31 = vsel %vm263_vm0, %v684_v42, 0.0  ;;  %v690_v42 = vsel %vm86_vm1, 0.0, %v6438_v32 }
 0x164   :  { %1138 = vadd.xlane.f32.xlu0 %v1137_v38  ;;  %1141 = vadd.xlane.f32.xlu1 %v1140_v20  ;;  %v1131_v38 = vsel %vm263_vm0, %v1003_v11, 0.0  ;;  %v1134_v20 = vsel %vm263_vm0, %v1004_v27, 0.0  ;;  %v832_v11 = vsel %vm263_vm0, %v690_v42, 0.0 }
 0x168   :  { %812 = vadd.xlane.f32.xlu0 %v811_v57  ;;  %815 = vadd.xlane.f32.xlu1 %v814_v31 }
 0x16c   :  { %1132 = vadd.xlane.f32.xlu0 %v1131_v38  ;;  %1135 = vadd.xlane.f32.xlu1 %v1134_v20  ;;  %v1009_v38 = vsel %vm86_vm1, %v6432_v23, 0.0  ;;  %v1010_v20 = vsel %vm86_vm1, %v6438_v32, 0.0 }
 0x16d   :  { %v1043_v57 = vpop.xlane.xlu0 %1042  ;;  %v723_v31 = vpop.xlane.xlu1 %722  ;;  %v1149_v33 = vsel %vm263_vm0, %v1009_v38, 0.0  ;;  %v1152_v42 = vsel %vm263_vm0, %v1010_v20, 0.0 }
 0x16e   :  { %v1229_v56 = vmul.f32 0.0625, %v1043_v57  ;;  %v909_v60 = vmul.f32 0.0625, %v723_v31 }
 0x170   :  { %v1293_v27 = vsel %vm86_vm1, %v1229_v56, %v909_v60  ;;  %830 = vadd.xlane.f32.xlu0 %v829_v12  ;;  %833 = vadd.xlane.f32.xlu1 %v832_v11  ;;  %v687_v56 = vsel %vm86_vm1, 0.0, %v6434_v24  ;;  %v688_v60 = vsel %vm86_vm1, 0.0, %v6446_v44 }
 0x171   :  { %v717_v52 = vpop.xlane.xlu0 %716  ;;  %v726_v57 = vpop.xlane.xlu1 %725  ;;  %v6643_v31 = vsub.f32 %v6210_v36, %v1293_v27  ;;  %v823_v38 = vsel %vm263_vm0, %v687_v56, 0.0  ;;  %v826_v20 = vsel %vm263_vm0, %v688_v60, 0.0 }
 0x172   :  { %v907_v32 = vmul.f32 0.0625, %v717_v52  ;;  %v910_v23 = vmul.f32 0.0625, %v726_v57  ;;  %v1008_v52 = vsel %vm86_vm1, %v6446_v44, 0.0 }
 0x173   :  { %11570 = vst [vmem:[#allocation29_spill] sm:$0xff] %v6643_v31 }
 0x174   :  { %1150 = vadd.xlane.f32.xlu0 %v1149_v33  ;;  %1153 = vadd.xlane.f32.xlu1 %v1152_v42 }
 0x175   :  { %v1037_v12 = vpop.xlane.xlu0 %1036  ;;  %v1046_v11 = vpop.xlane.xlu1 %1045 }
 0x176   :  { %v1227_v36 = vmul.f32 0.0625, %v1037_v12  ;;  %v1230_v27 = vmul.f32 0.0625, %v1046_v11  ;;  %v1143_v11 = vsel %vm263_vm0, %v1007_v28, 0.0 }
 0x178   :  { %v1291_v33 = vsel %vm86_vm1, %v1227_v36, %v907_v32  ;;  %v1294_v42 = vsel %vm86_vm1, %v1230_v27, %v910_v23  ;;  %824 = vadd.xlane.f32.xlu0 %v823_v38  ;;  %827 = vadd.xlane.f32.xlu1 %v826_v20  ;;  %v1146_v36 = vsel %vm263_vm0, %v1008_v52, 0.0  ;;  %v693_v38 = vsel %vm86_vm1, 0.0, %v6456_v59 }
 0x179   :  { %v1040_v57 = vpop.xlane.xlu1 %1039  ;;  %v720_v56 = vpop.xlane.xlu0 %719  ;;  %v6666_v60 = vsub.f32 %v6220_v40, %v1294_v42  ;;  %v6669_v32 = vsub.f32 %v6212_v37, %v1291_v33  ;;  %v694_v37 = vsel %vm86_vm1, 0.0, %v6462_v16  ;;  %v5478_v40 = vld [vmem:[%s11311_s1 + $0x10] sm:$0xff]   ;;  %v5479_v42 = vld [vmem:[%s11311_s1 + $0x18] sm:$0xff]   ;;  %v841_v52 = vsel %vm263_vm0, %v693_v38, 0.0 }
 0x17a   :  { %v1228_v12 = vmul.f32 0.0625, %v1040_v57  ;;  %v908_v23 = vmul.f32 0.0625, %v720_v56  ;;  %5376 = vmatprep.subr.bf16.mxu1 %v5478_v40  ;;  %v844_v57 = vsel %vm263_vm0, %v694_v37, 0.0  ;;  %v1013_v56 = vsel %vm86_vm1, %v6456_v59, 0.0 }
 0x17b   :  { %11571 = vst [vmem:[#allocation30_spill] sm:$0xff] %v6666_v60  ;;  %11572 = vst [vmem:[#allocation31_spill] sm:$0xff] %v6669_v32  ;;  %5377 = vmatpush3.bf16.msra.mxu1 %v5478_v40  ;;  %v1161_v37 = vsel %vm263_vm0, %v1013_v56, 0.0 }
 0x17c   :  { %v1292_v27 = vsel %vm86_vm1, %v1228_v12, %v908_v23  ;;  %1144 = vadd.xlane.f32.xlu0 %v1143_v11  ;;  %1147 = vadd.xlane.f32.xlu1 %v1146_v36 }
 0x17d   :  { %v735_v28 = vpop.xlane.xlu0 %734  ;;  %v738_v20 = vpop.xlane.xlu1 %737  ;;  %v6685_v33 = vsub.f32 %v6224_v43, %v1292_v27  ;;  %v1014_v43 = vsel %vm86_vm1, %v6462_v16, 0.0  ;;  %5378 = vmatprep.subr.bf16.mxu1 %v5479_v42 }
 0x17e   :  { %v913_v11 = vmul.f32 0.0625, %v735_v28  ;;  %v914_v36 = vmul.f32 0.0625, %v738_v20  ;;  %v1164_v40 = vsel %vm263_vm0, %v1014_v43, 0.0  ;;  %v691_v28 = vsel %vm86_vm1, 0.0, %v6458_v61 }
 0x17f   :  { %11573 = vst [vmem:[#allocation32_spill] sm:$0xff] %v6685_v33  ;;  %5379 = vmatpush3.bf16.msra.mxu1 %v5479_v42  ;;  %v692_v20 = vsel %vm86_vm1, 0.0, %v6470_v26 }
 0x180   :  { %842 = vadd.xlane.f32.xlu0 %v841_v52  ;;  %845 = vadd.xlane.f32.xlu1 %v844_v57 }
 0x181   :  { %v1055_v12 = vpop.xlane.xlu0 %1054  ;;  %v1058_v23 = vpop.xlane.xlu1 %1057 }
 0x182   :  { %v1233_v27 = vmul.f32 0.0625, %v1055_v12  ;;  %v1234_v38 = vmul.f32 0.0625, %v1058_v23  ;;  %5381 = vmatmul.mubr.msk.bf16.vlgmr.msra.gmra.mrb[0].mxu1 %vm263_vm0, %v6062_v3  ;;  %v835_v23 = vsel %vm263_vm0, %v691_v28, 0.0 }
 0x183   :  { %5384 = vmatprep.mubr.msk.bf16.mxu1 %vm263_vm0, %v6067_v4 }
 0x184   :  { %v1297_v52 = vsel %vm86_vm1, %v1233_v27, %v913_v11  ;;  %v1298_v57 = vsel %vm86_vm1, %v1234_v38, %v914_v36  ;;  %1162 = vadd.xlane.f32.xlu0 %v1161_v37  ;;  %1165 = vadd.xlane.f32.xlu1 %v1164_v40  ;;  %v838_v11 = vsel %vm263_vm0, %v692_v20, 0.0  ;;  %v697_v20 = vsel %vm86_vm1, 0.0, %v6480_v46 }
 0x185   :  { %v729_v56 = vpop.xlane.xlu0 %728  ;;  %v732_v12 = vpop.xlane.xlu1 %731  ;;  %v6711_v42 = vsub.f32 %v6240_v50, %v1297_v52  ;;  %v6714_v43 = vsub.f32 %v6246_v54, %v1298_v57  ;;  %v1011_v50 = vsel %vm86_vm1, %v6458_v61, 0.0  ;;  %v1012_v54 = vsel %vm86_vm1, %v6470_v26, 0.0 }
 0x186   :  { %v911_v3 = vmul.f32 0.0625, %v729_v56  ;;  %v912_v38 = vmul.f32 0.0625, %v732_v12  ;;  %v1155_v52 = vsel %vm263_vm0, %v1011_v50, 0.0  ;;  %v1158_v4 = vsel %vm263_vm0, %v1012_v54, 0.0 }
 0x187   :  { %11574 = vst [vmem:[#allocation33_spill] sm:$0xff] %v6711_v42  ;;  %11575 = vst [vmem:[#allocation34_spill] sm:$0xff] %v6714_v43  ;;  %v698_v56 = vsel %vm86_vm1, 0.0, %v6486_v14  ;;  %v853_v54 = vsel %vm263_vm0, %v697_v20, 0.0  ;;  %v696_v20 = vsel %vm86_vm1, 0.0, %v6494_v29 }
 0x188   :  { %836 = vadd.xlane.f32.xlu0 %v835_v23  ;;  %839 = vadd.xlane.f32.xlu1 %v838_v11 }
 0x189   :  { %v1049_v36 = vpop.xlane.xlu0 %1048  ;;  %v1052_v27 = vpop.xlane.xlu1 %1051 }
 0x18a   :  { %v1231_v37 = vmul.f32 0.0625, %v1049_v36  ;;  %v1232_v40 = vmul.f32 0.0625, %v1052_v27  ;;  %5385 = vmatmul.mubr.msk.bf16.gmra.mrb[4].mxu1 %vm263_vm0, %v6076_v5  ;;  %v856_v36 = vsel %vm263_vm0, %v698_v56, 0.0 }
 0x18b   :  { %5388 = vmatprep.mubr.msk.bf16.mxu1 %vm263_vm0, %v6081_v6 }
 0x18c   :  { %v1295_v57 = vsel %vm86_vm1, %v1231_v37, %v911_v3  ;;  %v1296_v28 = vsel %vm86_vm1, %v1232_v40, %v912_v38  ;;  %1156 = vadd.xlane.f32.xlu0 %v1155_v52  ;;  %1159 = vadd.xlane.f32.xlu1 %v1158_v4 }
 0x18d   :  { %v747_v12 = vpop.xlane.xlu0 %746  ;;  %v750_v23 = vpop.xlane.xlu1 %749  ;;  %v6741_v11 = vsub.f32 %v6242_v51, %v1295_v57  ;;  %v6744_v50 = vsub.f32 %v6248_v55, %v1296_v28  ;;  %v1017_v51 = vsel %vm86_vm1, %v6480_v46, 0.0  ;;  %v1018_v55 = vsel %vm86_vm1, %v6486_v14, 0.0 }
 0x18e   :  { %v917_v5 = vmul.f32 0.0625, %v747_v12  ;;  %v918_v38 = vmul.f32 0.0625, %v750_v23  ;;  %v1173_v52 = vsel %vm263_vm0, %v1017_v51, 0.0  ;;  %v1176_v6 = vsel %vm263_vm0, %v1018_v55, 0.0 }
 0x18f   :  { %11576 = vst [vmem:[#allocation35_spill] sm:$0xff] %v6741_v11  ;;  %11577 = vst [vmem:[#allocation36_spill] sm:$0xff] %v6744_v50  ;;  %v695_v28 = vsel %vm86_vm1, 0.0, %v6482_v49  ;;  %v850_v51 = vsel %vm263_vm0, %v696_v20, 0.0 }
 0x190   :  { %854 = vadd.xlane.f32.xlu0 %v853_v54  ;;  %857 = vadd.xlane.f32.xlu1 %v856_v36  ;;  %v847_v36 = vsel %vm263_vm0, %v695_v28, 0.0 }
 0x191   :  { %v1067_v27 = vpop.xlane.xlu0 %1066  ;;  %v1070_v3 = vpop.xlane.xlu1 %1069 }
 0x192   :  { %v1237_v37 = vmul.f32 0.0625, %v1067_v27  ;;  %v1238_v40 = vmul.f32 0.0625, %v1070_v3  ;;  %5389 = vmatmul.mubr.msk.bf16.gmra.mrb[8].mxu1 %vm263_vm0, %v6090_v7 }
 0x193   :  { %5392 = vmatprep.mubr.msk.bf16.mxu1 %vm263_vm0, %v6095_v8 }
 0x194   :  { %v1301_v4 = vsel %vm86_vm1, %v1237_v37, %v917_v5  ;;  %v1302_v57 = vsel %vm86_vm1, %v1238_v40, %v918_v38  ;;  %1174 = vadd.xlane.f32.xlu0 %v1173_v52  ;;  %1177 = vadd.xlane.f32.xlu1 %v1176_v6  ;;  %v701_v6 = vsel %vm86_vm1, 0.0, %v6504_v0 }
 0x195   :  { %v741_v56 = vpop.xlane.xlu0 %740  ;;  %v744_v12 = vpop.xlane.xlu1 %743  ;;  %v6771_v23 = vsub.f32 %v6264_v62, %v1301_v4  ;;  %v6774_v54 = vsub.f32 %v6270_v2, %v1302_v57  ;;  %v1015_v62 = vsel %vm86_vm1, %v6482_v49, 0.0  ;;  %v1016_v2 = vsel %vm86_vm1, %v6494_v29, 0.0 }
 0x196   :  { %v915_v7 = vmul.f32 0.0625, %v741_v56  ;;  %v916_v3 = vmul.f32 0.0625, %v744_v12  ;;  %v1167_v37 = vsel %vm263_vm0, %v1015_v62, 0.0  ;;  %v1170_v8 = vsel %vm263_vm0, %v1016_v2, 0.0 }
 0x197   :  { %11578 = vst [vmem:[#allocation37_spill] sm:$0xff] %v6771_v23  ;;  %11579 = vst [vmem:[#allocation38_spill] sm:$0xff] %v6774_v54  ;;  %v702_v4 = vsel %vm86_vm1, 0.0, %v6510_v53  ;;  %v865_v12 = vsel %vm263_vm0, %v701_v6, 0.0 }
 0x198   :  { %848 = vadd.xlane.f32.xlu0 %v847_v36  ;;  %851 = vadd.xlane.f32.xlu1 %v850_v51  ;;  %v868_v36 = vsel %vm263_vm0, %v702_v4, 0.0  ;;  %v5992_v4 = vld [vmem:[%s11312_s0 + $0x48] sm:$0xff]  }
 0x199   :  { %v1061_v55 = vpop.xlane.xlu0 %1060  ;;  %v1064_v27 = vpop.xlane.xlu1 %1063 }
 0x19a   :  { %v1235_v5 = vmul.f32 0.0625, %v1061_v55  ;;  %v1236_v38 = vmul.f32 0.0625, %v1064_v27  ;;  %5393 = vmatmul.mubr.msk.bf16.gmra.mrb[12].mxu1 %vm263_vm0, %v6104_v9 }
 0x19b   :  { %5396 = vmatprep.mubr.msk.bf16.mxu1 %vm263_vm0, %v6109_v10 }
 0x19c   :  { %v1299_v40 = vsel %vm86_vm1, %v1235_v5, %v915_v7  ;;  %v1300_v52 = vsel %vm86_vm1, %v1236_v38, %v916_v3  ;;  %1168 = vadd.xlane.f32.xlu0 %v1167_v37  ;;  %1171 = vadd.xlane.f32.xlu1 %v1170_v8  ;;  %v699_v38 = vsel %vm86_vm1, 0.0, %v6506_v48  ;;  %v700_v37 = vsel %vm86_vm1, 0.0, %v6518_v39 }
 0x19d   :  { %v759_v57 = vpop.xlane.xlu0 %758  ;;  %v762_v28 = vpop.xlane.xlu1 %761  ;;  %v6801_v20 = vsub.f32 %v6266_v63, %v1299_v40  ;;  %v6804_v56 = vsub.f32 %v6278_v13, %v1300_v52  ;;  %v1021_v63 = vsel %vm86_vm1, %v6504_v0, 0.0  ;;  %v1022_v13 = vsel %vm86_vm1, %v6510_v53, 0.0 }
 0x19e   :  { %v921_v9 = vmul.f32 0.0625, %v759_v57  ;;  %v922_v2 = vmul.f32 0.0625, %v762_v28  ;;  %v1185_v7 = vsel %vm263_vm0, %v1021_v63, 0.0  ;;  %v1188_v10 = vsel %vm263_vm0, %v1022_v13, 0.0 }
 0x19f   :  { %11580 = vst [vmem:[#allocation39_spill] sm:$0xff] %v6801_v20  ;;  %11581 = vst [vmem:[#allocation40_spill] sm:$0xff] %v6804_v56  ;;  %v859_v57 = vsel %vm263_vm0, %v699_v38, 0.0  ;;  %v862_v28 = vsel %vm263_vm0, %v700_v37, 0.0 }
 0x1a0   :  { %866 = vadd.xlane.f32.xlu0 %v865_v12  ;;  %869 = vadd.xlane.f32.xlu1 %v868_v36  ;;  %v5993_v12 = vld [vmem:[%s11312_s0 + $0x50] sm:$0xff]  }
 0x1a1   :  { %v1079_v51 = vpop.xlane.xlu0 %1078  ;;  %v1082_v62 = vpop.xlane.xlu1 %1081 }
 0x1a2   :  { %v1241_v55 = vmul.f32 0.0625, %v1079_v51  ;;  %v1242_v27 = vmul.f32 0.0625, %v1082_v62  ;;  %5397 = vmatmul.mubr.msk.bf16.gmra.mrb[16].mxu1 %vm263_vm0, %v5992_v4 }
 0x1a3   :  { %5400 = vmatprep.mubr.msk.bf16.mxu1 %vm263_vm0, %v5993_v12 }
 0x1a4   :  { %v1305_v3 = vsel %vm86_vm1, %v1241_v55, %v921_v9  ;;  %v1306_v5 = vsel %vm86_vm1, %v1242_v27, %v922_v2  ;;  %1186 = vadd.xlane.f32.xlu0 %v1185_v7  ;;  %1189 = vadd.xlane.f32.xlu1 %v1188_v10  ;;  %v705_v10 = vsel %vm86_vm1, 0.0, %v6528_v17 }
 0x1a5   :  { %v753_v8 = vpop.xlane.xlu0 %752  ;;  %v756_v40 = vpop.xlane.xlu1 %755  ;;  %v6831_v52 = vsub.f32 %v6288_v18, %v1305_v3  ;;  %v6834_v6 = vsub.f32 %v6294_v22, %v1306_v5  ;;  %v1019_v18 = vsel %vm86_vm1, %v6506_v48, 0.0  ;;  %v1020_v22 = vsel %vm86_vm1, %v6518_v39, 0.0 }
 0x1a6   :  { %v919_v13 = vmul.f32 0.0625, %v753_v8  ;;  %v920_v51 = vmul.f32 0.0625, %v756_v40  ;;  %v1179_v2 = vsel %vm263_vm0, %v1019_v18, 0.0  ;;  %v1182_v55 = vsel %vm263_vm0, %v1020_v22, 0.0  ;;  %v5994_v40 = vld [vmem:[%s11312_s0 + $0x58] sm:$0xff]  }
 0x1a7   :  { %11582 = vst [vmem:[#allocation41_spill] sm:$0xff] %v6834_v6  ;;  %v706_v3 = vsel %vm86_vm1, 0.0, %v6534_v41  ;;  %v877_v4 = vsel %vm263_vm0, %v705_v10, 0.0 }
 0x1a8   :  { %860 = vadd.xlane.f32.xlu0 %v859_v57  ;;  %863 = vadd.xlane.f32.xlu1 %v862_v28  ;;  %v880_v57 = vsel %vm263_vm0, %v706_v3, 0.0  ;;  %v5995_v28 = vld [vmem:[%s11312_s0 + $0x60] sm:$0xff]  }
 0x1a9   :  { %v1073_v36 = vpop.xlane.xlu0 %1072  ;;  %v1076_v63 = vpop.xlane.xlu1 %1075 }
 0x1aa   :  { %v1239_v62 = vmul.f32 0.0625, %v1073_v36  ;;  %v1240_v9 = vmul.f32 0.0625, %v1076_v63  ;;  %5401 = vmatmul.mubr.msk.bf16.gmra.mrb[20].mxu1 %vm263_vm0, %v5994_v40  ;;  %v5996_v40 = vld [vmem:[%s11312_s0 + $0x68] sm:$0xff]  }
 0x1ab   :  { %5404 = vmatprep.mubr.msk.bf16.mxu1 %vm263_vm0, %v5995_v28  ;;  %v5997_v28 = vld [vmem:[%s11312_s0 + $0x70] sm:$0xff]  }
 0x1ac   :  { %v1303_v27 = vsel %vm86_vm1, %v1239_v62, %v919_v13  ;;  %v1304_v7 = vsel %vm86_vm1, %v1240_v9, %v920_v51  ;;  %1180 = vadd.xlane.f32.xlu0 %v1179_v2  ;;  %1183 = vadd.xlane.f32.xlu1 %v1182_v55  ;;  %v703_v55 = vsel %vm86_vm1, 0.0, %v6530_v1 }
 0x1ad   :  { %v771_v5 = vpop.xlane.xlu0 %770  ;;  %v774_v38 = vpop.xlane.xlu1 %773  ;;  %v6865_v37 = vsub.f32 %v6290_v19, %v1303_v27  ;;  %v6868_v8 = vsub.f32 %v6302_v25, %v1304_v7  ;;  %v1025_v19 = vsel %vm86_vm1, %v6528_v17, 0.0  ;;  %v1026_v25 = vsel %vm86_vm1, %v6534_v41, 0.0 }
 0x1ae   :  { %v925_v22 = vmul.f32 0.0625, %v771_v5  ;;  %v926_v36 = vmul.f32 0.0625, %v774_v38  ;;  %v1197_v51 = vsel %vm263_vm0, %v1025_v19, 0.0  ;;  %v1200_v62 = vsel %vm263_vm0, %v1026_v25, 0.0  ;;  %v11583_v5 = vld [vmem:[#allocation3_spill] sm:$0xff] }
 0x1af   :  { %v704_v27 = vsel %vm86_vm1, 0.0, %v6542_v45  ;;  %v1024_v19 = vsel %vm86_vm1, %v6542_v45, 0.0 }
 0x1b0   :  { %878 = vadd.xlane.f32.xlu0 %v877_v4  ;;  %881 = vadd.xlane.f32.xlu1 %v880_v57  ;;  %v871_v4 = vsel %vm263_vm0, %v703_v55, 0.0  ;;  %v874_v57 = vsel %vm263_vm0, %v704_v27, 0.0  ;;  %v710_v55 = vsel %vm86_vm1, 0.0, %v6558_v34 }
 0x1b1   :  { %v1091_v12 = vpop.xlane.xlu0 %1090  ;;  %v1094_v18 = vpop.xlane.xlu1 %1093 }
 0x1b2   :  { %v1245_v63 = vmul.f32 0.0625, %v1091_v12  ;;  %v1246_v13 = vmul.f32 0.0625, %v1094_v18  ;;  %5405 = vmatmul.mubr.msk.bf16.gmra.mrb[24].mxu1 %vm263_vm0, %v5996_v40  ;;  %v11585_v40 = vld [vmem:[#allocation4_spill] sm:$0xff] }
 0x1b3   :  { %5408 = vmatprep.mubr.msk.bf16.mxu1 %vm263_vm0, %v5997_v28 }
 0x1b4   :  { %v1309_v9 = vsel %vm86_vm1, %v1245_v63, %v925_v22  ;;  %v1310_v2 = vsel %vm86_vm1, %v1246_v13, %v926_v36  ;;  %1198 = vadd.xlane.f32.xlu0 %v1197_v51  ;;  %1201 = vadd.xlane.f32.xlu1 %v1200_v62  ;;  %v1194_v51 = vsel %vm263_vm0, %v1024_v19, 0.0  ;;  %v5999_v19 = vld [vmem:[%s11312_s0 + $0x80] sm:$0xff]  }
 0x1b5   :  { %v765_v7 = vpop.xlane.xlu0 %764  ;;  %v768_v10 = vpop.xlane.xlu1 %767  ;;  %v6899_v3 = vsub.f32 %v6312_v30, %v1309_v9  ;;  %v6902_v38 = vsub.f32 %v11583_v5, %v1310_v2  ;;  %v1023_v30 = vsel %vm86_vm1, %v6530_v1, 0.0  ;;  %v709_v2 = vsel %vm86_vm1, 0.0, %v6552_v21 }
 0x1b6   :  { %v923_v18 = vmul.f32 0.0625, %v765_v7  ;;  %v924_v22 = vmul.f32 0.0625, %v768_v10  ;;  %v1191_v13 = vsel %vm263_vm0, %v1023_v30, 0.0  ;;  %v11584_v10 = vld [vmem:[#allocation2_spill] sm:$0xff]  ;;  %v889_v28 = vsel %vm263_vm0, %v709_v2, 0.0 }
 0x1b7   :  { %v892_v30 = vsel %vm263_vm0, %v710_v55, 0.0 }
 0x1b8   :  { %872 = vadd.xlane.f32.xlu0 %v871_v4  ;;  %875 = vadd.xlane.f32.xlu1 %v874_v57  ;;  %v5998_v57 = vld [vmem:[%s11312_s0 + $0x78] sm:$0xff]  }
 0x1b9   :  { %v1085_v25 = vpop.xlane.xlu0 %1084  ;;  %v1088_v12 = vpop.xlane.xlu1 %1087 }
 0x1ba   :  { %v1243_v36 = vmul.f32 0.0625, %v1085_v25  ;;  %v1244_v63 = vmul.f32 0.0625, %v1088_v12  ;;  %5409 = vmatmul.mubr.msk.bf16.gmra.mrb[28].mxu1 %vm263_vm0, %v5998_v57  ;;  %v1029_v25 = vsel %vm86_vm1, %v6552_v21, 0.0  ;;  %v1030_v12 = vsel %vm86_vm1, %v6558_v34, 0.0 }
 0x1bb   :  { %5412 = vmatprep.mubr.msk.bf16.mxu1 %vm263_vm0, %v5999_v19 }
 0x1bc   :  { %v1307_v62 = vsel %vm86_vm1, %v1243_v36, %v923_v18  ;;  %v1308_v9 = vsel %vm86_vm1, %v1244_v63, %v924_v22  ;;  %1192 = vadd.xlane.f32.xlu0 %v1191_v13  ;;  %1195 = vadd.xlane.f32.xlu1 %v1194_v51 }
 0x1bd   :  { %v783_v27 = vpop.xlane.xlu0 %782  ;;  %v786_v7 = vpop.xlane.xlu1 %785  ;;  %v6933_v5 = vsub.f32 %v11584_v10, %v1307_v62  ;;  %v6936_v4 = vsub.f32 %v11585_v40, %v1308_v9  ;;  %v1209_v62 = vsel %vm263_vm0, %v1029_v25, 0.0  ;;  %v1212_v9 = vsel %vm263_vm0, %v1030_v12, 0.0  ;;  %v11586_v10 = vld [vmem:[#allocation23_spill] sm:$0xff] }
 0x1be   :  { %v929_v36 = vmul.f32 0.0625, %v783_v27  ;;  %v930_v63 = vmul.f32 0.0625, %v786_v7  ;;  %v707_v40 = vsel %vm86_vm1, 0.0, %v11586_v10  ;;  %v11587_v27 = vld [vmem:[#allocation24_spill] sm:$0xff]  ;;  %v11589_v25 = vld [vmem:[#allocation7_spill] sm:$0xff] }
 0x1bf   :  { %v708_v7 = vsel %vm86_vm1, 0.0, %v11587_v27 }
 0x1c0   :  { %890 = vadd.xlane.f32.xlu0 %v889_v28  ;;  %893 = vadd.xlane.f32.xlu1 %v892_v30  ;;  %v11588_v30 = vld [vmem:[#allocation5_spill] sm:$0xff] }
 0x1c1   :  { %v1103_v18 = vpop.xlane.xlu0 %1102  ;;  %v1106_v22 = vpop.xlane.xlu1 %1105 }
 0x1c2   :  { %v1249_v13 = vmul.f32 0.0625, %v1103_v18  ;;  %v1250_v51 = vmul.f32 0.0625, %v1106_v22  ;;  %v6000_v18 = vld [vmem:[%s11312_s0 + $0x88] sm:$0xff]   ;;  %v883_v22 = vsel %vm263_vm0, %v707_v40, 0.0 }
 0x1c3   :  { %5413 = vmatmul.mubr.msk.bf16.gmra.mrb[32].mxu1 %vm263_vm0, %v6000_v18 }
 0x1c4   :  { %v1313_v2 = vsel %vm86_vm1, %v1249_v13, %v929_v36  ;;  %v1314_v55 = vsel %vm86_vm1, %v1250_v51, %v930_v63  ;;  %1210 = vadd.xlane.f32.xlu0 %v1209_v62  ;;  %1213 = vadd.xlane.f32.xlu1 %v1212_v9  ;;  %v886_v36 = vsel %vm263_vm0, %v708_v7, 0.0  ;;  %v6001_v63 = vld [vmem:[%s11312_s0 + $0x90] sm:$0xff]   ;;  %v1027_v13 = vsel %vm86_vm1, %v11586_v10, 0.0 }
 0x1c5   :  { %v777_v57 = vpop.xlane.xlu0 %776  ;;  %v780_v28 = vpop.xlane.xlu1 %779  ;;  %v6967_v19 = vsub.f32 %v11588_v30, %v1313_v2  ;;  %v6970_v12 = vsub.f32 %v11589_v25, %v1314_v55  ;;  %5416 = vmatprep.mubr.msk.bf16.mxu1 %vm263_vm0, %v6001_v63  ;;  %v1028_v51 = vsel %vm86_vm1, %v11587_v27, 0.0  ;;  %v1203_v30 = vsel %vm263_vm0, %v1027_v13, 0.0  ;;  %v11590_v13 = vld [vmem:[#allocation6_spill] sm:$0xff] }
 0x1c6   :  { %v927_v2 = vmul.f32 0.0625, %v777_v57  ;;  %v928_v55 = vmul.f32 0.0625, %v780_v28  ;;  %v1206_v25 = vsel %vm263_vm0, %v1028_v51, 0.0  ;;  %v714_v57 = vsel %vm86_vm1, 0.0, %v6582_v58 }
 0x1c8   :  { %884 = vadd.xlane.f32.xlu0 %v883_v22  ;;  %887 = vadd.xlane.f32.xlu1 %v886_v36  ;;  %v713_v36 = vsel %vm86_vm1, 0.0, %v6576_v47 }
 0x1c9   :  { %v1097_v62 = vpop.xlane.xlu0 %1096  ;;  %v1100_v9 = vpop.xlane.xlu1 %1099 }
 0x1ca   :  { %v1247_v40 = vmul.f32 0.0625, %v1097_v62  ;;  %v1248_v7 = vmul.f32 0.0625, %v1100_v9  ;;  %v11591_v62 = vld [vmem:[#allocation8_spill] sm:$0xff] }
 0x1cc   :  { %v1311_v18 = vsel %vm86_vm1, %v1247_v40, %v927_v2  ;;  %v1312_v22 = vsel %vm86_vm1, %v1248_v7, %v928_v55  ;;  %1204 = vadd.xlane.f32.xlu0 %v1203_v30  ;;  %1207 = vadd.xlane.f32.xlu1 %v1206_v25  ;;  %v6002_v2 = vld [vmem:[%s11312_s0 + $0x98] sm:$0xff]   ;;  %v901_v55 = vsel %vm263_vm0, %v713_v36, 0.0  ;;  %v904_v40 = vsel %vm263_vm0, %v714_v57, 0.0  ;;  %v6003_v7 = vld [vmem:[%s11312_s0 + $0xa0] sm:$0xff]  }
 0x1cd   :  { %v795_v28 = vpop.xlane.xlu0 %794  ;;  %v798_v63 = vpop.xlane.xlu1 %797  ;;  %v7001_v51 = vsub.f32 %v11590_v13, %v1311_v18  ;;  %v7004_v9 = vsub.f32 %v11591_v62, %v1312_v22  ;;  %5417 = vmatmul.mubr.msk.bf16.gmra.mrb[36].mxu1 %vm263_vm0, %v6002_v2  ;;  %v1033_v30 = vsel %vm86_vm1, %v6576_v47, 0.0  ;;  %v1034_v25 = vsel %vm86_vm1, %v6582_v58, 0.0  ;;  %v11594_v47 = vld [vmem:[#allocation11_spill] sm:$0xff] }
 0x1ce   :  { %5420 = vmatprep.mubr.msk.bf16.mxu1 %vm263_vm0, %v6003_v7  ;;  %v933_v36 = vmul.f32 0.0625, %v795_v28  ;;  %v934_v57 = vmul.f32 0.0625, %v798_v63  ;;  %v1221_v2 = vsel %vm263_vm0, %v1033_v30, 0.0  ;;  %v1224_v7 = vsel %vm263_vm0, %v1034_v25, 0.0  ;;  %v11592_v28 = vld [vmem:[#allocation26_spill] sm:$0xff] }
 0x1cf   :  { %v711_v63 = vsel %vm86_vm1, 0.0, %v11592_v28 }
 0x1d0   :  { %902 = vadd.xlane.f32.xlu0 %v901_v55  ;;  %905 = vadd.xlane.f32.xlu1 %v904_v40  ;;  %v712_v55 = vsel %vm86_vm1, 0.0, %v6590_v15 }
 0x1d1   :  { %v1115_v18 = vpop.xlane.xlu0 %1114  ;;  %v1118_v22 = vpop.xlane.xlu1 %1117 }
 0x1d2   :  { %v1253_v13 = vmul.f32 0.0625, %v1115_v18  ;;  %v1254_v62 = vmul.f32 0.0625, %v1118_v22  ;;  %v11593_v22 = vld [vmem:[#allocation9_spill] sm:$0xff] }
 0x1d4   :  { %v1317_v40 = vsel %vm86_vm1, %v1253_v13, %v933_v36  ;;  %v1318_v58 = vsel %vm86_vm1, %v1254_v62, %v934_v57  ;;  %1222 = vadd.xlane.f32.xlu0 %v1221_v2  ;;  %1225 = vadd.xlane.f32.xlu1 %v1224_v7  ;;  %v6004_v36 = vld [vmem:[%s11312_s0 + $0xa8] sm:$0xff]   ;;  %v895_v57 = vsel %vm263_vm0, %v711_v63, 0.0  ;;  %v898_v13 = vsel %vm263_vm0, %v712_v55, 0.0  ;;  %v6005_v62 = vld [vmem:[%s11312_s0 + $0xb0] sm:$0xff]  }
 0x1d5   :  { %v789_v18 = vpop.xlane.xlu0 %788  ;;  %v792_v30 = vpop.xlane.xlu1 %791  ;;  %v7035_v25 = vsub.f32 %v11593_v22, %v1317_v40  ;;  %v7038_v27 = vsub.f32 %v11594_v47, %v1318_v58  ;;  %5421 = vmatmul.mubr.msk.bf16.gmra.mrb[40].mxu1 %vm263_vm0, %v6004_v36  ;;  %v1032_v58 = vsel %vm86_vm1, %v6590_v15, 0.0  ;;  %v1031_v47 = vsel %vm86_vm1, %v11592_v28, 0.0 }
 0x1d6   :  { %5424 = vmatprep.mubr.msk.bf16.mxu1 %vm263_vm0, %v6005_v62  ;;  %v1421_v2 = vmul.f32 %v6643_v31, %v6643_v31  ;;  %v1422_v7 = vmul.f32 %v6666_v60, %v6666_v60  ;;  %v931_v63 = vmul.f32 0.0625, %v789_v18  ;;  %v932_v22 = vmul.f32 0.0625, %v792_v30 }
 0x1d7   :  { %v1215_v15 = vsel %vm263_vm0, %v1031_v47, 0.0 }
 0x1d8   :  { %896 = vadd.xlane.f32.xlu0 %v895_v57  ;;  %899 = vadd.xlane.f32.xlu1 %v898_v13  ;;  %v1218_v57 = vsel %vm263_vm0, %v1032_v58, 0.0  ;;  %v1485_v60 = vsel %vm86_vm1, 0.0, %v1421_v2  ;;  %v1486_v18 = vsel %vm86_vm1, 0.0, %v1422_v7  ;;  %v11597_v58 = vld [vmem:[#allocation12_spill] sm:$0xff] }
 0x1d9   :  { %v1109_v55 = vpop.xlane.xlu0 %1108  ;;  %v1112_v40 = vpop.xlane.xlu1 %1111 }
 0x1da   :  { %v1251_v36 = vmul.f32 0.0625, %v1109_v55  ;;  %v1252_v62 = vmul.f32 0.0625, %v1112_v40  ;;  %v11595_v40 = vld [vmem:[#allocation10_spill] sm:$0xff] }
 0x1dc   :  { %v1315_v13 = vsel %vm86_vm1, %v1251_v36, %v931_v63  ;;  %v1316_v28 = vsel %vm86_vm1, %v1252_v62, %v932_v22  ;;  %1216 = vadd.xlane.f32.xlu0 %v1215_v15  ;;  %1219 = vadd.xlane.f32.xlu1 %v1218_v57  ;;  %v6006_v63 = vld [vmem:[%s11312_s0 + $0xb8] sm:$0xff]   ;;  %v1553_v15 = vsel %vm263_vm0, %v1485_v60, 0.0  ;;  %v1556_v22 = vsel %vm263_vm0, %v1486_v18, 0.0  ;;  %v6007_v36 = vld [vmem:[%s11312_s0 + $0xc0] sm:$0xff]  }
 0x1dd   :  { %v807_v30 = vpop.xlane.xlu0 %806  ;;  %v810_v55 = vpop.xlane.xlu1 %809  ;;  %v7071_v47 = vsub.f32 %v11595_v40, %v1315_v13  ;;  %v7074_v31 = vsub.f32 %v11597_v58, %v1316_v28  ;;  %5425 = vmatmul.mubr.msk.bf16.gmra.mrb[44].mxu1 %vm263_vm0, %v6006_v63  ;;  %v1933_v28 = vsel %vm86_vm1, %v1421_v2, 0.0  ;;  %v1934_v62 = vsel %vm86_vm1, %v1422_v7, 0.0 }
 0x1de   :  { %5428 = vmatprep.mubr.msk.bf16.mxu1 %vm263_vm0, %v6007_v36  ;;  %v1419_v57 = vmul.f32 %v6669_v32, %v6669_v32  ;;  %v1420_v60 = vmul.f32 %v6685_v33, %v6685_v33  ;;  %v937_v40 = vmul.f32 0.0625, %v807_v30  ;;  %v938_v58 = vmul.f32 0.0625, %v810_v55 }
 0x1df   :  { %11596 = vst [vmem:[#allocation3_spill] sm:$0xff] %v7071_v47  ;;  %11598 = vst [vmem:[#allocation2_spill] sm:$0xff] %v7074_v31 }
 0x1e0   :  { %1554 = vadd.xlane.f32.xlu0 %v1553_v15  ;;  %1557 = vadd.xlane.f32.xlu1 %v1556_v22  ;;  %v2001_v15 = vsel %vm263_vm0, %v1933_v28, 0.0  ;;  %v2004_v22 = vsel %vm263_vm0, %v1934_v62, 0.0  ;;  %v1483_v33 = vsel %vm86_vm1, 0.0, %v1419_v57  ;;  %v1484_v30 = vsel %vm86_vm1, 0.0, %v1420_v60  ;;  %v11601_v62 = vld [vmem:[#allocation15_spill] sm:$0xff] }
 0x1e1   :  { %v1127_v13 = vpop.xlane.xlu0 %1126  ;;  %v1130_v18 = vpop.xlane.xlu1 %1129 }
 0x1e2   :  { %v1257_v63 = vmul.f32 0.0625, %v1127_v13  ;;  %v1258_v36 = vmul.f32 0.0625, %v1130_v18  ;;  %v11599_v18 = vld [vmem:[#allocation13_spill] sm:$0xff] }
 0x1e4   :  { %v1321_v2 = vsel %vm86_vm1, %v1257_v63, %v937_v40  ;;  %v1322_v7 = vsel %vm86_vm1, %v1258_v36, %v938_v58  ;;  %2002 = vadd.xlane.f32.xlu0 %v2001_v15  ;;  %2005 = vadd.xlane.f32.xlu1 %v2004_v22  ;;  %v6008_v40 = vld [vmem:[%s11312_s0 + $0xc8] sm:$0xff]   ;;  %v1547_v58 = vsel %vm263_vm0, %v1483_v33, 0.0  ;;  %v1550_v63 = vsel %vm263_vm0, %v1484_v30, 0.0  ;;  %v6009_v36 = vld [vmem:[%s11312_s0 + $0xd0] sm:$0xff]  }
 0x1e5   :  { %v801_v55 = vpop.xlane.xlu0 %800  ;;  %v804_v13 = vpop.xlane.xlu1 %803  ;;  %v7105_v28 = vsub.f32 %v11599_v18, %v1321_v2  ;;  %v7108_v32 = vsub.f32 %v11601_v62, %v1322_v7  ;;  %5429 = vmatmul.mubr.msk.bf16.gmra.mrb[48].mxu1 %vm263_vm0, %v6008_v40  ;;  %v1931_v15 = vsel %vm86_vm1, %v1419_v57, 0.0  ;;  %v1932_v22 = vsel %vm86_vm1, %v1420_v60, 0.0 }
 0x1e6   :  { %5432 = vmatprep.mubr.msk.bf16.mxu1 %vm263_vm0, %v6009_v36  ;;  %v1425_v2 = vmul.f32 %v6711_v42, %v6711_v42  ;;  %v1426_v33 = vmul.f32 %v6714_v43, %v6714_v43  ;;  %v935_v18 = vmul.f32 0.0625, %v801_v55  ;;  %v936_v62 = vmul.f32 0.0625, %v804_v13 }
 0x1e7   :  { %11600 = vst [vmem:[#allocation4_spill] sm:$0xff] %v7105_v28  ;;  %11602 = vst [vmem:[#allocation23_spill] sm:$0xff] %v7108_v32 }
 0x1e8   :  { %1548 = vadd.xlane.f32.xlu0 %v1547_v58  ;;  %1551 = vadd.xlane.f32.xlu1 %v1550_v63  ;;  %v1995_v58 = vsel %vm263_vm0, %v1931_v15, 0.0  ;;  %v1998_v63 = vsel %vm263_vm0, %v1932_v22, 0.0  ;;  %v1489_v43 = vsel %vm86_vm1, 0.0, %v1425_v2  ;;  %v1490_v55 = vsel %vm86_vm1, 0.0, %v1426_v33  ;;  %v11605_v22 = vld [vmem:[#allocation16_spill] sm:$0xff] }
 0x1e9   :  { %v1121_v7 = vpop.xlane.xlu0 %1120  ;;  %v1124_v30 = vpop.xlane.xlu1 %1123 }
 0x1ea   :  { %v1255_v40 = vmul.f32 0.0625, %v1121_v7  ;;  %v1256_v36 = vmul.f32 0.0625, %v1124_v30  ;;  %v11603_v30 = vld [vmem:[#allocation14_spill] sm:$0xff] }
 0x1ec   :  { %v1319_v57 = vsel %vm86_vm1, %v1255_v40, %v935_v18  ;;  %v1320_v60 = vsel %vm86_vm1, %v1256_v36, %v936_v62  ;;  %1996 = vadd.xlane.f32.xlu0 %v1995_v58  ;;  %1999 = vadd.xlane.f32.xlu1 %v1998_v63  ;;  %v6010_v18 = vld [vmem:[%s11312_s0 + $0xd8] sm:$0xff]   ;;  %v1565_v62 = vsel %vm263_vm0, %v1489_v43, 0.0  ;;  %v1568_v40 = vsel %vm263_vm0, %v1490_v55, 0.0  ;;  %v6011_v36 = vld [vmem:[%s11312_s0 + $0xe0] sm:$0xff]  }
 0x1ed   :  { %v819_v13 = vpop.xlane.xlu0 %818  ;;  %v822_v7 = vpop.xlane.xlu1 %821  ;;  %v7139_v15 = vsub.f32 %v11603_v30, %v1319_v57  ;;  %v7142_v42 = vsub.f32 %v11605_v22, %v1320_v60  ;;  %5433 = vmatmul.mubr.msk.bf16.gmra.mrb[52].mxu1 %vm263_vm0, %v6010_v18  ;;  %v1937_v58 = vsel %vm86_vm1, %v1425_v2, 0.0  ;;  %v1938_v63 = vsel %vm86_vm1, %v1426_v33, 0.0 }
 0x1ee   :  { %5436 = vmatprep.mubr.msk.bf16.mxu1 %vm263_vm0, %v6011_v36  ;;  %v1423_v57 = vmul.f32 %v6741_v11, %v6741_v11  ;;  %v1424_v43 = vmul.f32 %v6744_v50, %v6744_v50  ;;  %v941_v30 = vmul.f32 0.0625, %v819_v13  ;;  %v942_v22 = vmul.f32 0.0625, %v822_v7 }
 0x1ef   :  { %11604 = vst [vmem:[#allocation5_spill] sm:$0xff] %v7139_v15  ;;  %11606 = vst [vmem:[#allocation7_spill] sm:$0xff] %v7142_v42 }
 0x1f0   :  { %1566 = vadd.xlane.f32.xlu0 %v1565_v62  ;;  %1569 = vadd.xlane.f32.xlu1 %v1568_v40  ;;  %v2013_v62 = vsel %vm263_vm0, %v1937_v58, 0.0  ;;  %v2016_v40 = vsel %vm263_vm0, %v1938_v63, 0.0  ;;  %v1487_v50 = vsel %vm86_vm1, 0.0, %v1423_v57  ;;  %v1488_v13 = vsel %vm86_vm1, 0.0, %v1424_v43  ;;  %v11609_v63 = vld [vmem:[#allocation19_spill] sm:$0xff] }
 0x1f1   :  { %v1139_v60 = vpop.xlane.xlu0 %1138  ;;  %v1142_v55 = vpop.xlane.xlu1 %1141 }
 0x1f2   :  { %v1261_v18 = vmul.f32 0.0625, %v1139_v60  ;;  %v1262_v36 = vmul.f32 0.0625, %v1142_v55  ;;  %v11607_v55 = vld [vmem:[#allocation17_spill] sm:$0xff] }
 0x1f4   :  { %v1325_v2 = vsel %vm86_vm1, %v1261_v18, %v941_v30  ;;  %v1326_v33 = vsel %vm86_vm1, %v1262_v36, %v942_v22  ;;  %2014 = vadd.xlane.f32.xlu0 %v2013_v62  ;;  %2017 = vadd.xlane.f32.xlu1 %v2016_v40  ;;  %v6012_v30 = vld [vmem:[%s11312_s0 + $0xe8] sm:$0xff]   ;;  %v1559_v22 = vsel %vm263_vm0, %v1487_v50, 0.0  ;;  %v1562_v18 = vsel %vm263_vm0, %v1488_v13, 0.0  ;;  %v6013_v36 = vld [vmem:[%s11312_s0 + $0xf0] sm:$0xff]  }
 0x1f5   :  { %v813_v7 = vpop.xlane.xlu0 %812  ;;  %v816_v60 = vpop.xlane.xlu1 %815  ;;  %v7173_v58 = vsub.f32 %v11607_v55, %v1325_v2  ;;  %v7176_v11 = vsub.f32 %v11609_v63, %v1326_v33  ;;  %5437 = vmatmul.mubr.msk.bf16.gmra.mrb[56].mxu1 %vm263_vm0, %v6012_v30  ;;  %v1935_v62 = vsel %vm86_vm1, %v1423_v57, 0.0  ;;  %v1936_v40 = vsel %vm86_vm1, %v1424_v43, 0.0 }
 0x1f6   :  { %5440 = vmatprep.mubr.msk.bf16.mxu1 %vm263_vm0, %v6013_v36  ;;  %v1429_v2 = vmul.f32 %v6771_v23, %v6771_v23  ;;  %v1430_v50 = vmul.f32 %v6774_v54, %v6774_v54  ;;  %v939_v55 = vmul.f32 0.0625, %v813_v7  ;;  %v940_v63 = vmul.f32 0.0625, %v816_v60 }
 0x1f7   :  { %11608 = vst [vmem:[#allocation6_spill] sm:$0xff] %v7173_v58  ;;  %11610 = vst [vmem:[#allocation8_spill] sm:$0xff] %v7176_v11 }
 0x1f8   :  { %1560 = vadd.xlane.f32.xlu0 %v1559_v22  ;;  %1563 = vadd.xlane.f32.xlu1 %v1562_v18  ;;  %v2007_v22 = vsel %vm263_vm0, %v1935_v62, 0.0  ;;  %v2010_v18 = vsel %vm263_vm0, %v1936_v40, 0.0  ;;  %v1493_v54 = vsel %vm86_vm1, 0.0, %v1429_v2  ;;  %v1494_v7 = vsel %vm86_vm1, 0.0, %v1430_v50  ;;  %v11613_v40 = vld [vmem:[#allocation20_spill] sm:$0xff] }
 0x1f9   :  { %v1133_v33 = vpop.xlane.xlu0 %1132  ;;  %v1136_v13 = vpop.xlane.xlu1 %1135 }
 0x1fa   :  { %v1259_v30 = vmul.f32 0.0625, %v1133_v33  ;;  %v1260_v36 = vmul.f32 0.0625, %v1136_v13  ;;  %v11611_v13 = vld [vmem:[#allocation18_spill] sm:$0xff] }
 0x1fc   :  { %v1323_v57 = vsel %vm86_vm1, %v1259_v30, %v939_v55  ;;  %v1324_v43 = vsel %vm86_vm1, %v1260_v36, %v940_v63  ;;  %2008 = vadd.xlane.f32.xlu0 %v2007_v22  ;;  %2011 = vadd.xlane.f32.xlu1 %v2010_v18  ;;  %v6014_v55 = vld [vmem:[%s11312_s0 + $0xf8] sm:$0xff]   ;;  %v1577_v63 = vsel %vm263_vm0, %v1493_v54, 0.0  ;;  %v1580_v30 = vsel %vm263_vm0, %v1494_v7, 0.0 }
 0x1fd   :  { %v831_v60 = vpop.xlane.xlu0 %830  ;;  %v834_v33 = vpop.xlane.xlu1 %833  ;;  %v7207_v62 = vsub.f32 %v11611_v13, %v1323_v57  ;;  %v7210_v23 = vsub.f32 %v11613_v40, %v1324_v43  ;;  %5441 = vmatmul.mubr.msk.bf16.gmra.mrb[60].mxu1 %vm263_vm0, %v6014_v55  ;;  %v1941_v36 = vsel %vm86_vm1, %v1429_v2, 0.0  ;;  %v1942_v22 = vsel %vm86_vm1, %v1430_v50, 0.0 }
 0x1fe   :  { %v1427_v18 = vmul.f32 %v6801_v20, %v6801_v20  ;;  %v1428_v57 = vmul.f32 %v6804_v56, %v6804_v56  ;;  %v945_v40 = vmul.f32 0.0625, %v831_v60  ;;  %v946_v54 = vmul.f32 0.0625, %v834_v33 }
 0x1ff   :  { %11612 = vst [vmem:[#allocation9_spill] sm:$0xff] %v7207_v62  ;;  %11614 = vst [vmem:[#allocation11_spill] sm:$0xff] %v7210_v23 }
 0x200   :  { %1578 = vadd.xlane.f32.xlu0 %v1577_v63  ;;  %1581 = vadd.xlane.f32.xlu1 %v1580_v30  ;;  %v2025_v63 = vsel %vm263_vm0, %v1941_v36, 0.0  ;;  %v2028_v30 = vsel %vm263_vm0, %v1942_v22, 0.0  ;;  %v1491_v56 = vsel %vm86_vm1, 0.0, %v1427_v18  ;;  %v1492_v60 = vsel %vm86_vm1, 0.0, %v1428_v57  ;;  %v11617_v22 = vld [vmem:[#allocation22_spill] sm:$0xff] }
 0x201   :  { %v1151_v43 = vpop.xlane.xlu0 %1150  ;;  %v1154_v13 = vpop.xlane.xlu1 %1153 }
 0x202   :  { %v1265_v55 = vmul.f32 0.0625, %v1151_v43  ;;  %v1266_v7 = vmul.f32 0.0625, %v1154_v13  ;;  %v11615_v13 = vld [vmem:[#allocation21_spill] sm:$0xff] }
 0x204   :  { %v1329_v2 = vsel %vm86_vm1, %v1265_v55, %v945_v40  ;;  %v1330_v50 = vsel %vm86_vm1, %v1266_v7, %v946_v54  ;;  %2026 = vadd.xlane.f32.xlu0 %v2025_v63  ;;  %2029 = vadd.xlane.f32.xlu1 %v2028_v30  ;;  %v1571_v40 = vsel %vm263_vm0, %v1491_v56, 0.0  ;;  %v1574_v54 = vsel %vm263_vm0, %v1492_v60, 0.0 }
 0x205   :  { %v825_v33 = vpop.xlane.xlu0 %824  ;;  %v828_v43 = vpop.xlane.xlu1 %827  ;;  %v7237_v36 = vsub.f32 %v11615_v13, %v1329_v2  ;;  %v7240_v20 = vsub.f32 %v11617_v22, %v1330_v50  ;;  %v1939_v55 = vsel %vm86_vm1, %v1427_v18, 0.0  ;;  %v1940_v7 = vsel %vm86_vm1, %v1428_v57, 0.0 }
 0x206   :  { %v1433_v63 = vmul.f32 %v6831_v52, %v6831_v52  ;;  %v1434_v30 = vmul.f32 %v6834_v6, %v6834_v6  ;;  %v943_v13 = vmul.f32 0.0625, %v825_v33  ;;  %v944_v56 = vmul.f32 0.0625, %v828_v43 }
 0x207   :  { %11616 = vst [vmem:[#allocation10_spill] sm:$0xff] %v7237_v36  ;;  %11618 = vst [vmem:[#allocation12_spill] sm:$0xff] %v7240_v20 }
 0x208   :  { %1572 = vadd.xlane.f32.xlu0 %v1571_v40  ;;  %1575 = vadd.xlane.f32.xlu1 %v1574_v54  ;;  %v2019_v40 = vsel %vm263_vm0, %v1939_v55, 0.0  ;;  %v2022_v54 = vsel %vm263_vm0, %v1940_v7, 0.0  ;;  %v1497_v6 = vsel %vm86_vm1, 0.0, %v1433_v63  ;;  %v1498_v33 = vsel %vm86_vm1, 0.0, %v1434_v30 }
 0x209   :  { %v1145_v2 = vpop.xlane.xlu0 %1144  ;;  %v1148_v50 = vpop.xlane.xlu1 %1147 }
 0x20a   :  { %v1263_v22 = vmul.f32 0.0625, %v1145_v2  ;;  %v1264_v60 = vmul.f32 0.0625, %v1148_v50  ;;  %v1589_v50 = vsel %vm263_vm0, %v1497_v6, 0.0 }
 0x20c   :  { %v1327_v18 = vsel %vm86_vm1, %v1263_v22, %v943_v13  ;;  %v1328_v57 = vsel %vm86_vm1, %v1264_v60, %v944_v56  ;;  %2020 = vadd.xlane.f32.xlu0 %v2019_v40  ;;  %2023 = vadd.xlane.f32.xlu1 %v2022_v54  ;;  %v1592_v13 = vsel %vm263_vm0, %v1498_v33, 0.0  ;;  %v1945_v56 = vsel %vm86_vm1, %v1433_v63, 0.0 }
 0x20d   :  { %v843_v43 = vpop.xlane.xlu0 %842  ;;  %v846_v2 = vpop.xlane.xlu1 %845  ;;  %v7263_v55 = vsub.f32 %v6434_v24, %v1327_v18  ;;  %v7266_v7 = vsub.f32 %v6446_v44, %v1328_v57  ;;  %v1946_v22 = vsel %vm86_vm1, %v1434_v30, 0.0  ;;  %v1431_v60 = vmul.f32 %v6865_v37, %v6865_v37 }
 0x20e   :  { %v1432_v24 = vmul.f32 %v6868_v8, %v6868_v8  ;;  %v949_v54 = vmul.f32 0.0625, %v843_v43  ;;  %v950_v6 = vmul.f32 0.0625, %v846_v2  ;;  %v2037_v33 = vsel %vm263_vm0, %v1945_v56, 0.0 }
 0x20f   :  { %11619 = vst [vmem:[#allocation13_spill] sm:$0xff] %v7263_v55  ;;  %11620 = vst [vmem:[#allocation15_spill] sm:$0xff] %v7266_v7 }
 0x210   :  { %1590 = vadd.xlane.f32.xlu0 %v1589_v50  ;;  %1593 = vadd.xlane.f32.xlu1 %v1592_v13  ;;  %v2040_v50 = vsel %vm263_vm0, %v1946_v22, 0.0  ;;  %v1495_v13 = vsel %vm86_vm1, 0.0, %v1431_v60  ;;  %v1496_v43 = vsel %vm86_vm1, 0.0, %v1432_v24 }
 0x211   :  { %v1163_v44 = vpop.xlane.xlu0 %1162  ;;  %v1166_v40 = vpop.xlane.xlu1 %1165 }
 0x212   :  { %v1269_v18 = vmul.f32 0.0625, %v1163_v44  ;;  %v1270_v57 = vmul.f32 0.0625, %v1166_v40  ;;  %v1583_v40 = vsel %vm263_vm0, %v1495_v13, 0.0 }
 0x214   :  { %v1333_v63 = vsel %vm86_vm1, %v1269_v18, %v949_v54  ;;  %v1334_v30 = vsel %vm86_vm1, %v1270_v57, %v950_v6  ;;  %2038 = vadd.xlane.f32.xlu0 %v2037_v33  ;;  %2041 = vadd.xlane.f32.xlu1 %v2040_v50  ;;  %v1586_v54 = vsel %vm263_vm0, %v1496_v43, 0.0  ;;  %v1943_v6 = vsel %vm86_vm1, %v1431_v60, 0.0 }
 0x215   :  { %v837_v2 = vpop.xlane.xlu0 %836  ;;  %v840_v44 = vpop.xlane.xlu1 %839  ;;  %v7289_v56 = vsub.f32 %v6456_v59, %v1333_v63  ;;  %v7292_v22 = vsub.f32 %v6462_v16, %v1334_v30  ;;  %v1944_v18 = vsel %vm86_vm1, %v1432_v24, 0.0  ;;  %v1437_v57 = vmul.f32 %v6899_v3, %v6899_v3 }
 0x216   :  { %v1438_v59 = vmul.f32 %v6902_v38, %v6902_v38  ;;  %v947_v50 = vmul.f32 0.0625, %v837_v2  ;;  %v948_v63 = vmul.f32 0.0625, %v840_v44  ;;  %v2031_v43 = vsel %vm263_vm0, %v1943_v6, 0.0 }
 0x217   :  { %11621 = vst [vmem:[#allocation14_spill] sm:$0xff] %v7289_v56  ;;  %11622 = vst [vmem:[#allocation16_spill] sm:$0xff] %v7292_v22 }
 0x218   :  { %1584 = vadd.xlane.f32.xlu0 %v1583_v40  ;;  %1587 = vadd.xlane.f32.xlu1 %v1586_v54  ;;  %v2034_v40 = vsel %vm263_vm0, %v1944_v18, 0.0  ;;  %v1501_v54 = vsel %vm86_vm1, 0.0, %v1437_v57  ;;  %v1502_v2 = vsel %vm86_vm1, 0.0, %v1438_v59 }
 0x219   :  { %v1157_v16 = vpop.xlane.xlu0 %1156  ;;  %v1160_v33 = vpop.xlane.xlu1 %1159 }
 0x21a   :  { %v1267_v30 = vmul.f32 0.0625, %v1157_v16  ;;  %v1268_v13 = vmul.f32 0.0625, %v1160_v33  ;;  %v1601_v33 = vsel %vm263_vm0, %v1501_v54, 0.0 }
 0x21c   :  { %v1331_v60 = vsel %vm86_vm1, %v1267_v30, %v947_v50  ;;  %v1332_v24 = vsel %vm86_vm1, %v1268_v13, %v948_v63  ;;  %2032 = vadd.xlane.f32.xlu0 %v2031_v43  ;;  %2035 = vadd.xlane.f32.xlu1 %v2034_v40  ;;  %v1604_v50 = vsel %vm263_vm0, %v1502_v2, 0.0  ;;  %v1949_v63 = vsel %vm86_vm1, %v1437_v57, 0.0 }
 0x21d   :  { %v855_v44 = vpop.xlane.xlu0 %854  ;;  %v858_v16 = vpop.xlane.xlu1 %857  ;;  %v7315_v6 = vsub.f32 %v6458_v61, %v1331_v60  ;;  %v7318_v18 = vsub.f32 %v6470_v26, %v1332_v24  ;;  %v1950_v30 = vsel %vm86_vm1, %v1438_v59, 0.0  ;;  %v1435_v13 = vmul.f32 %v6933_v5, %v6933_v5 }
 0x21e   :  { %v1436_v61 = vmul.f32 %v6936_v4, %v6936_v4  ;;  %v953_v40 = vmul.f32 0.0625, %v855_v44  ;;  %v954_v60 = vmul.f32 0.0625, %v858_v16  ;;  %v2049_v2 = vsel %vm263_vm0, %v1949_v63, 0.0 }
 0x21f   :  { %11623 = vst [vmem:[#allocation17_spill] sm:$0xff] %v7315_v6  ;;  %11624 = vst [vmem:[#allocation19_spill] sm:$0xff] %v7318_v18 }
 0x220   :  { %1602 = vadd.xlane.f32.xlu0 %v1601_v33  ;;  %1605 = vadd.xlane.f32.xlu1 %v1604_v50  ;;  %v2052_v33 = vsel %vm263_vm0, %v1950_v30, 0.0  ;;  %v1499_v50 = vsel %vm86_vm1, 0.0, %v1435_v13  ;;  %v1500_v44 = vsel %vm86_vm1, 0.0, %v1436_v61 }
 0x221   :  { %v1175_v26 = vpop.xlane.xlu0 %1174  ;;  %v1178_v43 = vpop.xlane.xlu1 %1177 }
 0x222   :  { %v1273_v24 = vmul.f32 0.0625, %v1175_v26  ;;  %v1274_v54 = vmul.f32 0.0625, %v1178_v43  ;;  %v1595_v43 = vsel %vm263_vm0, %v1499_v50, 0.0 }
 0x224   :  { %v1337_v57 = vsel %vm86_vm1, %v1273_v24, %v953_v40  ;;  %v1338_v59 = vsel %vm86_vm1, %v1274_v54, %v954_v60  ;;  %2050 = vadd.xlane.f32.xlu0 %v2049_v2  ;;  %2053 = vadd.xlane.f32.xlu1 %v2052_v33  ;;  %v1598_v40 = vsel %vm263_vm0, %v1500_v44, 0.0  ;;  %v1947_v60 = vsel %vm86_vm1, %v1435_v13, 0.0 }
 0x225   :  { %v849_v16 = vpop.xlane.xlu0 %848  ;;  %v852_v26 = vpop.xlane.xlu1 %851  ;;  %v7341_v63 = vsub.f32 %v6480_v46, %v1337_v57  ;;  %v7344_v30 = vsub.f32 %v6486_v14, %v1338_v59  ;;  %v1948_v24 = vsel %vm86_vm1, %v1436_v61, 0.0  ;;  %v1441_v54 = vmul.f32 %v6967_v19, %v6967_v19 }
 0x226   :  { %v1442_v46 = vmul.f32 %v6970_v12, %v6970_v12  ;;  %v951_v33 = vmul.f32 0.0625, %v849_v16  ;;  %v952_v57 = vmul.f32 0.0625, %v852_v26  ;;  %v2043_v44 = vsel %vm263_vm0, %v1947_v60, 0.0 }
 0x227   :  { %11625 = vst [vmem:[#allocation18_spill] sm:$0xff] %v7341_v63  ;;  %11626 = vst [vmem:[#allocation20_spill] sm:$0xff] %v7344_v30 }
 0x228   :  { %1596 = vadd.xlane.f32.xlu0 %v1595_v43  ;;  %1599 = vadd.xlane.f32.xlu1 %v1598_v40  ;;  %v2046_v43 = vsel %vm263_vm0, %v1948_v24, 0.0  ;;  %v1505_v40 = vsel %vm86_vm1, 0.0, %v1441_v54  ;;  %v1506_v16 = vsel %vm86_vm1, 0.0, %v1442_v46 }
 0x229   :  { %v1169_v14 = vpop.xlane.xlu0 %1168  ;;  %v1172_v2 = vpop.xlane.xlu1 %1171 }
 0x22a   :  { %v1271_v59 = vmul.f32 0.0625, %v1169_v14  ;;  %v1272_v50 = vmul.f32 0.0625, %v1172_v2  ;;  %v1613_v2 = vsel %vm263_vm0, %v1505_v40, 0.0 }
 0x22c   :  { %v1335_v13 = vsel %vm86_vm1, %v1271_v59, %v951_v33  ;;  %v1336_v61 = vsel %vm86_vm1, %v1272_v50, %v952_v57  ;;  %2044 = vadd.xlane.f32.xlu0 %v2043_v44  ;;  %2047 = vadd.xlane.f32.xlu1 %v2046_v43  ;;  %v1616_v33 = vsel %vm263_vm0, %v1506_v16, 0.0  ;;  %v1953_v57 = vsel %vm86_vm1, %v1441_v54, 0.0 }
 0x22d   :  { %v867_v26 = vpop.xlane.xlu0 %866  ;;  %v870_v14 = vpop.xlane.xlu1 %869  ;;  %v7367_v60 = vsub.f32 %v6482_v49, %v1335_v13  ;;  %v7370_v24 = vsub.f32 %v6494_v29, %v1336_v61  ;;  %v1954_v59 = vsel %vm86_vm1, %v1442_v46, 0.0  ;;  %v1439_v50 = vmul.f32 %v7001_v51, %v7001_v51 }
 0x22e   :  { %v1440_v49 = vmul.f32 %v7004_v9, %v7004_v9  ;;  %v957_v43 = vmul.f32 0.0625, %v867_v26  ;;  %v958_v13 = vmul.f32 0.0625, %v870_v14  ;;  %v2061_v16 = vsel %vm263_vm0, %v1953_v57, 0.0 }
 0x22f   :  { %11627 = vst [vmem:[#allocation21_spill] sm:$0xff] %v7367_v60  ;;  %11628 = vst [vmem:[#allocation22_spill] sm:$0xff] %v7370_v24 }
 0x230   :  { %1614 = vadd.xlane.f32.xlu0 %v1613_v2  ;;  %1617 = vadd.xlane.f32.xlu1 %v1616_v33  ;;  %v2064_v2 = vsel %vm263_vm0, %v1954_v59, 0.0  ;;  %v1503_v33 = vsel %vm86_vm1, 0.0, %v1439_v50  ;;  %v1504_v26 = vsel %vm86_vm1, 0.0, %v1440_v49 }
 0x231   :  { %v1187_v29 = vpop.xlane.xlu0 %1186  ;;  %v1190_v44 = vpop.xlane.xlu1 %1189 }
 0x232   :  { %v1277_v61 = vmul.f32 0.0625, %v1187_v29  ;;  %v1278_v40 = vmul.f32 0.0625, %v1190_v44  ;;  %v1607_v44 = vsel %vm263_vm0, %v1503_v33, 0.0 }
 0x234   :  { %v1341_v54 = vsel %vm86_vm1, %v1277_v61, %v957_v43  ;;  %v1342_v46 = vsel %vm86_vm1, %v1278_v40, %v958_v13  ;;  %2062 = vadd.xlane.f32.xlu0 %v2061_v16  ;;  %2065 = vadd.xlane.f32.xlu1 %v2064_v2  ;;  %v1610_v43 = vsel %vm263_vm0, %v1504_v26, 0.0  ;;  %v1951_v13 = vsel %vm86_vm1, %v1439_v50, 0.0 }
 0x235   :  { %v861_v14 = vpop.xlane.xlu0 %860  ;;  %v864_v29 = vpop.xlane.xlu1 %863  ;;  %v7393_v57 = vsub.f32 %v6504_v0, %v1341_v54  ;;  %v7396_v59 = vsub.f32 %v6510_v53, %v1342_v46  ;;  %v1952_v61 = vsel %vm86_vm1, %v1440_v49, 0.0  ;;  %v1445_v40 = vmul.f32 %v7035_v25, %v7035_v25 }
 0x236   :  { %v1446_v0 = vmul.f32 %v7038_v27, %v7038_v27  ;;  %v955_v2 = vmul.f32 0.0625, %v861_v14  ;;  %v956_v54 = vmul.f32 0.0625, %v864_v29  ;;  %v2055_v26 = vsel %vm263_vm0, %v1951_v13, 0.0 }
 0x237   :  { %11629 = vst [vmem:[#allocation42_spill] sm:$0xff] %v7393_v57  ;;  %11630 = vst [vmem:[#allocation43_spill] sm:$0xff] %v7396_v59 }
 0x238   :  { %1608 = vadd.xlane.f32.xlu0 %v1607_v44  ;;  %1611 = vadd.xlane.f32.xlu1 %v1610_v43  ;;  %v2058_v44 = vsel %vm263_vm0, %v1952_v61, 0.0  ;;  %v1509_v43 = vsel %vm86_vm1, 0.0, %v1445_v40  ;;  %v1510_v14 = vsel %vm86_vm1, 0.0, %v1446_v0 }
 0x239   :  { %v1181_v53 = vpop.xlane.xlu0 %1180  ;;  %v1184_v16 = vpop.xlane.xlu1 %1183 }
 0x23a   :  { %v1275_v46 = vmul.f32 0.0625, %v1181_v53  ;;  %v1276_v33 = vmul.f32 0.0625, %v1184_v16  ;;  %v1625_v16 = vsel %vm263_vm0, %v1509_v43, 0.0 }
 0x23c   :  { %v1339_v50 = vsel %vm86_vm1, %v1275_v46, %v955_v2  ;;  %v1340_v49 = vsel %vm86_vm1, %v1276_v33, %v956_v54  ;;  %2056 = vadd.xlane.f32.xlu0 %v2055_v26  ;;  %2059 = vadd.xlane.f32.xlu1 %v2058_v44  ;;  %v1628_v2 = vsel %vm263_vm0, %v1510_v14, 0.0  ;;  %v1957_v54 = vsel %vm86_vm1, %v1445_v40, 0.0 }
 0x23d   :  { %v879_v29 = vpop.xlane.xlu0 %878  ;;  %v882_v53 = vpop.xlane.xlu1 %881  ;;  %v7419_v13 = vsub.f32 %v6506_v48, %v1339_v50  ;;  %v7422_v61 = vsub.f32 %v6518_v39, %v1340_v49  ;;  %v1958_v46 = vsel %vm86_vm1, %v1446_v0, 0.0  ;;  %v1443_v33 = vmul.f32 %v7071_v47, %v7071_v47 }
 0x23e   :  { %v1444_v48 = vmul.f32 %v7074_v31, %v7074_v31  ;;  %v961_v44 = vmul.f32 0.0625, %v879_v29  ;;  %v962_v50 = vmul.f32 0.0625, %v882_v53  ;;  %v2073_v14 = vsel %vm263_vm0, %v1957_v54, 0.0 }
 0x23f   :  { %11631 = vst [vmem:[#allocation44_spill] sm:$0xff] %v7419_v13  ;;  %11632 = vst [vmem:[#allocation45_spill] sm:$0xff] %v7422_v61 }
 0x240   :  { %1626 = vadd.xlane.f32.xlu0 %v1625_v16  ;;  %1629 = vadd.xlane.f32.xlu1 %v1628_v2  ;;  %v2076_v16 = vsel %vm263_vm0, %v1958_v46, 0.0  ;;  %v1507_v2 = vsel %vm86_vm1, 0.0, %v1443_v33  ;;  %v1508_v29 = vsel %vm86_vm1, 0.0, %v1444_v48 }
 0x241   :  { %v1199_v39 = vpop.xlane.xlu0 %1198  ;;  %v1202_v26 = vpop.xlane.xlu1 %1201 }
 0x242   :  { %v1281_v49 = vmul.f32 0.0625, %v1199_v39  ;;  %v1282_v43 = vmul.f32 0.0625, %v1202_v26  ;;  %v1619_v26 = vsel %vm263_vm0, %v1507_v2, 0.0 }
 0x244   :  { %v1345_v40 = vsel %vm86_vm1, %v1281_v49, %v961_v44  ;;  %v1346_v0 = vsel %vm86_vm1, %v1282_v43, %v962_v50  ;;  %2074 = vadd.xlane.f32.xlu0 %v2073_v14  ;;  %2077 = vadd.xlane.f32.xlu1 %v2076_v16  ;;  %v1622_v44 = vsel %vm263_vm0, %v1508_v29, 0.0  ;;  %v1955_v50 = vsel %vm86_vm1, %v1443_v33, 0.0 }
 0x245   :  { %v873_v53 = vpop.xlane.xlu0 %872  ;;  %v876_v39 = vpop.xlane.xlu1 %875  ;;  %v7445_v54 = vsub.f32 %v6528_v17, %v1345_v40  ;;  %v7448_v46 = vsub.f32 %v6534_v41, %v1346_v0  ;;  %v1956_v49 = vsel %vm86_vm1, %v1444_v48, 0.0  ;;  %v1449_v43 = vmul.f32 %v7105_v28, %v7105_v28  ;;  %v11648_v28 = vld [vmem:[#allocation27_spill] sm:$0xff] }
 0x246   :  { %v1450_v17 = vmul.f32 %v7108_v32, %v7108_v32  ;;  %v959_v16 = vmul.f32 0.0625, %v873_v53  ;;  %v960_v40 = vmul.f32 0.0625, %v876_v39  ;;  %v2067_v29 = vsel %vm263_vm0, %v1955_v50, 0.0 }
 0x247   :  { %11633 = vst [vmem:[#allocation46_spill] sm:$0xff] %v7445_v54  ;;  %11634 = vst [vmem:[#allocation47_spill] sm:$0xff] %v7448_v46 }
 0x248   :  { %1620 = vadd.xlane.f32.xlu0 %v1619_v26  ;;  %1623 = vadd.xlane.f32.xlu1 %v1622_v44  ;;  %v2070_v26 = vsel %vm263_vm0, %v1956_v49, 0.0  ;;  %v1513_v44 = vsel %vm86_vm1, 0.0, %v1449_v43  ;;  %v1514_v53 = vsel %vm86_vm1, 0.0, %v1450_v17 }
 0x249   :  { %v1193_v41 = vpop.xlane.xlu0 %1192  ;;  %v1196_v14 = vpop.xlane.xlu1 %1195 }
 0x24a   :  { %v1279_v0 = vmul.f32 0.0625, %v1193_v41  ;;  %v1280_v2 = vmul.f32 0.0625, %v1196_v14  ;;  %v1637_v14 = vsel %vm263_vm0, %v1513_v44, 0.0 }
 0x24c   :  { %v1343_v33 = vsel %vm86_vm1, %v1279_v0, %v959_v16  ;;  %v1344_v48 = vsel %vm86_vm1, %v1280_v2, %v960_v40  ;;  %2068 = vadd.xlane.f32.xlu0 %v2067_v29  ;;  %2071 = vadd.xlane.f32.xlu1 %v2070_v26  ;;  %v1640_v16 = vsel %vm263_vm0, %v1514_v53, 0.0  ;;  %v1961_v40 = vsel %vm86_vm1, %v1449_v43, 0.0 }
 0x24d   :  { %v891_v39 = vpop.xlane.xlu0 %890  ;;  %v894_v41 = vpop.xlane.xlu1 %893  ;;  %v7471_v50 = vsub.f32 %v6530_v1, %v1343_v33  ;;  %v7474_v49 = vsub.f32 %v6542_v45, %v1344_v48  ;;  %v1962_v0 = vsel %vm86_vm1, %v1450_v17, 0.0  ;;  %v1447_v2 = vmul.f32 %v7139_v15, %v7139_v15 }
 0x24e   :  { %v1448_v1 = vmul.f32 %v7142_v42, %v7142_v42  ;;  %v965_v26 = vmul.f32 0.0625, %v891_v39  ;;  %v966_v33 = vmul.f32 0.0625, %v894_v41  ;;  %v2085_v53 = vsel %vm263_vm0, %v1961_v40, 0.0 }
 0x24f   :  { %11635 = vst [vmem:[#allocation48_spill] sm:$0xff] %v7471_v50  ;;  %11636 = vst [vmem:[#allocation49_spill] sm:$0xff] %v7474_v49 }
 0x250   :  { %1638 = vadd.xlane.f32.xlu0 %v1637_v14  ;;  %1641 = vadd.xlane.f32.xlu1 %v1640_v16  ;;  %v2088_v14 = vsel %vm263_vm0, %v1962_v0, 0.0  ;;  %v1511_v16 = vsel %vm86_vm1, 0.0, %v1447_v2  ;;  %v1512_v39 = vsel %vm86_vm1, 0.0, %v1448_v1 }
 0x251   :  { %v1211_v45 = vpop.xlane.xlu0 %1210  ;;  %v1214_v29 = vpop.xlane.xlu1 %1213 }
 0x252   :  { %v1285_v48 = vmul.f32 0.0625, %v1211_v45  ;;  %v1286_v44 = vmul.f32 0.0625, %v1214_v29  ;;  %v1631_v29 = vsel %vm263_vm0, %v1511_v16, 0.0 }
 0x254   :  { %v1349_v43 = vsel %vm86_vm1, %v1285_v48, %v965_v26  ;;  %v1350_v17 = vsel %vm86_vm1, %v1286_v44, %v966_v33  ;;  %2086 = vadd.xlane.f32.xlu0 %v2085_v53  ;;  %2089 = vadd.xlane.f32.xlu1 %v2088_v14  ;;  %v1634_v26 = vsel %vm263_vm0, %v1512_v39, 0.0  ;;  %v1959_v33 = vsel %vm86_vm1, %v1447_v2, 0.0 }
 0x255   :  { %v885_v41 = vpop.xlane.xlu0 %884  ;;  %v888_v45 = vpop.xlane.xlu1 %887  ;;  %v7497_v40 = vsub.f32 %v6552_v21, %v1349_v43  ;;  %v7500_v0 = vsub.f32 %v6558_v34, %v1350_v17  ;;  %v1960_v48 = vsel %vm86_vm1, %v1448_v1, 0.0  ;;  %v1453_v44 = vmul.f32 %v7173_v58, %v7173_v58  ;;  %v11641_v58 = vld [vmem:[#allocation24_spill] sm:$0xff] }
 0x256   :  { %v1454_v21 = vmul.f32 %v7176_v11, %v7176_v11  ;;  %v963_v14 = vmul.f32 0.0625, %v885_v41  ;;  %v964_v43 = vmul.f32 0.0625, %v888_v45  ;;  %v7512_v39 = vpop.f32.mrb[0].mxu1  ;;  %v2082_v2 = vsel %vm263_vm0, %v1960_v48, 0.0 }
 0x257   :  { %11637 = vst [vmem:[#allocation50_spill] sm:$0xff] %v7497_v40  ;;  %11638 = vst [vmem:[#allocation51_spill] sm:$0xff] %v7500_v0  ;;  %v1517_v41 = vsel %vm86_vm1, 0.0, %v1453_v44 }
 0x258   :  { %1632 = vadd.xlane.f32.xlu0 %v1631_v29  ;;  %1635 = vadd.xlane.f32.xlu1 %v1634_v26  ;;  %v2079_v29 = vsel %vm263_vm0, %v1959_v33, 0.0  ;;  %v7516_v26 = vpop.f32.mrb[1].mxu1  ;;  %v1518_v45 = vsel %vm86_vm1, 0.0, %v1454_v21 }
 0x259   :  { %v1205_v34 = vpop.xlane.xlu0 %1204  ;;  %v1208_v53 = vpop.xlane.xlu1 %1207 }
 0x25a   :  { %v1283_v17 = vmul.f32 0.0625, %v1205_v34  ;;  %v1284_v16 = vmul.f32 0.0625, %v1208_v53  ;;  %v7526_v34 = vpop.f32.mrb[2].mxu1 }
 0x25b   :  { %11639 = vst [vmem:[#allocation52_spill] sm:$0xff] %v7526_v34 }
 0x25c   :  { %v1347_v1 = vsel %vm86_vm1, %v1283_v17, %v963_v14  ;;  %v1348_v11 = vsel %vm86_vm1, %v1284_v16, %v964_v43  ;;  %2080 = vadd.xlane.f32.xlu0 %v2079_v29  ;;  %2083 = vadd.xlane.f32.xlu1 %v2082_v2  ;;  %v7534_v17 = vpop.f32.mrb[3].mxu1  ;;  %v1649_v43 = vsel %vm263_vm0, %v1517_v41, 0.0  ;;  %v1652_v16 = vsel %vm263_vm0, %v1518_v45, 0.0 }
 0x25d   :  { %v903_v33 = vpop.xlane.xlu0 %902  ;;  %v906_v48 = vpop.xlane.xlu1 %905  ;;  %v7529_v53 = vsub.f32 %v11586_v10, %v1347_v1  ;;  %v7532_v14 = vsub.f32 %v11641_v58, %v1348_v11  ;;  %v1965_v29 = vsel %vm86_vm1, %v1453_v44, 0.0  ;;  %v1966_v2 = vsel %vm86_vm1, %v1454_v21, 0.0 }
 0x25e   :  { %v1451_v10 = vmul.f32 %v7207_v62, %v7207_v62  ;;  %v1452_v11 = vmul.f32 %v7210_v23, %v7210_v23  ;;  %v969_v42 = vmul.f32 0.0625, %v903_v33  ;;  %v970_v41 = vmul.f32 0.0625, %v906_v48 }
 0x25f   :  { %11640 = vst [vmem:[#allocation53_spill] sm:$0xff] %v7529_v53  ;;  %11642 = vst [vmem:[#allocation24_spill] sm:$0xff] %v7532_v14  ;;  %v2100_v44 = vsel %vm263_vm0, %v1966_v2, 0.0 }
 0x260   :  { %1650 = vadd.xlane.f32.xlu0 %v1649_v43  ;;  %1653 = vadd.xlane.f32.xlu1 %v1652_v16  ;;  %v7546_v43 = vpop.f32.mrb[4].mxu1  ;;  %v2097_v16 = vsel %vm263_vm0, %v1965_v29, 0.0  ;;  %v1515_v33 = vsel %vm86_vm1, 0.0, %v1451_v10  ;;  %v1516_v48 = vsel %vm86_vm1, 0.0, %v1452_v11 }
 0x261   :  { %v1223_v58 = vpop.xlane.xlu0 %1222  ;;  %v1226_v1 = vpop.xlane.xlu1 %1225  ;;  %11643 = vst [vmem:[#allocation54_spill] sm:$0xff] %v7546_v43 }
 0x262   :  { %v1289_v15 = vmul.f32 0.0625, %v1223_v58  ;;  %v1290_v45 = vmul.f32 0.0625, %v1226_v1  ;;  %v7550_v32 = vpop.f32.mrb[5].mxu1  ;;  %v11646_v1 = vld [vmem:[#allocation25_spill] sm:$0xff] }
 0x263   :  { %11644 = vst [vmem:[#allocation55_spill] sm:$0xff] %v7550_v32  ;;  %v7560_v58 = vpop.f32.mrb[6].mxu1 }
 0x264   :  { %v1353_v21 = vsel %vm86_vm1, %v1289_v15, %v969_v42  ;;  %v1354_v23 = vsel %vm86_vm1, %v1290_v45, %v970_v41  ;;  %2098 = vadd.xlane.f32.xlu0 %v2097_v16  ;;  %2101 = vadd.xlane.f32.xlu1 %v2100_v44  ;;  %11645 = vst [vmem:[#allocation56_spill] sm:$0xff] %v7560_v58  ;;  %v7568_v15 = vpop.f32.mrb[7].mxu1  ;;  %v1643_v41 = vsel %vm263_vm0, %v1515_v33, 0.0  ;;  %v1646_v45 = vsel %vm263_vm0, %v1516_v48, 0.0 }
 0x265   :  { %v897_v29 = vpop.xlane.xlu0 %896  ;;  %v900_v2 = vpop.xlane.xlu1 %899  ;;  %v7563_v62 = vsub.f32 %v11646_v1, %v1353_v21  ;;  %v7566_v42 = vsub.f32 %v11648_v28, %v1354_v23  ;;  %11650 = vst [vmem:[#allocation57_spill] sm:$0xff] %v7568_v15  ;;  %v1963_v16 = vsel %vm86_vm1, %v1451_v10, 0.0  ;;  %v1964_v44 = vsel %vm86_vm1, %v1452_v11, 0.0 }
 0x266   :  { %v1457_v21 = vmul.f32 %v7237_v36, %v7237_v36  ;;  %v1458_v23 = vmul.f32 %v7240_v20, %v7240_v20  ;;  %v967_v31 = vmul.f32 0.0625, %v897_v29  ;;  %v968_v33 = vmul.f32 0.0625, %v900_v2 }
 0x267   :  { %11647 = vst [vmem:[#allocation25_spill] sm:$0xff] %v7563_v62  ;;  %11649 = vst [vmem:[#allocation27_spill] sm:$0xff] %v7566_v42  ;;  %v2094_v10 = vsel %vm263_vm0, %v1964_v44, 0.0 }
 0x268   :  { %1644 = vadd.xlane.f32.xlu0 %v1643_v41  ;;  %1647 = vadd.xlane.f32.xlu1 %v1646_v45  ;;  %v7580_v41 = vpop.f32.mrb[8].mxu1  ;;  %v2091_v45 = vsel %vm263_vm0, %v1963_v16, 0.0  ;;  %v1521_v29 = vsel %vm86_vm1, 0.0, %v1457_v21  ;;  %v1522_v2 = vsel %vm86_vm1, 0.0, %v1458_v23 }
 0x269   :  { %v1217_v28 = vpop.xlane.xlu0 %1216  ;;  %v1220_v1 = vpop.xlane.xlu1 %1219  ;;  %11651 = vst [vmem:[#allocation58_spill] sm:$0xff] %v7580_v41  ;;  %v11656_v41 = vld [vmem:[#allocation28_spill] sm:$0xff] }
 0x26a   :  { %v1287_v47 = vmul.f32 0.0625, %v1217_v28  ;;  %v1288_v48 = vmul.f32 0.0625, %v1220_v1  ;;  %v7584_v58 = vpop.f32.mrb[9].mxu1  ;;  %v11654_v1 = vld [vmem:[#allocation26_spill] sm:$0xff] }
 0x26b   :  { %11652 = vst [vmem:[#allocation59_spill] sm:$0xff] %v7584_v58  ;;  %v7594_v28 = vpop.f32.mrb[10].mxu1  ;;  %v1455_v58 = vmul.f32 %v7263_v55, %v7263_v55 }
 0x26c   :  { %v1351_v11 = vsel %vm86_vm1, %v1287_v47, %v967_v31  ;;  %v1352_v20 = vsel %vm86_vm1, %v1288_v48, %v968_v33  ;;  %2092 = vadd.xlane.f32.xlu0 %v2091_v45  ;;  %2095 = vadd.xlane.f32.xlu1 %v2094_v10  ;;  %11653 = vst [vmem:[#allocation60_spill] sm:$0xff] %v7594_v28  ;;  %v7602_v48 = vpop.f32.mrb[11].mxu1  ;;  %v1661_v45 = vsel %vm263_vm0, %v1521_v29, 0.0  ;;  %v1664_v10 = vsel %vm263_vm0, %v1522_v2, 0.0 }
 0x26d   :  { %v1555_v16 = vpop.xlane.xlu0 %1554  ;;  %v1558_v44 = vpop.xlane.xlu1 %1557  ;;  %v7597_v36 = vsub.f32 %v11654_v1, %v1351_v11  ;;  %v7600_v31 = vsub.f32 %v11656_v41, %v1352_v20  ;;  %11658 = vst [vmem:[#allocation61_spill] sm:$0xff] %v7602_v48  ;;  %v1969_v11 = vsel %vm86_vm1, %v1457_v21, 0.0  ;;  %v1970_v20 = vsel %vm86_vm1, %v1458_v23, 0.0 }
 0x26e   :  { %v1741_v47 = vmul.f32 0.0625, %v1555_v16  ;;  %v1742_v33 = vmul.f32 0.0625, %v1558_v44  ;;  %v1456_v41 = vmul.f32 %v7266_v7, %v7266_v7  ;;  %v7614_v48 = vpop.f32.mrb[12].mxu1  ;;  %v1519_v21 = vsel %vm86_vm1, 0.0, %v1455_v58 }
 0x26f   :  { %11655 = vst [vmem:[#allocation26_spill] sm:$0xff] %v7597_v36  ;;  %11657 = vst [vmem:[#allocation28_spill] sm:$0xff] %v7600_v31 }
 0x270   :  { %v1805_v28 = vadd.f32 1e-05, %v1741_v47  ;;  %1662 = vadd.xlane.f32.xlu0 %v1661_v45  ;;  %1665 = vadd.xlane.f32.xlu1 %v1664_v10  ;;  %v1806_v16 = vadd.f32 1e-05, %v1742_v33  ;;  %11659 = vst [vmem:[#allocation62_spill] sm:$0xff] %v7614_v48  ;;  %v2109_v47 = vsel %vm263_vm0, %v1969_v11, 0.0 }
 0x271   :  { %v2003_v44 = vpop.xlane.xlu0 %2002  ;;  %v2006_v29 = vpop.xlane.xlu1 %2005  ;;  %v2112_v45 = vsel %vm263_vm0, %v1970_v20, 0.0  ;;  %v1520_v33 = vsel %vm86_vm1, 0.0, %v1456_v41 }
 0x272   :  { %v2189_v1 = vmul.f32 0.0625, %v2003_v44  ;;  %v2190_v2 = vmul.f32 0.0625, %v2006_v29  ;;  %v7620_v10 = vpop.f32.mrb[13].mxu1  ;;  %5480 = vrsqrt.f32 %v1805_v28  ;;  %v1655_v28 = vsel %vm263_vm0, %v1519_v21, 0.0 }
 0x273   :  { %11660 = vst [vmem:[#allocation63_spill] sm:$0xff] %v7620_v10  ;;  %v7624_v44 = vpop.f32.mrb[14].mxu1  ;;  %5482 = vrsqrt.f32 %v1806_v16  ;;  %v1967_v16 = vsel %vm86_vm1, %v1455_v58, 0.0 }
 0x274   :  { %v2253_v23 = vadd.f32 1e-05, %v2189_v1  ;;  %v2254_v55 = vadd.f32 1e-05, %v2190_v2  ;;  %2110 = vadd.xlane.f32.xlu0 %v2109_v47  ;;  %2113 = vadd.xlane.f32.xlu1 %v2112_v45  ;;  %11661 = vst [vmem:[#allocation64_spill] sm:$0xff] %v7624_v44  ;;  %v7626_v48 = vpop.f32.mrb[15].mxu1  ;;  %v1461_v2 = vmul.f32 %v7289_v56, %v7289_v56 }
 0x275   :  { %v1549_v29 = vpop.xlane.xlu0 %1548  ;;  %v1552_v11 = vpop.xlane.xlu1 %1551  ;;  %11662 = vst [vmem:[#allocation65_spill] sm:$0xff] %v7626_v48  ;;  %v1658_v1 = vsel %vm263_vm0, %v1520_v33, 0.0  ;;  %v1968_v45 = vsel %vm86_vm1, %v1456_v41, 0.0 }
 0x276   :  { %5484 = vrsqrt.f32 %v2253_v23  ;;  %v1739_v20 = vmul.f32 0.0625, %v1549_v29  ;;  %v1740_v7 = vmul.f32 0.0625, %v1552_v11  ;;  %v1462_v23 = vmul.f32 %v7292_v22, %v7292_v22  ;;  %v7638_v44 = vpop.f32.mrb[16].mxu1 }
 0x277   :  { %5486 = vrsqrt.f32 %v2254_v55  ;;  %11663 = vst [vmem:[#allocation66_spill] sm:$0xff] %v7638_v44  ;;  %v1525_v58 = vsel %vm86_vm1, 0.0, %v1461_v2 }
 0x278   :  { %v1803_v47 = vadd.f32 1e-05, %v1739_v20  ;;  %1656 = vadd.xlane.f32.xlu0 %v1655_v28  ;;  %1659 = vadd.xlane.f32.xlu1 %v1658_v1  ;;  %v1804_v55 = vadd.f32 1e-05, %v1740_v7  ;;  %v2103_v20 = vsel %vm263_vm0, %v1967_v16, 0.0  ;;  %v2106_v28 = vsel %vm263_vm0, %v1968_v45, 0.0 }
 0x279   :  { %v1997_v29 = vpop.xlane.xlu0 %1996  ;;  %v2000_v21 = vpop.xlane.xlu1 %1999  ;;  %v1526_v7 = vsel %vm86_vm1, 0.0, %v1462_v23  ;;  %v1973_v45 = vsel %vm86_vm1, %v1461_v2, 0.0  ;;  %v1974_v22 = vsel %vm86_vm1, %v1462_v23, 0.0  ;;  %v1673_v44 = vsel %vm263_vm0, %v1525_v58, 0.0 }
 0x27a   :  { %v2187_v11 = vmul.f32 0.0625, %v1997_v29  ;;  %v2188_v33 = vmul.f32 0.0625, %v2000_v21  ;;  %v7644_v1 = vpop.f32.mrb[17].mxu1  ;;  %5488 = vrsqrt.f32 %v1803_v47  ;;  %v1459_v47 = vmul.f32 %v7315_v6, %v7315_v6 }
 0x27b   :  { %11664 = vst [vmem:[#allocation67_spill] sm:$0xff] %v7644_v1  ;;  %v7648_v29 = vpop.f32.mrb[18].mxu1  ;;  %5490 = vrsqrt.f32 %v1804_v55  ;;  %v1676_v2 = vsel %vm263_vm0, %v1526_v7, 0.0  ;;  %v2121_v6 = vsel %vm263_vm0, %v1973_v45, 0.0  ;;  %v2124_v7 = vsel %vm263_vm0, %v1974_v22, 0.0  ;;  %v11669_v22 = vld [vmem:[#allocation30_spill] sm:$0xff] }
 0x27c   :  { %v2251_v41 = vadd.f32 1e-05, %v2187_v11  ;;  %v2252_v56 = vadd.f32 1e-05, %v2188_v33  ;;  %2104 = vadd.xlane.f32.xlu0 %v2103_v20  ;;  %2107 = vadd.xlane.f32.xlu1 %v2106_v28  ;;  %11665 = vst [vmem:[#allocation68_spill] sm:$0xff] %v7648_v29  ;;  %v5481_v11 = vpop.eup %5480  ;;  %v1460_v28 = vmul.f32 %v7318_v18, %v7318_v18  ;;  %v7658_v29 = vpop.f32.mrb[19].mxu1 }
 0x27d   :  { %v1567_v21 = vpop.xlane.xlu0 %1566  ;;  %v1570_v16 = vpop.xlane.xlu1 %1569  ;;  %11666 = vst [vmem:[#allocation69_spill] sm:$0xff] %v7658_v29 }
 0x27e   :  { %5492 = vrsqrt.f32 %v2251_v41  ;;  %v1745_v33 = vmul.f32 0.0625, %v1567_v21  ;;  %v1746_v20 = vmul.f32 0.0625, %v1570_v16  ;;  %v5483_v55 = vpop.eup %5482  ;;  %v7666_v21 = vld [vmem:[%s11313_s2] ss:$0 sm:$0xff]  ;;  %v1524_v48 = vsel %vm86_vm1, 0.0, %v1460_v28  ;;  %v7678_v10 = vpop.f32.mrb[20].mxu1 }
 0x27f   :  { %5494 = vrsqrt.f32 %v2252_v56 }
 0x280   :  { %v5485_v1 = vpop.eup %5484  ;;  %v1809_v23 = vadd.f32 1e-05, %v1745_v33  ;;  %1674 = vadd.xlane.f32.xlu0 %v1673_v44  ;;  %1677 = vadd.xlane.f32.xlu1 %v1676_v2  ;;  %v1810_v56 = vadd.f32 1e-05, %v1746_v20  ;;  %v1523_v44 = vsel %vm86_vm1, 0.0, %v1459_v47  ;;  %v11667_v33 = vld [vmem:[#allocation29_spill] sm:$0xff] }
 0x281   :  { %v5487_v41 = vpop.eup %5486  ;;  %v2381_v16 = vsel %vm86_vm1, %v5485_v1, %v5481_v11  ;;  %v2015_v18 = vpop.xlane.xlu0 %2014  ;;  %11668 = vst [vmem:[#allocation29_spill] sm:$0xff] %v7678_v10  ;;  %v7683_v1 = vld [vmem:[%s11314_s3] ss:$0 sm:$0xff]  ;;  %v1465_v10 = vmul.f32 %v7341_v63, %v7341_v63 }
 0x282   :  { %v2018_v58 = vpop.xlane.xlu1 %2017  ;;  %v2445_v2 = vmul.f32 %v2381_v16, %v11667_v33  ;;  %v2382_v45 = vsel %vm86_vm1, %v5487_v41, %v5483_v55  ;;  %v2193_v29 = vmul.f32 0.0625, %v2015_v18  ;;  %v1971_v16 = vsel %vm86_vm1, %v1459_v47, 0.0  ;;  %v7690_v18 = vpop.f32.mrb[21].mxu1 }
 0x283   :  { %v2446_v11 = vmul.f32 %v2382_v45, %v11669_v22  ;;  %v2194_v20 = vmul.f32 0.0625, %v2018_v58  ;;  %v1972_v55 = vsel %vm86_vm1, %v1460_v28, 0.0  ;;  %11670 = vst [vmem:[#allocation30_spill] sm:$0xff] %v7690_v18  ;;  %5496 = vrsqrt.f32 %v1809_v23  ;;  %v7695_v43 = vpop.f32.mrb[22].mxu1 }
 0x284   :  { %v2515_v41 = vmul.f32 %v7666_v21, %v2445_v2  ;;  %v2257_v33 = vadd.f32 1e-05, %v2193_v29  ;;  %2122 = vadd.xlane.f32.xlu0 %v2121_v6  ;;  %2125 = vadd.xlane.f32.xlu1 %v2124_v7  ;;  %11671 = vst [vmem:[#allocation70_spill] sm:$0xff] %v7695_v43  ;;  %5498 = vrsqrt.f32 %v1810_v56  ;;  %v1466_v28 = vmul.f32 %v7344_v30, %v7344_v30  ;;  %v5489_v18 = vpop.eup %5488  ;;  %v7701_v7 = vpop.f32.mrb[23].mxu1 }
 0x285   :  { %v2516_v58 = vmul.f32 %v7666_v21, %v2446_v11  ;;  %v2258_v47 = vadd.f32 1e-05, %v2194_v20  ;;  %v1561_v45 = vpop.xlane.xlu0 %1560  ;;  %11672 = vst [vmem:[#allocation71_spill] sm:$0xff] %v7701_v7  ;;  %v5491_v2 = vpop.eup %5490  ;;  %v1667_v56 = vsel %vm263_vm0, %v1523_v44, 0.0  ;;  %v1670_v11 = vsel %vm263_vm0, %v1524_v48, 0.0 }
 0x286   :  { %v1564_v22 = vpop.xlane.xlu1 %1563  ;;  %v2585_v23 = vadd.f32 %v7683_v1, %v2515_v41  ;;  %5500 = vrsqrt.f32 %v2257_v33  ;;  %v1743_v6 = vmul.f32 0.0625, %v1561_v45  ;;  %v2115_v33 = vsel %vm263_vm0, %v1971_v16, 0.0  ;;  %v7725_v30 = vpop.f32.mrb[24].mxu1 }
 0x287   :  { %v1744_v29 = vmul.f32 0.0625, %v1564_v22  ;;  %v2586_v63 = vadd.f32 %v7683_v1, %v2516_v58  ;;  %5502 = vrsqrt.f32 %v2258_v47  ;;  %v2118_v22 = vsel %vm263_vm0, %v1972_v55, 0.0  ;;  %v7732_v7 = vpop.f32.mrb[25].mxu1 }
 0x288   :  { %v5493_v20 = vpop.eup %5492  ;;  %2649 = vst.msk [vmem:[%s11315_s4 + $0x20] sm:$0xff] %vm263_vm0, %v2585_v23  ;;  %v1807_v41 = vadd.f32 1e-05, %v1743_v6  ;;  %1668 = vadd.xlane.f32.xlu0 %v1667_v56  ;;  %1671 = vadd.xlane.f32.xlu1 %v1670_v11  ;;  %v1529_v23 = vsel %vm86_vm1, 0.0, %v1465_v10  ;;  %v11673_v6 = vld [vmem:[#allocation31_spill] sm:$0xff]  ;;  %v1977_v55 = vsel %vm86_vm1, %v1465_v10, 0.0 }
 0x289   :  { %v5495_v45 = vpop.eup %5494  ;;  %2650 = vst.msk [vmem:[%s11315_s4 + $0x28] sm:$0xff] %vm263_vm0, %v2586_v63  ;;  %v2379_v48 = vsel %vm86_vm1, %v5493_v20, %v5489_v18  ;;  %v1808_v44 = vadd.f32 1e-05, %v1744_v29  ;;  %v2009_v58 = vpop.xlane.xlu0 %2008  ;;  %v1530_v63 = vsel %vm86_vm1, 0.0, %v1466_v28  ;;  %11674 = vst [vmem:[#allocation31_spill] sm:$0xff] %v7725_v30  ;;  %v11675_v18 = vld [vmem:[#allocation32_spill] sm:$0xff] }
 0x28a   :  { %v2012_v47 = vpop.xlane.xlu1 %2011  ;;  %v2443_v56 = vmul.f32 %v2379_v48, %v11673_v6  ;;  %v2380_v16 = vsel %vm86_vm1, %v5495_v45, %v5491_v2  ;;  %v2191_v11 = vmul.f32 0.0625, %v2009_v58  ;;  %v1978_v43 = vsel %vm86_vm1, %v1466_v28, 0.0  ;;  %11676 = vst [vmem:[#allocation32_spill] sm:$0xff] %v7732_v7  ;;  %v7737_v58 = vpop.f32.mrb[26].mxu1 }
 0x28b   :  { %v2444_v29 = vmul.f32 %v2380_v16, %v11675_v18  ;;  %v2192_v20 = vmul.f32 0.0625, %v2012_v47  ;;  %5504 = vrsqrt.f32 %v1807_v41  ;;  %v1463_v45 = vmul.f32 %v7367_v60, %v7367_v60  ;;  %11677 = vst [vmem:[#allocation72_spill] sm:$0xff] %v7737_v58 }
 0x28c   :  { %v2513_v48 = vmul.f32 %v7666_v21, %v2443_v56  ;;  %v2255_v2 = vadd.f32 1e-05, %v2191_v11  ;;  %2116 = vadd.xlane.f32.xlu0 %v2115_v33  ;;  %2119 = vadd.xlane.f32.xlu1 %v2118_v22  ;;  %5506 = vrsqrt.f32 %v1808_v44  ;;  %v1464_v28 = vmul.f32 %v7370_v24, %v7370_v24  ;;  %v7743_v56 = vpop.f32.mrb[27].mxu1 }
 0x28d   :  { %v2514_v47 = vmul.f32 %v7666_v21, %v2444_v29  ;;  %v2256_v10 = vadd.f32 1e-05, %v2192_v20  ;;  %v1579_v6 = vpop.xlane.xlu0 %1578  ;;  %v5497_v18 = vpop.eup %5496  ;;  %11678 = vst [vmem:[#allocation73_spill] sm:$0xff] %v7743_v56  ;;  %v1685_v44 = vsel %vm263_vm0, %v1529_v23, 0.0  ;;  %v1688_v29 = vsel %vm263_vm0, %v1530_v63, 0.0 }
 0x28e   :  { %v1582_v16 = vpop.xlane.xlu1 %1581  ;;  %v2583_v41 = vadd.f32 %v7683_v1, %v2513_v48  ;;  %5508 = vrsqrt.f32 %v2255_v2  ;;  %v1749_v33 = vmul.f32 0.0625, %v1579_v6  ;;  %v5499_v11 = vpop.eup %5498  ;;  %v2133_v2 = vsel %vm263_vm0, %v1977_v55, 0.0 }
 0x28f   :  { %v1750_v22 = vmul.f32 0.0625, %v1582_v16  ;;  %v2584_v60 = vadd.f32 %v7683_v1, %v2514_v47  ;;  %5510 = vrsqrt.f32 %v2256_v10  ;;  %v2136_v16 = vsel %vm263_vm0, %v1978_v43, 0.0  ;;  %v7767_v24 = vpop.f32.mrb[28].mxu1 }
 0x290   :  { %v5501_v20 = vpop.eup %5500  ;;  %2647 = vst.msk [vmem:[%s11315_s4] sm:$0xff] %vm263_vm0, %v2583_v41  ;;  %v1813_v48 = vadd.f32 1e-05, %v1749_v33  ;;  %1686 = vadd.xlane.f32.xlu0 %v1685_v44  ;;  %1689 = vadd.xlane.f32.xlu1 %v1688_v29  ;;  %v1527_v41 = vsel %vm86_vm1, 0.0, %v1463_v45  ;;  %v11679_v33 = vld [vmem:[#allocation33_spill] sm:$0xff]  ;;  %v1975_v43 = vsel %vm86_vm1, %v1463_v45, 0.0 }
 0x291   :  { %v5503_v6 = vpop.eup %5502  ;;  %2648 = vst.msk [vmem:[%s11315_s4 + $0x8] sm:$0xff] %vm263_vm0, %v2584_v60  ;;  %v2385_v23 = vsel %vm86_vm1, %v5501_v20, %v5497_v18  ;;  %v1814_v63 = vadd.f32 1e-05, %v1750_v22  ;;  %v2027_v47 = vpop.xlane.xlu0 %2026  ;;  %v1528_v60 = vsel %vm86_vm1, 0.0, %v1464_v28  ;;  %11680 = vst [vmem:[#allocation33_spill] sm:$0xff] %v7767_v24  ;;  %v11681_v18 = vld [vmem:[#allocation34_spill] sm:$0xff] }
 0x292   :  { %v2030_v10 = vpop.xlane.xlu1 %2029  ;;  %v2449_v44 = vmul.f32 %v2385_v23, %v11679_v33  ;;  %v2386_v55 = vsel %vm86_vm1, %v5503_v6, %v5499_v11  ;;  %v2197_v29 = vmul.f32 0.0625, %v2027_v47  ;;  %v1976_v58 = vsel %vm86_vm1, %v1464_v28, 0.0  ;;  %v7774_v30 = vpop.f32.mrb[29].mxu1 }
 0x293   :  { %v2450_v22 = vmul.f32 %v2386_v55, %v11681_v18  ;;  %v2198_v20 = vmul.f32 0.0625, %v2030_v10  ;;  %11682 = vst [vmem:[#allocation34_spill] sm:$0xff] %v7774_v30  ;;  %5512 = vrsqrt.f32 %v1813_v48  ;;  %v1469_v6 = vmul.f32 %v7393_v57, %v7393_v57  ;;  %v7779_v47 = vpop.f32.mrb[30].mxu1 }
 0x294   :  { %v2519_v23 = vmul.f32 %v7666_v21, %v2449_v44  ;;  %v2261_v11 = vadd.f32 1e-05, %v2197_v29  ;;  %2134 = vadd.xlane.f32.xlu0 %v2133_v2  ;;  %2137 = vadd.xlane.f32.xlu1 %v2136_v16  ;;  %11683 = vst [vmem:[#allocation74_spill] sm:$0xff] %v7779_v47  ;;  %5514 = vrsqrt.f32 %v1814_v63  ;;  %v1470_v28 = vmul.f32 %v7396_v59, %v7396_v59  ;;  %v7785_v44 = vpop.f32.mrb[31].mxu1 }
 0x295   :  { %v2520_v10 = vmul.f32 %v7666_v21, %v2450_v22  ;;  %v2262_v45 = vadd.f32 1e-05, %v2198_v20  ;;  %v1573_v33 = vpop.xlane.xlu0 %1572  ;;  %v5505_v18 = vpop.eup %5504  ;;  %11684 = vst [vmem:[#allocation75_spill] sm:$0xff] %v7785_v44  ;;  %v1679_v63 = vsel %vm263_vm0, %v1527_v41, 0.0  ;;  %v1682_v22 = vsel %vm263_vm0, %v1528_v60, 0.0 }
 0x296   :  { %v1576_v55 = vpop.xlane.xlu1 %1575  ;;  %v2589_v48 = vadd.f32 %v7683_v1, %v2519_v23  ;;  %5516 = vrsqrt.f32 %v2261_v11  ;;  %v1747_v2 = vmul.f32 0.0625, %v1573_v33  ;;  %v5507_v29 = vpop.eup %5506  ;;  %v2127_v11 = vsel %vm263_vm0, %v1975_v43, 0.0 }
 0x297   :  { %v1748_v16 = vmul.f32 0.0625, %v1576_v55  ;;  %v2590_v57 = vadd.f32 %v7683_v1, %v2520_v10  ;;  %5518 = vrsqrt.f32 %v2262_v45  ;;  %v2130_v55 = vsel %vm263_vm0, %v1976_v58, 0.0  ;;  %v7809_v59 = vpop.f32.mrb[32].mxu1 }
 0x298   :  { %v5509_v20 = vpop.eup %5508  ;;  %2653 = vst.msk [vmem:[%s11315_s4 + $0x60] sm:$0xff] %vm263_vm0, %v2589_v48  ;;  %v1811_v23 = vadd.f32 1e-05, %v1747_v2  ;;  %1680 = vadd.xlane.f32.xlu0 %v1679_v63  ;;  %1683 = vadd.xlane.f32.xlu1 %v1682_v22  ;;  %v1533_v48 = vsel %vm86_vm1, 0.0, %v1469_v6  ;;  %v11685_v2 = vld [vmem:[#allocation35_spill] sm:$0xff]  ;;  %v1981_v58 = vsel %vm86_vm1, %v1469_v6, 0.0 }
 0x299   :  { %v5511_v33 = vpop.eup %5510  ;;  %2654 = vst.msk [vmem:[%s11315_s4 + $0x68] sm:$0xff] %vm263_vm0, %v2590_v57  ;;  %v2383_v41 = vsel %vm86_vm1, %v5509_v20, %v5505_v18  ;;  %v1812_v60 = vadd.f32 1e-05, %v1748_v16  ;;  %v2021_v10 = vpop.xlane.xlu0 %2020  ;;  %v1534_v57 = vsel %vm86_vm1, 0.0, %v1470_v28  ;;  %11686 = vst [vmem:[#allocation35_spill] sm:$0xff] %v7809_v59  ;;  %v11687_v18 = vld [vmem:[#allocation36_spill] sm:$0xff] }
 0x29a   :  { %v2024_v45 = vpop.xlane.xlu1 %2023  ;;  %v2447_v63 = vmul.f32 %v2383_v41, %v11685_v2  ;;  %v2384_v43 = vsel %vm86_vm1, %v5511_v33, %v5507_v29  ;;  %v2195_v22 = vmul.f32 0.0625, %v2021_v10  ;;  %v1982_v47 = vsel %vm86_vm1, %v1470_v28, 0.0  ;;  %v7816_v24 = vpop.f32.mrb[33].mxu1 }
 0x29b   :  { %v2448_v16 = vmul.f32 %v2384_v43, %v11687_v18  ;;  %v2196_v20 = vmul.f32 0.0625, %v2024_v45  ;;  %11688 = vst [vmem:[#allocation36_spill] sm:$0xff] %v7816_v24  ;;  %5520 = vrsqrt.f32 %v1811_v23  ;;  %v1467_v33 = vmul.f32 %v7419_v13, %v7419_v13  ;;  %v7821_v10 = vpop.f32.mrb[34].mxu1 }
 0x29c   :  { %v2517_v41 = vmul.f32 %v7666_v21, %v2447_v63  ;;  %v2259_v29 = vadd.f32 1e-05, %v2195_v22  ;;  %2128 = vadd.xlane.f32.xlu0 %v2127_v11  ;;  %2131 = vadd.xlane.f32.xlu1 %v2130_v55  ;;  %11689 = vst [vmem:[#allocation76_spill] sm:$0xff] %v7821_v10  ;;  %5522 = vrsqrt.f32 %v1812_v60  ;;  %v1468_v28 = vmul.f32 %v7422_v61, %v7422_v61  ;;  %v7827_v63 = vpop.f32.mrb[35].mxu1 }
 0x29d   :  { %v2518_v45 = vmul.f32 %v7666_v21, %v2448_v16  ;;  %v2260_v6 = vadd.f32 1e-05, %v2196_v20  ;;  %v1591_v2 = vpop.xlane.xlu0 %1590  ;;  %v5513_v18 = vpop.eup %5512  ;;  %11690 = vst [vmem:[#allocation77_spill] sm:$0xff] %v7827_v63  ;;  %v1697_v60 = vsel %vm263_vm0, %v1533_v48, 0.0  ;;  %v1700_v16 = vsel %vm263_vm0, %v1534_v57, 0.0 }
 0x29e   :  { %v1594_v43 = vpop.xlane.xlu1 %1593  ;;  %v2587_v23 = vadd.f32 %v7683_v1, %v2517_v41  ;;  %5524 = vrsqrt.f32 %v2259_v29  ;;  %v1753_v11 = vmul.f32 0.0625, %v1591_v2  ;;  %v5515_v22 = vpop.eup %5514  ;;  %v2145_v29 = vsel %vm263_vm0, %v1981_v58, 0.0 }
 0x29f   :  { %v1754_v55 = vmul.f32 0.0625, %v1594_v43  ;;  %v2588_v13 = vadd.f32 %v7683_v1, %v2518_v45  ;;  %5526 = vrsqrt.f32 %v2260_v6  ;;  %v2148_v43 = vsel %vm263_vm0, %v1982_v47, 0.0 }
 0x2a0   :  { %v5517_v20 = vpop.eup %5516  ;;  %2651 = vst.msk [vmem:[%s11315_s4 + $0x40] sm:$0xff] %vm263_vm0, %v2587_v23  ;;  %v1817_v41 = vadd.f32 1e-05, %v1753_v11  ;;  %1698 = vadd.xlane.f32.xlu0 %v1697_v60  ;;  %1701 = vadd.xlane.f32.xlu1 %v1700_v16  ;;  %v1531_v23 = vsel %vm86_vm1, 0.0, %v1467_v33  ;;  %v11691_v11 = vld [vmem:[#allocation37_spill] sm:$0xff]  ;;  %v7851_v61 = vpop.f32.mrb[36].mxu1 }
 0x2a1   :  { %v5519_v2 = vpop.eup %5518  ;;  %2652 = vst.msk [vmem:[%s11315_s4 + $0x48] sm:$0xff] %vm263_vm0, %v2588_v13  ;;  %v2389_v48 = vsel %vm86_vm1, %v5517_v20, %v5513_v18  ;;  %v1818_v57 = vadd.f32 1e-05, %v1754_v55  ;;  %v2039_v45 = vpop.xlane.xlu0 %2038  ;;  %v1532_v13 = vsel %vm86_vm1, 0.0, %v1468_v28  ;;  %11692 = vst [vmem:[#allocation37_spill] sm:$0xff] %v7851_v61  ;;  %v11693_v18 = vld [vmem:[#allocation38_spill] sm:$0xff] }
 0x2a2   :  { %v2042_v6 = vpop.xlane.xlu1 %2041  ;;  %v2453_v60 = vmul.f32 %v2389_v48, %v11691_v11  ;;  %v2390_v58 = vsel %vm86_vm1, %v5519_v2, %v5515_v22  ;;  %v2201_v16 = vmul.f32 0.0625, %v2039_v45  ;;  %v1979_v47 = vsel %vm86_vm1, %v1467_v33, 0.0  ;;  %v7858_v59 = vpop.f32.mrb[37].mxu1 }
 0x2a3   :  { %v2454_v55 = vmul.f32 %v2390_v58, %v11693_v18  ;;  %v2202_v20 = vmul.f32 0.0625, %v2042_v6  ;;  %v1980_v10 = vsel %vm86_vm1, %v1468_v28, 0.0  ;;  %11694 = vst [vmem:[#allocation38_spill] sm:$0xff] %v7858_v59  ;;  %5528 = vrsqrt.f32 %v1817_v41  ;;  %v7863_v45 = vpop.f32.mrb[38].mxu1 }
 0x2a4   :  { %v2523_v48 = vmul.f32 %v7666_v21, %v2453_v60  ;;  %v2265_v22 = vadd.f32 1e-05, %v2201_v16  ;;  %2146 = vadd.xlane.f32.xlu0 %v2145_v29  ;;  %2149 = vadd.xlane.f32.xlu1 %v2148_v43  ;;  %v1473_v2 = vmul.f32 %v7445_v54, %v7445_v54  ;;  %11695 = vst [vmem:[#allocation78_spill] sm:$0xff] %v7863_v45  ;;  %5530 = vrsqrt.f32 %v1818_v57  ;;  %v7869_v60 = vpop.f32.mrb[39].mxu1 }
 0x2a5   :  { %v2524_v6 = vmul.f32 %v7666_v21, %v2454_v55  ;;  %v2266_v33 = vadd.f32 1e-05, %v2202_v20  ;;  %v1585_v11 = vpop.xlane.xlu0 %1584  ;;  %v1474_v28 = vmul.f32 %v7448_v46, %v7448_v46  ;;  %v5521_v18 = vpop.eup %5520  ;;  %11696 = vst [vmem:[#allocation79_spill] sm:$0xff] %v7869_v60  ;;  %v1691_v57 = vsel %vm263_vm0, %v1531_v23, 0.0 }
 0x2a6   :  { %v1588_v58 = vpop.xlane.xlu1 %1587  ;;  %v2593_v41 = vadd.f32 %v7683_v1, %v2523_v48  ;;  %5532 = vrsqrt.f32 %v2265_v22  ;;  %v1751_v29 = vmul.f32 0.0625, %v1585_v11  ;;  %v5523_v16 = vpop.eup %5522  ;;  %v1694_v55 = vsel %vm263_vm0, %v1532_v13, 0.0 }
 0x2a7   :  { %v1752_v43 = vmul.f32 0.0625, %v1588_v58  ;;  %v2594_v54 = vadd.f32 %v7683_v1, %v2524_v6  ;;  %5534 = vrsqrt.f32 %v2266_v33  ;;  %v2139_v22 = vsel %vm263_vm0, %v1979_v47, 0.0 }
 0x2a8   :  { %v5525_v20 = vpop.eup %5524  ;;  %2657 = vst.msk [vmem:[%s11315_s4 + $0xa0] sm:$0xff] %vm263_vm0, %v2593_v41  ;;  %v1815_v48 = vadd.f32 1e-05, %v1751_v29  ;;  %1692 = vadd.xlane.f32.xlu0 %v1691_v57  ;;  %1695 = vadd.xlane.f32.xlu1 %v1694_v55  ;;  %v2142_v58 = vsel %vm263_vm0, %v1980_v10, 0.0  ;;  %v1537_v41 = vsel %vm86_vm1, 0.0, %v1473_v2  ;;  %v11697_v29 = vld [vmem:[#allocation39_spill] sm:$0xff] }
 0x2a9   :  { %v5527_v11 = vpop.eup %5526  ;;  %2658 = vst.msk [vmem:[%s11315_s4 + $0xa8] sm:$0xff] %vm263_vm0, %v2594_v54  ;;  %v2387_v23 = vsel %vm86_vm1, %v5525_v20, %v5521_v18  ;;  %v1816_v13 = vadd.f32 1e-05, %v1752_v43  ;;  %v2033_v6 = vpop.xlane.xlu0 %2032  ;;  %v1538_v54 = vsel %vm86_vm1, 0.0, %v1474_v28  ;;  %v11699_v18 = vld [vmem:[#allocation40_spill] sm:$0xff]  ;;  %v1985_v10 = vsel %vm86_vm1, %v1473_v2, 0.0 }
 0x2aa   :  { %v2036_v33 = vpop.xlane.xlu1 %2035  ;;  %v2451_v57 = vmul.f32 %v2387_v23, %v11697_v29  ;;  %v2388_v47 = vsel %vm86_vm1, %v5527_v11, %v5523_v16  ;;  %v2199_v55 = vmul.f32 0.0625, %v2033_v6  ;;  %v7893_v46 = vpop.f32.mrb[40].mxu1  ;;  %v1986_v45 = vsel %vm86_vm1, %v1474_v28, 0.0 }
 0x2ab   :  { %11698 = vst [vmem:[#allocation39_spill] sm:$0xff] %v7893_v46  ;;  %v2452_v43 = vmul.f32 %v2388_v47, %v11699_v18  ;;  %v2200_v20 = vmul.f32 0.0625, %v2036_v33  ;;  %v7900_v61 = vpop.f32.mrb[41].mxu1  ;;  %5536 = vrsqrt.f32 %v1815_v48  ;;  %v1471_v11 = vmul.f32 %v7471_v50, %v7471_v50 }
 0x2ac   :  { %11700 = vst [vmem:[#allocation40_spill] sm:$0xff] %v7900_v61  ;;  %v2521_v23 = vmul.f32 %v7666_v21, %v2451_v57  ;;  %v2263_v16 = vadd.f32 1e-05, %v2199_v55  ;;  %2140 = vadd.xlane.f32.xlu0 %v2139_v22  ;;  %2143 = vadd.xlane.f32.xlu1 %v2142_v58  ;;  %v7905_v6 = vpop.f32.mrb[42].mxu1  ;;  %5538 = vrsqrt.f32 %v1816_v13  ;;  %v1472_v28 = vmul.f32 %v7474_v49, %v7474_v49 }
 0x2ad   :  { %11701 = vst [vmem:[#allocation80_spill] sm:$0xff] %v7905_v6  ;;  %v2522_v33 = vmul.f32 %v7666_v21, %v2452_v43  ;;  %v2264_v2 = vadd.f32 1e-05, %v2200_v20  ;;  %v1603_v29 = vpop.xlane.xlu0 %1602  ;;  %v5529_v18 = vpop.eup %5528  ;;  %v1709_v13 = vsel %vm263_vm0, %v1537_v41, 0.0  ;;  %v1712_v43 = vsel %vm263_vm0, %v1538_v54, 0.0 }
 0x2ae   :  { %v1606_v47 = vpop.xlane.xlu1 %1605  ;;  %v2591_v48 = vadd.f32 %v7683_v1, %v2521_v23  ;;  %5540 = vrsqrt.f32 %v2263_v16  ;;  %v1757_v22 = vmul.f32 0.0625, %v1603_v29  ;;  %v7911_v57 = vpop.f32.mrb[43].mxu1  ;;  %v2157_v16 = vsel %vm263_vm0, %v1985_v10, 0.0 }
 0x2af   :  { %v1758_v58 = vmul.f32 0.0625, %v1606_v47  ;;  %11702 = vst [vmem:[#allocation81_spill] sm:$0xff] %v7911_v57  ;;  %v5531_v55 = vpop.eup %5530  ;;  %v2592_v50 = vadd.f32 %v7683_v1, %v2522_v33  ;;  %5542 = vrsqrt.f32 %v2264_v2  ;;  %v2160_v47 = vsel %vm263_vm0, %v1986_v45, 0.0 }
 0x2b0   :  { %v5533_v20 = vpop.eup %5532  ;;  %2655 = vst.msk [vmem:[%s11315_s4 + $0x80] sm:$0xff] %vm263_vm0, %v2591_v48  ;;  %v1821_v23 = vadd.f32 1e-05, %v1757_v22  ;;  %1710 = vadd.xlane.f32.xlu0 %v1709_v13  ;;  %1713 = vadd.xlane.f32.xlu1 %v1712_v43  ;;  %v1535_v48 = vsel %vm86_vm1, 0.0, %v1471_v11  ;;  %v7935_v43 = vpop.f32.mrb[44].mxu1  ;;  %v1983_v45 = vsel %vm86_vm1, %v1471_v11, 0.0 }
 0x2b1   :  { %v5535_v29 = vpop.eup %5534  ;;  %2656 = vst.msk [vmem:[%s11315_s4 + $0x88] sm:$0xff] %vm263_vm0, %v2592_v50  ;;  %v2393_v41 = vsel %vm86_vm1, %v5533_v20, %v5529_v18  ;;  %v1822_v54 = vadd.f32 1e-05, %v1758_v58  ;;  %v2051_v33 = vpop.xlane.xlu0 %2050  ;;  %v1536_v50 = vsel %vm86_vm1, 0.0, %v1472_v28  ;;  %11703 = vst [vmem:[#allocation82_spill] sm:$0xff] %v7935_v43  ;;  %v11704_v18 = vld [vmem:[#allocation41_spill] sm:$0xff] }
 0x2b2   :  { %v2054_v2 = vpop.xlane.xlu1 %2053  ;;  %v2457_v22 = vmul.f32 %v2393_v41, %v6831_v52  ;;  %v2394_v10 = vsel %vm86_vm1, %v5535_v29, %v5531_v55  ;;  %v2205_v13 = vmul.f32 0.0625, %v2051_v33  ;;  %v1984_v49 = vsel %vm86_vm1, %v1472_v28, 0.0  ;;  %v7942_v6 = vpop.f32.mrb[45].mxu1 }
 0x2b3   :  { %v2458_v58 = vmul.f32 %v2394_v10, %v11704_v18  ;;  %v2206_v20 = vmul.f32 0.0625, %v2054_v2  ;;  %11705 = vst [vmem:[#allocation41_spill] sm:$0xff] %v7942_v6  ;;  %5544 = vrsqrt.f32 %v1821_v23  ;;  %v1703_v29 = vsel %vm263_vm0, %v1535_v48, 0.0  ;;  %v7946_v41 = vpop.f32.mrb[46].mxu1 }
 0x2b4   :  { %v2527_v52 = vmul.f32 %v7666_v21, %v2457_v22  ;;  %v2269_v55 = vadd.f32 1e-05, %v2205_v13  ;;  %2158 = vadd.xlane.f32.xlu0 %v2157_v16  ;;  %2161 = vadd.xlane.f32.xlu1 %v2160_v47  ;;  %11706 = vst [vmem:[#allocation83_spill] sm:$0xff] %v7946_v41  ;;  %5546 = vrsqrt.f32 %v1822_v54  ;;  %v7951_v28 = vmul.f32 %v7497_v40, %v7497_v40  ;;  %v7954_v22 = vpop.f32.mrb[47].mxu1 }
 0x2b5   :  { %v2528_v33 = vmul.f32 %v7666_v21, %v2458_v58  ;;  %v2270_v2 = vadd.f32 1e-05, %v2206_v20  ;;  %v1597_v11 = vpop.xlane.xlu0 %1596  ;;  %v5537_v18 = vpop.eup %5536  ;;  %11707 = vst [vmem:[#allocation84_spill] sm:$0xff] %v7954_v22  ;;  %v1706_v54 = vsel %vm263_vm0, %v1536_v50, 0.0  ;;  %v1478_v58 = vmul.f32 %v7500_v0, %v7500_v0 }
 0x2b6   :  { %v1600_v10 = vpop.xlane.xlu1 %1599  ;;  %v2597_v23 = vadd.f32 %v7683_v1, %v2527_v52  ;;  %5548 = vrsqrt.f32 %v2269_v55  ;;  %v1755_v16 = vmul.f32 0.0625, %v1597_v11  ;;  %v5539_v48 = vpop.eup %5538  ;;  %v2154_v40 = vsel %vm263_vm0, %v1984_v49, 0.0 }
 0x2b7   :  { %v1756_v47 = vmul.f32 0.0625, %v1600_v10  ;;  %v2598_v13 = vadd.f32 %v7683_v1, %v2528_v33  ;;  %5550 = vrsqrt.f32 %v2270_v2  ;;  %v2151_v10 = vsel %vm263_vm0, %v1983_v45, 0.0 }
 0x2b8   :  { %v5541_v20 = vpop.eup %5540  ;;  %2661 = vst.msk [vmem:[%s11315_s4 + $0xe0] sm:$0xff] %vm263_vm0, %v2597_v23  ;;  %v1819_v52 = vadd.f32 1e-05, %v1755_v16  ;;  %1704 = vadd.xlane.f32.xlu0 %v1703_v29  ;;  %1707 = vadd.xlane.f32.xlu1 %v1706_v54  ;;  %v7978_v54 = vpop.f32.mrb[48].mxu1  ;;  %v1542_v45 = vsel %vm86_vm1, 0.0, %v1478_v58  ;;  %v1475_v49 = vmul.f32 %v7529_v53, %v7529_v53 }
 0x2b9   :  { %v5543_v55 = vpop.eup %5542  ;;  %2662 = vst.msk [vmem:[%s11315_s4 + $0xe8] sm:$0xff] %vm263_vm0, %v2598_v13  ;;  %v2391_v50 = vsel %vm86_vm1, %v5541_v20, %v5537_v18  ;;  %v1820_v33 = vadd.f32 1e-05, %v1756_v47  ;;  %v2045_v2 = vpop.xlane.xlu0 %2044  ;;  %v1541_v13 = vsel %vm86_vm1, 0.0, %v7951_v28  ;;  %11708 = vst [vmem:[#allocation85_spill] sm:$0xff] %v7978_v54 }
 0x2ba   :  { %v2048_v11 = vpop.xlane.xlu1 %2047  ;;  %v2455_v23 = vmul.f32 %v2391_v50, %v6865_v37  ;;  %v2392_v29 = vsel %vm86_vm1, %v5543_v55, %v5539_v48  ;;  %v2203_v16 = vmul.f32 0.0625, %v2045_v2  ;;  %v7985_v37 = vpop.f32.mrb[49].mxu1  ;;  %5552 = vrsqrt.f32 %v1819_v52 }
 0x2bb   :  { %v2456_v18 = vmul.f32 %v2392_v29, %v6868_v8  ;;  %v2204_v47 = vmul.f32 0.0625, %v2048_v11  ;;  %11709 = vst [vmem:[#allocation86_spill] sm:$0xff] %v7985_v37  ;;  %v1476_v55 = vmul.f32 %v7532_v14, %v7532_v14  ;;  %v7990_v50 = vpop.f32.mrb[50].mxu1  ;;  %5554 = vrsqrt.f32 %v1820_v33 }
 0x2bc   :  { %v2525_v48 = vmul.f32 %v7666_v21, %v2455_v23  ;;  %v2267_v20 = vadd.f32 1e-05, %v2203_v16  ;;  %2152 = vadd.xlane.f32.xlu0 %v2151_v10  ;;  %2155 = vadd.xlane.f32.xlu1 %v2154_v40  ;;  %11710 = vst [vmem:[#allocation87_spill] sm:$0xff] %v7990_v50  ;;  %v7994_v16 = vpop.f32.mrb[51].mxu1  ;;  %v1721_v14 = vsel %vm263_vm0, %v1541_v13, 0.0 }
 0x2bd   :  { %v2526_v8 = vmul.f32 %v7666_v21, %v2456_v18  ;;  %v2268_v2 = vadd.f32 1e-05, %v2204_v47  ;;  %v1615_v11 = vpop.xlane.xlu0 %1614  ;;  %v5545_v0 = vpop.eup %5544  ;;  %11711 = vst [vmem:[#allocation88_spill] sm:$0xff] %v7994_v16  ;;  %v1724_v18 = vsel %vm263_vm0, %v1542_v45, 0.0 }
 0x2be   :  { %v1618_v29 = vpop.xlane.xlu1 %1617  ;;  %v2595_v53 = vadd.f32 %v7683_v1, %v2525_v48  ;;  %5556 = vrsqrt.f32 %v2267_v20  ;;  %v1761_v23 = vmul.f32 0.0625, %v1615_v11  ;;  %v5547_v40 = vpop.eup %5546  ;;  %v1539_v48 = vsel %vm86_vm1, 0.0, %v1475_v49 }
 0x2bf   :  { %v1762_v52 = vmul.f32 0.0625, %v1618_v29  ;;  %v2596_v10 = vadd.f32 %v7683_v1, %v2526_v8  ;;  %5558 = vrsqrt.f32 %v2268_v2  ;;  %v1540_v20 = vsel %vm86_vm1, 0.0, %v1476_v55 }
 0x2c0   :  { %v5549_v33 = vpop.eup %5548  ;;  %2659 = vst.msk [vmem:[%s11315_s4 + $0xc0] sm:$0xff] %vm263_vm0, %v2595_v53  ;;  %v1825_v47 = vadd.f32 1e-05, %v1761_v23  ;;  %1722 = vadd.xlane.f32.xlu0 %v1721_v14  ;;  %1725 = vadd.xlane.f32.xlu1 %v1724_v18  ;;  %v1987_v14 = vsel %vm86_vm1, %v1475_v49, 0.0  ;;  %v1990_v11 = vsel %vm86_vm1, %v1478_v58, 0.0  ;;  %v8022_v50 = vpop.f32.mrb[52].mxu1 }
 0x2c1   :  { %v5551_v8 = vpop.eup %5550  ;;  %2660 = vst.msk [vmem:[%s11315_s4 + $0xc8] sm:$0xff] %vm263_vm0, %v2596_v10  ;;  %v2397_v13 = vsel %vm86_vm1, %v5549_v33, %v5545_v0  ;;  %v1826_v45 = vadd.f32 1e-05, %v1762_v52  ;;  %v2063_v53 = vpop.xlane.xlu0 %2062  ;;  %v1988_v10 = vsel %vm86_vm1, %v1476_v55, 0.0  ;;  %11712 = vst [vmem:[#allocation89_spill] sm:$0xff] %v8022_v50  ;;  %v1715_v33 = vsel %vm263_vm0, %v1539_v48, 0.0 }
 0x2c2   :  { %v2066_v2 = vpop.xlane.xlu1 %2065  ;;  %v2461_v29 = vmul.f32 %v2397_v13, %v6899_v3  ;;  %v2398_v23 = vsel %vm86_vm1, %v5551_v8, %v5547_v40  ;;  %v2209_v18 = vmul.f32 0.0625, %v2063_v53  ;;  %v1718_v49 = vsel %vm263_vm0, %v1540_v20, 0.0  ;;  %v8027_v54 = vpop.f32.mrb[53].mxu1 }
 0x2c3   :  { %v2462_v0 = vmul.f32 %v2398_v23, %v6902_v38  ;;  %v2210_v52 = vmul.f32 0.0625, %v2066_v2  ;;  %11713 = vst [vmem:[#allocation90_spill] sm:$0xff] %v8027_v54  ;;  %5560 = vrsqrt.f32 %v1825_v47  ;;  %v8032_v55 = vmul.f32 %v7563_v62, %v7563_v62  ;;  %v8034_v40 = vpop.f32.mrb[54].mxu1 }
 0x2c4   :  { %v2531_v3 = vmul.f32 %v7666_v21, %v2461_v29  ;;  %v2273_v58 = vadd.f32 1e-05, %v2209_v18  ;;  %1716 = vadd.xlane.f32.xlu0 %v1715_v33  ;;  %1719 = vadd.xlane.f32.xlu1 %v1718_v49  ;;  %11714 = vst [vmem:[#allocation91_spill] sm:$0xff] %v8034_v40  ;;  %5562 = vrsqrt.f32 %v1826_v45  ;;  %v8039_v13 = vmul.f32 %v7566_v42, %v7566_v42  ;;  %v5553_v47 = vpop.eup %5552  ;;  %v8042_v23 = vpop.f32.mrb[55].mxu1 }
 0x2c5   :  { %v2532_v38 = vmul.f32 %v7666_v21, %v2462_v0  ;;  %v2274_v48 = vadd.f32 1e-05, %v2210_v52  ;;  %v1609_v8 = vpop.xlane.xlu0 %1608  ;;  %11715 = vst [vmem:[#allocation92_spill] sm:$0xff] %v8042_v23  ;;  %v5555_v18 = vpop.eup %5554  ;;  %v2163_v45 = vsel %vm263_vm0, %v1987_v14, 0.0  ;;  %v2166_v0 = vsel %vm263_vm0, %v1988_v10, 0.0 }
 0x2c6   :  { %v1612_v20 = vpop.xlane.xlu1 %1611  ;;  %v2601_v53 = vadd.f32 %v7683_v1, %v2531_v3  ;;  %5564 = vrsqrt.f32 %v2273_v58  ;;  %v1759_v2 = vmul.f32 0.0625, %v1609_v8  ;;  %v1545_v3 = vsel %vm86_vm1, 0.0, %v8032_v55 }
 0x2c7   :  { %v1760_v29 = vmul.f32 0.0625, %v1612_v20  ;;  %v2602_v33 = vadd.f32 %v7683_v1, %v2532_v38  ;;  %5566 = vrsqrt.f32 %v2274_v48  ;;  %v1479_v58 = vmul.f32 %v7597_v36, %v7597_v36 }
 0x2c8   :  { %v5557_v52 = vpop.eup %5556  ;;  %2665 = vst.msk [vmem:[%s11315_s4 + $0x120] sm:$0xff] %vm263_vm0, %v2601_v53  ;;  %v1823_v49 = vadd.f32 1e-05, %v1759_v2  ;;  %2164 = vadd.xlane.f32.xlu0 %v2163_v45  ;;  %2167 = vadd.xlane.f32.xlu1 %v2166_v0  ;;  %v2172_v20 = vsel %vm263_vm0, %v1990_v11, 0.0  ;;  %v1546_v0 = vsel %vm86_vm1, 0.0, %v8039_v13  ;;  %v8069_v42 = vpop.f32.mrb[56].mxu1  ;;  %v1480_v11 = vmul.f32 %v7600_v31, %v7600_v31 }
 0x2c9   :  { %v5559_v38 = vpop.eup %5558  ;;  %2666 = vst.msk [vmem:[%s11315_s4 + $0x128] sm:$0xff] %vm263_vm0, %v2602_v33  ;;  %v2395_v14 = vsel %vm86_vm1, %v5557_v52, %v5553_v47  ;;  %v1824_v10 = vadd.f32 1e-05, %v1760_v29  ;;  %v2057_v48 = vpop.xlane.xlu0 %2056  ;;  %11716 = vst [vmem:[#allocation93_spill] sm:$0xff] %v8069_v42  ;;  %v1733_v29 = vsel %vm263_vm0, %v1545_v3, 0.0 }
 0x2ca   :  { %v2060_v8 = vpop.xlane.xlu1 %2059  ;;  %v2459_v53 = vmul.f32 %v2395_v14, %v6933_v5  ;;  %v2396_v2 = vsel %vm86_vm1, %v5559_v38, %v5555_v18  ;;  %v2207_v45 = vmul.f32 0.0625, %v2057_v48  ;;  %v8075_v52 = vpop.f32.mrb[57].mxu1  ;;  %5568 = vrsqrt.f32 %v1823_v49 }
 0x2cb   :  { %v2460_v33 = vmul.f32 %v2396_v2, %v6936_v4  ;;  %v2208_v47 = vmul.f32 0.0625, %v2060_v8  ;;  %11717 = vst [vmem:[#allocation94_spill] sm:$0xff] %v8075_v52  ;;  %v1543_v38 = vsel %vm86_vm1, 0.0, %v1479_v58  ;;  %v8080_v14 = vpop.f32.mrb[58].mxu1  ;;  %5570 = vrsqrt.f32 %v1824_v10 }
 0x2cc   :  { %v2529_v5 = vmul.f32 %v7666_v21, %v2459_v53  ;;  %v2271_v18 = vadd.f32 1e-05, %v2207_v45  ;;  %1734 = vadd.xlane.f32.xlu0 %v1733_v29  ;;  %2173 = vadd.xlane.f32.xlu1 %v2172_v20  ;;  %11718 = vst [vmem:[#allocation95_spill] sm:$0xff] %v8080_v14  ;;  %v1989_v2 = vsel %vm86_vm1, %v7951_v28, 0.0  ;;  %v8087_v29 = vpop.f32.mrb[59].mxu1  ;;  %v1727_v10 = vsel %vm263_vm0, %v1543_v38, 0.0 }
 0x2cd   :  { %v2530_v4 = vmul.f32 %v7666_v21, %v2460_v33  ;;  %v2272_v3 = vadd.f32 1e-05, %v2208_v47  ;;  %v1627_v48 = vpop.xlane.xlu0 %1626  ;;  %v5561_v53 = vpop.eup %5560  ;;  %11719 = vst [vmem:[#allocation96_spill] sm:$0xff] %v8087_v29  ;;  %v1736_v33 = vsel %vm263_vm0, %v1546_v0, 0.0 }
 0x2ce   :  { %v1630_v8 = vpop.xlane.xlu1 %1629  ;;  %v2599_v49 = vadd.f32 %v7683_v1, %v2529_v5  ;;  %5572 = vrsqrt.f32 %v2271_v18  ;;  %v1765_v20 = vmul.f32 0.0625, %v1627_v48  ;;  %v5563_v62 = vpop.eup %5562  ;;  %v1544_v5 = vsel %vm86_vm1, 0.0, %v1480_v11 }
 0x2cf   :  { %v1766_v45 = vmul.f32 0.0625, %v1630_v8  ;;  %v2600_v31 = vadd.f32 %v7683_v1, %v2530_v4  ;;  %5574 = vrsqrt.f32 %v2272_v3 }
 0x2d0   :  { %v5565_v47 = vpop.eup %5564  ;;  %2663 = vst.msk [vmem:[%s11315_s4 + $0x100] sm:$0xff] %vm263_vm0, %v2599_v49  ;;  %v1829_v28 = vadd.f32 1e-05, %v1765_v20  ;;  %1728 = vadd.xlane.f32.xlu0 %v1727_v10  ;;  %1737 = vadd.xlane.f32.xlu1 %v1736_v33  ;;  %v2169_v20 = vsel %vm263_vm0, %v1989_v2, 0.0  ;;  %v8108_v10 = vpop.f32.mrb[60].mxu1 }
 0x2d1   :  { %v5567_v18 = vpop.eup %5566  ;;  %2664 = vst.msk [vmem:[%s11315_s4 + $0x108] sm:$0xff] %vm263_vm0, %v2600_v31  ;;  %v2401_v0 = vsel %vm86_vm1, %v5565_v47, %v5561_v53  ;;  %v1830_v38 = vadd.f32 1e-05, %v1766_v45  ;;  %v2075_v4 = vpop.xlane.xlu0 %2074  ;;  %11720 = vst [vmem:[#allocation97_spill] sm:$0xff] %v8108_v10  ;;  %v1730_v31 = vsel %vm263_vm0, %v1544_v5, 0.0  ;;  %v1991_v53 = vsel %vm86_vm1, %v1479_v58, 0.0 }
 0x2d2   :  { %v2078_v3 = vpop.xlane.xlu1 %2077  ;;  %v2465_v48 = vmul.f32 %v2401_v0, %v6967_v19  ;;  %v2402_v8 = vsel %vm86_vm1, %v5567_v18, %v5563_v62  ;;  %v2213_v49 = vmul.f32 0.0625, %v2075_v4  ;;  %v8114_v45 = vpop.f32.mrb[61].mxu1  ;;  %5576 = vrsqrt.f32 %v1829_v28 }
 0x2d3   :  { %v2466_v33 = vmul.f32 %v2402_v8, %v6970_v12  ;;  %v2214_v36 = vmul.f32 0.0625, %v2078_v3  ;;  %11721 = vst [vmem:[#allocation98_spill] sm:$0xff] %v8114_v45  ;;  %v1992_v62 = vsel %vm86_vm1, %v1480_v11, 0.0  ;;  %v8119_v2 = vpop.f32.mrb[62].mxu1  ;;  %5578 = vrsqrt.f32 %v1830_v38 }
 0x2d4   :  { %v2535_v19 = vmul.f32 %v7666_v21, %v2465_v48  ;;  %v2277_v47 = vadd.f32 1e-05, %v2213_v49  ;;  %2170 = vadd.xlane.f32.xlu0 %v2169_v20  ;;  %1731 = vadd.xlane.f32.xlu1 %v1730_v31  ;;  %11722 = vst [vmem:[#allocation99_spill] sm:$0xff] %v8119_v2  ;;  %v5569_v58 = vpop.eup %5568  ;;  %v8123_v48 = vpop.f32.mrb[63].mxu1  ;;  %v2175_v11 = vsel %vm263_vm0, %v1991_v53, 0.0  ;;  %v1993_v20 = vsel %vm86_vm1, %v8032_v55, 0.0 }
 0x2d5   :  { %v2536_v12 = vmul.f32 %v7666_v21, %v2466_v33  ;;  %v2278_v5 = vadd.f32 1e-05, %v2214_v36  ;;  %v1621_v18 = vpop.xlane.xlu0 %1620  ;;  %11723 = vst [vmem:[#allocation100_spill] sm:$0xff] %v8123_v48  ;;  %v5571_v8 = vpop.eup %5570  ;;  %v2178_v21 = vsel %vm263_vm0, %v1992_v62, 0.0 }
 0x2d6   :  { %v1624_v0 = vpop.xlane.xlu1 %1623  ;;  %v2605_v4 = vadd.f32 %v7683_v1, %v2535_v19  ;;  %5580 = vrsqrt.f32 %v2277_v47  ;;  %v1763_v3 = vmul.f32 0.0625, %v1621_v18 }
 0x2d7   :  { %v1764_v28 = vmul.f32 0.0625, %v1624_v0  ;;  %v2606_v49 = vadd.f32 %v7683_v1, %v2536_v12  ;;  %5582 = vrsqrt.f32 %v2278_v5  ;;  %v1994_v1 = vsel %vm86_vm1, %v8039_v13, 0.0 }
 0x2d8   :  { %v5573_v38 = vpop.eup %5572  ;;  %2669 = vst.msk [vmem:[%s11315_s4 + $0x160] sm:$0xff] %vm263_vm0, %v2605_v4  ;;  %v1827_v36 = vadd.f32 1e-05, %v1763_v3  ;;  %2176 = vadd.xlane.f32.xlu0 %v2175_v11  ;;  %2179 = vadd.xlane.f32.xlu1 %v2178_v21  ;;  %v3017_v13 = vsel %vm86_vm1, 0.0, %v7516_v26  ;;  %v2181_v0 = vsel %vm263_vm0, %v1993_v20, 0.0  ;;  %v3019_v21 = vsel %vm86_vm1, 0.0, %v7512_v39 }
 0x2d9   :  { %v5575_v33 = vpop.eup %5574  ;;  %2670 = vst.msk [vmem:[%s11315_s4 + $0x168] sm:$0xff] %vm263_vm0, %v2606_v49  ;;  %v2399_v31 = vsel %vm86_vm1, %v5573_v38, %v5569_v58  ;;  %v1828_v53 = vadd.f32 1e-05, %v1764_v28  ;;  %v2069_v19 = vpop.xlane.xlu0 %2068  ;;  %v2184_v58 = vsel %vm263_vm0, %v1994_v1, 0.0  ;;  %v8156_v4 = vld [vmem:[%s11313_s2] ss:$0 sm:$0xff] }
 0x2da   :  { %v2072_v47 = vpop.xlane.xlu1 %2071  ;;  %v2463_v62 = vmul.f32 %v2399_v31, %v7001_v51  ;;  %v2400_v55 = vsel %vm86_vm1, %v5575_v33, %v5571_v8  ;;  %v2211_v12 = vmul.f32 0.0625, %v2069_v19  ;;  %5584 = vrsqrt.f32 %v1827_v36  ;;  %v8169_v36 = vld [vmem:[%s11314_s3] ss:$0 sm:$0xff] }
 0x2db   :  { %v2464_v5 = vmul.f32 %v2400_v55, %v7004_v9  ;;  %v2212_v18 = vmul.f32 0.0625, %v2072_v47  ;;  %v3018_v9 = vsel %vm86_vm1, 0.0, %v7534_v17  ;;  %5586 = vrsqrt.f32 %v1828_v53 }
 0x2dc   :  { %v2533_v51 = vmul.f32 %v8156_v4, %v2463_v62  ;;  %v2275_v3 = vadd.f32 1e-05, %v2211_v12  ;;  %2182 = vadd.xlane.f32.xlu0 %v2181_v0  ;;  %2185 = vadd.xlane.f32.xlu1 %v2184_v58  ;;  %v5577_v38 = vpop.eup %5576  ;;  %v3081_v19 = vsel %vm263_vm0, %v3017_v13, 0.0  ;;  %v3084_v47 = vsel %vm263_vm0, %v3018_v9, 0.0 }
 0x2dd   :  { %v2534_v28 = vmul.f32 %v8156_v4, %v2464_v5  ;;  %v2276_v8 = vadd.f32 1e-05, %v2212_v18  ;;  %v1639_v49 = vpop.xlane.xlu0 %1638  ;;  %v5579_v31 = vpop.eup %5578  ;;  %v3020_v12 = vsel %vm86_vm1, 0.0, %v7526_v34 }
 0x2de   :  { %v1642_v11 = vpop.xlane.xlu1 %1641  ;;  %v2603_v20 = vadd.f32 %v8169_v36, %v2533_v51  ;;  %5588 = vrsqrt.f32 %v2275_v3  ;;  %v1769_v1 = vmul.f32 0.0625, %v1639_v49 }
 0x2df   :  { %v1770_v33 = vmul.f32 0.0625, %v1642_v11  ;;  %v2604_v53 = vadd.f32 %v8169_v36, %v2534_v28  ;;  %5590 = vrsqrt.f32 %v2276_v8  ;;  %v3087_v28 = vsel %vm263_vm0, %v3019_v21, 0.0 }
 0x2e0   :  { %v5581_v62 = vpop.eup %5580  ;;  %2667 = vst.msk [vmem:[%s11315_s4 + $0x140] sm:$0xff] %vm263_vm0, %v2603_v20  ;;  %v1833_v55 = vadd.f32 1e-05, %v1769_v1  ;;  %3082 = vadd.xlane.f32.xlu0 %v3081_v19  ;;  %3085 = vadd.xlane.f32.xlu1 %v3084_v47  ;;  %v3090_v11 = vsel %vm263_vm0, %v3020_v12, 0.0 }
 0x2e1   :  { %v5583_v5 = vpop.eup %5582  ;;  %2668 = vst.msk [vmem:[%s11315_s4 + $0x148] sm:$0xff] %vm263_vm0, %v2604_v53  ;;  %v2405_v13 = vsel %vm86_vm1, %v5581_v62, %v5577_v38  ;;  %v1834_v18 = vadd.f32 1e-05, %v1770_v33  ;;  %v2087_v0 = vpop.xlane.xlu0 %2086  ;;  %v3021_v38 = vsel %vm86_vm1, 0.0, %v7550_v32  ;;  %v11724_v53 = vld [vmem:[#allocation54_spill] sm:$0xff] }
 0x2e2   :  { %v2090_v58 = vpop.xlane.xlu1 %2089  ;;  %v2469_v51 = vmul.f32 %v2405_v13, %v7035_v25  ;;  %v2406_v3 = vsel %vm86_vm1, %v5583_v5, %v5579_v31  ;;  %v2217_v9 = vmul.f32 0.0625, %v2087_v0  ;;  %5592 = vrsqrt.f32 %v1833_v55 }
 0x2e3   :  { %v2470_v8 = vmul.f32 %v2406_v3, %v7038_v27  ;;  %v2218_v49 = vmul.f32 0.0625, %v2090_v58  ;;  %v3022_v25 = vsel %vm86_vm1, 0.0, %v7568_v15  ;;  %5594 = vrsqrt.f32 %v1834_v18  ;;  %v11725_v3 = vld [vmem:[#allocation56_spill] sm:$0xff] }
 0x2e4   :  { %v2539_v20 = vmul.f32 %v8156_v4, %v2469_v51  ;;  %v2281_v1 = vadd.f32 1e-05, %v2217_v9  ;;  %3088 = vadd.xlane.f32.xlu0 %v3087_v28  ;;  %3091 = vadd.xlane.f32.xlu1 %v3090_v11  ;;  %v3023_v19 = vsel %vm86_vm1, 0.0, %v11724_v53  ;;  %v5585_v47 = vpop.eup %5584  ;;  %v3093_v0 = vsel %vm263_vm0, %v3021_v38, 0.0 }
 0x2e5   :  { %v2540_v21 = vmul.f32 %v8156_v4, %v2470_v8  ;;  %v2282_v27 = vadd.f32 1e-05, %v2218_v49  ;;  %v1633_v33 = vpop.xlane.xlu0 %1632  ;;  %v5587_v5 = vpop.eup %5586  ;;  %v3096_v18 = vsel %vm263_vm0, %v3022_v25, 0.0  ;;  %v3024_v9 = vsel %vm86_vm1, 0.0, %v11725_v3 }
 0x2e6   :  { %v1636_v31 = vpop.xlane.xlu1 %1635  ;;  %v2609_v62 = vadd.f32 %v8169_v36, %v2539_v20  ;;  %5596 = vrsqrt.f32 %v2281_v1  ;;  %v1767_v55 = vmul.f32 0.0625, %v1633_v33  ;;  %v11726_v20 = vld [vmem:[#allocation3_spill] sm:$0xff]  ;;  %v11727_v33 = vld [vmem:[#allocation2_spill] sm:$0xff] }
 0x2e7   :  { %v1768_v12 = vmul.f32 0.0625, %v1636_v31  ;;  %v2610_v13 = vadd.f32 %v8169_v36, %v2540_v21  ;;  %5598 = vrsqrt.f32 %v2282_v27  ;;  %v3099_v27 = vsel %vm263_vm0, %v3023_v19, 0.0 }
 0x2e8   :  { %v5589_v58 = vpop.eup %5588  ;;  %2673 = vst.msk [vmem:[%s11315_s4 + $0x1a0] sm:$0xff] %vm263_vm0, %v2609_v62  ;;  %v1831_v51 = vadd.f32 1e-05, %v1767_v55  ;;  %3094 = vadd.xlane.f32.xlu0 %v3093_v0  ;;  %3097 = vadd.xlane.f32.xlu1 %v3096_v18  ;;  %v3102_v55 = vsel %vm263_vm0, %v3024_v9, 0.0  ;;  %v11729_v18 = vld [vmem:[#allocation61_spill] sm:$0xff] }
 0x2e9   :  { %v5591_v28 = vpop.eup %5590  ;;  %2674 = vst.msk [vmem:[%s11315_s4 + $0x1a8] sm:$0xff] %vm263_vm0, %v2610_v13  ;;  %v2403_v8 = vsel %vm86_vm1, %v5589_v58, %v5585_v47  ;;  %v1832_v49 = vadd.f32 1e-05, %v1768_v12  ;;  %v2081_v11 = vpop.xlane.xlu0 %2080  ;;  %v11728_v13 = vld [vmem:[#allocation59_spill] sm:$0xff] }
 0x2ea   :  { %v2084_v38 = vpop.xlane.xlu1 %2083  ;;  %v2467_v1 = vmul.f32 %v2403_v8, %v11726_v20  ;;  %v2404_v25 = vsel %vm86_vm1, %v5591_v28, %v5587_v5  ;;  %v2215_v21 = vmul.f32 0.0625, %v2081_v11  ;;  %v3025_v47 = vsel %vm86_vm1, 0.0, %v11728_v13  ;;  %v11730_v8 = vld [vmem:[#allocation58_spill] sm:$0xff] }
 0x2eb   :  { %v2468_v31 = vmul.f32 %v2404_v25, %v11727_v33  ;;  %v2216_v62 = vmul.f32 0.0625, %v2084_v38  ;;  %5600 = vrsqrt.f32 %v1831_v51  ;;  %v3026_v5 = vsel %vm86_vm1, 0.0, %v11729_v18 }
 0x2ec   :  { %v2537_v12 = vmul.f32 %v8156_v4, %v2467_v1  ;;  %v2279_v0 = vadd.f32 1e-05, %v2215_v21  ;;  %3100 = vadd.xlane.f32.xlu0 %v3099_v27  ;;  %3103 = vadd.xlane.f32.xlu1 %v3102_v55  ;;  %5602 = vrsqrt.f32 %v1832_v49  ;;  %v3027_v11 = vsel %vm86_vm1, 0.0, %v11730_v8  ;;  %v5593_v38 = vpop.eup %5592 }
 0x2ed   :  { %v2538_v19 = vmul.f32 %v8156_v4, %v2468_v31  ;;  %v2280_v58 = vadd.f32 1e-05, %v2216_v62  ;;  %v1651_v28 = vpop.xlane.xlu0 %1650  ;;  %v5595_v25 = vpop.eup %5594  ;;  %v3105_v27 = vsel %vm263_vm0, %v3025_v47, 0.0  ;;  %v3108_v49 = vsel %vm263_vm0, %v3026_v5, 0.0  ;;  %v11731_v62 = vld [vmem:[#allocation60_spill] sm:$0xff] }
 0x2ee   :  { %v1654_v9 = vpop.xlane.xlu1 %1653  ;;  %v2607_v51 = vadd.f32 %v8169_v36, %v2537_v12  ;;  %5604 = vrsqrt.f32 %v2279_v0  ;;  %v1773_v20 = vmul.f32 0.0625, %v1651_v28  ;;  %v3028_v55 = vsel %vm86_vm1, 0.0, %v11731_v62 }
 0x2ef   :  { %v1774_v1 = vmul.f32 0.0625, %v1654_v9  ;;  %v2608_v21 = vadd.f32 %v8169_v36, %v2538_v19  ;;  %5606 = vrsqrt.f32 %v2280_v58  ;;  %v11732_v58 = vld [vmem:[#allocation4_spill] sm:$0xff]  ;;  %v3114_v8 = vsel %vm263_vm0, %v3028_v55, 0.0 }
 0x2f0   :  { %v5597_v33 = vpop.eup %5596  ;;  %2671 = vst.msk [vmem:[%s11315_s4 + $0x180] sm:$0xff] %vm263_vm0, %v2607_v51  ;;  %v1837_v31 = vadd.f32 1e-05, %v1773_v20  ;;  %3106 = vadd.xlane.f32.xlu0 %v3105_v27  ;;  %3109 = vadd.xlane.f32.xlu1 %v3108_v49  ;;  %v3111_v20 = vsel %vm263_vm0, %v3027_v11, 0.0  ;;  %v11733_v27 = vld [vmem:[#allocation23_spill] sm:$0xff] }
 0x2f1   :  { %v5599_v12 = vpop.eup %5598  ;;  %2672 = vst.msk [vmem:[%s11315_s4 + $0x188] sm:$0xff] %vm263_vm0, %v2608_v21  ;;  %v2409_v47 = vsel %vm86_vm1, %v5597_v33, %v5593_v38  ;;  %v1838_v0 = vadd.f32 1e-05, %v1774_v1  ;;  %v2099_v5 = vpop.xlane.xlu0 %2098  ;;  %v11734_v21 = vld [vmem:[#allocation63_spill] sm:$0xff] }
 0x2f2   :  { %v2102_v19 = vpop.xlane.xlu1 %2101  ;;  %v2473_v28 = vmul.f32 %v2409_v47, %v11732_v58  ;;  %v2410_v9 = vsel %vm86_vm1, %v5599_v12, %v5595_v25  ;;  %v2221_v51 = vmul.f32 0.0625, %v2099_v5  ;;  %v3029_v38 = vsel %vm86_vm1, 0.0, %v11734_v21  ;;  %v11735_v47 = vld [vmem:[#allocation65_spill] sm:$0xff] }
 0x2f3   :  { %v2474_v49 = vmul.f32 %v2410_v9, %v11733_v27  ;;  %v2222_v62 = vmul.f32 0.0625, %v2102_v19  ;;  %5608 = vrsqrt.f32 %v1837_v31  ;;  %v3030_v25 = vsel %vm86_vm1, 0.0, %v11735_v47  ;;  %v11736_v19 = vld [vmem:[#allocation62_spill] sm:$0xff] }
 0x2f4   :  { %v2543_v1 = vmul.f32 %v8156_v4, %v2473_v28  ;;  %v2285_v33 = vadd.f32 1e-05, %v2221_v51  ;;  %3112 = vadd.xlane.f32.xlu0 %v3111_v20  ;;  %3115 = vadd.xlane.f32.xlu1 %v3114_v8  ;;  %5610 = vrsqrt.f32 %v1838_v0  ;;  %v3031_v58 = vsel %vm86_vm1, 0.0, %v11736_v19 }
 0x2f5   :  { %v2544_v11 = vmul.f32 %v8156_v4, %v2474_v49  ;;  %v2286_v12 = vadd.f32 1e-05, %v2222_v62  ;;  %v1645_v5 = vpop.xlane.xlu0 %1644  ;;  %v5601_v9 = vpop.eup %5600  ;;  %v3117_v27 = vsel %vm263_vm0, %v3029_v38, 0.0  ;;  %v3120_v62 = vsel %vm263_vm0, %v3030_v25, 0.0 }
 0x2f6   :  { %v1648_v55 = vpop.xlane.xlu1 %1647  ;;  %v2613_v31 = vadd.f32 %v8169_v36, %v2543_v1  ;;  %5612 = vrsqrt.f32 %v2285_v33  ;;  %v1771_v28 = vmul.f32 0.0625, %v1645_v5  ;;  %v5603_v51 = vpop.eup %5602  ;;  %v11737_v1 = vld [vmem:[#allocation64_spill] sm:$0xff] }
 0x2f7   :  { %v1772_v8 = vmul.f32 0.0625, %v1648_v55  ;;  %v2614_v20 = vadd.f32 %v8169_v36, %v2544_v11  ;;  %5614 = vrsqrt.f32 %v2286_v12  ;;  %v3032_v33 = vsel %vm86_vm1, 0.0, %v11737_v1  ;;  %v11738_v55 = vld [vmem:[#allocation5_spill] sm:$0xff]  ;;  %v11739_v1 = vld [vmem:[#allocation7_spill] sm:$0xff] }
 0x2f8   :  { %v5605_v0 = vpop.eup %5604  ;;  %2677 = vst.msk [vmem:[%s11315_s4 + $0x1e0] sm:$0xff] %vm263_vm0, %v2613_v31  ;;  %v1835_v49 = vadd.f32 1e-05, %v1771_v28  ;;  %3118 = vadd.xlane.f32.xlu0 %v3117_v27  ;;  %3121 = vadd.xlane.f32.xlu1 %v3120_v62  ;;  %v3123_v62 = vsel %vm263_vm0, %v3031_v58, 0.0  ;;  %v3126_v21 = vsel %vm263_vm0, %v3032_v33, 0.0 }
 0x2f9   :  { %v5607_v5 = vpop.eup %5606  ;;  %2678 = vst.msk [vmem:[%s11315_s4 + $0x1e8] sm:$0xff] %vm263_vm0, %v2614_v20  ;;  %v2407_v38 = vsel %vm86_vm1, %v5605_v0, %v5601_v9  ;;  %v1836_v25 = vadd.f32 1e-05, %v1772_v8  ;;  %v2093_v11 = vpop.xlane.xlu0 %2092  ;;  %v11740_v20 = vld [vmem:[#allocation67_spill] sm:$0xff] }
 0x2fa   :  { %v2096_v12 = vpop.xlane.xlu1 %2095  ;;  %v2471_v31 = vmul.f32 %v2407_v38, %v11738_v55  ;;  %v2408_v28 = vsel %vm86_vm1, %v5607_v5, %v5603_v51  ;;  %v2219_v27 = vmul.f32 0.0625, %v2093_v11  ;;  %v3033_v9 = vsel %vm86_vm1, 0.0, %v11740_v20  ;;  %v11741_v38 = vld [vmem:[#allocation69_spill] sm:$0xff]  ;;  %v11742_v11 = vld [vmem:[#allocation66_spill] sm:$0xff] }
 0x2fb   :  { %v2472_v19 = vmul.f32 %v2408_v28, %v11739_v1  ;;  %v2220_v47 = vmul.f32 0.0625, %v2096_v12  ;;  %5616 = vrsqrt.f32 %v1835_v49  ;;  %v3034_v51 = vsel %vm86_vm1, 0.0, %v11741_v38 }
 0x2fc   :  { %v2541_v8 = vmul.f32 %v8156_v4, %v2471_v31  ;;  %v2283_v0 = vadd.f32 1e-05, %v2219_v27  ;;  %3124 = vadd.xlane.f32.xlu0 %v3123_v62  ;;  %3127 = vadd.xlane.f32.xlu1 %v3126_v21  ;;  %5618 = vrsqrt.f32 %v1836_v25  ;;  %v3035_v12 = vsel %vm86_vm1, 0.0, %v11742_v11 }
 0x2fd   :  { %v2542_v58 = vmul.f32 %v8156_v4, %v2472_v19  ;;  %v2284_v1 = vadd.f32 1e-05, %v2220_v47  ;;  %v1663_v5 = vpop.xlane.xlu0 %1662  ;;  %v5609_v55 = vpop.eup %5608  ;;  %v3129_v19 = vsel %vm263_vm0, %v3033_v9, 0.0  ;;  %v3132_v47 = vsel %vm263_vm0, %v3034_v51, 0.0 }
 0x2fe   :  { %v1666_v33 = vpop.xlane.xlu1 %1665  ;;  %v2611_v49 = vadd.f32 %v8169_v36, %v2541_v8  ;;  %5620 = vrsqrt.f32 %v2283_v0  ;;  %v1777_v31 = vmul.f32 0.0625, %v1663_v5  ;;  %v5611_v28 = vpop.eup %5610  ;;  %v11743_v8 = vld [vmem:[#allocation68_spill] sm:$0xff] }
 0x2ff   :  { %v1778_v21 = vmul.f32 0.0625, %v1666_v33  ;;  %v2612_v27 = vadd.f32 %v8169_v36, %v2542_v58  ;;  %5622 = vrsqrt.f32 %v2284_v1  ;;  %v3036_v0 = vsel %vm86_vm1, 0.0, %v11743_v8  ;;  %v11744_v33 = vld [vmem:[#allocation6_spill] sm:$0xff]  ;;  %v11745_v8 = vld [vmem:[#allocation8_spill] sm:$0xff] }
 0x300   :  { %v5613_v25 = vpop.eup %5612  ;;  %2675 = vst.msk [vmem:[%s11315_s4 + $0x1c0] sm:$0xff] %vm263_vm0, %v2611_v49  ;;  %v1841_v62 = vadd.f32 1e-05, %v1777_v31  ;;  %3130 = vadd.xlane.f32.xlu0 %v3129_v19  ;;  %3133 = vadd.xlane.f32.xlu1 %v3132_v47  ;;  %v3135_v47 = vsel %vm263_vm0, %v3035_v12, 0.0  ;;  %v3138_v20 = vsel %vm263_vm0, %v3036_v0, 0.0 }
 0x301   :  { %v5615_v5 = vpop.eup %5614  ;;  %2676 = vst.msk [vmem:[%s11315_s4 + $0x1c8] sm:$0xff] %vm263_vm0, %v2612_v27  ;;  %v2413_v9 = vsel %vm86_vm1, %v5613_v25, %v5609_v55  ;;  %v1842_v51 = vadd.f32 1e-05, %v1778_v21  ;;  %v2111_v58 = vpop.xlane.xlu0 %2110  ;;  %v11746_v27 = vld [vmem:[#allocation30_spill] sm:$0xff] }
 0x302   :  { %v2114_v1 = vpop.xlane.xlu1 %2113  ;;  %v2477_v49 = vmul.f32 %v2413_v9, %v11744_v33  ;;  %v2414_v31 = vsel %vm86_vm1, %v5615_v5, %v5611_v28  ;;  %v2225_v19 = vmul.f32 0.0625, %v2111_v58  ;;  %v3037_v55 = vsel %vm86_vm1, 0.0, %v11746_v27  ;;  %v11747_v9 = vld [vmem:[#allocation71_spill] sm:$0xff]  ;;  %v11748_v58 = vld [vmem:[#allocation29_spill] sm:$0xff] }
 0x303   :  { %v2478_v11 = vmul.f32 %v2414_v31, %v11745_v8  ;;  %v2226_v38 = vmul.f32 0.0625, %v2114_v1  ;;  %5624 = vrsqrt.f32 %v1841_v62  ;;  %v3038_v28 = vsel %vm86_vm1, 0.0, %v11747_v9 }
 0x304   :  { %v2547_v21 = vmul.f32 %v8156_v4, %v2477_v49  ;;  %v2289_v25 = vadd.f32 1e-05, %v2225_v19  ;;  %3136 = vadd.xlane.f32.xlu0 %v3135_v47  ;;  %3139 = vadd.xlane.f32.xlu1 %v3138_v20  ;;  %5626 = vrsqrt.f32 %v1842_v51  ;;  %v3039_v1 = vsel %vm86_vm1, 0.0, %v11748_v58 }
 0x305   :  { %v2548_v12 = vmul.f32 %v8156_v4, %v2478_v11  ;;  %v2290_v8 = vadd.f32 1e-05, %v2226_v38  ;;  %v1657_v5 = vpop.xlane.xlu0 %1656  ;;  %v5617_v33 = vpop.eup %5616  ;;  %v3141_v11 = vsel %vm263_vm0, %v3037_v55, 0.0  ;;  %v3144_v38 = vsel %vm263_vm0, %v3038_v28, 0.0 }
 0x306   :  { %v1660_v0 = vpop.xlane.xlu1 %1659  ;;  %v2617_v62 = vadd.f32 %v8169_v36, %v2547_v21  ;;  %5628 = vrsqrt.f32 %v2289_v25  ;;  %v1775_v49 = vmul.f32 0.0625, %v1657_v5  ;;  %v5619_v31 = vpop.eup %5618  ;;  %v11749_v21 = vld [vmem:[#allocation70_spill] sm:$0xff] }
 0x307   :  { %v1776_v20 = vmul.f32 0.0625, %v1660_v0  ;;  %v2618_v19 = vadd.f32 %v8169_v36, %v2548_v12  ;;  %5630 = vrsqrt.f32 %v2290_v8  ;;  %v3040_v25 = vsel %vm86_vm1, 0.0, %v11749_v21  ;;  %v11750_v0 = vld [vmem:[#allocation9_spill] sm:$0xff]  ;;  %v11751_v21 = vld [vmem:[#allocation11_spill] sm:$0xff] }
 0x308   :  { %v5621_v51 = vpop.eup %5620  ;;  %2681 = vst.msk [vmem:[%s11315_s4 + $0x220] sm:$0xff] %vm263_vm0, %v2617_v62  ;;  %v1839_v47 = vadd.f32 1e-05, %v1775_v49  ;;  %3142 = vadd.xlane.f32.xlu0 %v3141_v11  ;;  %3145 = vadd.xlane.f32.xlu1 %v3144_v38  ;;  %v3147_v38 = vsel %vm263_vm0, %v3039_v1, 0.0  ;;  %v3150_v27 = vsel %vm263_vm0, %v3040_v25, 0.0 }
 0x309   :  { %v5623_v5 = vpop.eup %5622  ;;  %2682 = vst.msk [vmem:[%s11315_s4 + $0x228] sm:$0xff] %vm263_vm0, %v2618_v19  ;;  %v2411_v55 = vsel %vm86_vm1, %v5621_v51, %v5617_v33  ;;  %v1840_v28 = vadd.f32 1e-05, %v1776_v20  ;;  %v2105_v12 = vpop.xlane.xlu0 %2104  ;;  %v3041_v33 = vsel %vm86_vm1, 0.0, %v7732_v7 }
 0x30a   :  { %v2108_v8 = vpop.xlane.xlu1 %2107  ;;  %v2475_v62 = vmul.f32 %v2411_v55, %v11750_v0  ;;  %v2412_v49 = vsel %vm86_vm1, %v5623_v5, %v5619_v31  ;;  %v2223_v11 = vmul.f32 0.0625, %v2105_v12  ;;  %5632 = vrsqrt.f32 %v1839_v47  ;;  %v11752_v5 = vld [vmem:[#allocation31_spill] sm:$0xff] }
 0x30b   :  { %v2476_v58 = vmul.f32 %v2412_v49, %v11751_v21  ;;  %v2224_v9 = vmul.f32 0.0625, %v2108_v8  ;;  %v3042_v31 = vsel %vm86_vm1, 0.0, %v7743_v56  ;;  %5634 = vrsqrt.f32 %v1840_v28 }
 0x30c   :  { %v2545_v20 = vmul.f32 %v8156_v4, %v2475_v62  ;;  %v2287_v19 = vadd.f32 1e-05, %v2223_v11  ;;  %3148 = vadd.xlane.f32.xlu0 %v3147_v38  ;;  %3151 = vadd.xlane.f32.xlu1 %v3150_v27  ;;  %v3043_v55 = vsel %vm86_vm1, 0.0, %v11752_v5  ;;  %v11753_v11 = vld [vmem:[#allocation72_spill] sm:$0xff] }
 0x30d   :  { %v2546_v1 = vmul.f32 %v8156_v4, %v2476_v58  ;;  %v2288_v51 = vadd.f32 1e-05, %v2224_v9  ;;  %v1675_v21 = vpop.xlane.xlu0 %1674  ;;  %v5625_v12 = vpop.eup %5624  ;;  %v3153_v58 = vsel %vm263_vm0, %v3041_v33, 0.0  ;;  %v3156_v9 = vsel %vm263_vm0, %v3042_v31, 0.0 }
 0x30e   :  { %v1678_v25 = vpop.xlane.xlu1 %1677  ;;  %v2615_v47 = vadd.f32 %v8169_v36, %v2545_v20  ;;  %5636 = vrsqrt.f32 %v2287_v19  ;;  %v1781_v8 = vmul.f32 0.0625, %v1675_v21  ;;  %v5627_v0 = vpop.eup %5626  ;;  %v3044_v38 = vsel %vm86_vm1, 0.0, %v11753_v11 }
 0x30f   :  { %v1782_v27 = vmul.f32 0.0625, %v1678_v25  ;;  %v2616_v62 = vadd.f32 %v8169_v36, %v2546_v1  ;;  %5638 = vrsqrt.f32 %v2288_v51  ;;  %v11754_v51 = vld [vmem:[#allocation10_spill] sm:$0xff]  ;;  %v3162_v5 = vsel %vm263_vm0, %v3044_v38, 0.0 }
 0x310   :  { %v5629_v28 = vpop.eup %5628  ;;  %2679 = vst.msk [vmem:[%s11315_s4 + $0x200] sm:$0xff] %vm263_vm0, %v2615_v47  ;;  %v1845_v49 = vadd.f32 1e-05, %v1781_v8  ;;  %3154 = vadd.xlane.f32.xlu0 %v3153_v58  ;;  %3157 = vadd.xlane.f32.xlu1 %v3156_v9  ;;  %v3159_v8 = vsel %vm263_vm0, %v3043_v55, 0.0  ;;  %v11755_v58 = vld [vmem:[#allocation12_spill] sm:$0xff] }
 0x311   :  { %v5631_v20 = vpop.eup %5630  ;;  %2680 = vst.msk [vmem:[%s11315_s4 + $0x208] sm:$0xff] %vm263_vm0, %v2616_v62  ;;  %v2417_v33 = vsel %vm86_vm1, %v5629_v28, %v5625_v12  ;;  %v1846_v19 = vadd.f32 1e-05, %v1782_v27  ;;  %v2123_v31 = vpop.xlane.xlu0 %2122  ;;  %v3045_v12 = vsel %vm86_vm1, 0.0, %v7774_v30 }
 0x312   :  { %v2126_v1 = vpop.xlane.xlu1 %2125  ;;  %v2481_v21 = vmul.f32 %v2417_v33, %v11754_v51  ;;  %v2418_v25 = vsel %vm86_vm1, %v5631_v20, %v5627_v0  ;;  %v2229_v47 = vmul.f32 0.0625, %v2123_v31  ;;  %5640 = vrsqrt.f32 %v1845_v49  ;;  %v11756_v33 = vld [vmem:[#allocation33_spill] sm:$0xff] }
 0x313   :  { %v2482_v9 = vmul.f32 %v2418_v25, %v11755_v58  ;;  %v2230_v11 = vmul.f32 0.0625, %v2126_v1  ;;  %v3046_v0 = vsel %vm86_vm1, 0.0, %v7785_v44  ;;  %5642 = vrsqrt.f32 %v1846_v19  ;;  %v11757_v58 = vld [vmem:[#allocation74_spill] sm:$0xff] }
 0x314   :  { %v2551_v27 = vmul.f32 %v8156_v4, %v2481_v21  ;;  %v2293_v62 = vadd.f32 1e-05, %v2229_v47  ;;  %3160 = vadd.xlane.f32.xlu0 %v3159_v8  ;;  %3163 = vadd.xlane.f32.xlu1 %v3162_v5  ;;  %v3047_v31 = vsel %vm86_vm1, 0.0, %v11756_v33  ;;  %v5633_v1 = vpop.eup %5632  ;;  %v3165_v47 = vsel %vm263_vm0, %v3045_v12, 0.0 }
 0x315   :  { %v2552_v55 = vmul.f32 %v8156_v4, %v2482_v9  ;;  %v2294_v28 = vadd.f32 1e-05, %v2230_v11  ;;  %v1669_v20 = vpop.xlane.xlu0 %1668  ;;  %v5635_v21 = vpop.eup %5634  ;;  %v3168_v11 = vsel %vm263_vm0, %v3046_v0, 0.0  ;;  %v3048_v9 = vsel %vm86_vm1, 0.0, %v11757_v58 }
 0x316   :  { %v1672_v38 = vpop.xlane.xlu1 %1671  ;;  %v2621_v49 = vadd.f32 %v8169_v36, %v2551_v27  ;;  %5644 = vrsqrt.f32 %v2293_v62  ;;  %v1779_v51 = vmul.f32 0.0625, %v1669_v20  ;;  %v3174_v33 = vsel %vm263_vm0, %v3048_v9, 0.0 }
 0x317   :  { %v1780_v5 = vmul.f32 0.0625, %v1672_v38  ;;  %v2622_v25 = vadd.f32 %v8169_v36, %v2552_v55  ;;  %5646 = vrsqrt.f32 %v2294_v28  ;;  %v11758_v28 = vld [vmem:[#allocation13_spill] sm:$0xff] }
 0x318   :  { %v5637_v19 = vpop.eup %5636  ;;  %2685 = vst.msk [vmem:[%s11315_s4 + $0x260] sm:$0xff] %vm263_vm0, %v2621_v49  ;;  %v1843_v8 = vadd.f32 1e-05, %v1779_v51  ;;  %3166 = vadd.xlane.f32.xlu0 %v3165_v47  ;;  %3169 = vadd.xlane.f32.xlu1 %v3168_v11  ;;  %v3171_v51 = vsel %vm263_vm0, %v3047_v31, 0.0  ;;  %v11759_v47 = vld [vmem:[#allocation15_spill] sm:$0xff] }
 0x319   :  { %v5639_v27 = vpop.eup %5638  ;;  %2686 = vst.msk [vmem:[%s11315_s4 + $0x268] sm:$0xff] %vm263_vm0, %v2622_v25  ;;  %v2415_v12 = vsel %vm86_vm1, %v5637_v19, %v5633_v1  ;;  %v1844_v62 = vadd.f32 1e-05, %v1780_v5  ;;  %v2117_v0 = vpop.xlane.xlu0 %2116  ;;  %v3049_v1 = vsel %vm86_vm1, 0.0, %v7816_v24 }
 0x31a   :  { %v2120_v55 = vpop.xlane.xlu1 %2119  ;;  %v2479_v20 = vmul.f32 %v2415_v12, %v11758_v28  ;;  %v2416_v38 = vsel %vm86_vm1, %v5639_v27, %v5635_v21  ;;  %v2227_v49 = vmul.f32 0.0625, %v2117_v0  ;;  %5648 = vrsqrt.f32 %v1843_v8  ;;  %v11760_v12 = vld [vmem:[#allocation35_spill] sm:$0xff] }
 0x31b   :  { %v2480_v11 = vmul.f32 %v2416_v38, %v11759_v47  ;;  %v2228_v58 = vmul.f32 0.0625, %v2120_v55  ;;  %v3050_v21 = vsel %vm86_vm1, 0.0, %v7827_v63  ;;  %5650 = vrsqrt.f32 %v1844_v62  ;;  %v11761_v47 = vld [vmem:[#allocation76_spill] sm:$0xff] }
 0x31c   :  { %v2549_v5 = vmul.f32 %v8156_v4, %v2479_v20  ;;  %v2291_v25 = vadd.f32 1e-05, %v2227_v49  ;;  %3172 = vadd.xlane.f32.xlu0 %v3171_v51  ;;  %3175 = vadd.xlane.f32.xlu1 %v3174_v33  ;;  %v3051_v0 = vsel %vm86_vm1, 0.0, %v11760_v12  ;;  %v5641_v55 = vpop.eup %5640  ;;  %v3177_v49 = vsel %vm263_vm0, %v3049_v1, 0.0 }
 0x31d   :  { %v2550_v31 = vmul.f32 %v8156_v4, %v2480_v11  ;;  %v2292_v19 = vadd.f32 1e-05, %v2228_v58  ;;  %v1687_v27 = vpop.xlane.xlu0 %1686  ;;  %v5643_v20 = vpop.eup %5642  ;;  %v3180_v58 = vsel %vm263_vm0, %v3050_v21, 0.0  ;;  %v3052_v11 = vsel %vm86_vm1, 0.0, %v11761_v47 }
 0x31e   :  { %v1690_v9 = vpop.xlane.xlu1 %1689  ;;  %v2619_v8 = vadd.f32 %v8169_v36, %v2549_v5  ;;  %5652 = vrsqrt.f32 %v2291_v25  ;;  %v1785_v28 = vmul.f32 0.0625, %v1687_v27  ;;  %v3186_v12 = vsel %vm263_vm0, %v3052_v11, 0.0 }
 0x31f   :  { %v1786_v33 = vmul.f32 0.0625, %v1690_v9  ;;  %v2620_v38 = vadd.f32 %v8169_v36, %v2550_v31  ;;  %5654 = vrsqrt.f32 %v2292_v19  ;;  %v11762_v19 = vld [vmem:[#allocation14_spill] sm:$0xff] }
 0x320   :  { %v5645_v62 = vpop.eup %5644  ;;  %2683 = vst.msk [vmem:[%s11315_s4 + $0x240] sm:$0xff] %vm263_vm0, %v2619_v8  ;;  %v1849_v51 = vadd.f32 1e-05, %v1785_v28  ;;  %3178 = vadd.xlane.f32.xlu0 %v3177_v49  ;;  %3181 = vadd.xlane.f32.xlu1 %v3180_v58  ;;  %v3183_v28 = vsel %vm263_vm0, %v3051_v0, 0.0  ;;  %v11763_v49 = vld [vmem:[#allocation16_spill] sm:$0xff] }
 0x321   :  { %v5647_v5 = vpop.eup %5646  ;;  %2684 = vst.msk [vmem:[%s11315_s4 + $0x248] sm:$0xff] %vm263_vm0, %v2620_v38  ;;  %v2421_v1 = vsel %vm86_vm1, %v5645_v62, %v5641_v55  ;;  %v1850_v25 = vadd.f32 1e-05, %v1786_v33  ;;  %v2135_v21 = vpop.xlane.xlu0 %2134  ;;  %v3053_v55 = vsel %vm86_vm1, 0.0, %v7858_v59 }
 0x322   :  { %v2138_v31 = vpop.xlane.xlu1 %2137  ;;  %v2485_v27 = vmul.f32 %v2421_v1, %v11762_v19  ;;  %v2422_v9 = vsel %vm86_vm1, %v5647_v5, %v5643_v20  ;;  %v2233_v8 = vmul.f32 0.0625, %v2135_v21  ;;  %5656 = vrsqrt.f32 %v1849_v51  ;;  %v11764_v1 = vld [vmem:[#allocation37_spill] sm:$0xff] }
 0x323   :  { %v2486_v58 = vmul.f32 %v2422_v9, %v11763_v49  ;;  %v2234_v47 = vmul.f32 0.0625, %v2138_v31  ;;  %v3054_v20 = vsel %vm86_vm1, 0.0, %v7869_v60  ;;  %5658 = vrsqrt.f32 %v1850_v25  ;;  %v11765_v49 = vld [vmem:[#allocation78_spill] sm:$0xff] }
 0x324   :  { %v2555_v33 = vmul.f32 %v8156_v4, %v2485_v27  ;;  %v2297_v38 = vadd.f32 1e-05, %v2233_v8  ;;  %3184 = vadd.xlane.f32.xlu0 %v3183_v28  ;;  %3187 = vadd.xlane.f32.xlu1 %v3186_v12  ;;  %v3055_v21 = vsel %vm86_vm1, 0.0, %v11764_v1  ;;  %v5649_v31 = vpop.eup %5648  ;;  %v3189_v8 = vsel %vm263_vm0, %v3053_v55, 0.0 }
 0x325   :  { %v2556_v0 = vmul.f32 %v8156_v4, %v2486_v58  ;;  %v2298_v62 = vadd.f32 1e-05, %v2234_v47  ;;  %v1681_v5 = vpop.xlane.xlu0 %1680  ;;  %v5651_v27 = vpop.eup %5650  ;;  %v3192_v47 = vsel %vm263_vm0, %v3054_v20, 0.0  ;;  %v3056_v58 = vsel %vm86_vm1, 0.0, %v11765_v49 }
 0x326   :  { %v1684_v11 = vpop.xlane.xlu1 %1683  ;;  %v2625_v51 = vadd.f32 %v8169_v36, %v2555_v33  ;;  %5660 = vrsqrt.f32 %v2297_v38  ;;  %v1783_v19 = vmul.f32 0.0625, %v1681_v5  ;;  %v3198_v1 = vsel %vm263_vm0, %v3056_v58, 0.0 }
 0x327   :  { %v1784_v12 = vmul.f32 0.0625, %v1684_v11  ;;  %v2626_v9 = vadd.f32 %v8169_v36, %v2556_v0  ;;  %5662 = vrsqrt.f32 %v2298_v62  ;;  %v11766_v62 = vld [vmem:[#allocation17_spill] sm:$0xff] }
 0x328   :  { %v5653_v25 = vpop.eup %5652  ;;  %2689 = vst.msk [vmem:[%s11315_s4 + $0x2a0] sm:$0xff] %vm263_vm0, %v2625_v51  ;;  %v1847_v28 = vadd.f32 1e-05, %v1783_v19  ;;  %3190 = vadd.xlane.f32.xlu0 %v3189_v8  ;;  %3193 = vadd.xlane.f32.xlu1 %v3192_v47  ;;  %v3195_v19 = vsel %vm263_vm0, %v3055_v21, 0.0  ;;  %v11767_v8 = vld [vmem:[#allocation19_spill] sm:$0xff] }
 0x329   :  { %v5655_v33 = vpop.eup %5654  ;;  %2690 = vst.msk [vmem:[%s11315_s4 + $0x2a8] sm:$0xff] %vm263_vm0, %v2626_v9  ;;  %v2419_v55 = vsel %vm86_vm1, %v5653_v25, %v5649_v31  ;;  %v1848_v38 = vadd.f32 1e-05, %v1784_v12  ;;  %v2129_v20 = vpop.xlane.xlu0 %2128  ;;  %v3057_v31 = vsel %vm86_vm1, 0.0, %v7900_v61 }
 0x32a   :  { %v2132_v0 = vpop.xlane.xlu1 %2131  ;;  %v2483_v5 = vmul.f32 %v2419_v55, %v11766_v62  ;;  %v2420_v11 = vsel %vm86_vm1, %v5655_v33, %v5651_v27  ;;  %v2231_v51 = vmul.f32 0.0625, %v2129_v20  ;;  %5664 = vrsqrt.f32 %v1847_v28 }
 0x32b   :  { %v2484_v47 = vmul.f32 %v2420_v11, %v11767_v8  ;;  %v2232_v49 = vmul.f32 0.0625, %v2132_v0  ;;  %v3058_v27 = vsel %vm86_vm1, 0.0, %v7911_v57  ;;  %5666 = vrsqrt.f32 %v1848_v38 }
 0x32c   :  { %v2553_v12 = vmul.f32 %v8156_v4, %v2483_v5  ;;  %v2295_v9 = vadd.f32 1e-05, %v2231_v51  ;;  %3196 = vadd.xlane.f32.xlu0 %v3195_v19  ;;  %3199 = vadd.xlane.f32.xlu1 %v3198_v1  ;;  %v3059_v55 = vsel %vm86_vm1, 0.0, %v7893_v46  ;;  %v5657_v20 = vpop.eup %5656  ;;  %v3201_v11 = vsel %vm263_vm0, %v3057_v31, 0.0  ;;  %v11768_v19 = vld [vmem:[#allocation80_spill] sm:$0xff] }
 0x32d   :  { %v2554_v21 = vmul.f32 %v8156_v4, %v2484_v47  ;;  %v2296_v25 = vadd.f32 1e-05, %v2232_v49  ;;  %v1699_v33 = vpop.xlane.xlu0 %1698  ;;  %v5659_v62 = vpop.eup %5658  ;;  %v3204_v49 = vsel %vm263_vm0, %v3058_v27, 0.0  ;;  %v3060_v8 = vsel %vm86_vm1, 0.0, %v11768_v19 }
 0x32e   :  { %v1702_v58 = vpop.xlane.xlu1 %1701  ;;  %v2623_v28 = vadd.f32 %v8169_v36, %v2553_v12  ;;  %5668 = vrsqrt.f32 %v2295_v9  ;;  %v1789_v0 = vmul.f32 0.0625, %v1699_v33  ;;  %v3210_v19 = vsel %vm263_vm0, %v3060_v8, 0.0 }
 0x32f   :  { %v1790_v1 = vmul.f32 0.0625, %v1702_v58  ;;  %v2624_v5 = vadd.f32 %v8169_v36, %v2554_v21  ;;  %5670 = vrsqrt.f32 %v2296_v25  ;;  %v11769_v21 = vld [vmem:[#allocation18_spill] sm:$0xff] }
 0x330   :  { %v5661_v38 = vpop.eup %5660  ;;  %2687 = vst.msk [vmem:[%s11315_s4 + $0x280] sm:$0xff] %vm263_vm0, %v2623_v28  ;;  %v1853_v51 = vadd.f32 1e-05, %v1789_v0  ;;  %3202 = vadd.xlane.f32.xlu0 %v3201_v11  ;;  %3205 = vadd.xlane.f32.xlu1 %v3204_v49  ;;  %v3207_v28 = vsel %vm263_vm0, %v3059_v55, 0.0  ;;  %v11770_v0 = vld [vmem:[#allocation20_spill] sm:$0xff] }
 0x331   :  { %v5663_v47 = vpop.eup %5662  ;;  %2688 = vst.msk [vmem:[%s11315_s4 + $0x288] sm:$0xff] %vm263_vm0, %v2624_v5  ;;  %v2425_v31 = vsel %vm86_vm1, %v5661_v38, %v5657_v20  ;;  %v1854_v12 = vadd.f32 1e-05, %v1790_v1  ;;  %v2147_v9 = vpop.xlane.xlu0 %2146  ;;  %v3061_v20 = vsel %vm86_vm1, 0.0, %v7942_v6 }
 0x332   :  { %v2150_v27 = vpop.xlane.xlu1 %2149  ;;  %v2489_v25 = vmul.f32 %v2425_v31, %v11769_v21  ;;  %v2426_v33 = vsel %vm86_vm1, %v5663_v47, %v5659_v62  ;;  %v2237_v58 = vmul.f32 0.0625, %v2147_v9  ;;  %5672 = vrsqrt.f32 %v1853_v51 }
 0x333   :  { %v2490_v11 = vmul.f32 %v2426_v33, %v11770_v0  ;;  %v2238_v49 = vmul.f32 0.0625, %v2150_v27  ;;  %v3062_v62 = vsel %vm86_vm1, 0.0, %v7954_v22  ;;  %5674 = vrsqrt.f32 %v1854_v12 }
 0x334   :  { %v2559_v1 = vmul.f32 %v8156_v4, %v2489_v25  ;;  %v2301_v5 = vadd.f32 1e-05, %v2237_v58  ;;  %3208 = vadd.xlane.f32.xlu0 %v3207_v28  ;;  %3211 = vadd.xlane.f32.xlu1 %v3210_v19  ;;  %v3063_v31 = vsel %vm86_vm1, 0.0, %v7935_v43  ;;  %v5665_v9 = vpop.eup %5664  ;;  %v3213_v33 = vsel %vm263_vm0, %v3061_v20, 0.0 }
 0x335   :  { %v2560_v55 = vmul.f32 %v8156_v4, %v2490_v11  ;;  %v2302_v38 = vadd.f32 1e-05, %v2238_v49  ;;  %v1693_v47 = vpop.xlane.xlu0 %1692  ;;  %v5667_v21 = vpop.eup %5666  ;;  %v3216_v12 = vsel %vm263_vm0, %v3062_v62, 0.0  ;;  %v3064_v0 = vsel %vm86_vm1, 0.0, %v7946_v41  ;;  %v11771_v62 = vld [vmem:[#allocation21_spill] sm:$0xff] }
 0x336   :  { %v1696_v8 = vpop.xlane.xlu1 %1695  ;;  %v2629_v51 = vadd.f32 %v8169_v36, %v2559_v1  ;;  %5676 = vrsqrt.f32 %v2301_v5  ;;  %v1787_v27 = vmul.f32 0.0625, %v1693_v47 }
 0x337   :  { %v1788_v19 = vmul.f32 0.0625, %v1696_v8  ;;  %v2630_v25 = vadd.f32 %v8169_v36, %v2560_v55  ;;  %5678 = vrsqrt.f32 %v2302_v38  ;;  %v3219_v8 = vsel %vm263_vm0, %v3063_v31, 0.0 }
 0x338   :  { %v5669_v58 = vpop.eup %5668  ;;  %2693 = vst.msk [vmem:[%s11315_s4 + $0x2e0] sm:$0xff] %vm263_vm0, %v2629_v51  ;;  %v1851_v28 = vadd.f32 1e-05, %v1787_v27  ;;  %3214 = vadd.xlane.f32.xlu0 %v3213_v33  ;;  %3217 = vadd.xlane.f32.xlu1 %v3216_v12  ;;  %v11772_v51 = vld [vmem:[#allocation22_spill] sm:$0xff]  ;;  %v3222_v12 = vsel %vm263_vm0, %v3064_v0, 0.0 }
 0x339   :  { %v5671_v11 = vpop.eup %5670  ;;  %2694 = vst.msk [vmem:[%s11315_s4 + $0x2e8] sm:$0xff] %vm263_vm0, %v2630_v25  ;;  %v2423_v49 = vsel %vm86_vm1, %v5669_v58, %v5665_v9  ;;  %v1852_v20 = vadd.f32 1e-05, %v1788_v19  ;;  %v2141_v1 = vpop.xlane.xlu0 %2140  ;;  %v3065_v9 = vsel %vm86_vm1, 0.0, %v7985_v37 }
 0x33a   :  { %v2144_v5 = vpop.xlane.xlu1 %2143  ;;  %v2487_v55 = vmul.f32 %v2423_v49, %v11771_v62  ;;  %v2424_v38 = vsel %vm86_vm1, %v5671_v11, %v5667_v21  ;;  %v2235_v47 = vmul.f32 0.0625, %v2141_v1  ;;  %5680 = vrsqrt.f32 %v1851_v28  ;;  %v11773_v49 = vld [vmem:[#allocation85_spill] sm:$0xff] }
 0x33b   :  { %v2488_v27 = vmul.f32 %v2424_v38, %v11772_v51  ;;  %v2236_v33 = vmul.f32 0.0625, %v2144_v5  ;;  %v3066_v21 = vsel %vm86_vm1, 0.0, %v7994_v16  ;;  %5682 = vrsqrt.f32 %v1852_v20 }
 0x33c   :  { %v2557_v19 = vmul.f32 %v8156_v4, %v2487_v55  ;;  %v2299_v25 = vadd.f32 1e-05, %v2235_v47  ;;  %3220 = vadd.xlane.f32.xlu0 %v3219_v8  ;;  %3223 = vadd.xlane.f32.xlu1 %v3222_v12  ;;  %v3067_v1 = vsel %vm86_vm1, 0.0, %v11773_v49  ;;  %v5673_v5 = vpop.eup %5672  ;;  %v3228_v20 = vsel %vm263_vm0, %v3066_v21, 0.0  ;;  %v11775_v21 = vld [vmem:[#allocation42_spill] sm:$0xff] }
 0x33d   :  { %v2558_v31 = vmul.f32 %v8156_v4, %v2488_v27  ;;  %v2300_v58 = vadd.f32 1e-05, %v2236_v33  ;;  %v1711_v11 = vpop.xlane.xlu0 %1710  ;;  %v5675_v38 = vpop.eup %5674  ;;  %v3225_v4 = vsel %vm263_vm0, %v3065_v9, 0.0  ;;  %v11774_v27 = vld [vmem:[#allocation87_spill] sm:$0xff] }
 0x33e   :  { %v1714_v0 = vpop.xlane.xlu1 %1713  ;;  %v2627_v28 = vadd.f32 %v8169_v36, %v2557_v19  ;;  %5684 = vrsqrt.f32 %v2299_v25  ;;  %v1793_v62 = vmul.f32 0.0625, %v1711_v11  ;;  %v3068_v33 = vsel %vm86_vm1, 0.0, %v11774_v27 }
 0x33f   :  { %v1794_v55 = vmul.f32 0.0625, %v1714_v0  ;;  %v2628_v47 = vadd.f32 %v8169_v36, %v2558_v31  ;;  %5686 = vrsqrt.f32 %v2300_v58  ;;  %v3231_v0 = vsel %vm263_vm0, %v3067_v1, 0.0 }
 0x340   :  { %v5677_v8 = vpop.eup %5676  ;;  %2691 = vst.msk [vmem:[%s11315_s4 + $0x2c0] sm:$0xff] %vm263_vm0, %v2627_v28  ;;  %v1857_v51 = vadd.f32 1e-05, %v1793_v62  ;;  %3226 = vadd.xlane.f32.xlu0 %v3225_v4  ;;  %3229 = vadd.xlane.f32.xlu1 %v3228_v20  ;;  %v11776_v28 = vld [vmem:[#allocation43_spill] sm:$0xff]  ;;  %v3234_v20 = vsel %vm263_vm0, %v3068_v33, 0.0  ;;  %v3070_v1 = vsel %vm86_vm1, 0.0, %v8042_v23 }
 0x341   :  { %v5679_v12 = vpop.eup %5678  ;;  %2692 = vst.msk [vmem:[%s11315_s4 + $0x2c8] sm:$0xff] %vm263_vm0, %v2628_v47  ;;  %v2429_v36 = vsel %vm86_vm1, %v5677_v8, %v5673_v5  ;;  %v1858_v9 = vadd.f32 1e-05, %v1794_v55  ;;  %v2159_v19 = vpop.xlane.xlu0 %2158  ;;  %v3069_v5 = vsel %vm86_vm1, 0.0, %v8027_v54  ;;  %v8608_v55 = vld [vmem:[%s11313_s2] ss:$0 sm:$0xff] }
 0x342   :  { %v2162_v25 = vpop.xlane.xlu1 %2161  ;;  %v2493_v31 = vmul.f32 %v2429_v36, %v11775_v21  ;;  %v2430_v58 = vsel %vm86_vm1, %v5679_v12, %v5675_v38  ;;  %v2241_v11 = vmul.f32 0.0625, %v2159_v19  ;;  %5688 = vrsqrt.f32 %v1857_v51  ;;  %v8621_v51 = vld [vmem:[%s11314_s3] ss:$0 sm:$0xff] }
 0x343   :  { %v2494_v62 = vmul.f32 %v2430_v58, %v11776_v28  ;;  %v2242_v4 = vmul.f32 0.0625, %v2162_v25  ;;  %5690 = vrsqrt.f32 %v1858_v9  ;;  %v3071_v19 = vsel %vm86_vm1, 0.0, %v8022_v50 }
 0x344   :  { %v2563_v47 = vmul.f32 %v8608_v55, %v2493_v31  ;;  %v2305_v38 = vadd.f32 1e-05, %v2241_v11  ;;  %3232 = vadd.xlane.f32.xlu0 %v3231_v0  ;;  %3235 = vadd.xlane.f32.xlu1 %v3234_v20  ;;  %v5681_v25 = vpop.eup %5680  ;;  %v3237_v0 = vsel %vm263_vm0, %v3069_v5, 0.0  ;;  %v3240_v28 = vsel %vm263_vm0, %v3070_v1, 0.0 }
 0x345   :  { %v2564_v8 = vmul.f32 %v8608_v55, %v2494_v62  ;;  %v2306_v33 = vadd.f32 1e-05, %v2242_v4  ;;  %v1705_v12 = vpop.xlane.xlu0 %1704  ;;  %v5683_v11 = vpop.eup %5682  ;;  %v3072_v20 = vsel %vm86_vm1, 0.0, %v8034_v40 }
 0x346   :  { %v1708_v36 = vpop.xlane.xlu1 %1707  ;;  %v2633_v21 = vadd.f32 %v8621_v51, %v2563_v47  ;;  %5692 = vrsqrt.f32 %v2305_v38  ;;  %v1791_v31 = vmul.f32 0.0625, %v1705_v12  ;;  %v3246_v50 = vsel %vm263_vm0, %v3072_v20, 0.0 }
 0x347   :  { %v1792_v58 = vmul.f32 0.0625, %v1708_v36  ;;  %v2634_v9 = vadd.f32 %v8621_v51, %v2564_v8  ;;  %5694 = vrsqrt.f32 %v2306_v33  ;;  %v11777_v33 = vld [vmem:[#allocation44_spill] sm:$0xff] }
 0x348   :  { %v5685_v62 = vpop.eup %5684  ;;  %2697 = vst.msk [vmem:[%s11315_s4 + $0x320] sm:$0xff] %vm263_vm0, %v2633_v21  ;;  %v1855_v4 = vadd.f32 1e-05, %v1791_v31  ;;  %3238 = vadd.xlane.f32.xlu0 %v3237_v0  ;;  %3241 = vadd.xlane.f32.xlu1 %v3240_v28  ;;  %v3243_v31 = vsel %vm263_vm0, %v3071_v19, 0.0  ;;  %v11778_v0 = vld [vmem:[#allocation45_spill] sm:$0xff] }
 0x349   :  { %v5687_v47 = vpop.eup %5686  ;;  %2698 = vst.msk [vmem:[%s11315_s4 + $0x328] sm:$0xff] %vm263_vm0, %v2634_v9  ;;  %v2427_v5 = vsel %vm86_vm1, %v5685_v62, %v5681_v25  ;;  %v1856_v38 = vadd.f32 1e-05, %v1792_v58  ;;  %v2153_v1 = vpop.xlane.xlu0 %2152  ;;  %v3073_v25 = vsel %vm86_vm1, 0.0, %v8075_v52 }
 0x34a   :  { %v2156_v8 = vpop.xlane.xlu1 %2155  ;;  %v2491_v12 = vmul.f32 %v2427_v5, %v11777_v33  ;;  %v2428_v36 = vsel %vm86_vm1, %v5687_v47, %v5683_v11  ;;  %v2239_v21 = vmul.f32 0.0625, %v2153_v1  ;;  %5696 = vrsqrt.f32 %v1855_v4 }
 0x34b   :  { %v2492_v28 = vmul.f32 %v2428_v36, %v11778_v0  ;;  %v2240_v40 = vmul.f32 0.0625, %v2156_v8  ;;  %v3074_v11 = vsel %vm86_vm1, 0.0, %v8087_v29  ;;  %5698 = vrsqrt.f32 %v1856_v38 }
 0x34c   :  { %v2561_v58 = vmul.f32 %v8608_v55, %v2491_v12  ;;  %v2303_v9 = vadd.f32 1e-05, %v2239_v21  ;;  %3244 = vadd.xlane.f32.xlu0 %v3243_v31  ;;  %3247 = vadd.xlane.f32.xlu1 %v3246_v50  ;;  %v5689_v5 = vpop.eup %5688  ;;  %v3249_v50 = vsel %vm263_vm0, %v3073_v25, 0.0  ;;  %v3252_v33 = vsel %vm263_vm0, %v3074_v11, 0.0  ;;  %v11780_v11 = vld [vmem:[#allocation47_spill] sm:$0xff] }
 0x34d   :  { %v2562_v19 = vmul.f32 %v8608_v55, %v2492_v28  ;;  %v2304_v62 = vadd.f32 1e-05, %v2240_v40  ;;  %v8654_v47 = vpop.xlane.xlu0 %1722  ;;  %v5691_v8 = vpop.eup %5690  ;;  %v3075_v40 = vsel %vm86_vm1, 0.0, %v8069_v42  ;;  %v3076_v38 = vsel %vm86_vm1, 0.0, %v8080_v14  ;;  %v11779_v28 = vld [vmem:[#allocation46_spill] sm:$0xff] }
 0x34e   :  { %v1726_v20 = vpop.xlane.xlu1 %1725  ;;  %v2631_v1 = vadd.f32 %v8621_v51, %v2561_v58  ;;  %5700 = vrsqrt.f32 %v2303_v9 }
 0x34f   :  { %v2632_v4 = vadd.f32 %v8621_v51, %v2562_v19  ;;  %5702 = vrsqrt.f32 %v2304_v62 }
 0x350   :  { %v5693_v12 = vpop.eup %5692  ;;  %2695 = vst.msk [vmem:[%s11315_s4 + $0x300] sm:$0xff] %vm263_vm0, %v2631_v1  ;;  %3250 = vadd.xlane.f32.xlu0 %v3249_v50  ;;  %3253 = vadd.xlane.f32.xlu1 %v3252_v33  ;;  %v3255_v1 = vsel %vm263_vm0, %v3075_v40, 0.0  ;;  %v3258_v50 = vsel %vm263_vm0, %v3076_v38, 0.0  ;;  %v3079_v38 = vsel %vm86_vm1, 0.0, %v8108_v10 }
 0x351   :  { %v5695_v36 = vpop.eup %5694  ;;  %2696 = vst.msk [vmem:[%s11315_s4 + $0x308] sm:$0xff] %vm263_vm0, %v2632_v4  ;;  %v2433_v21 = vsel %vm86_vm1, %v5693_v12, %v5689_v5  ;;  %v1717_v31 = vpop.xlane.xlu0 %1716  ;;  %v3078_v5 = vsel %vm86_vm1, 0.0, %v8123_v48 }
 0x352   :  { %v1720_v0 = vpop.xlane.xlu1 %1719  ;;  %v2497_v25 = vmul.f32 %v2433_v21, %v11779_v28  ;;  %v2434_v58 = vsel %vm86_vm1, %v5695_v36, %v5691_v8  ;;  %v1795_v9 = vmul.f32 0.0625, %v1717_v31  ;;  %v3077_v8 = vsel %vm86_vm1, 0.0, %v8114_v45 }
 0x353   :  { %v2498_v19 = vmul.f32 %v2434_v58, %v11780_v11  ;;  %v1796_v62 = vmul.f32 0.0625, %v1720_v0  ;;  %v1798_v28 = vmul.f32 0.0625, %v1726_v20  ;;  %v3080_v20 = vsel %vm86_vm1, 0.0, %v8119_v2 }
 0x354   :  { %v2567_v4 = vmul.f32 %v8608_v55, %v2497_v25  ;;  %v1859_v33 = vadd.f32 1e-05, %v1795_v9  ;;  %3256 = vadd.xlane.f32.xlu0 %v3255_v1  ;;  %3259 = vadd.xlane.f32.xlu1 %v3258_v50  ;;  %v5697_v31 = vpop.eup %5696  ;;  %v3261_v1 = vsel %vm263_vm0, %v3077_v8, 0.0 }
 0x355   :  { %v2568_v12 = vmul.f32 %v8608_v55, %v2498_v19  ;;  %v1860_v36 = vadd.f32 1e-05, %v1796_v62  ;;  %v2165_v21 = vpop.xlane.xlu0 %2164  ;;  %v5699_v9 = vpop.eup %5698  ;;  %v3264_v19 = vsel %vm263_vm0, %v3078_v5, 0.0 }
 0x356   :  { %v2168_v40 = vpop.xlane.xlu1 %2167  ;;  %v2637_v0 = vadd.f32 %v8621_v51, %v2567_v4  ;;  %v2243_v25 = vmul.f32 0.0625, %v2165_v21  ;;  %5704 = vrsqrt.f32 %v1859_v33  ;;  %v3337_v21 = vsel %vm86_vm1, %v7516_v26, 0.0 }
 0x357   :  { %v2244_v58 = vmul.f32 0.0625, %v2168_v40  ;;  %v2638_v11 = vadd.f32 %v8621_v51, %v2568_v12  ;;  %5706 = vrsqrt.f32 %v1860_v36  ;;  %v3267_v12 = vsel %vm263_vm0, %v3079_v38, 0.0  ;;  %v11781_v40 = vld [vmem:[#allocation48_spill] sm:$0xff] }
 0x358   :  { %v5701_v62 = vpop.eup %5700  ;;  %2701 = vst.msk [vmem:[%s11315_s4 + $0x360] sm:$0xff] %vm263_vm0, %v2637_v0  ;;  %v2307_v50 = vadd.f32 1e-05, %v2243_v25  ;;  %3262 = vadd.xlane.f32.xlu0 %v3261_v1  ;;  %3265 = vadd.xlane.f32.xlu1 %v3264_v19  ;;  %v3270_v36 = vsel %vm263_vm0, %v3080_v20, 0.0  ;;  %v3338_v38 = vsel %vm86_vm1, %v7534_v17, 0.0  ;;  %v3401_v20 = vsel %vm263_vm0, %v3337_v21, 0.0 }
 0x359   :  { %v2308_v10 = vadd.f32 1e-05, %v2244_v58  ;;  %v5703_v4 = vpop.eup %5702  ;;  %2702 = vst.msk [vmem:[%s11315_s4 + $0x368] sm:$0xff] %vm263_vm0, %v2638_v11  ;;  %v2431_v5 = vsel %vm86_vm1, %v5701_v62, %v5697_v31  ;;  %v1735_v8 = vpop.xlane.xlu0 %1734  ;;  %v1862_v58 = vadd.f32 1e-05, %v1798_v28  ;;  %v11782_v11 = vld [vmem:[#allocation49_spill] sm:$0xff] }
 0x35a   :  { %v2174_v33 = vpop.xlane.xlu1 %2173  ;;  %v2495_v0 = vmul.f32 %v2431_v5, %v11781_v40  ;;  %v2432_v25 = vsel %vm86_vm1, %v5703_v4, %v5699_v9  ;;  %5708 = vrsqrt.f32 %v2307_v50  ;;  %v1797_v9 = vmul.f32 0.0625, %v8654_v47 }
 0x35b   :  { %v2496_v1 = vmul.f32 %v2432_v25, %v11782_v11  ;;  %5710 = vrsqrt.f32 %v2308_v10  ;;  %v2246_v31 = vmul.f32 0.0625, %v2174_v33  ;;  %v3404_v33 = vsel %vm263_vm0, %v3338_v38, 0.0 }
 0x35c   :  { %v2565_v19 = vmul.f32 %v8608_v55, %v2495_v0  ;;  %3268 = vadd.xlane.f32.xlu0 %v3267_v12  ;;  %3271 = vadd.xlane.f32.xlu1 %v3270_v36  ;;  %5712 = vrsqrt.f32 %v1862_v58  ;;  %v3339_v12 = vsel %vm86_vm1, %v7512_v39, 0.0  ;;  %v3340_v21 = vsel %vm86_vm1, %v7526_v34, 0.0 }
 0x35d   :  { %v2566_v62 = vmul.f32 %v8608_v55, %v2496_v1  ;;  %v2310_v28 = vadd.f32 1e-05, %v2246_v31  ;;  %v1729_v50 = vpop.xlane.xlu0 %1728  ;;  %v3341_v40 = vsel %vm86_vm1, %v7550_v32, 0.0  ;;  %v3342_v0 = vsel %vm86_vm1, %v7568_v15, 0.0 }
 0x35e   :  { %v1738_v4 = vpop.xlane.xlu1 %1737  ;;  %v2635_v10 = vadd.f32 %v8621_v51, %v2565_v19  ;;  %v1799_v47 = vmul.f32 0.0625, %v1729_v50  ;;  %v1861_v25 = vadd.f32 1e-05, %v1797_v9  ;;  %v3407_v19 = vsel %vm263_vm0, %v3339_v12, 0.0 }
 0x35f   :  { %v2636_v5 = vadd.f32 %v8621_v51, %v2566_v62  ;;  %5714 = vrsqrt.f32 %v2310_v28  ;;  %v3410_v62 = vsel %vm263_vm0, %v3340_v21, 0.0  ;;  %v3413_v28 = vsel %vm263_vm0, %v3341_v40, 0.0 }
 0x360   :  { %2699 = vst.msk [vmem:[%s11315_s4 + $0x340] sm:$0xff] %vm263_vm0, %v2635_v10  ;;  %3402 = vadd.xlane.f32.xlu0 %v3401_v20  ;;  %3405 = vadd.xlane.f32.xlu1 %v3404_v33  ;;  %v5705_v1 = vpop.eup %5704  ;;  %v3416_v50 = vsel %vm263_vm0, %v3342_v0, 0.0  ;;  %v3343_v10 = vsel %vm86_vm1, %v11724_v53, 0.0  ;;  %v1801_v9 = vmul.f32 0.0625, %v1735_v8  ;;  %v3344_v12 = vsel %vm86_vm1, %v11725_v3, 0.0  ;;  %v11783_v53 = vld [vmem:[#allocation53_spill] sm:$0xff] }
 0x361   :  { %2700 = vst.msk [vmem:[%s11315_s4 + $0x348] sm:$0xff] %vm263_vm0, %v2636_v5  ;;  %v2171_v58 = vpop.xlane.xlu0 %2170  ;;  %v5707_v38 = vpop.eup %5706  ;;  %v1863_v5 = vadd.f32 1e-05, %v1799_v47  ;;  %5716 = vrsqrt.f32 %v1861_v25  ;;  %v1802_v40 = vmul.f32 0.0625, %v1738_v4  ;;  %v3419_v3 = vsel %vm263_vm0, %v3343_v10, 0.0 }
 0x362   :  { %v1732_v11 = vpop.xlane.xlu1 %1731  ;;  %v2245_v31 = vmul.f32 0.0625, %v2171_v58  ;;  %v3422_v25 = vsel %vm263_vm0, %v3344_v12, 0.0 }
 0x363   :  { %v1800_v36 = vmul.f32 0.0625, %v1732_v11 }
 0x364   :  { %v5709_v20 = vpop.eup %5708  ;;  %v2309_v33 = vadd.f32 1e-05, %v2245_v31  ;;  %3408 = vadd.xlane.f32.xlu0 %v3407_v19  ;;  %3411 = vadd.xlane.f32.xlu1 %v3410_v62  ;;  %v11784_v31 = vld [vmem:[#allocation24_spill] sm:$0xff] }
 0x365   :  { %v5711_v58 = vpop.eup %5710  ;;  %v2435_v21 = vsel %vm86_vm1, %v5709_v20, %v5705_v1  ;;  %v1864_v0 = vadd.f32 1e-05, %v1800_v36  ;;  %v2177_v11 = vpop.xlane.xlu0 %2176  ;;  %v1865_v1 = vadd.f32 1e-05, %v1801_v9  ;;  %v1866_v20 = vadd.f32 1e-05, %v1802_v40 }
 0x366   :  { %v2180_v15 = vpop.xlane.xlu1 %2179  ;;  %v2499_v32 = vmul.f32 %v2435_v21, %v11783_v53  ;;  %v2436_v8 = vsel %vm86_vm1, %v5711_v58, %v5707_v38  ;;  %5718 = vrsqrt.f32 %v2309_v33  ;;  %v2247_v47 = vmul.f32 0.0625, %v2177_v11  ;;  %v5713_v34 = vpop.eup %5712 }
 0x367   :  { %v2500_v19 = vmul.f32 %v2436_v8, %v11784_v31  ;;  %v2248_v62 = vmul.f32 0.0625, %v2180_v15  ;;  %5720 = vrsqrt.f32 %v1863_v5  ;;  %v11785_v5 = vld [vmem:[#allocation51_spill] sm:$0xff]  ;;  %v3346_v40 = vsel %vm86_vm1, %v11729_v18, 0.0 }
 0x368   :  { %v2569_v4 = vmul.f32 %v8608_v55, %v2499_v32  ;;  %v2311_v36 = vadd.f32 1e-05, %v2247_v47  ;;  %3414 = vadd.xlane.f32.xlu0 %v3413_v28  ;;  %3417 = vadd.xlane.f32.xlu1 %v3416_v50  ;;  %5722 = vrsqrt.f32 %v1864_v0 }
 0x369   :  { %v5715_v53 = vpop.eup %5714  ;;  %v2570_v38 = vmul.f32 %v8608_v55, %v2500_v19  ;;  %v2312_v33 = vadd.f32 1e-05, %v2248_v62  ;;  %v2183_v58 = vpop.xlane.xlu0 %2182  ;;  %v3428_v62 = vsel %vm263_vm0, %v3346_v40, 0.0 }
 0x36a   :  { %v2186_v15 = vpop.xlane.xlu1 %2185  ;;  %v2639_v10 = vadd.f32 %v8621_v51, %v2569_v4  ;;  %v2438_v12 = vsel %vm86_vm1, %v5715_v53, %v5713_v34  ;;  %5724 = vrsqrt.f32 %v2311_v36  ;;  %v2249_v32 = vmul.f32 0.0625, %v2183_v58  ;;  %v11786_v4 = vld [vmem:[#allocation58_spill] sm:$0xff]  ;;  %v11787_v36 = vld [vmem:[#allocation60_spill] sm:$0xff] }
 0x36b   :  { %v2640_v9 = vadd.f32 %v8621_v51, %v2570_v38  ;;  %v2502_v28 = vmul.f32 %v2438_v12, %v11785_v5  ;;  %5726 = vrsqrt.f32 %v2312_v33  ;;  %v2250_v50 = vmul.f32 0.0625, %v2186_v15  ;;  %v5717_v47 = vpop.eup %5716  ;;  %v11788_v15 = vld [vmem:[#allocation50_spill] sm:$0xff] }
 0x36c   :  { %2703 = vst.msk [vmem:[%s11315_s4 + $0x380] sm:$0xff] %vm263_vm0, %v2639_v10  ;;  %5728 = vrsqrt.f32 %v1865_v1  ;;  %v2313_v21 = vadd.f32 1e-05, %v2249_v32  ;;  %3420 = vadd.xlane.f32.xlu0 %v3419_v3  ;;  %3423 = vadd.xlane.f32.xlu1 %v3422_v25  ;;  %v3345_v34 = vsel %vm86_vm1, %v11728_v13, 0.0  ;;  %v3347_v1 = vsel %vm86_vm1, %v11786_v4, 0.0 }
 0x36d   :  { %2704 = vst.msk [vmem:[%s11315_s4 + $0x388] sm:$0xff] %vm263_vm0, %v2640_v9  ;;  %v2572_v0 = vmul.f32 %v8608_v55, %v2502_v28  ;;  %5730 = vrsqrt.f32 %v1866_v20  ;;  %v2314_v11 = vadd.f32 1e-05, %v2250_v50  ;;  %v8789_v8 = vpop.xlane.xlu0 %3082  ;;  %v3425_v19 = vsel %vm263_vm0, %v3345_v34, 0.0  ;;  %v11789_v50 = vld [vmem:[#allocation63_spill] sm:$0xff]  ;;  %v11790_v34 = vld [vmem:[#allocation65_spill] sm:$0xff] }
 0x36e   :  { %v8791_v3 = vpop.xlane.xlu1 %3085  ;;  %5732 = vrsqrt.f32 %v2313_v21  ;;  %v3348_v53 = vsel %vm86_vm1, %v11787_v36, 0.0  ;;  %v3431_v32 = vsel %vm263_vm0, %v3347_v1, 0.0  ;;  %v3349_v21 = vsel %vm86_vm1, %v11789_v50, 0.0 }
 0x36f   :  { %v2642_v31 = vadd.f32 %v8621_v51, %v2572_v0  ;;  %5734 = vrsqrt.f32 %v2314_v11  ;;  %v3434_v9 = vsel %vm263_vm0, %v3348_v53, 0.0  ;;  %v3350_v40 = vsel %vm86_vm1, %v11790_v34, 0.0 }
 0x370   :  { %v5719_v25 = vpop.eup %5718  ;;  %3426 = vadd.xlane.f32.xlu0 %v3425_v19  ;;  %3429 = vadd.xlane.f32.xlu1 %v3428_v62 }
 0x371   :  { %2706 = vst.msk [vmem:[%s11315_s4 + $0x3a8] sm:$0xff] %vm263_vm0, %v2642_v31  ;;  %v2437_v38 = vsel %vm86_vm1, %v5719_v25, %v5717_v47  ;;  %v8808_v20 = vpop.xlane.xlu0 %3088  ;;  %v5721_v58 = vpop.eup %5720  ;;  %v11791_v25 = vld [vmem:[#allocation26_spill] sm:$0xff] }
 0x372   :  { %v8810_v33 = vpop.xlane.xlu1 %3091  ;;  %v2501_v10 = vmul.f32 %v2437_v38, %v11788_v15  ;;  %v5723_v12 = vpop.eup %5722  ;;  %v11792_v15 = vld [vmem:[#allocation28_spill] sm:$0xff] }
 0x374   :  { %v5725_v5 = vpop.eup %5724  ;;  %v2571_v28 = vmul.f32 %v8608_v55, %v2501_v10  ;;  %3432 = vadd.xlane.f32.xlu0 %v3431_v32  ;;  %3435 = vadd.xlane.f32.xlu1 %v3434_v9  ;;  %v3437_v32 = vsel %vm263_vm0, %v3349_v21, 0.0  ;;  %v3440_v9 = vsel %vm263_vm0, %v3350_v40, 0.0 }
 0x375   :  { %v5727_v0 = vpop.eup %5726  ;;  %v2439_v11 = vsel %vm86_vm1, %v5725_v5, %v5721_v58  ;;  %v8824_v47 = vpop.xlane.xlu0 %3094 }
 0x376   :  { %v8826_v31 = vpop.xlane.xlu1 %3097  ;;  %v5729_v19 = vpop.eup %5728  ;;  %v2641_v62 = vadd.f32 %v8621_v51, %v2571_v28  ;;  %v2503_v1 = vmul.f32 %v2439_v11, %v11791_v25  ;;  %v2440_v53 = vsel %vm86_vm1, %v5727_v0, %v5723_v12  ;;  %v11793_v28 = vld [vmem:[#allocation62_spill] sm:$0xff]  ;;  %v11794_v0 = vld [vmem:[#allocation64_spill] sm:$0xff] }
 0x377   :  { %v5731_v38 = vpop.eup %5730  ;;  %v2504_v10 = vmul.f32 %v2440_v53, %v11792_v15  ;;  %v3351_v12 = vsel %vm86_vm1, %v11793_v28, 0.0  ;;  %v3352_v21 = vsel %vm86_vm1, %v11794_v0, 0.0  ;;  %v11795_v15 = vld [vmem:[#allocation25_spill] sm:$0xff]  ;;  %v11796_v0 = vld [vmem:[#allocation27_spill] sm:$0xff] }
 0x378   :  { %v5733_v58 = vpop.eup %5732  ;;  %2705 = vst.msk [vmem:[%s11315_s4 + $0x3a0] sm:$0xff] %vm263_vm0, %v2641_v62  ;;  %v2573_v5 = vmul.f32 %v8608_v55, %v2503_v1  ;;  %3438 = vadd.xlane.f32.xlu0 %v3437_v32  ;;  %3441 = vadd.xlane.f32.xlu1 %v3440_v9  ;;  %v3446_v50 = vsel %vm263_vm0, %v3352_v21, 0.0 }
 0x379   :  { %v5735_v11 = vpop.eup %5734  ;;  %v2574_v40 = vmul.f32 %v8608_v55, %v2504_v10  ;;  %v2441_v25 = vsel %vm86_vm1, %v5733_v58, %v5729_v19  ;;  %v8849_v53 = vpop.xlane.xlu0 %3100  ;;  %v3443_v10 = vsel %vm263_vm0, %v3351_v12, 0.0  ;;  %v11797_v58 = vld [vmem:[#allocation67_spill] sm:$0xff] }
 0x37a   :  { %v8851_v62 = vpop.xlane.xlu1 %3103  ;;  %v2643_v1 = vadd.f32 %v8621_v51, %v2573_v5  ;;  %v2505_v32 = vmul.f32 %v2441_v25, %v11795_v15  ;;  %v2442_v9 = vsel %vm86_vm1, %v5735_v11, %v5731_v38  ;;  %v3353_v38 = vsel %vm86_vm1, %v11797_v58, 0.0  ;;  %v11798_v5 = vld [vmem:[#allocation69_spill] sm:$0xff] }
 0x37b   :  { %v2644_v28 = vadd.f32 %v8621_v51, %v2574_v40  ;;  %v2506_v34 = vmul.f32 %v2442_v9, %v11796_v0  ;;  %v3354_v0 = vsel %vm86_vm1, %v11798_v5, 0.0  ;;  %v3449_v25 = vsel %vm263_vm0, %v3353_v38, 0.0 }
 0x37c   :  { %2707 = vst.msk [vmem:[%s11315_s4 + $0x3c0] sm:$0xff] %vm263_vm0, %v2643_v1  ;;  %v2575_v19 = vmul.f32 %v8608_v55, %v2505_v32  ;;  %3444 = vadd.xlane.f32.xlu0 %v3443_v10  ;;  %3447 = vadd.xlane.f32.xlu1 %v3446_v50  ;;  %v3452_v1 = vsel %vm263_vm0, %v3354_v0, 0.0  ;;  %v11802_v0 = vld [vmem:[#allocation71_spill] sm:$0xff] }
 0x37d   :  { %2708 = vst.msk [vmem:[%s11315_s4 + $0x3c8] sm:$0xff] %vm263_vm0, %v2644_v28  ;;  %v2576_v12 = vmul.f32 %v8608_v55, %v2506_v34  ;;  %v8877_v21 = vpop.xlane.xlu0 %3106  ;;  %v11799_v55 = vld [vmem:[#allocation66_spill] sm:$0xff]  ;;  %v11800_v28 = vld [vmem:[#allocation68_spill] sm:$0xff] }
 0x37e   :  { %v8879_v11 = vpop.xlane.xlu1 %3109  ;;  %v2645_v50 = vadd.f32 %v8621_v51, %v2575_v19  ;;  %v3355_v34 = vsel %vm86_vm1, %v11799_v55, 0.0  ;;  %v3356_v15 = vsel %vm86_vm1, %v11800_v28, 0.0  ;;  %v11801_v19 = vld [vmem:[#allocation30_spill] sm:$0xff] }
 0x37f   :  { %v2646_v40 = vadd.f32 %v8621_v51, %v2576_v12  ;;  %v3455_v9 = vsel %vm263_vm0, %v3355_v34, 0.0  ;;  %v3458_v10 = vsel %vm263_vm0, %v3356_v15, 0.0  ;;  %v3357_v38 = vsel %vm86_vm1, %v11801_v19, 0.0  ;;  %v11803_v34 = vld [vmem:[#allocation29_spill] sm:$0xff] }
 0x380   :  { %2709 = vst.msk [vmem:[%s11315_s4 + $0x3e0] sm:$0xff] %vm263_vm0, %v2645_v50  ;;  %3450 = vadd.xlane.f32.xlu0 %v3449_v25  ;;  %3453 = vadd.xlane.f32.xlu1 %v3452_v1  ;;  %v3358_v12 = vsel %vm86_vm1, %v11802_v0, 0.0  ;;  %v3461_v25 = vsel %vm263_vm0, %v3357_v38, 0.0  ;;  %v3359_v15 = vsel %vm86_vm1, %v11803_v34, 0.0 }
 0x381   :  { %2710 = vst.msk [vmem:[%s11315_s4 + $0x3e8] sm:$0xff] %vm263_vm0, %v2646_v40  ;;  %v8899_v51 = vpop.xlane.xlu0 %3112  ;;  %v3464_v1 = vsel %vm263_vm0, %v3358_v12, 0.0  ;;  %v3467_v28 = vsel %vm263_vm0, %v3359_v15, 0.0  ;;  %v3361_v12 = vsel %vm86_vm1, %v7732_v7, 0.0 }
 0x382   :  { %v8901_v32 = vpop.xlane.xlu1 %3115  ;;  %v3473_v34 = vsel %vm263_vm0, %v3361_v12, 0.0 }
 0x384   :  { %3456 = vadd.xlane.f32.xlu0 %v3455_v9  ;;  %3459 = vadd.xlane.f32.xlu1 %v3458_v10  ;;  %v11804_v9 = vld [vmem:[#allocation70_spill] sm:$0xff] }
 0x385   :  { %v8911_v50 = vpop.xlane.xlu0 %3118  ;;  %v3360_v10 = vsel %vm86_vm1, %v11804_v9, 0.0 }
 0x386   :  { %v8913_v40 = vpop.xlane.xlu1 %3121  ;;  %v3470_v38 = vsel %vm263_vm0, %v3360_v10, 0.0 }
 0x388   :  { %3462 = vadd.xlane.f32.xlu0 %v3461_v25  ;;  %3465 = vadd.xlane.f32.xlu1 %v3464_v1  ;;  %v3362_v25 = vsel %vm86_vm1, %v7743_v56, 0.0 }
 0x389   :  { %v8923_v19 = vpop.xlane.xlu0 %3124  ;;  %v3476_v15 = vsel %vm263_vm0, %v3362_v25, 0.0  ;;  %v3366_v25 = vsel %vm86_vm1, %v7785_v44, 0.0 }
 0x38a   :  { %v8925_v0 = vpop.xlane.xlu1 %3127 }
 0x38c   :  { %3468 = vadd.xlane.f32.xlu0 %v3467_v28  ;;  %3471 = vadd.xlane.f32.xlu1 %v3470_v38  ;;  %v11805_v28 = vld [vmem:[#allocation31_spill] sm:$0xff]  ;;  %v11806_v38 = vld [vmem:[#allocation72_spill] sm:$0xff] }
 0x38d   :  { %v8935_v1 = vpop.xlane.xlu0 %3130  ;;  %v3363_v10 = vsel %vm86_vm1, %v11805_v28, 0.0  ;;  %v3364_v7 = vsel %vm86_vm1, %v11806_v38, 0.0 }
 0x38e   :  { %v8937_v9 = vpop.xlane.xlu1 %3133  ;;  %v3479_v5 = vsel %vm263_vm0, %v3363_v10, 0.0  ;;  %v3482_v12 = vsel %vm263_vm0, %v3364_v7, 0.0  ;;  %v3488_v10 = vsel %vm263_vm0, %v3366_v25, 0.0  ;;  %v11808_v7 = vld [vmem:[#allocation33_spill] sm:$0xff]  ;;  %v3370_v25 = vsel %vm86_vm1, %v7827_v63, 0.0 }
 0x390   :  { %3474 = vadd.xlane.f32.xlu0 %v3473_v34  ;;  %3477 = vadd.xlane.f32.xlu1 %v3476_v15  ;;  %v3365_v34 = vsel %vm86_vm1, %v7774_v30, 0.0 }
 0x391   :  { %v8947_v55 = vpop.xlane.xlu0 %3136  ;;  %v3485_v28 = vsel %vm263_vm0, %v3365_v34, 0.0 }
 0x392   :  { %v8949_v56 = vpop.xlane.xlu1 %3139 }
 0x394   :  { %3480 = vadd.xlane.f32.xlu0 %v3479_v5  ;;  %3483 = vadd.xlane.f32.xlu1 %v3482_v12  ;;  %v3367_v5 = vsel %vm86_vm1, %v11808_v7, 0.0  ;;  %v11809_v12 = vld [vmem:[#allocation74_spill] sm:$0xff] }
 0x395   :  { %v8959_v15 = vpop.xlane.xlu0 %3142  ;;  %v3368_v30 = vsel %vm86_vm1, %v11809_v12, 0.0 }
 0x396   :  { %v8961_v38 = vpop.xlane.xlu1 %3145  ;;  %v3494_v34 = vsel %vm263_vm0, %v3368_v30, 0.0  ;;  %v11812_v30 = vld [vmem:[#allocation35_spill] sm:$0xff] }
 0x397   :  { %11807 = vst [vmem:[#allocation3_spill] sm:$0xff] %v8961_v38  ;;  %v3491_v38 = vsel %vm263_vm0, %v3367_v5, 0.0  ;;  %v3500_v5 = vsel %vm263_vm0, %v3370_v25, 0.0  ;;  %v3374_v25 = vsel %vm86_vm1, %v7869_v60, 0.0 }
 0x398   :  { %3486 = vadd.xlane.f32.xlu0 %v3485_v28  ;;  %3489 = vadd.xlane.f32.xlu1 %v3488_v10  ;;  %v3369_v28 = vsel %vm86_vm1, %v7816_v24, 0.0 }
 0x399   :  { %v8971_v58 = vpop.xlane.xlu0 %3148  ;;  %v3497_v7 = vsel %vm263_vm0, %v3369_v28, 0.0 }
 0x39a   :  { %v8973_v44 = vpop.xlane.xlu1 %3151 }
 0x39b   :  { %11810 = vst [vmem:[#allocation2_spill] sm:$0xff] %v8973_v44 }
 0x39c   :  { %3492 = vadd.xlane.f32.xlu0 %v3491_v38  ;;  %3495 = vadd.xlane.f32.xlu1 %v3494_v34  ;;  %v3371_v38 = vsel %vm86_vm1, %v11812_v30, 0.0  ;;  %v11813_v34 = vld [vmem:[#allocation76_spill] sm:$0xff] }
 0x39d   :  { %v8983_v10 = vpop.xlane.xlu0 %3154  ;;  %v3372_v24 = vsel %vm86_vm1, %v11813_v34, 0.0 }
 0x39e   :  { %v8985_v12 = vpop.xlane.xlu1 %3157  ;;  %v3506_v28 = vsel %vm263_vm0, %v3372_v24, 0.0  ;;  %v11816_v24 = vld [vmem:[#allocation37_spill] sm:$0xff] }
 0x39f   :  { %11811 = vst [vmem:[#allocation59_spill] sm:$0xff] %v8985_v12  ;;  %v3503_v12 = vsel %vm263_vm0, %v3371_v38, 0.0  ;;  %v3512_v38 = vsel %vm263_vm0, %v3374_v25, 0.0  ;;  %v3378_v25 = vsel %vm86_vm1, %v7911_v57, 0.0 }
 0x3a0   :  { %3498 = vadd.xlane.f32.xlu0 %v3497_v7  ;;  %3501 = vadd.xlane.f32.xlu1 %v3500_v5  ;;  %v3373_v7 = vsel %vm86_vm1, %v7858_v59, 0.0 }
 0x3a1   :  { %v8995_v44 = vpop.xlane.xlu0 %3160  ;;  %v3509_v30 = vsel %vm263_vm0, %v3373_v7, 0.0 }
 0x3a2   :  { %v8997_v63 = vpop.xlane.xlu1 %3163 }
 0x3a3   :  { %11814 = vst [vmem:[#allocation61_spill] sm:$0xff] %v8997_v63 }
 0x3a4   :  { %3504 = vadd.xlane.f32.xlu0 %v3503_v12  ;;  %3507 = vadd.xlane.f32.xlu1 %v3506_v28  ;;  %v3375_v12 = vsel %vm86_vm1, %v11816_v24, 0.0  ;;  %v11817_v28 = vld [vmem:[#allocation78_spill] sm:$0xff] }
 0x3a5   :  { %v9007_v5 = vpop.xlane.xlu0 %3166  ;;  %v3376_v59 = vsel %vm86_vm1, %v11817_v28, 0.0 }
 0x3a6   :  { %v9009_v34 = vpop.xlane.xlu1 %3169  ;;  %v3518_v7 = vsel %vm263_vm0, %v3376_v59, 0.0  ;;  %v3379_v59 = vsel %vm86_vm1, %v7893_v46, 0.0 }
 0x3a7   :  { %11815 = vst [vmem:[#allocation4_spill] sm:$0xff] %v9009_v34  ;;  %v3515_v34 = vsel %vm263_vm0, %v3375_v12, 0.0  ;;  %v3524_v12 = vsel %vm263_vm0, %v3378_v25, 0.0  ;;  %v3382_v25 = vsel %vm86_vm1, %v7954_v22, 0.0 }
 0x3a8   :  { %3510 = vadd.xlane.f32.xlu0 %v3509_v30  ;;  %3513 = vadd.xlane.f32.xlu1 %v3512_v38  ;;  %v3377_v30 = vsel %vm86_vm1, %v7900_v61, 0.0 }
 0x3a9   :  { %v9019_v63 = vpop.xlane.xlu0 %3172  ;;  %v3521_v24 = vsel %vm263_vm0, %v3377_v30, 0.0 }
 0x3aa   :  { %v9021_v60 = vpop.xlane.xlu1 %3175 }
 0x3ac   :  { %3516 = vadd.xlane.f32.xlu0 %v3515_v34  ;;  %3519 = vadd.xlane.f32.xlu1 %v3518_v7  ;;  %v11819_v34 = vld [vmem:[#allocation80_spill] sm:$0xff] }
 0x3ad   :  { %v9031_v38 = vpop.xlane.xlu0 %3178  ;;  %v3380_v7 = vsel %vm86_vm1, %v11819_v34, 0.0 }
 0x3ae   :  { %v9033_v28 = vpop.xlane.xlu1 %3181  ;;  %v3530_v30 = vsel %vm263_vm0, %v3380_v7, 0.0  ;;  %v3384_v7 = vsel %vm86_vm1, %v7946_v41, 0.0 }
 0x3af   :  { %11818 = vst [vmem:[#allocation23_spill] sm:$0xff] %v9033_v28  ;;  %v3527_v28 = vsel %vm263_vm0, %v3379_v59, 0.0  ;;  %v3536_v59 = vsel %vm263_vm0, %v3382_v25, 0.0  ;;  %v3386_v25 = vsel %vm86_vm1, %v7994_v16, 0.0 }
 0x3b0   :  { %3522 = vadd.xlane.f32.xlu0 %v3521_v24  ;;  %3525 = vadd.xlane.f32.xlu1 %v3524_v12  ;;  %v3381_v24 = vsel %vm86_vm1, %v7942_v6, 0.0 }
 0x3b1   :  { %v9043_v61 = vpop.xlane.xlu0 %3184  ;;  %v3533_v46 = vsel %vm263_vm0, %v3381_v24, 0.0  ;;  %v3542_v24 = vsel %vm263_vm0, %v3384_v7, 0.0  ;;  %v3388_v7 = vsel %vm86_vm1, %v11774_v27, 0.0 }
 0x3b2   :  { %v9045_v57 = vpop.xlane.xlu1 %3187 }
 0x3b4   :  { %3528 = vadd.xlane.f32.xlu0 %v3527_v28  ;;  %3531 = vadd.xlane.f32.xlu1 %v3530_v30  ;;  %v3383_v28 = vsel %vm86_vm1, %v7935_v43, 0.0 }
 0x3b5   :  { %v9055_v12 = vpop.xlane.xlu0 %3190  ;;  %v3539_v6 = vsel %vm263_vm0, %v3383_v28, 0.0  ;;  %v3548_v28 = vsel %vm263_vm0, %v3386_v25, 0.0  ;;  %v3390_v25 = vsel %vm86_vm1, %v8042_v23, 0.0 }
 0x3b6   :  { %v9057_v34 = vpop.xlane.xlu1 %3193 }
 0x3b8   :  { %3534 = vadd.xlane.f32.xlu0 %v3533_v46  ;;  %3537 = vadd.xlane.f32.xlu1 %v3536_v59  ;;  %v3385_v46 = vsel %vm86_vm1, %v7985_v37, 0.0 }
 0x3b9   :  { %v9067_v30 = vpop.xlane.xlu0 %3196  ;;  %v3545_v43 = vsel %vm263_vm0, %v3385_v46, 0.0  ;;  %v3554_v46 = vsel %vm263_vm0, %v3388_v7, 0.0 }
 0x3ba   :  { %v9069_v22 = vpop.xlane.xlu1 %3199 }
 0x3bc   :  { %3540 = vadd.xlane.f32.xlu0 %v3539_v6  ;;  %3543 = vadd.xlane.f32.xlu1 %v3542_v24  ;;  %v3387_v6 = vsel %vm86_vm1, %v11773_v49, 0.0 }
 0x3bd   :  { %v9079_v59 = vpop.xlane.xlu0 %3202  ;;  %v3551_v37 = vsel %vm263_vm0, %v3387_v6, 0.0  ;;  %v3560_v6 = vsel %vm263_vm0, %v3390_v25, 0.0  ;;  %v3394_v25 = vsel %vm86_vm1, %v8087_v29, 0.0 }
 0x3be   :  { %v9081_v41 = vpop.xlane.xlu1 %3205 }
 0x3c0   :  { %3546 = vadd.xlane.f32.xlu0 %v3545_v43  ;;  %3549 = vadd.xlane.f32.xlu1 %v3548_v28  ;;  %v3389_v43 = vsel %vm86_vm1, %v8027_v54, 0.0 }
 0x3c1   :  { %v9091_v24 = vpop.xlane.xlu0 %3208  ;;  %v3557_v49 = vsel %vm263_vm0, %v3389_v43, 0.0 }
 0x3c2   :  { %v9093_v16 = vpop.xlane.xlu1 %3211 }
 0x3c3   :  { %11820 = vst [vmem:[#allocation5_spill] sm:$0xff] %v9093_v16 }
 0x3c4   :  { %3552 = vadd.xlane.f32.xlu0 %v3551_v37  ;;  %3555 = vadd.xlane.f32.xlu1 %v3554_v46  ;;  %v11822_v37 = vld [vmem:[#allocation89_spill] sm:$0xff]  ;;  %v11823_v46 = vld [vmem:[#allocation91_spill] sm:$0xff] }
 0x3c5   :  { %v9103_v28 = vpop.xlane.xlu0 %3214  ;;  %v3391_v7 = vsel %vm86_vm1, %v11822_v37, 0.0  ;;  %v3392_v54 = vsel %vm86_vm1, %v11823_v46, 0.0 }
 0x3c6   :  { %v9105_v27 = vpop.xlane.xlu1 %3217  ;;  %v3566_v43 = vsel %vm263_vm0, %v3392_v54, 0.0  ;;  %v3395_v54 = vsel %vm86_vm1, %v8069_v42, 0.0 }
 0x3c7   :  { %11821 = vst [vmem:[#allocation7_spill] sm:$0xff] %v9105_v27  ;;  %v3563_v27 = vsel %vm263_vm0, %v3391_v7, 0.0  ;;  %v3572_v7 = vsel %vm263_vm0, %v3394_v25, 0.0  ;;  %v3397_v25 = vsel %vm86_vm1, %v8114_v45, 0.0 }
 0x3c8   :  { %3558 = vadd.xlane.f32.xlu0 %v3557_v49  ;;  %3561 = vadd.xlane.f32.xlu1 %v3560_v6  ;;  %v3393_v49 = vsel %vm86_vm1, %v8075_v52, 0.0  ;;  %v3575_v52 = vsel %vm263_vm0, %v3395_v54, 0.0  ;;  %v3581_v42 = vsel %vm263_vm0, %v3397_v25, 0.0 }
 0x3c9   :  { %v9115_v16 = vpop.xlane.xlu0 %3220  ;;  %v3569_v37 = vsel %vm263_vm0, %v3393_v49, 0.0 }
 0x3ca   :  { %v9117_v23 = vpop.xlane.xlu1 %3223 }
 0x3cc   :  { %3564 = vadd.xlane.f32.xlu0 %v3563_v27  ;;  %3567 = vadd.xlane.f32.xlu1 %v3566_v43  ;;  %v3396_v27 = vsel %vm86_vm1, %v8080_v14, 0.0 }
 0x3cd   :  { %v9127_v6 = vpop.xlane.xlu0 %3226  ;;  %v3578_v49 = vsel %vm263_vm0, %v3396_v27, 0.0  ;;  %v11826_v27 = vld [vmem:[#allocation97_spill] sm:$0xff] }
 0x3ce   :  { %v9129_v46 = vpop.xlane.xlu1 %3229 }
 0x3d0   :  { %3570 = vadd.xlane.f32.xlu0 %v3569_v37  ;;  %3573 = vadd.xlane.f32.xlu1 %v3572_v7  ;;  %v3398_v37 = vsel %vm86_vm1, %v8123_v48, 0.0  ;;  %v3399_v48 = vsel %vm86_vm1, %v11826_v27, 0.0 }
 0x3d1   :  { %v9139_v43 = vpop.xlane.xlu0 %3232  ;;  %v3584_v54 = vsel %vm263_vm0, %v3398_v37, 0.0 }
 0x3d2   :  { %v9141_v29 = vpop.xlane.xlu1 %3235 }
 0x3d4   :  { %3576 = vadd.xlane.f32.xlu0 %v3575_v52  ;;  %3579 = vadd.xlane.f32.xlu1 %v3578_v49  ;;  %v3400_v52 = vsel %vm86_vm1, %v8119_v2, 0.0 }
 0x3d5   :  { %v9151_v7 = vpop.xlane.xlu0 %3238  ;;  %v3590_v25 = vsel %vm263_vm0, %v3400_v52, 0.0 }
 0x3d6   :  { %11824 = vst [vmem:[#allocation6_spill] sm:$0xff] %v9151_v7  ;;  %v9153_v14 = vpop.xlane.xlu1 %3241 }
 0x3d7   :  { %11825 = vst [vmem:[#allocation8_spill] sm:$0xff] %v9153_v14  ;;  %v3587_v14 = vsel %vm263_vm0, %v3399_v48, 0.0 }
 0x3d8   :  { %3582 = vadd.xlane.f32.xlu0 %v3581_v42  ;;  %3585 = vadd.xlane.f32.xlu1 %v3584_v54 }
 0x3d9   :  { %v9163_v49 = vpop.xlane.xlu0 %3244 }
 0x3da   :  { %11827 = vst [vmem:[#allocation9_spill] sm:$0xff] %v9163_v49  ;;  %v9165_v45 = vpop.xlane.xlu1 %3247 }
 0x3db   :  { %11828 = vst [vmem:[#allocation11_spill] sm:$0xff] %v9165_v45 }
 0x3dc   :  { %3588 = vadd.xlane.f32.xlu0 %v3587_v14  ;;  %3591 = vadd.xlane.f32.xlu1 %v3590_v25  ;;  %v3273_v14 = vmul.f32 0.0625, %v8789_v8  ;;  %v3274_v25 = vmul.f32 0.0625, %v8791_v3  ;;  %v3275_v8 = vmul.f32 0.0625, %v8808_v20  ;;  %v3276_v3 = vmul.f32 0.0625, %v8810_v33 }
 0x3dd   :  { %v9169_v42 = vpop.xlane.xlu0 %3250 }
 0x3de   :  { %11829 = vst [vmem:[#allocation10_spill] sm:$0xff] %v9169_v42  ;;  %v9171_v37 = vpop.xlane.xlu1 %3253 }
 0x3df   :  { %11830 = vst [vmem:[#allocation12_spill] sm:$0xff] %v9171_v37 }
 0x3e1   :  { %v9173_v54 = vpop.xlane.xlu0 %3256 }
 0x3e2   :  { %11831 = vst [vmem:[#allocation13_spill] sm:$0xff] %v9173_v54  ;;  %v9175_v27 = vpop.xlane.xlu1 %3259 }
 0x3e3   :  { %11832 = vst [vmem:[#allocation15_spill] sm:$0xff] %v9175_v27 }
 0x3e5   :  { %v9177_v7 = vpop.xlane.xlu0 %3262 }
 0x3e6   :  { %11833 = vst [vmem:[#allocation14_spill] sm:$0xff] %v9177_v7  ;;  %v9179_v2 = vpop.xlane.xlu1 %3265 }
 0x3e7   :  { %11834 = vst [vmem:[#allocation16_spill] sm:$0xff] %v9179_v2 }
 0x3e9   :  { %v9181_v49 = vpop.xlane.xlu0 %3268 }
 0x3ea   :  { %11835 = vst [vmem:[#allocation17_spill] sm:$0xff] %v9181_v49  ;;  %v9183_v45 = vpop.xlane.xlu1 %3271 }
 0x3eb   :  { %11836 = vst [vmem:[#allocation19_spill] sm:$0xff] %v9183_v45 }
 0x3ed   :  { %v3403_v48 = vpop.xlane.xlu0 %3402 }
 0x3ee   :  { %v3406_v52 = vpop.xlane.xlu1 %3405  ;;  %v3593_v42 = vmul.f32 0.0625, %v3403_v48 }
 0x3ef   :  { %v3594_v37 = vmul.f32 0.0625, %v3406_v52 }
 0x3f0   :  { %v3657_v54 = vsel %vm86_vm1, %v3593_v42, %v3273_v14 }
 0x3f1   :  { %v3658_v7 = vsel %vm86_vm1, %v3594_v37, %v3274_v25  ;;  %v3409_v27 = vpop.xlane.xlu0 %3408  ;;  %v9192_v49 = vsub.f32 %v7516_v26, %v3657_v54  ;;  %v3277_v26 = vmul.f32 0.0625, %v8824_v47  ;;  %v3278_v54 = vmul.f32 0.0625, %v8826_v31  ;;  %v11840_v31 = vld [vmem:[#allocation52_spill] sm:$0xff] }
 0x3f2   :  { %v3412_v2 = vpop.xlane.xlu1 %3411  ;;  %v9195_v45 = vsub.f32 %v7534_v17, %v3658_v7  ;;  %v3595_v48 = vmul.f32 0.0625, %v3409_v27 }
 0x3f3   :  { %11837 = vst [vmem:[#allocation18_spill] sm:$0xff] %v9192_v49  ;;  %v3596_v52 = vmul.f32 0.0625, %v3412_v2  ;;  %v9201_v42 = vmul.f32 %v9192_v49, %v9192_v49 }
 0x3f4   :  { %11838 = vst [vmem:[#allocation20_spill] sm:$0xff] %v9195_v45  ;;  %v9205_v37 = vmul.f32 %v9195_v45, %v9195_v45  ;;  %v3659_v17 = vsel %vm86_vm1, %v3595_v48, %v3275_v8 }
 0x3f5   :  { %v3660_v20 = vsel %vm86_vm1, %v3596_v52, %v3276_v3  ;;  %v3415_v33 = vpop.xlane.xlu0 %3414  ;;  %v3849_v7 = vsel %vm86_vm1, 0.0, %v9201_v42  ;;  %v9220_v47 = vsub.f32 %v7512_v39, %v3659_v17  ;;  %v3279_v39 = vmul.f32 0.0625, %v8849_v53 }
 0x3f6   :  { %v3418_v2 = vpop.xlane.xlu1 %3417  ;;  %v3850_v27 = vsel %vm86_vm1, 0.0, %v9205_v37  ;;  %v9223_v14 = vsub.f32 %v11840_v31, %v3660_v20  ;;  %v3597_v25 = vmul.f32 0.0625, %v3415_v33  ;;  %v3913_v3 = vsel %vm263_vm0, %v3849_v7, 0.0 }
 0x3f7   :  { %11839 = vst [vmem:[#allocation21_spill] sm:$0xff] %v9220_v47  ;;  %v3598_v8 = vmul.f32 0.0625, %v3418_v2  ;;  %v3916_v48 = vsel %vm263_vm0, %v3850_v27, 0.0  ;;  %3914 = vadd.xlane.f32.xlu0 %v3913_v3  ;;  %v9229_v52 = vmul.f32 %v9220_v47, %v9220_v47  ;;  %v3280_v17 = vmul.f32 0.0625, %v8851_v62  ;;  %v11842_v3 = vld [vmem:[#allocation55_spill] sm:$0xff]  ;;  %v11844_v62 = vld [vmem:[#allocation57_spill] sm:$0xff] }
 0x3f8   :  { %11841 = vst [vmem:[#allocation22_spill] sm:$0xff] %v9223_v14  ;;  %3917 = vadd.xlane.f32.xlu1 %v3916_v48  ;;  %v9233_v45 = vmul.f32 %v9223_v14, %v9223_v14  ;;  %v3661_v20 = vsel %vm86_vm1, %v3597_v25, %v3277_v26 }
 0x3f9   :  { %v3662_v33 = vsel %vm86_vm1, %v3598_v8, %v3278_v54  ;;  %v3421_v2 = vpop.xlane.xlu0 %3420  ;;  %v3851_v27 = vsel %vm86_vm1, 0.0, %v9229_v52  ;;  %v9248_v53 = vsub.f32 %v11842_v3, %v3661_v20  ;;  %v3281_v20 = vmul.f32 0.0625, %v8877_v21 }
 0x3fa   :  { %v3424_v7 = vpop.xlane.xlu1 %3423  ;;  %v3852_v31 = vsel %vm86_vm1, 0.0, %v9233_v45  ;;  %v9251_v48 = vsub.f32 %v11844_v62, %v3662_v33  ;;  %v3599_v26 = vmul.f32 0.0625, %v3421_v2  ;;  %v3919_v54 = vsel %vm263_vm0, %v3851_v27, 0.0 }
 0x3fb   :  { %11843 = vst [vmem:[#allocation42_spill] sm:$0xff] %v9248_v53  ;;  %v3600_v25 = vmul.f32 0.0625, %v3424_v7  ;;  %v3922_v8 = vsel %vm263_vm0, %v3852_v31, 0.0  ;;  %3920 = vadd.xlane.f32.xlu0 %v3919_v54  ;;  %v9257_v14 = vmul.f32 %v9248_v53, %v9248_v53  ;;  %v3282_v33 = vmul.f32 0.0625, %v8879_v11  ;;  %v11846_v54 = vld [vmem:[#allocation54_spill] sm:$0xff]  ;;  %v11848_v11 = vld [vmem:[#allocation56_spill] sm:$0xff] }
 0x3fc   :  { %11845 = vst [vmem:[#allocation43_spill] sm:$0xff] %v9251_v48  ;;  %3923 = vadd.xlane.f32.xlu1 %v3922_v8  ;;  %v9261_v47 = vmul.f32 %v9251_v48, %v9251_v48  ;;  %v3663_v2 = vsel %vm86_vm1, %v3599_v26, %v3279_v39 }
 0x3fd   :  { %v3664_v7 = vsel %vm86_vm1, %v3600_v25, %v3280_v17  ;;  %v3427_v27 = vpop.xlane.xlu0 %3426  ;;  %v3853_v3 = vsel %vm86_vm1, 0.0, %v9257_v14  ;;  %v9276_v21 = vsub.f32 %v11846_v54, %v3663_v2  ;;  %v3283_v2 = vmul.f32 0.0625, %v8899_v51 }
 0x3fe   :  { %v3430_v31 = vpop.xlane.xlu1 %3429  ;;  %v3854_v62 = vsel %vm86_vm1, 0.0, %v9261_v47  ;;  %v9279_v8 = vsub.f32 %v11848_v11, %v3664_v7  ;;  %v3601_v39 = vmul.f32 0.0625, %v3427_v27  ;;  %v3925_v17 = vsel %vm263_vm0, %v3853_v3, 0.0 }
 0x3ff   :  { %11847 = vst [vmem:[#allocation44_spill] sm:$0xff] %v9276_v21  ;;  %v3602_v26 = vmul.f32 0.0625, %v3430_v31  ;;  %v3928_v25 = vsel %vm263_vm0, %v3854_v62, 0.0  ;;  %3926 = vadd.xlane.f32.xlu0 %v3925_v17  ;;  %v9285_v48 = vmul.f32 %v9276_v21, %v9276_v21  ;;  %v3284_v7 = vmul.f32 0.0625, %v8901_v32 }
 0x400   :  { %11849 = vst [vmem:[#allocation45_spill] sm:$0xff] %v9279_v8  ;;  %3929 = vadd.xlane.f32.xlu1 %v3928_v25  ;;  %v9289_v53 = vmul.f32 %v9279_v8, %v9279_v8  ;;  %v3665_v27 = vsel %vm86_vm1, %v3601_v39, %v3281_v20 }
 0x401   :  { %v3666_v31 = vsel %vm86_vm1, %v3602_v26, %v3282_v33  ;;  %v3433_v3 = vpop.xlane.xlu0 %3432  ;;  %v3855_v54 = vsel %vm86_vm1, 0.0, %v9285_v48  ;;  %v9304_v51 = vsub.f32 %v11728_v13, %v3665_v27  ;;  %v3285_v13 = vmul.f32 0.0625, %v8911_v50 }
 0x402   :  { %v3436_v62 = vpop.xlane.xlu1 %3435  ;;  %v3856_v11 = vsel %vm86_vm1, 0.0, %v9289_v53  ;;  %v9307_v32 = vsub.f32 %v11729_v18, %v3666_v31  ;;  %v3603_v20 = vmul.f32 0.0625, %v3433_v3  ;;  %v3931_v33 = vsel %vm263_vm0, %v3855_v54, 0.0 }
 0x403   :  { %11850 = vst [vmem:[#allocation46_spill] sm:$0xff] %v9304_v51  ;;  %v3604_v39 = vmul.f32 0.0625, %v3436_v62  ;;  %v3934_v26 = vsel %vm263_vm0, %v3856_v11, 0.0  ;;  %3932 = vadd.xlane.f32.xlu0 %v3931_v33  ;;  %v9313_v17 = vmul.f32 %v9304_v51, %v9304_v51  ;;  %v3286_v18 = vmul.f32 0.0625, %v8913_v40 }
 0x404   :  { %11851 = vst [vmem:[#allocation47_spill] sm:$0xff] %v9307_v32  ;;  %3935 = vadd.xlane.f32.xlu1 %v3934_v26  ;;  %v9317_v25 = vmul.f32 %v9307_v32, %v9307_v32  ;;  %v3667_v27 = vsel %vm86_vm1, %v3603_v20, %v3283_v2 }
 0x405   :  { %v3668_v31 = vsel %vm86_vm1, %v3604_v39, %v3284_v7  ;;  %v3439_v3 = vpop.xlane.xlu0 %3438  ;;  %v3857_v54 = vsel %vm86_vm1, 0.0, %v9313_v17  ;;  %v9332_v50 = vsub.f32 %v11786_v4, %v3667_v27  ;;  %v3287_v4 = vmul.f32 0.0625, %v8923_v19 }
 0x406   :  { %v3442_v62 = vpop.xlane.xlu1 %3441  ;;  %v3858_v11 = vsel %vm86_vm1, 0.0, %v9317_v25  ;;  %v9335_v40 = vsub.f32 %v11787_v36, %v3668_v31  ;;  %v3605_v2 = vmul.f32 0.0625, %v3439_v3  ;;  %v3937_v7 = vsel %vm263_vm0, %v3857_v54, 0.0 }
 0x407   :  { %11852 = vst [vmem:[#allocation48_spill] sm:$0xff] %v9332_v50  ;;  %v3606_v20 = vmul.f32 0.0625, %v3442_v62  ;;  %v3940_v39 = vsel %vm263_vm0, %v3858_v11, 0.0  ;;  %3938 = vadd.xlane.f32.xlu0 %v3937_v7  ;;  %v9341_v33 = vmul.f32 %v9332_v50, %v9332_v50  ;;  %v3288_v36 = vmul.f32 0.0625, %v8925_v0  ;;  %v11854_v7 = vld [vmem:[#allocation63_spill] sm:$0xff]  ;;  %v11856_v0 = vld [vmem:[#allocation65_spill] sm:$0xff] }
 0x408   :  { %11853 = vst [vmem:[#allocation49_spill] sm:$0xff] %v9335_v40  ;;  %3941 = vadd.xlane.f32.xlu1 %v3940_v39  ;;  %v9345_v26 = vmul.f32 %v9335_v40, %v9335_v40  ;;  %v3669_v27 = vsel %vm86_vm1, %v3605_v2, %v3285_v13 }
 0x409   :  { %v3670_v31 = vsel %vm86_vm1, %v3606_v20, %v3286_v18  ;;  %v3445_v3 = vpop.xlane.xlu0 %3444  ;;  %v3859_v54 = vsel %vm86_vm1, 0.0, %v9341_v33  ;;  %v9360_v19 = vsub.f32 %v11854_v7, %v3669_v27  ;;  %v3289_v27 = vmul.f32 0.0625, %v8935_v1 }
 0x40a   :  { %v3448_v62 = vpop.xlane.xlu1 %3447  ;;  %v3860_v11 = vsel %vm86_vm1, 0.0, %v9345_v26  ;;  %v9363_v39 = vsub.f32 %v11856_v0, %v3670_v31  ;;  %v3607_v13 = vmul.f32 0.0625, %v3445_v3  ;;  %v3943_v18 = vsel %vm263_vm0, %v3859_v54, 0.0 }
 0x40b   :  { %11855 = vst [vmem:[#allocation53_spill] sm:$0xff] %v9360_v19  ;;  %v3608_v2 = vmul.f32 0.0625, %v3448_v62  ;;  %v3946_v20 = vsel %vm263_vm0, %v3860_v11, 0.0  ;;  %3944 = vadd.xlane.f32.xlu0 %v3943_v18  ;;  %v9369_v40 = vmul.f32 %v9360_v19, %v9360_v19  ;;  %v3290_v31 = vmul.f32 0.0625, %v8937_v9  ;;  %v11858_v18 = vld [vmem:[#allocation62_spill] sm:$0xff]  ;;  %v11860_v9 = vld [vmem:[#allocation64_spill] sm:$0xff] }
 0x40c   :  { %11857 = vst [vmem:[#allocation24_spill] sm:$0xff] %v9363_v39  ;;  %3947 = vadd.xlane.f32.xlu1 %v3946_v20  ;;  %v9373_v50 = vmul.f32 %v9363_v39, %v9363_v39  ;;  %v3671_v3 = vsel %vm86_vm1, %v3607_v13, %v3287_v4 }
 0x40d   :  { %v3672_v62 = vsel %vm86_vm1, %v3608_v2, %v3288_v36  ;;  %v3451_v54 = vpop.xlane.xlu0 %3450  ;;  %v3861_v7 = vsel %vm86_vm1, 0.0, %v9369_v40  ;;  %v9388_v1 = vsub.f32 %v11858_v18, %v3671_v3  ;;  %v3291_v3 = vmul.f32 0.0625, %v8947_v55 }
 0x40e   :  { %v3454_v11 = vpop.xlane.xlu1 %3453  ;;  %v3862_v0 = vsel %vm86_vm1, 0.0, %v9373_v50  ;;  %v9391_v20 = vsub.f32 %v11860_v9, %v3672_v62  ;;  %v3609_v4 = vmul.f32 0.0625, %v3451_v54  ;;  %v3949_v36 = vsel %vm263_vm0, %v3861_v7, 0.0 }
 0x40f   :  { %11859 = vst [vmem:[#allocation51_spill] sm:$0xff] %v9388_v1  ;;  %v3610_v13 = vmul.f32 0.0625, %v3454_v11  ;;  %v3952_v2 = vsel %vm263_vm0, %v3862_v0, 0.0  ;;  %3950 = vadd.xlane.f32.xlu0 %v3949_v36  ;;  %v9397_v39 = vmul.f32 %v9388_v1, %v9388_v1  ;;  %v3292_v62 = vmul.f32 0.0625, %v8949_v56  ;;  %v11862_v36 = vld [vmem:[#allocation67_spill] sm:$0xff]  ;;  %v11864_v56 = vld [vmem:[#allocation69_spill] sm:$0xff] }
 0x410   :  { %11861 = vst [vmem:[#allocation58_spill] sm:$0xff] %v9391_v20  ;;  %3953 = vadd.xlane.f32.xlu1 %v3952_v2  ;;  %v9401_v19 = vmul.f32 %v9391_v20, %v9391_v20  ;;  %v3673_v54 = vsel %vm86_vm1, %v3609_v4, %v3289_v27 }
 0x411   :  { %v3674_v11 = vsel %vm86_vm1, %v3610_v13, %v3290_v31  ;;  %v3457_v7 = vpop.xlane.xlu0 %3456  ;;  %v3863_v18 = vsel %vm86_vm1, 0.0, %v9397_v39  ;;  %v9416_v55 = vsub.f32 %v11862_v36, %v3673_v54  ;;  %v3293_v54 = vmul.f32 0.0625, %v8959_v15 }
 0x412   :  { %v3460_v0 = vpop.xlane.xlu1 %3459  ;;  %v3864_v9 = vsel %vm86_vm1, 0.0, %v9401_v19  ;;  %v9419_v2 = vsub.f32 %v11864_v56, %v3674_v11  ;;  %v3611_v27 = vmul.f32 0.0625, %v3457_v7  ;;  %v3955_v31 = vsel %vm263_vm0, %v3863_v18, 0.0  ;;  %v11866_v11 = vld [vmem:[#allocation3_spill] sm:$0xff] }
 0x413   :  { %11863 = vst [vmem:[#allocation60_spill] sm:$0xff] %v9416_v55  ;;  %v3612_v4 = vmul.f32 0.0625, %v3460_v0  ;;  %v3958_v13 = vsel %vm263_vm0, %v3864_v9, 0.0  ;;  %3956 = vadd.xlane.f32.xlu0 %v3955_v31  ;;  %v9425_v20 = vmul.f32 %v9416_v55, %v9416_v55  ;;  %v3294_v36 = vmul.f32 0.0625, %v11866_v11  ;;  %v11869_v11 = vld [vmem:[#allocation68_spill] sm:$0xff] }
 0x414   :  { %11865 = vst [vmem:[#allocation50_spill] sm:$0xff] %v9419_v2  ;;  %3959 = vadd.xlane.f32.xlu1 %v3958_v13  ;;  %v9429_v1 = vmul.f32 %v9419_v2, %v9419_v2  ;;  %v3675_v7 = vsel %vm86_vm1, %v3611_v27, %v3291_v3  ;;  %v11867_v13 = vld [vmem:[#allocation66_spill] sm:$0xff] }
 0x415   :  { %v3676_v0 = vsel %vm86_vm1, %v3612_v4, %v3292_v62  ;;  %v3463_v18 = vpop.xlane.xlu0 %3462  ;;  %v3865_v56 = vsel %vm86_vm1, 0.0, %v9425_v20  ;;  %v9444_v15 = vsub.f32 %v11867_v13, %v3675_v7  ;;  %v3295_v7 = vmul.f32 0.0625, %v8971_v58 }
 0x416   :  { %v3466_v9 = vpop.xlane.xlu1 %3465  ;;  %v3866_v31 = vsel %vm86_vm1, 0.0, %v9429_v1  ;;  %v9447_v2 = vsub.f32 %v11869_v11, %v3676_v0  ;;  %v3613_v3 = vmul.f32 0.0625, %v3463_v18  ;;  %v3961_v62 = vsel %vm263_vm0, %v3865_v56, 0.0  ;;  %v11871_v0 = vld [vmem:[#allocation2_spill] sm:$0xff] }
 0x417   :  { %11868 = vst [vmem:[#allocation26_spill] sm:$0xff] %v9444_v15  ;;  %v3614_v27 = vmul.f32 0.0625, %v3466_v9  ;;  %v3964_v4 = vsel %vm263_vm0, %v3866_v31, 0.0  ;;  %3962 = vadd.xlane.f32.xlu0 %v3961_v62  ;;  %v9453_v55 = vmul.f32 %v9444_v15, %v9444_v15  ;;  %v3296_v13 = vmul.f32 0.0625, %v11871_v0  ;;  %v11874_v0 = vld [vmem:[#allocation71_spill] sm:$0xff] }
 0x418   :  { %11870 = vst [vmem:[#allocation28_spill] sm:$0xff] %v9447_v2  ;;  %3965 = vadd.xlane.f32.xlu1 %v3964_v4  ;;  %v9457_v32 = vmul.f32 %v9447_v2, %v9447_v2  ;;  %v3677_v18 = vsel %vm86_vm1, %v3613_v3, %v3293_v54  ;;  %v11872_v4 = vld [vmem:[#allocation30_spill] sm:$0xff] }
 0x419   :  { %v3678_v9 = vsel %vm86_vm1, %v3614_v27, %v3294_v36  ;;  %v3469_v56 = vpop.xlane.xlu0 %3468  ;;  %v3867_v11 = vsel %vm86_vm1, 0.0, %v9453_v55  ;;  %v9472_v58 = vsub.f32 %v11872_v4, %v3677_v18  ;;  %v3297_v18 = vmul.f32 0.0625, %v8983_v10 }
 0x41a   :  { %v3472_v31 = vpop.xlane.xlu1 %3471  ;;  %v3868_v62 = vsel %vm86_vm1, 0.0, %v9457_v32  ;;  %v9475_v2 = vsub.f32 %v11874_v0, %v3678_v9  ;;  %v3615_v54 = vmul.f32 0.0625, %v3469_v56  ;;  %v3967_v36 = vsel %vm263_vm0, %v3867_v11, 0.0  ;;  %v11876_v9 = vld [vmem:[#allocation59_spill] sm:$0xff] }
 0x41b   :  { %11873 = vst [vmem:[#allocation25_spill] sm:$0xff] %v9472_v58  ;;  %v3616_v3 = vmul.f32 0.0625, %v3472_v31  ;;  %v3970_v27 = vsel %vm263_vm0, %v3868_v62, 0.0  ;;  %3968 = vadd.xlane.f32.xlu0 %v3967_v36  ;;  %v9481_v15 = vmul.f32 %v9472_v58, %v9472_v58  ;;  %v3298_v4 = vmul.f32 0.0625, %v11876_v9  ;;  %v11879_v9 = vld [vmem:[#allocation70_spill] sm:$0xff] }
 0x41c   :  { %11875 = vst [vmem:[#allocation27_spill] sm:$0xff] %v9475_v2  ;;  %3971 = vadd.xlane.f32.xlu1 %v3970_v27  ;;  %v9485_v51 = vmul.f32 %v9475_v2, %v9475_v2  ;;  %v3679_v56 = vsel %vm86_vm1, %v3615_v54, %v3295_v7  ;;  %v11877_v27 = vld [vmem:[#allocation29_spill] sm:$0xff] }
 0x41d   :  { %v3680_v31 = vsel %vm86_vm1, %v3616_v3, %v3296_v13  ;;  %v3475_v11 = vpop.xlane.xlu0 %3474  ;;  %v3869_v0 = vsel %vm86_vm1, 0.0, %v9481_v15  ;;  %v9500_v10 = vsub.f32 %v11877_v27, %v3679_v56  ;;  %v3299_v56 = vmul.f32 0.0625, %v8995_v44 }
 0x41e   :  { %v3478_v62 = vpop.xlane.xlu1 %3477  ;;  %v3870_v36 = vsel %vm86_vm1, 0.0, %v9485_v51  ;;  %v9503_v2 = vsub.f32 %v11879_v9, %v3680_v31  ;;  %v3617_v7 = vmul.f32 0.0625, %v3475_v11  ;;  %v3973_v13 = vsel %vm263_vm0, %v3869_v0, 0.0  ;;  %v11881_v31 = vld [vmem:[#allocation61_spill] sm:$0xff] }
 0x41f   :  { %11878 = vst [vmem:[#allocation52_spill] sm:$0xff] %v9500_v10  ;;  %v3618_v54 = vmul.f32 0.0625, %v3478_v62  ;;  %v3976_v3 = vsel %vm263_vm0, %v3870_v36, 0.0  ;;  %3974 = vadd.xlane.f32.xlu0 %v3973_v13  ;;  %v9509_v58 = vmul.f32 %v9500_v10, %v9500_v10  ;;  %v3300_v27 = vmul.f32 0.0625, %v11881_v31  ;;  %v11884_v31 = vld [vmem:[#allocation73_spill] sm:$0xff] }
 0x420   :  { %11880 = vst [vmem:[#allocation55_spill] sm:$0xff] %v9503_v2  ;;  %3977 = vadd.xlane.f32.xlu1 %v3976_v3  ;;  %v9513_v8 = vmul.f32 %v9503_v2, %v9503_v2  ;;  %v3681_v11 = vsel %vm86_vm1, %v3617_v7, %v3297_v18  ;;  %v11882_v3 = vld [vmem:[#allocation32_spill] sm:$0xff] }
 0x421   :  { %v3682_v62 = vsel %vm86_vm1, %v3618_v54, %v3298_v4  ;;  %v3481_v0 = vpop.xlane.xlu0 %3480  ;;  %v3871_v9 = vsel %vm86_vm1, 0.0, %v9509_v58  ;;  %v9528_v44 = vsub.f32 %v11882_v3, %v3681_v11  ;;  %v3301_v11 = vmul.f32 0.0625, %v9007_v5 }
 0x422   :  { %v3484_v36 = vpop.xlane.xlu1 %3483  ;;  %v3872_v13 = vsel %vm86_vm1, 0.0, %v9513_v8  ;;  %v9531_v2 = vsub.f32 %v11884_v31, %v3682_v62  ;;  %v3619_v18 = vmul.f32 0.0625, %v3481_v0  ;;  %v3979_v4 = vsel %vm263_vm0, %v3871_v9, 0.0  ;;  %v11886_v62 = vld [vmem:[#allocation4_spill] sm:$0xff] }
 0x423   :  { %11883 = vst [vmem:[#allocation57_spill] sm:$0xff] %v9528_v44  ;;  %v3620_v7 = vmul.f32 0.0625, %v3484_v36  ;;  %v3982_v54 = vsel %vm263_vm0, %v3872_v13, 0.0  ;;  %3980 = vadd.xlane.f32.xlu0 %v3979_v4  ;;  %v9537_v10 = vmul.f32 %v9528_v44, %v9528_v44  ;;  %v3302_v3 = vmul.f32 0.0625, %v11886_v62  ;;  %v11889_v62 = vld [vmem:[#allocation72_spill] sm:$0xff] }
 0x424   :  { %11885 = vst [vmem:[#allocation54_spill] sm:$0xff] %v9531_v2  ;;  %3983 = vadd.xlane.f32.xlu1 %v3982_v54  ;;  %v9541_v21 = vmul.f32 %v9531_v2, %v9531_v2  ;;  %v3683_v0 = vsel %vm86_vm1, %v3619_v18, %v3299_v56  ;;  %v11887_v54 = vld [vmem:[#allocation31_spill] sm:$0xff] }
 0x425   :  { %v3684_v36 = vsel %vm86_vm1, %v3620_v7, %v3300_v27  ;;  %v3487_v9 = vpop.xlane.xlu0 %3486  ;;  %v3873_v31 = vsel %vm86_vm1, 0.0, %v9537_v10  ;;  %v9556_v5 = vsub.f32 %v11887_v54, %v3683_v0  ;;  %v3303_v0 = vmul.f32 0.0625, %v9019_v63 }
 0x426   :  { %v3490_v13 = vpop.xlane.xlu1 %3489  ;;  %v3874_v4 = vsel %vm86_vm1, 0.0, %v9541_v21  ;;  %v9559_v2 = vsub.f32 %v11889_v62, %v3684_v36  ;;  %v3621_v56 = vmul.f32 0.0625, %v3487_v9  ;;  %v3985_v27 = vsel %vm263_vm0, %v3873_v31, 0.0 }
 0x427   :  { %11888 = vst [vmem:[#allocation56_spill] sm:$0xff] %v9556_v5  ;;  %v3622_v18 = vmul.f32 0.0625, %v3490_v13  ;;  %v3988_v7 = vsel %vm263_vm0, %v3874_v4, 0.0  ;;  %3986 = vadd.xlane.f32.xlu0 %v3985_v27  ;;  %v9565_v44 = vmul.f32 %v9556_v5, %v9556_v5  ;;  %v3304_v36 = vmul.f32 0.0625, %v9021_v60  ;;  %v11891_v27 = vld [vmem:[#allocation34_spill] sm:$0xff]  ;;  %v11893_v60 = vld [vmem:[#allocation75_spill] sm:$0xff] }
 0x428   :  { %11890 = vst [vmem:[#allocation63_spill] sm:$0xff] %v9559_v2  ;;  %3989 = vadd.xlane.f32.xlu1 %v3988_v7  ;;  %v9569_v49 = vmul.f32 %v9559_v2, %v9559_v2  ;;  %v3685_v9 = vsel %vm86_vm1, %v3621_v56, %v3301_v11 }
 0x429   :  { %v3686_v13 = vsel %vm86_vm1, %v3622_v18, %v3302_v3  ;;  %v3493_v31 = vpop.xlane.xlu0 %3492  ;;  %v3875_v54 = vsel %vm86_vm1, 0.0, %v9565_v44  ;;  %v9584_v63 = vsub.f32 %v11891_v27, %v3685_v9  ;;  %v3305_v9 = vmul.f32 0.0625, %v9031_v38 }
 0x42a   :  { %v3496_v4 = vpop.xlane.xlu1 %3495  ;;  %v3876_v62 = vsel %vm86_vm1, 0.0, %v9569_v49  ;;  %v9587_v7 = vsub.f32 %v11893_v60, %v3686_v13  ;;  %v3623_v11 = vmul.f32 0.0625, %v3493_v31  ;;  %v3991_v3 = vsel %vm263_vm0, %v3875_v54, 0.0  ;;  %v11896_v13 = vld [vmem:[#allocation23_spill] sm:$0xff] }
 0x42b   :  { %11892 = vst [vmem:[#allocation65_spill] sm:$0xff] %v9584_v63  ;;  %v3624_v56 = vmul.f32 0.0625, %v3496_v4  ;;  %v3994_v18 = vsel %vm263_vm0, %v3876_v62, 0.0  ;;  %3992 = vadd.xlane.f32.xlu0 %v3991_v3  ;;  %v9593_v2 = vmul.f32 %v9584_v63, %v9584_v63  ;;  %v3306_v27 = vmul.f32 0.0625, %v11896_v13  ;;  %v11899_v13 = vld [vmem:[#allocation74_spill] sm:$0xff] }
 0x42c   :  { %11894 = vst [vmem:[#allocation62_spill] sm:$0xff] %v9587_v7  ;;  %3995 = vadd.xlane.f32.xlu1 %v3994_v18  ;;  %v9597_v5 = vmul.f32 %v9587_v7, %v9587_v7  ;;  %v3687_v31 = vsel %vm86_vm1, %v3623_v11, %v3303_v0  ;;  %v11897_v18 = vld [vmem:[#allocation33_spill] sm:$0xff] }
 0x42d   :  { %v3688_v4 = vsel %vm86_vm1, %v3624_v56, %v3304_v36  ;;  %v3499_v54 = vpop.xlane.xlu0 %3498  ;;  %v3877_v60 = vsel %vm86_vm1, 0.0, %v9593_v2  ;;  %v9612_v38 = vsub.f32 %v11897_v18, %v3687_v31  ;;  %v3307_v31 = vmul.f32 0.0625, %v9043_v61 }
 0x42e   :  { %11895 = vst [vmem:[#allocation64_spill] sm:$0xff] %v9597_v5  ;;  %v3502_v62 = vpop.xlane.xlu1 %3501  ;;  %v3878_v3 = vsel %vm86_vm1, 0.0, %v9597_v5  ;;  %v9615_v7 = vsub.f32 %v11899_v13, %v3688_v4  ;;  %v3625_v0 = vmul.f32 0.0625, %v3499_v54  ;;  %v3997_v36 = vsel %vm263_vm0, %v3877_v60, 0.0 }
 0x42f   :  { %11898 = vst [vmem:[#allocation67_spill] sm:$0xff] %v9612_v38  ;;  %v3626_v11 = vmul.f32 0.0625, %v3502_v62  ;;  %v4000_v56 = vsel %vm263_vm0, %v3878_v3, 0.0  ;;  %3998 = vadd.xlane.f32.xlu0 %v3997_v36  ;;  %v9621_v63 = vmul.f32 %v9612_v38, %v9612_v38  ;;  %v3308_v4 = vmul.f32 0.0625, %v9045_v57  ;;  %v11901_v36 = vld [vmem:[#allocation36_spill] sm:$0xff]  ;;  %v11903_v57 = vld [vmem:[#allocation77_spill] sm:$0xff] }
 0x430   :  { %11900 = vst [vmem:[#allocation69_spill] sm:$0xff] %v9615_v7  ;;  %4001 = vadd.xlane.f32.xlu1 %v4000_v56  ;;  %v9625_v5 = vmul.f32 %v9615_v7, %v9615_v7  ;;  %v3689_v54 = vsel %vm86_vm1, %v3625_v0, %v3305_v9 }
 0x431   :  { %v3690_v62 = vsel %vm86_vm1, %v3626_v11, %v3306_v27  ;;  %v3505_v60 = vpop.xlane.xlu0 %3504  ;;  %v3879_v18 = vsel %vm86_vm1, 0.0, %v9621_v63  ;;  %v9640_v61 = vsub.f32 %v11901_v36, %v3689_v54  ;;  %v3309_v54 = vmul.f32 0.0625, %v9055_v12 }
 0x432   :  { %v3508_v3 = vpop.xlane.xlu1 %3507  ;;  %v3880_v13 = vsel %vm86_vm1, 0.0, %v9625_v5  ;;  %v9643_v56 = vsub.f32 %v11903_v57, %v3690_v62  ;;  %v3627_v9 = vmul.f32 0.0625, %v3505_v60  ;;  %v4003_v27 = vsel %vm263_vm0, %v3879_v18, 0.0 }
 0x433   :  { %11902 = vst [vmem:[#allocation3_spill] sm:$0xff] %v9640_v61  ;;  %v3628_v0 = vmul.f32 0.0625, %v3508_v3  ;;  %v4006_v11 = vsel %vm263_vm0, %v3880_v13, 0.0  ;;  %4004 = vadd.xlane.f32.xlu0 %v4003_v27  ;;  %v9649_v7 = vmul.f32 %v9640_v61, %v9640_v61  ;;  %v3310_v62 = vmul.f32 0.0625, %v9057_v34  ;;  %v11905_v27 = vld [vmem:[#allocation35_spill] sm:$0xff]  ;;  %v11907_v34 = vld [vmem:[#allocation76_spill] sm:$0xff] }
 0x434   :  { %11904 = vst [vmem:[#allocation66_spill] sm:$0xff] %v9643_v56  ;;  %4007 = vadd.xlane.f32.xlu1 %v4006_v11  ;;  %v9653_v38 = vmul.f32 %v9643_v56, %v9643_v56  ;;  %v3691_v60 = vsel %vm86_vm1, %v3627_v9, %v3307_v31 }
 0x435   :  { %v3692_v3 = vsel %vm86_vm1, %v3628_v0, %v3308_v4  ;;  %v3511_v18 = vpop.xlane.xlu0 %3510  ;;  %v3881_v36 = vsel %vm86_vm1, 0.0, %v9649_v7  ;;  %v9668_v12 = vsub.f32 %v11905_v27, %v3691_v60  ;;  %v3311_v60 = vmul.f32 0.0625, %v9067_v30 }
 0x436   :  { %v3514_v13 = vpop.xlane.xlu1 %3513  ;;  %v3882_v57 = vsel %vm86_vm1, 0.0, %v9653_v38  ;;  %v9671_v11 = vsub.f32 %v11907_v34, %v3692_v3  ;;  %v3629_v31 = vmul.f32 0.0625, %v3511_v18  ;;  %v4009_v4 = vsel %vm263_vm0, %v3881_v36, 0.0 }
 0x437   :  { %11906 = vst [vmem:[#allocation68_spill] sm:$0xff] %v9668_v12  ;;  %v3630_v9 = vmul.f32 0.0625, %v3514_v13  ;;  %v4012_v0 = vsel %vm263_vm0, %v3882_v57, 0.0  ;;  %4010 = vadd.xlane.f32.xlu0 %v4009_v4  ;;  %v9677_v56 = vmul.f32 %v9668_v12, %v9668_v12  ;;  %v3312_v3 = vmul.f32 0.0625, %v9069_v22  ;;  %v11909_v4 = vld [vmem:[#allocation38_spill] sm:$0xff]  ;;  %v11911_v22 = vld [vmem:[#allocation79_spill] sm:$0xff] }
 0x438   :  { %11908 = vst [vmem:[#allocation2_spill] sm:$0xff] %v9671_v11  ;;  %4013 = vadd.xlane.f32.xlu1 %v4012_v0  ;;  %v9681_v61 = vmul.f32 %v9671_v11, %v9671_v11  ;;  %v3693_v18 = vsel %vm86_vm1, %v3629_v31, %v3309_v54 }
 0x439   :  { %v3694_v13 = vsel %vm86_vm1, %v3630_v9, %v3310_v62  ;;  %v3517_v36 = vpop.xlane.xlu0 %3516  ;;  %v3883_v27 = vsel %vm86_vm1, 0.0, %v9677_v56  ;;  %v9696_v30 = vsub.f32 %v11909_v4, %v3693_v18  ;;  %v3313_v18 = vmul.f32 0.0625, %v9079_v59 }
 0x43a   :  { %v3520_v57 = vpop.xlane.xlu1 %3519  ;;  %v3884_v34 = vsel %vm86_vm1, 0.0, %v9681_v61  ;;  %v9699_v0 = vsub.f32 %v11911_v22, %v3694_v13  ;;  %v3631_v54 = vmul.f32 0.0625, %v3517_v36  ;;  %v4015_v62 = vsel %vm263_vm0, %v3883_v27, 0.0 }
 0x43b   :  { %11910 = vst [vmem:[#allocation30_spill] sm:$0xff] %v9696_v30  ;;  %v3632_v31 = vmul.f32 0.0625, %v3520_v57  ;;  %v4018_v9 = vsel %vm263_vm0, %v3884_v34, 0.0  ;;  %4016 = vadd.xlane.f32.xlu0 %v4015_v62  ;;  %v9705_v11 = vmul.f32 %v9696_v30, %v9696_v30  ;;  %v3314_v13 = vmul.f32 0.0625, %v9081_v41  ;;  %v11913_v62 = vld [vmem:[#allocation37_spill] sm:$0xff]  ;;  %v11915_v41 = vld [vmem:[#allocation78_spill] sm:$0xff] }
 0x43c   :  { %11912 = vst [vmem:[#allocation71_spill] sm:$0xff] %v9699_v0  ;;  %4019 = vadd.xlane.f32.xlu1 %v4018_v9  ;;  %v9709_v12 = vmul.f32 %v9699_v0, %v9699_v0  ;;  %v3695_v36 = vsel %vm86_vm1, %v3631_v54, %v3311_v60 }
 0x43d   :  { %v3696_v57 = vsel %vm86_vm1, %v3632_v31, %v3312_v3  ;;  %v3523_v27 = vpop.xlane.xlu0 %3522  ;;  %v3885_v4 = vsel %vm86_vm1, 0.0, %v9705_v11  ;;  %v9724_v59 = vsub.f32 %v11913_v62, %v3695_v36  ;;  %v3315_v36 = vmul.f32 0.0625, %v9091_v24 }
 0x43e   :  { %v3526_v34 = vpop.xlane.xlu1 %3525  ;;  %v3886_v22 = vsel %vm86_vm1, 0.0, %v9709_v12  ;;  %v9727_v9 = vsub.f32 %v11915_v41, %v3696_v57  ;;  %v3633_v60 = vmul.f32 0.0625, %v3523_v27  ;;  %v4021_v3 = vsel %vm263_vm0, %v3885_v4, 0.0  ;;  %v11918_v57 = vld [vmem:[#allocation5_spill] sm:$0xff] }
 0x43f   :  { %11914 = vst [vmem:[#allocation59_spill] sm:$0xff] %v9724_v59  ;;  %v3634_v54 = vmul.f32 0.0625, %v3526_v34  ;;  %v4024_v31 = vsel %vm263_vm0, %v3886_v22, 0.0  ;;  %4022 = vadd.xlane.f32.xlu0 %v4021_v3  ;;  %v9733_v0 = vmul.f32 %v9724_v59, %v9724_v59  ;;  %v3316_v62 = vmul.f32 0.0625, %v11918_v57  ;;  %v11921_v57 = vld [vmem:[#allocation81_spill] sm:$0xff] }
 0x440   :  { %11916 = vst [vmem:[#allocation29_spill] sm:$0xff] %v9727_v9  ;;  %4025 = vadd.xlane.f32.xlu1 %v4024_v31  ;;  %v9737_v30 = vmul.f32 %v9727_v9, %v9727_v9  ;;  %v3697_v27 = vsel %vm86_vm1, %v3633_v60, %v3313_v18  ;;  %v11919_v31 = vld [vmem:[#allocation40_spill] sm:$0xff] }
 0x441   :  { %v3698_v34 = vsel %vm86_vm1, %v3634_v54, %v3314_v13  ;;  %v3529_v4 = vpop.xlane.xlu0 %3528  ;;  %v3887_v41 = vsel %vm86_vm1, 0.0, %v9733_v0  ;;  %v9752_v24 = vsub.f32 %v11919_v31, %v3697_v27  ;;  %v3317_v27 = vmul.f32 0.0625, %v9103_v28 }
 0x442   :  { %11917 = vst [vmem:[#allocation70_spill] sm:$0xff] %v9737_v30  ;;  %v3532_v22 = vpop.xlane.xlu1 %3531  ;;  %v3888_v3 = vsel %vm86_vm1, 0.0, %v9737_v30  ;;  %v9755_v9 = vsub.f32 %v11921_v57, %v3698_v34  ;;  %v3635_v18 = vmul.f32 0.0625, %v3529_v4  ;;  %v4027_v13 = vsel %vm263_vm0, %v3887_v41, 0.0  ;;  %v11924_v34 = vld [vmem:[#allocation7_spill] sm:$0xff] }
 0x443   :  { %11920 = vst [vmem:[#allocation61_spill] sm:$0xff] %v9752_v24  ;;  %v3636_v60 = vmul.f32 0.0625, %v3532_v22  ;;  %v4030_v54 = vsel %vm263_vm0, %v3888_v3, 0.0  ;;  %4028 = vadd.xlane.f32.xlu0 %v4027_v13  ;;  %v9761_v59 = vmul.f32 %v9752_v24, %v9752_v24  ;;  %v3318_v31 = vmul.f32 0.0625, %v11924_v34  ;;  %v11927_v34 = vld [vmem:[#allocation80_spill] sm:$0xff] }
 0x444   :  { %11922 = vst [vmem:[#allocation32_spill] sm:$0xff] %v9755_v9  ;;  %4031 = vadd.xlane.f32.xlu1 %v4030_v54  ;;  %v9765_v30 = vmul.f32 %v9755_v9, %v9755_v9  ;;  %v3699_v4 = vsel %vm86_vm1, %v3635_v18, %v3315_v36  ;;  %v11925_v54 = vld [vmem:[#allocation39_spill] sm:$0xff] }
 0x445   :  { %v3700_v22 = vsel %vm86_vm1, %v3636_v60, %v3316_v62  ;;  %v3535_v41 = vpop.xlane.xlu0 %3534  ;;  %v3889_v57 = vsel %vm86_vm1, 0.0, %v9761_v59  ;;  %v9780_v28 = vsub.f32 %v11925_v54, %v3699_v4  ;;  %v3319_v4 = vmul.f32 0.0625, %v9115_v16 }
 0x446   :  { %11923 = vst [vmem:[#allocation73_spill] sm:$0xff] %v9765_v30  ;;  %v3538_v3 = vpop.xlane.xlu1 %3537  ;;  %v3890_v13 = vsel %vm86_vm1, 0.0, %v9765_v30  ;;  %v9783_v9 = vsub.f32 %v11927_v34, %v3700_v22  ;;  %v3637_v36 = vmul.f32 0.0625, %v3535_v41  ;;  %v4033_v62 = vsel %vm263_vm0, %v3889_v57, 0.0 }
 0x447   :  { %11926 = vst [vmem:[#allocation4_spill] sm:$0xff] %v9780_v28  ;;  %v3638_v18 = vmul.f32 0.0625, %v3538_v3  ;;  %v4036_v60 = vsel %vm263_vm0, %v3890_v13, 0.0  ;;  %4034 = vadd.xlane.f32.xlu0 %v4033_v62  ;;  %v9789_v24 = vmul.f32 %v9780_v28, %v9780_v28  ;;  %v3320_v22 = vmul.f32 0.0625, %v9117_v23  ;;  %v11929_v62 = vld [vmem:[#allocation41_spill] sm:$0xff]  ;;  %v11931_v23 = vld [vmem:[#allocation84_spill] sm:$0xff] }
 0x448   :  { %11928 = vst [vmem:[#allocation31_spill] sm:$0xff] %v9783_v9  ;;  %4037 = vadd.xlane.f32.xlu1 %v4036_v60  ;;  %v9793_v30 = vmul.f32 %v9783_v9, %v9783_v9  ;;  %v3701_v41 = vsel %vm86_vm1, %v3637_v36, %v3317_v27 }
 0x449   :  { %v3702_v3 = vsel %vm86_vm1, %v3638_v18, %v3318_v31  ;;  %v3541_v57 = vpop.xlane.xlu0 %3540  ;;  %v3891_v54 = vsel %vm86_vm1, 0.0, %v9789_v24  ;;  %v9808_v16 = vsub.f32 %v11929_v62, %v3701_v41  ;;  %v3321_v41 = vmul.f32 0.0625, %v9127_v6 }
 0x44a   :  { %v3544_v13 = vpop.xlane.xlu1 %3543  ;;  %v3892_v34 = vsel %vm86_vm1, 0.0, %v9793_v30  ;;  %v9811_v60 = vsub.f32 %v11931_v23, %v3702_v3  ;;  %v3639_v27 = vmul.f32 0.0625, %v3541_v57  ;;  %v4039_v31 = vsel %vm263_vm0, %v3891_v54, 0.0 }
 0x44b   :  { %11930 = vst [vmem:[#allocation72_spill] sm:$0xff] %v9808_v16  ;;  %v3640_v36 = vmul.f32 0.0625, %v3544_v13  ;;  %v4042_v18 = vsel %vm263_vm0, %v3892_v34, 0.0  ;;  %4040 = vadd.xlane.f32.xlu0 %v4039_v31  ;;  %v9817_v9 = vmul.f32 %v9808_v16, %v9808_v16  ;;  %v3322_v3 = vmul.f32 0.0625, %v9129_v46  ;;  %v11933_v31 = vld [vmem:[#allocation82_spill] sm:$0xff]  ;;  %v11935_v46 = vld [vmem:[#allocation83_spill] sm:$0xff] }
 0x44c   :  { %11932 = vst [vmem:[#allocation34_spill] sm:$0xff] %v9811_v60  ;;  %4043 = vadd.xlane.f32.xlu1 %v4042_v18  ;;  %v9821_v28 = vmul.f32 %v9811_v60, %v9811_v60  ;;  %v3703_v57 = vsel %vm86_vm1, %v3639_v27, %v3319_v4 }
 0x44d   :  { %v3704_v13 = vsel %vm86_vm1, %v3640_v36, %v3320_v22  ;;  %v3547_v54 = vpop.xlane.xlu0 %3546  ;;  %v3893_v62 = vsel %vm86_vm1, 0.0, %v9817_v9  ;;  %v9836_v6 = vsub.f32 %v11933_v31, %v3703_v57  ;;  %v3323_v57 = vmul.f32 0.0625, %v9139_v43 }
 0x44e   :  { %v3550_v34 = vpop.xlane.xlu1 %3549  ;;  %v3894_v23 = vsel %vm86_vm1, 0.0, %v9821_v28  ;;  %v9839_v18 = vsub.f32 %v11935_v46, %v3704_v13  ;;  %v3641_v4 = vmul.f32 0.0625, %v3547_v54  ;;  %v4045_v22 = vsel %vm263_vm0, %v3893_v62, 0.0 }
 0x44f   :  { %11934 = vst [vmem:[#allocation75_spill] sm:$0xff] %v9836_v6  ;;  %v3642_v27 = vmul.f32 0.0625, %v3550_v34  ;;  %v4048_v36 = vsel %vm263_vm0, %v3894_v23, 0.0  ;;  %4046 = vadd.xlane.f32.xlu0 %v4045_v22  ;;  %v9845_v60 = vmul.f32 %v9836_v6, %v9836_v6  ;;  %v3324_v13 = vmul.f32 0.0625, %v9141_v29  ;;  %v11937_v22 = vld [vmem:[#allocation86_spill] sm:$0xff]  ;;  %v11939_v29 = vld [vmem:[#allocation88_spill] sm:$0xff] }
 0x450   :  { %11936 = vst [vmem:[#allocation23_spill] sm:$0xff] %v9839_v18  ;;  %4049 = vadd.xlane.f32.xlu1 %v4048_v36  ;;  %v9849_v16 = vmul.f32 %v9839_v18, %v9839_v18  ;;  %v3705_v54 = vsel %vm86_vm1, %v3641_v4, %v3321_v41 }
 0x451   :  { %v3706_v34 = vsel %vm86_vm1, %v3642_v27, %v3322_v3  ;;  %v3553_v62 = vpop.xlane.xlu0 %3552  ;;  %v3895_v31 = vsel %vm86_vm1, 0.0, %v9845_v60  ;;  %v9864_v43 = vsub.f32 %v11937_v22, %v3705_v54  ;;  %v11943_v54 = vld [vmem:[#allocation6_spill] sm:$0xff] }
 0x452   :  { %v3556_v23 = vpop.xlane.xlu1 %3555  ;;  %v3896_v46 = vsel %vm86_vm1, 0.0, %v9849_v16  ;;  %v9867_v36 = vsub.f32 %v11939_v29, %v3706_v34  ;;  %v3643_v41 = vmul.f32 0.0625, %v3553_v62  ;;  %v4051_v3 = vsel %vm263_vm0, %v3895_v31, 0.0  ;;  %v11944_v34 = vld [vmem:[#allocation8_spill] sm:$0xff] }
 0x453   :  { %11938 = vst [vmem:[#allocation33_spill] sm:$0xff] %v9864_v43  ;;  %v3644_v4 = vmul.f32 0.0625, %v3556_v23  ;;  %v4054_v27 = vsel %vm263_vm0, %v3896_v46, 0.0  ;;  %4052 = vadd.xlane.f32.xlu0 %v4051_v3  ;;  %v9873_v18 = vmul.f32 %v9864_v43, %v9864_v43  ;;  %v3325_v22 = vmul.f32 0.0625, %v11943_v54 }
 0x454   :  { %11940 = vst [vmem:[#allocation74_spill] sm:$0xff] %v9867_v36  ;;  %4055 = vadd.xlane.f32.xlu1 %v4054_v27  ;;  %v9877_v6 = vmul.f32 %v9867_v36, %v9867_v36  ;;  %v3326_v29 = vmul.f32 0.0625, %v11944_v34  ;;  %v3707_v62 = vsel %vm86_vm1, %v3643_v41, %v3323_v57  ;;  %v11945_v36 = vld [vmem:[#allocation85_spill] sm:$0xff]  ;;  %v11947_v34 = vld [vmem:[#allocation87_spill] sm:$0xff] }
 0x455   :  { %11941 = vst [vmem:[#allocation36_spill] sm:$0xff] %v9873_v18  ;;  %v3708_v23 = vsel %vm86_vm1, %v3644_v4, %v3324_v13  ;;  %v3559_v31 = vpop.xlane.xlu0 %3558  ;;  %v3897_v3 = vsel %vm86_vm1, 0.0, %v9873_v18  ;;  %v9892_v54 = vsub.f32 %v11945_v36, %v3707_v62  ;;  %v11951_v36 = vld [vmem:[#allocation9_spill] sm:$0xff] }
 0x456   :  { %11942 = vst [vmem:[#allocation77_spill] sm:$0xff] %v9877_v6  ;;  %v3562_v46 = vpop.xlane.xlu1 %3561  ;;  %v3898_v27 = vsel %vm86_vm1, 0.0, %v9877_v6  ;;  %v9895_v43 = vsub.f32 %v11947_v34, %v3708_v23  ;;  %v3645_v57 = vmul.f32 0.0625, %v3559_v31  ;;  %v4057_v13 = vsel %vm263_vm0, %v3897_v3, 0.0  ;;  %v11952_v23 = vld [vmem:[#allocation11_spill] sm:$0xff] }
 0x457   :  { %11946 = vst [vmem:[#allocation35_spill] sm:$0xff] %v9892_v54  ;;  %v3646_v41 = vmul.f32 0.0625, %v3562_v46  ;;  %v4060_v4 = vsel %vm263_vm0, %v3898_v27, 0.0  ;;  %4058 = vadd.xlane.f32.xlu0 %v4057_v13  ;;  %v9901_v18 = vmul.f32 %v9892_v54, %v9892_v54  ;;  %v3327_v62 = vmul.f32 0.0625, %v11951_v36 }
 0x458   :  { %11948 = vst [vmem:[#allocation76_spill] sm:$0xff] %v9895_v43  ;;  %4061 = vadd.xlane.f32.xlu1 %v4060_v4  ;;  %v9905_v6 = vmul.f32 %v9895_v43, %v9895_v43  ;;  %v3328_v34 = vmul.f32 0.0625, %v11952_v23  ;;  %v3709_v31 = vsel %vm86_vm1, %v3645_v57, %v3325_v22  ;;  %v11953_v43 = vld [vmem:[#allocation90_spill] sm:$0xff]  ;;  %v11955_v23 = vld [vmem:[#allocation92_spill] sm:$0xff] }
 0x459   :  { %11949 = vst [vmem:[#allocation38_spill] sm:$0xff] %v9901_v18  ;;  %v3710_v46 = vsel %vm86_vm1, %v3646_v41, %v3326_v29  ;;  %v3565_v3 = vpop.xlane.xlu0 %3564  ;;  %v3899_v13 = vsel %vm86_vm1, 0.0, %v9901_v18  ;;  %v9920_v36 = vsub.f32 %v11953_v43, %v3709_v31  ;;  %v11959_v43 = vld [vmem:[#allocation10_spill] sm:$0xff] }
 0x45a   :  { %11950 = vst [vmem:[#allocation79_spill] sm:$0xff] %v9905_v6  ;;  %v3568_v27 = vpop.xlane.xlu1 %3567  ;;  %v3900_v4 = vsel %vm86_vm1, 0.0, %v9905_v6  ;;  %v9923_v54 = vsub.f32 %v11955_v23, %v3710_v46  ;;  %v3647_v22 = vmul.f32 0.0625, %v3565_v3  ;;  %v4063_v29 = vsel %vm263_vm0, %v3899_v13, 0.0  ;;  %v11960_v46 = vld [vmem:[#allocation12_spill] sm:$0xff] }
 0x45b   :  { %11954 = vst [vmem:[#allocation37_spill] sm:$0xff] %v9920_v36  ;;  %v3648_v57 = vmul.f32 0.0625, %v3568_v27  ;;  %v4066_v41 = vsel %vm263_vm0, %v3900_v4, 0.0  ;;  %4064 = vadd.xlane.f32.xlu0 %v4063_v29  ;;  %v9929_v18 = vmul.f32 %v9920_v36, %v9920_v36  ;;  %v3329_v31 = vmul.f32 0.0625, %v11959_v43 }
 0x45c   :  { %11956 = vst [vmem:[#allocation78_spill] sm:$0xff] %v9923_v54  ;;  %4067 = vadd.xlane.f32.xlu1 %v4066_v41  ;;  %v9933_v6 = vmul.f32 %v9923_v54, %v9923_v54  ;;  %v3330_v23 = vmul.f32 0.0625, %v11960_v46  ;;  %v3711_v3 = vsel %vm86_vm1, %v3647_v22, %v3327_v62  ;;  %v11961_v54 = vld [vmem:[#allocation89_spill] sm:$0xff]  ;;  %v11963_v46 = vld [vmem:[#allocation91_spill] sm:$0xff] }
 0x45d   :  { %11957 = vst [vmem:[#allocation5_spill] sm:$0xff] %v9929_v18  ;;  %v3712_v27 = vsel %vm86_vm1, %v3648_v57, %v3328_v34  ;;  %v3571_v13 = vpop.xlane.xlu0 %3570  ;;  %v3901_v29 = vsel %vm86_vm1, 0.0, %v9929_v18  ;;  %v9948_v43 = vsub.f32 %v11961_v54, %v3711_v3  ;;  %v11967_v54 = vld [vmem:[#allocation13_spill] sm:$0xff] }
 0x45e   :  { %11958 = vst [vmem:[#allocation40_spill] sm:$0xff] %v9933_v6  ;;  %v3574_v4 = vpop.xlane.xlu1 %3573  ;;  %v3902_v41 = vsel %vm86_vm1, 0.0, %v9933_v6  ;;  %v9951_v36 = vsub.f32 %v11963_v46, %v3712_v27  ;;  %v3649_v62 = vmul.f32 0.0625, %v3571_v13  ;;  %v4069_v34 = vsel %vm263_vm0, %v3901_v29, 0.0  ;;  %v11968_v27 = vld [vmem:[#allocation15_spill] sm:$0xff] }
 0x45f   :  { %11962 = vst [vmem:[#allocation81_spill] sm:$0xff] %v9948_v43  ;;  %v3650_v22 = vmul.f32 0.0625, %v3574_v4  ;;  %v4072_v57 = vsel %vm263_vm0, %v3902_v41, 0.0  ;;  %4070 = vadd.xlane.f32.xlu0 %v4069_v34  ;;  %v9957_v18 = vmul.f32 %v9948_v43, %v9948_v43  ;;  %v3331_v3 = vmul.f32 0.0625, %v11967_v54 }
 0x460   :  { %11964 = vst [vmem:[#allocation7_spill] sm:$0xff] %v9951_v36  ;;  %4073 = vadd.xlane.f32.xlu1 %v4072_v57  ;;  %v9961_v6 = vmul.f32 %v9951_v36, %v9951_v36  ;;  %v3332_v46 = vmul.f32 0.0625, %v11968_v27  ;;  %v3713_v13 = vsel %vm86_vm1, %v3649_v62, %v3329_v31  ;;  %v11969_v36 = vld [vmem:[#allocation94_spill] sm:$0xff]  ;;  %v11971_v27 = vld [vmem:[#allocation96_spill] sm:$0xff] }
 0x461   :  { %11965 = vst [vmem:[#allocation39_spill] sm:$0xff] %v9957_v18  ;;  %v3714_v4 = vsel %vm86_vm1, %v3650_v22, %v3330_v23  ;;  %v3577_v29 = vpop.xlane.xlu0 %3576  ;;  %v3903_v34 = vsel %vm86_vm1, 0.0, %v9957_v18  ;;  %v9976_v54 = vsub.f32 %v11969_v36, %v3713_v13  ;;  %v11975_v36 = vld [vmem:[#allocation14_spill] sm:$0xff] }
 0x462   :  { %11966 = vst [vmem:[#allocation80_spill] sm:$0xff] %v9961_v6  ;;  %v3580_v41 = vpop.xlane.xlu1 %3579  ;;  %v3904_v57 = vsel %vm86_vm1, 0.0, %v9961_v6  ;;  %v9979_v43 = vsub.f32 %v11971_v27, %v3714_v4  ;;  %v3651_v31 = vmul.f32 0.0625, %v3577_v29  ;;  %v4075_v23 = vsel %vm263_vm0, %v3903_v34, 0.0  ;;  %v11976_v4 = vld [vmem:[#allocation16_spill] sm:$0xff] }
 0x463   :  { %11970 = vst [vmem:[#allocation41_spill] sm:$0xff] %v9976_v54  ;;  %v3652_v62 = vmul.f32 0.0625, %v3580_v41  ;;  %v4078_v22 = vsel %vm263_vm0, %v3904_v57, 0.0  ;;  %4076 = vadd.xlane.f32.xlu0 %v4075_v23  ;;  %v9985_v18 = vmul.f32 %v9976_v54, %v9976_v54  ;;  %v3333_v13 = vmul.f32 0.0625, %v11975_v36 }
 0x464   :  { %11972 = vst [vmem:[#allocation84_spill] sm:$0xff] %v9979_v43  ;;  %4079 = vadd.xlane.f32.xlu1 %v4078_v22  ;;  %v9989_v6 = vmul.f32 %v9979_v43, %v9979_v43  ;;  %v3334_v27 = vmul.f32 0.0625, %v11976_v4  ;;  %v3715_v29 = vsel %vm86_vm1, %v3651_v31, %v3331_v3  ;;  %v11977_v43 = vld [vmem:[#allocation93_spill] sm:$0xff]  ;;  %v11979_v4 = vld [vmem:[#allocation95_spill] sm:$0xff] }
 0x465   :  { %11973 = vst [vmem:[#allocation82_spill] sm:$0xff] %v9985_v18  ;;  %v3716_v41 = vsel %vm86_vm1, %v3652_v62, %v3332_v46  ;;  %v3583_v34 = vpop.xlane.xlu0 %3582  ;;  %v3905_v23 = vsel %vm86_vm1, 0.0, %v9985_v18  ;;  %v10004_v36 = vsub.f32 %v11977_v43, %v3715_v29  ;;  %v11983_v43 = vld [vmem:[#allocation17_spill] sm:$0xff] }
 0x466   :  { %11974 = vst [vmem:[#allocation83_spill] sm:$0xff] %v9989_v6  ;;  %v3586_v57 = vpop.xlane.xlu1 %3585  ;;  %v3906_v22 = vsel %vm86_vm1, 0.0, %v9989_v6  ;;  %v10007_v54 = vsub.f32 %v11979_v4, %v3716_v41  ;;  %v3653_v3 = vmul.f32 0.0625, %v3583_v34  ;;  %v4081_v46 = vsel %vm263_vm0, %v3905_v23, 0.0  ;;  %v11984_v41 = vld [vmem:[#allocation19_spill] sm:$0xff] }
 0x467   :  { %11978 = vst [vmem:[#allocation86_spill] sm:$0xff] %v10004_v36  ;;  %v3654_v31 = vmul.f32 0.0625, %v3586_v57  ;;  %v4084_v62 = vsel %vm263_vm0, %v3906_v22, 0.0  ;;  %4082 = vadd.xlane.f32.xlu0 %v4081_v46  ;;  %v10013_v18 = vmul.f32 %v10004_v36, %v10004_v36  ;;  %v3335_v29 = vmul.f32 0.0625, %v11983_v43 }
 0x468   :  { %11980 = vst [vmem:[#allocation88_spill] sm:$0xff] %v10007_v54  ;;  %4085 = vadd.xlane.f32.xlu1 %v4084_v62  ;;  %v10017_v6 = vmul.f32 %v10007_v54, %v10007_v54  ;;  %v3336_v4 = vmul.f32 0.0625, %v11984_v41  ;;  %v3717_v34 = vsel %vm86_vm1, %v3653_v3, %v3333_v13  ;;  %v11985_v54 = vld [vmem:[#allocation98_spill] sm:$0xff]  ;;  %v11987_v41 = vld [vmem:[#allocation100_spill] sm:$0xff] }
 0x469   :  { %11981 = vst [vmem:[#allocation6_spill] sm:$0xff] %v10013_v18  ;;  %v3718_v57 = vsel %vm86_vm1, %v3654_v31, %v3334_v27  ;;  %v3589_v23 = vpop.xlane.xlu0 %3588  ;;  %v3907_v46 = vsel %vm86_vm1, 0.0, %v10013_v18  ;;  %v10032_v43 = vsub.f32 %v11985_v54, %v3717_v34 }
 0x46a   :  { %11982 = vst [vmem:[#allocation8_spill] sm:$0xff] %v10017_v6  ;;  %v3592_v22 = vpop.xlane.xlu1 %3591  ;;  %v3908_v62 = vsel %vm86_vm1, 0.0, %v10017_v6  ;;  %v10035_v36 = vsub.f32 %v11987_v41, %v3718_v57  ;;  %v3655_v13 = vmul.f32 0.0625, %v3589_v23  ;;  %v4087_v27 = vsel %vm263_vm0, %v3907_v46, 0.0 }
 0x46b   :  { %11986 = vst [vmem:[#allocation85_spill] sm:$0xff] %v10032_v43  ;;  %v3656_v3 = vmul.f32 0.0625, %v3592_v22  ;;  %v4090_v31 = vsel %vm263_vm0, %v3908_v62, 0.0  ;;  %4088 = vadd.xlane.f32.xlu0 %v4087_v27  ;;  %v10041_v18 = vmul.f32 %v10032_v43, %v10032_v43  ;;  %v11989_v22 = vld [vmem:[#allocation97_spill] sm:$0xff]  ;;  %v11991_v62 = vld [vmem:[#allocation99_spill] sm:$0xff] }
 0x46c   :  { %11988 = vst [vmem:[#allocation87_spill] sm:$0xff] %v10035_v36  ;;  %4091 = vadd.xlane.f32.xlu1 %v4090_v31  ;;  %v10045_v6 = vmul.f32 %v10035_v36, %v10035_v36  ;;  %v3719_v54 = vsel %vm86_vm1, %v3655_v13, %v3335_v29 }
 0x46d   :  { %v3720_v34 = vsel %vm86_vm1, %v3656_v3, %v3336_v4  ;;  %v3909_v57 = vsel %vm86_vm1, 0.0, %v10041_v18  ;;  %v10058_v46 = vsub.f32 %v11989_v22, %v3719_v54 }
 0x46e   :  { %v3910_v23 = vsel %vm86_vm1, 0.0, %v10045_v6  ;;  %v10061_v41 = vsub.f32 %v11991_v62, %v3720_v34  ;;  %v4093_v27 = vsel %vm263_vm0, %v3909_v57, 0.0  ;;  %v4297_v57 = vsel %vm86_vm1, %v9201_v42, 0.0 }
 0x46f   :  { %11990 = vst [vmem:[#allocation9_spill] sm:$0xff] %v10058_v46  ;;  %v4096_v29 = vsel %vm263_vm0, %v3910_v23, 0.0  ;;  %4094 = vadd.xlane.f32.xlu0 %v4093_v27  ;;  %v10067_v4 = vmul.f32 %v10058_v46, %v10058_v46  ;;  %v4298_v23 = vsel %vm86_vm1, %v9205_v37, 0.0  ;;  %v4361_v22 = vsel %vm263_vm0, %v4297_v57, 0.0 }
 0x470   :  { %11992 = vst [vmem:[#allocation11_spill] sm:$0xff] %v10061_v41  ;;  %4097 = vadd.xlane.f32.xlu1 %v4096_v29  ;;  %v10071_v13 = vmul.f32 %v10061_v41, %v10061_v41  ;;  %v4364_v62 = vsel %vm263_vm0, %v4298_v23, 0.0  ;;  %v4299_v27 = vsel %vm86_vm1, %v9229_v52, 0.0  ;;  %v4300_v29 = vsel %vm86_vm1, %v9233_v45, 0.0 }
 0x471   :  { %v3911_v3 = vsel %vm86_vm1, 0.0, %v10067_v4  ;;  %v4367_v42 = vsel %vm263_vm0, %v4299_v27, 0.0  ;;  %v4301_v37 = vsel %vm86_vm1, %v9257_v14, 0.0  ;;  %v4303_v45 = vsel %vm86_vm1, %v9285_v48, 0.0 }
 0x472   :  { %v3912_v31 = vsel %vm86_vm1, 0.0, %v10071_v13  ;;  %v4099_v54 = vsel %vm263_vm0, %v3911_v3, 0.0  ;;  %v4370_v3 = vsel %vm263_vm0, %v4300_v29, 0.0  ;;  %v4373_v52 = vsel %vm263_vm0, %v4301_v37, 0.0 }
 0x473   :  { %v4102_v34 = vsel %vm263_vm0, %v3912_v31, 0.0  ;;  %4100 = vadd.xlane.f32.xlu0 %v4099_v54  ;;  %v4302_v31 = vsel %vm86_vm1, %v9261_v47, 0.0  ;;  %v4379_v14 = vsel %vm263_vm0, %v4303_v45, 0.0  ;;  %v4305_v47 = vsel %vm86_vm1, %v9313_v17, 0.0 }
 0x474   :  { %4103 = vadd.xlane.f32.xlu1 %v4102_v34  ;;  %v4376_v54 = vsel %vm263_vm0, %v4302_v31, 0.0  ;;  %v4304_v34 = vsel %vm86_vm1, %v9289_v53, 0.0  ;;  %v4306_v23 = vsel %vm86_vm1, %v9317_v25, 0.0  ;;  %v4385_v53 = vsel %vm263_vm0, %v4305_v47, 0.0 }
 0x475   :  { %v4382_v57 = vsel %vm263_vm0, %v4304_v34, 0.0  ;;  %v4307_v27 = vsel %vm86_vm1, %v9341_v33, 0.0  ;;  %v4308_v17 = vsel %vm86_vm1, %v9345_v26, 0.0  ;;  %v4309_v37 = vsel %vm86_vm1, %v9369_v40, 0.0 }
 0x476   :  { %v4310_v33 = vsel %vm86_vm1, %v9373_v50, 0.0  ;;  %v4311_v45 = vsel %vm86_vm1, %v9397_v39, 0.0  ;;  %v4312_v40 = vsel %vm86_vm1, %v9401_v19, 0.0  ;;  %v4313_v47 = vsel %vm86_vm1, %v9425_v20, 0.0 }
 0x477   :  { %4362 = vadd.xlane.f32.xlu0 %v4361_v22  ;;  %v4314_v39 = vsel %vm86_vm1, %v9429_v1, 0.0  ;;  %v4316_v20 = vsel %vm86_vm1, %v9457_v32, 0.0 }
 0x478   :  { %4365 = vadd.xlane.f32.xlu1 %v4364_v62  ;;  %v4388_v62 = vsel %vm263_vm0, %v4306_v23, 0.0 }
 0x47b   :  { %4368 = vadd.xlane.f32.xlu0 %v4367_v42  ;;  %v4391_v42 = vsel %vm263_vm0, %v4307_v27, 0.0  ;;  %v4315_v27 = vsel %vm86_vm1, %v9453_v55, 0.0  ;;  %v4318_v55 = vsel %vm86_vm1, %v9485_v51, 0.0 }
 0x47c   :  { %4371 = vadd.xlane.f32.xlu1 %v4370_v3  ;;  %v4394_v3 = vsel %vm263_vm0, %v4308_v17, 0.0 }
 0x47f   :  { %4374 = vadd.xlane.f32.xlu0 %v4373_v52  ;;  %v4397_v52 = vsel %vm263_vm0, %v4309_v37, 0.0  ;;  %v4317_v37 = vsel %vm86_vm1, %v9481_v15, 0.0  ;;  %v4320_v15 = vsel %vm86_vm1, %v9513_v8, 0.0 }
 0x480   :  { %4377 = vadd.xlane.f32.xlu1 %v4376_v54  ;;  %v4400_v54 = vsel %vm263_vm0, %v4310_v33, 0.0 }
 0x483   :  { %4380 = vadd.xlane.f32.xlu0 %v4379_v14  ;;  %v4403_v14 = vsel %vm263_vm0, %v4311_v45, 0.0  ;;  %v4319_v45 = vsel %vm86_vm1, %v9509_v58, 0.0  ;;  %v4322_v58 = vsel %vm86_vm1, %v9541_v21, 0.0 }
 0x484   :  { %4383 = vadd.xlane.f32.xlu1 %v4382_v57  ;;  %v10119_v22 = vpop.xlane.xlu0 %3914  ;;  %v4406_v57 = vsel %vm263_vm0, %v4312_v40, 0.0 }
 0x485   :  { %v10121_v48 = vpop.xlane.xlu1 %3917 }
 0x487   :  { %4386 = vadd.xlane.f32.xlu0 %v4385_v53  ;;  %v4409_v53 = vsel %vm263_vm0, %v4313_v47, 0.0  ;;  %v4321_v47 = vsel %vm86_vm1, %v9537_v10, 0.0  ;;  %v4324_v10 = vsel %vm86_vm1, %v9569_v49, 0.0 }
 0x488   :  { %4389 = vadd.xlane.f32.xlu1 %v4388_v62  ;;  %v10131_v29 = vpop.xlane.xlu0 %3920  ;;  %v4412_v62 = vsel %vm263_vm0, %v4314_v39, 0.0 }
 0x489   :  { %v10133_v25 = vpop.xlane.xlu1 %3923 }
 0x48b   :  { %4392 = vadd.xlane.f32.xlu0 %v4391_v42  ;;  %v4415_v42 = vsel %vm263_vm0, %v4315_v27, 0.0  ;;  %v4323_v27 = vsel %vm86_vm1, %v9565_v44, 0.0 }
 0x48c   :  { %4395 = vadd.xlane.f32.xlu1 %v4394_v3  ;;  %v10143_v31 = vpop.xlane.xlu0 %3926  ;;  %v4418_v3 = vsel %vm263_vm0, %v4316_v20, 0.0 }
 0x48d   :  { %v10145_v26 = vpop.xlane.xlu1 %3929 }
 0x48f   :  { %4398 = vadd.xlane.f32.xlu0 %v4397_v52  ;;  %v4421_v52 = vsel %vm263_vm0, %v4317_v37, 0.0  ;;  %v4325_v37 = vsel %vm86_vm1, %v9593_v2, 0.0  ;;  %v4328_v2 = vsel %vm86_vm1, %v9625_v5, 0.0 }
 0x490   :  { %4401 = vadd.xlane.f32.xlu1 %v4400_v54  ;;  %v10155_v34 = vpop.xlane.xlu0 %3932  ;;  %v4424_v54 = vsel %vm263_vm0, %v4318_v55, 0.0  ;;  %v11993_v55 = vld [vmem:[#allocation64_spill] sm:$0xff] }
 0x491   :  { %v10157_v50 = vpop.xlane.xlu1 %3935  ;;  %v4326_v44 = vsel %vm86_vm1, %v11993_v55, 0.0 }
 0x493   :  { %4404 = vadd.xlane.f32.xlu0 %v4403_v14  ;;  %v4427_v14 = vsel %vm263_vm0, %v4319_v45, 0.0  ;;  %v4448_v45 = vsel %vm263_vm0, %v4326_v44, 0.0  ;;  %v4333_v44 = vsel %vm86_vm1, %v9705_v11, 0.0 }
 0x494   :  { %4407 = vadd.xlane.f32.xlu1 %v4406_v57  ;;  %v10167_v23 = vpop.xlane.xlu0 %3938  ;;  %v4430_v57 = vsel %vm263_vm0, %v4320_v15, 0.0  ;;  %v4327_v15 = vsel %vm86_vm1, %v9621_v63, 0.0  ;;  %v4330_v63 = vsel %vm86_vm1, %v9653_v38, 0.0 }
 0x495   :  { %v10169_v19 = vpop.xlane.xlu1 %3941 }
 0x497   :  { %4410 = vadd.xlane.f32.xlu0 %v4409_v53  ;;  %v4433_v53 = vsel %vm263_vm0, %v4321_v47, 0.0  ;;  %v4451_v47 = vsel %vm263_vm0, %v4327_v15, 0.0 }
 0x498   :  { %4413 = vadd.xlane.f32.xlu1 %v4412_v62  ;;  %v10179_v17 = vpop.xlane.xlu0 %3944  ;;  %v4436_v62 = vsel %vm263_vm0, %v4322_v58, 0.0  ;;  %v4454_v58 = vsel %vm263_vm0, %v4328_v2, 0.0  ;;  %v4335_v2 = vsel %vm86_vm1, %v9733_v0, 0.0 }
 0x499   :  { %v10181_v1 = vpop.xlane.xlu1 %3947 }
 0x49b   :  { %4416 = vadd.xlane.f32.xlu0 %v4415_v42  ;;  %v4439_v42 = vsel %vm263_vm0, %v4323_v27, 0.0 }
 0x49c   :  { %4419 = vadd.xlane.f32.xlu1 %v4418_v3  ;;  %v10191_v33 = vpop.xlane.xlu0 %3950  ;;  %v4442_v3 = vsel %vm263_vm0, %v4324_v10, 0.0  ;;  %v4460_v10 = vsel %vm263_vm0, %v4330_v63, 0.0 }
 0x49d   :  { %v10193_v32 = vpop.xlane.xlu1 %3953 }
 0x49f   :  { %4422 = vadd.xlane.f32.xlu0 %v4421_v52 }
 0x4a0   :  { %4425 = vadd.xlane.f32.xlu1 %v4424_v54  ;;  %v10203_v40 = vpop.xlane.xlu0 %3956  ;;  %v4445_v54 = vsel %vm263_vm0, %v4325_v37, 0.0 }
 0x4a1   :  { %v10205_v51 = vpop.xlane.xlu1 %3959 }
 0x4a3   :  { %4428 = vadd.xlane.f32.xlu0 %v4427_v14 }
 0x4a4   :  { %4431 = vadd.xlane.f32.xlu1 %v4430_v57  ;;  %v10215_v39 = vpop.xlane.xlu0 %3962 }
 0x4a5   :  { %v10217_v8 = vpop.xlane.xlu1 %3965 }
 0x4a7   :  { %4434 = vadd.xlane.f32.xlu0 %v4433_v53  ;;  %v4329_v53 = vsel %vm86_vm1, %v9649_v7, 0.0  ;;  %v4332_v7 = vsel %vm86_vm1, %v9681_v61, 0.0 }
 0x4a8   :  { %4437 = vadd.xlane.f32.xlu1 %v4436_v62  ;;  %v10227_v20 = vpop.xlane.xlu0 %3968  ;;  %v4457_v27 = vsel %vm263_vm0, %v4329_v53, 0.0  ;;  %v4466_v55 = vsel %vm263_vm0, %v4332_v7, 0.0  ;;  %v4475_v53 = vsel %vm263_vm0, %v4335_v2, 0.0 }
 0x4a9   :  { %v10229_v21 = vpop.xlane.xlu1 %3971 }
 0x4ab   :  { %4440 = vadd.xlane.f32.xlu0 %v4439_v42  ;;  %v4331_v42 = vsel %vm86_vm1, %v9677_v56, 0.0  ;;  %v4334_v56 = vsel %vm86_vm1, %v9709_v12, 0.0 }
 0x4ac   :  { %4443 = vadd.xlane.f32.xlu1 %v4442_v3  ;;  %v10239_v52 = vpop.xlane.xlu0 %3974  ;;  %v4463_v37 = vsel %vm263_vm0, %v4331_v42, 0.0  ;;  %v4472_v15 = vsel %vm263_vm0, %v4334_v56, 0.0 }
 0x4ad   :  { %v10241_v49 = vpop.xlane.xlu1 %3977 }
 0x4af   :  { %4446 = vadd.xlane.f32.xlu0 %v4445_v54 }
 0x4b0   :  { %4449 = vadd.xlane.f32.xlu1 %v4448_v45  ;;  %v10251_v14 = vpop.xlane.xlu0 %3980  ;;  %v4469_v45 = vsel %vm263_vm0, %v4333_v44, 0.0  ;;  %v4339_v44 = vsel %vm86_vm1, %v9789_v24, 0.0  ;;  %v4342_v24 = vsel %vm86_vm1, %v9821_v28, 0.0 }
 0x4b1   :  { %v10253_v57 = vpop.xlane.xlu1 %3983 }
 0x4b3   :  { %4452 = vadd.xlane.f32.xlu0 %v4451_v47  ;;  %v11994_v47 = vld [vmem:[#allocation70_spill] sm:$0xff] }
 0x4b4   :  { %4455 = vadd.xlane.f32.xlu1 %v4454_v58  ;;  %v10263_v62 = vpop.xlane.xlu0 %3986  ;;  %v4336_v11 = vsel %vm86_vm1, %v11994_v47, 0.0  ;;  %v4341_v47 = vsel %vm86_vm1, %v9817_v9, 0.0  ;;  %v4344_v9 = vsel %vm86_vm1, %v9849_v16, 0.0 }
 0x4b5   :  { %v10265_v5 = vpop.xlane.xlu1 %3989  ;;  %v4478_v63 = vsel %vm263_vm0, %v4336_v11, 0.0 }
 0x4b7   :  { %4458 = vadd.xlane.f32.xlu0 %v4457_v27  ;;  %v4337_v27 = vsel %vm86_vm1, %v9761_v59, 0.0  ;;  %v4340_v59 = vsel %vm86_vm1, %v9793_v30, 0.0 }
 0x4b8   :  { %4461 = vadd.xlane.f32.xlu1 %v4460_v10  ;;  %v10275_v3 = vpop.xlane.xlu0 %3992  ;;  %v11995_v10 = vld [vmem:[#allocation73_spill] sm:$0xff]  ;;  %v4490_v2 = vsel %vm263_vm0, %v4340_v59, 0.0 }
 0x4b9   :  { %v10277_v38 = vpop.xlane.xlu1 %3995  ;;  %v4338_v0 = vsel %vm86_vm1, %v11995_v10, 0.0  ;;  %v11997_v59 = vld [vmem:[#allocation77_spill] sm:$0xff] }
 0x4bb   :  { %4464 = vadd.xlane.f32.xlu0 %v4463_v37  ;;  %v4481_v37 = vsel %vm263_vm0, %v4337_v27, 0.0  ;;  %v4343_v27 = vsel %vm86_vm1, %v9845_v60, 0.0  ;;  %v4346_v60 = vsel %vm86_vm1, %v11997_v59, 0.0  ;;  %v12000_v59 = vld [vmem:[#allocation5_spill] sm:$0xff] }
 0x4bc   :  { %4467 = vadd.xlane.f32.xlu1 %v4466_v55  ;;  %v10287_v54 = vpop.xlane.xlu0 %3998  ;;  %v4484_v55 = vsel %vm263_vm0, %v4338_v0, 0.0  ;;  %v4499_v0 = vsel %vm263_vm0, %v4343_v27, 0.0 }
 0x4bd   :  { %v10289_v61 = vpop.xlane.xlu1 %4001 }
 0x4bf   :  { %4470 = vadd.xlane.f32.xlu0 %v4469_v45 }
 0x4c0   :  { %4473 = vadd.xlane.f32.xlu1 %v4472_v15  ;;  %v10299_v58 = vpop.xlane.xlu0 %4004  ;;  %v4487_v15 = vsel %vm263_vm0, %v4339_v44, 0.0 }
 0x4c1   :  { %v10301_v12 = vpop.xlane.xlu1 %4007 }
 0x4c3   :  { %4476 = vadd.xlane.f32.xlu0 %v4475_v53  ;;  %v4493_v53 = vsel %vm263_vm0, %v4341_v47, 0.0  ;;  %v4508_v47 = vsel %vm263_vm0, %v4346_v60, 0.0  ;;  %v4349_v60 = vsel %vm86_vm1, %v12000_v59, 0.0 }
 0x4c4   :  { %4479 = vadd.xlane.f32.xlu1 %v4478_v63  ;;  %v10311_v42 = vpop.xlane.xlu0 %4010  ;;  %v4496_v63 = vsel %vm263_vm0, %v4342_v24, 0.0  ;;  %v11998_v24 = vld [vmem:[#allocation38_spill] sm:$0xff] }
 0x4c5   :  { %v10313_v7 = vpop.xlane.xlu1 %4013 }
 0x4c7   :  { %4482 = vadd.xlane.f32.xlu0 %v4481_v37  ;;  %v4502_v37 = vsel %vm263_vm0, %v4344_v9, 0.0 }
 0x4c8   :  { %4485 = vadd.xlane.f32.xlu1 %v4484_v55  ;;  %v10323_v56 = vpop.xlane.xlu0 %4016  ;;  %v11996_v55 = vld [vmem:[#allocation36_spill] sm:$0xff] }
 0x4c9   :  { %v10325_v45 = vpop.xlane.xlu1 %4019  ;;  %v4345_v44 = vsel %vm86_vm1, %v11996_v55, 0.0 }
 0x4cb   :  { %4488 = vadd.xlane.f32.xlu0 %v4487_v15 }
 0x4cc   :  { %4491 = vadd.xlane.f32.xlu1 %v4490_v2  ;;  %v10335_v11 = vpop.xlane.xlu0 %4022  ;;  %v4505_v2 = vsel %vm263_vm0, %v4345_v44, 0.0  ;;  %v4105_v44 = vmul.f32 0.0625, %v10119_v22  ;;  %v4108_v22 = vmul.f32 0.0625, %v10133_v25  ;;  %v4110_v25 = vmul.f32 0.0625, %v10145_v26 }
 0x4cd   :  { %v10337_v30 = vpop.xlane.xlu1 %4025 }
 0x4ce   :  { %v4169_v46 = vadd.f32 1e-05, %v4105_v44 }
 0x4cf   :  { %4494 = vadd.xlane.f32.xlu0 %v4493_v53  ;;  %v4347_v53 = vsel %vm86_vm1, %v11998_v24, 0.0  ;;  %v4106_v24 = vmul.f32 0.0625, %v10121_v48  ;;  %v12004_v48 = vld [vmem:[#allocation80_spill] sm:$0xff] }
 0x4d0   :  { %4497 = vadd.xlane.f32.xlu1 %v4496_v63  ;;  %v10347_v10 = vpop.xlane.xlu0 %4028  ;;  %v11999_v63 = vld [vmem:[#allocation79_spill] sm:$0xff]  ;;  %v4352_v36 = vsel %vm86_vm1, %v12004_v48, 0.0  ;;  %5736 = vrsqrt.f32 %v4169_v46 }
 0x4d1   :  { %v10349_v28 = vpop.xlane.xlu1 %4031  ;;  %v4348_v27 = vsel %vm86_vm1, %v11999_v63, 0.0  ;;  %v12008_v48 = vld [vmem:[#allocation83_spill] sm:$0xff] }
 0x4d2   :  { %v4514_v55 = vsel %vm263_vm0, %v4348_v27, 0.0  ;;  %v4517_v27 = vsel %vm263_vm0, %v4349_v60, 0.0  ;;  %v4354_v26 = vsel %vm86_vm1, %v12008_v48, 0.0 }
 0x4d3   :  { %4500 = vadd.xlane.f32.xlu0 %v4499_v0 }
 0x4d4   :  { %4503 = vadd.xlane.f32.xlu1 %v4502_v37  ;;  %v10359_v15 = vpop.xlane.xlu0 %4034  ;;  %v4511_v37 = vsel %vm263_vm0, %v4347_v53, 0.0  ;;  %v4107_v53 = vmul.f32 0.0625, %v10131_v29  ;;  %v4170_v29 = vadd.f32 1e-05, %v4106_v24  ;;  %v4526_v24 = vsel %vm263_vm0, %v4352_v36, 0.0  ;;  %v12009_v36 = vld [vmem:[#allocation6_spill] sm:$0xff] }
 0x4d5   :  { %v10361_v16 = vpop.xlane.xlu1 %4037 }
 0x4d6   :  { %v4171_v44 = vadd.f32 1e-05, %v4107_v53  ;;  %5738 = vrsqrt.f32 %v4170_v29 }
 0x4d7   :  { %4506 = vadd.xlane.f32.xlu0 %v4505_v2  ;;  %v12001_v2 = vld [vmem:[#allocation40_spill] sm:$0xff] }
 0x4d8   :  { %4509 = vadd.xlane.f32.xlu1 %v4508_v47  ;;  %v10371_v9 = vpop.xlane.xlu0 %4040  ;;  %v4350_v47 = vsel %vm86_vm1, %v12001_v2, 0.0  ;;  %v4109_v2 = vmul.f32 0.0625, %v10143_v31  ;;  %v4111_v31 = vmul.f32 0.0625, %v10155_v34  ;;  %v4174_v34 = vadd.f32 1e-05, %v4110_v25 }
 0x4d9   :  { %v10373_v0 = vpop.xlane.xlu1 %4043  ;;  %5740 = vrsqrt.f32 %v4171_v44  ;;  %v4532_v25 = vsel %vm263_vm0, %v4354_v26, 0.0  ;;  %v4120_v26 = vmul.f32 0.0625, %v10205_v51 }
 0x4da   :  { %v4175_v46 = vadd.f32 1e-05, %v4111_v31  ;;  %v4118_v31 = vmul.f32 0.0625, %v10193_v32  ;;  %v4358_v32 = vsel %vm86_vm1, %v10045_v6, 0.0 }
 0x4db   :  { %4512 = vadd.xlane.f32.xlu0 %v4511_v37  ;;  %v4520_v37 = vsel %vm263_vm0, %v4350_v47, 0.0  ;;  %v12007_v47 = vld [vmem:[#allocation82_spill] sm:$0xff] }
 0x4dc   :  { %4515 = vadd.xlane.f32.xlu1 %v4514_v55  ;;  %v10385_v63 = vpop.xlane.xlu0 %4046  ;;  %v12003_v55 = vld [vmem:[#allocation39_spill] sm:$0xff] }
 0x4dd   :  { %v10387_v41 = vpop.xlane.xlu1 %4049  ;;  %v4351_v59 = vsel %vm86_vm1, %v12003_v55, 0.0  ;;  %v4353_v55 = vsel %vm86_vm1, %v12007_v47, 0.0  ;;  %v4355_v47 = vsel %vm86_vm1, %v12009_v36, 0.0 }
 0x4de   :  { %12002 = vst [vmem:[#allocation90_spill] sm:$0xff] %v10387_v41  ;;  %v4112_v41 = vmul.f32 0.0625, %v10157_v50  ;;  %v4529_v53 = vsel %vm263_vm0, %v4353_v55, 0.0  ;;  %v4535_v44 = vsel %vm263_vm0, %v4355_v47, 0.0  ;;  %v10454_v47 = vpop.eup %5736 }
 0x4df   :  { %4518 = vadd.xlane.f32.xlu0 %v4517_v27  ;;  %v4523_v27 = vsel %vm263_vm0, %v4351_v59, 0.0 }
 0x4e0   :  { %4521 = vadd.xlane.f32.xlu1 %v4520_v37  ;;  %v10401_v43 = vpop.xlane.xlu0 %4052  ;;  %v4172_v37 = vadd.f32 1e-05, %v4108_v22  ;;  %v4114_v22 = vmul.f32 0.0625, %v10169_v19  ;;  %v4176_v29 = vadd.f32 1e-05, %v4112_v41  ;;  %v4116_v19 = vmul.f32 0.0625, %v10181_v1 }
 0x4e1   :  { %12005 = vst [vmem:[#allocation92_spill] sm:$0xff] %v10401_v43  ;;  %v10403_v60 = vpop.xlane.xlu1 %4055  ;;  %v4113_v43 = vmul.f32 0.0625, %v10167_v23  ;;  %v4115_v23 = vmul.f32 0.0625, %v10179_v17 }
 0x4e2   :  { %12006 = vst [vmem:[#allocation10_spill] sm:$0xff] %v10403_v60  ;;  %v4173_v60 = vadd.f32 1e-05, %v4109_v2  ;;  %v12010_v2 = vld [vmem:[#allocation8_spill] sm:$0xff]  ;;  %5742 = vrsqrt.f32 %v4172_v37  ;;  %v4178_v17 = vadd.f32 1e-05, %v4114_v22 }
 0x4e3   :  { %4524 = vadd.xlane.f32.xlu0 %v4523_v27  ;;  %v4356_v55 = vsel %vm86_vm1, %v12010_v2, 0.0  ;;  %v4177_v27 = vadd.f32 1e-05, %v4113_v43  ;;  %v4179_v1 = vadd.f32 1e-05, %v4115_v23  ;;  %v4119_v43 = vmul.f32 0.0625, %v10203_v40  ;;  %v10458_v23 = vpop.eup %5738 }
 0x4e4   :  { %4527 = vadd.xlane.f32.xlu1 %v4526_v24  ;;  %v10418_v59 = vpop.xlane.xlu0 %4058  ;;  %5744 = vrsqrt.f32 %v4173_v60  ;;  %v4117_v24 = vmul.f32 0.0625, %v10191_v33  ;;  %v4538_v41 = vsel %vm263_vm0, %v4356_v55, 0.0  ;;  %v4357_v33 = vsel %vm86_vm1, %v10041_v18, 0.0 }
 0x4e5   :  { %v10420_v50 = vpop.xlane.xlu1 %4061  ;;  %5746 = vrsqrt.f32 %v4174_v34  ;;  %v4180_v60 = vadd.f32 1e-05, %v4116_v19  ;;  %v4121_v34 = vmul.f32 0.0625, %v10215_v39  ;;  %v4182_v40 = vadd.f32 1e-05, %v4118_v31 }
 0x4e6   :  { %5748 = vrsqrt.f32 %v4175_v46  ;;  %v4122_v22 = vmul.f32 0.0625, %v10217_v8  ;;  %v4541_v51 = vsel %vm263_vm0, %v4357_v33, 0.0  ;;  %v4183_v6 = vadd.f32 1e-05, %v4119_v43 }
 0x4e7   :  { %4530 = vadd.xlane.f32.xlu0 %v4529_v53  ;;  %5750 = vrsqrt.f32 %v4176_v29  ;;  %v4181_v53 = vadd.f32 1e-05, %v4117_v24  ;;  %v4123_v46 = vmul.f32 0.0625, %v10227_v20  ;;  %v4544_v39 = vsel %vm263_vm0, %v4358_v32, 0.0  ;;  %v10464_v29 = vpop.eup %5740 }
 0x4e8   :  { %4533 = vadd.xlane.f32.xlu1 %v4532_v25  ;;  %v10434_v48 = vpop.xlane.xlu0 %4064  ;;  %5752 = vrsqrt.f32 %v4177_v27  ;;  %v4184_v2 = vadd.f32 1e-05, %v4120_v26  ;;  %v4124_v8 = vmul.f32 0.0625, %v10229_v21  ;;  %v4359_v55 = vsel %vm86_vm1, %v10067_v4, 0.0 }
 0x4e9   :  { %v10436_v37 = vpop.xlane.xlu1 %4067  ;;  %5754 = vrsqrt.f32 %v4178_v17  ;;  %v4185_v19 = vadd.f32 1e-05, %v4121_v34  ;;  %v4125_v25 = vmul.f32 0.0625, %v10239_v52  ;;  %v4360_v20 = vsel %vm86_vm1, %v10071_v13, 0.0 }
 0x4ea   :  { %5756 = vrsqrt.f32 %v4179_v1  ;;  %v4186_v21 = vadd.f32 1e-05, %v4122_v22  ;;  %v4126_v24 = vmul.f32 0.0625, %v10241_v49  ;;  %v4187_v52 = vadd.f32 1e-05, %v4123_v46 }
 0x4eb   :  { %4536 = vadd.xlane.f32.xlu0 %v4535_v44  ;;  %5758 = vrsqrt.f32 %v4180_v60  ;;  %v4127_v31 = vmul.f32 0.0625, %v10251_v14  ;;  %v4188_v13 = vadd.f32 1e-05, %v4124_v8  ;;  %v4128_v43 = vmul.f32 0.0625, %v10253_v57 }
 0x4ec   :  { %4539 = vadd.xlane.f32.xlu1 %v4538_v41  ;;  %v10449_v36 = vpop.xlane.xlu0 %4070  ;;  %5760 = vrsqrt.f32 %v4181_v53  ;;  %v10470_v27 = vpop.eup %5742  ;;  %v4547_v41 = vsel %vm263_vm0, %v4359_v55, 0.0  ;;  %v4550_v49 = vsel %vm263_vm0, %v4360_v20, 0.0  ;;  %v4189_v60 = vadd.f32 1e-05, %v4125_v25 }
 0x4ed   :  { %v10451_v18 = vpop.xlane.xlu1 %4073  ;;  %5762 = vrsqrt.f32 %v4182_v40  ;;  %v4129_v26 = vmul.f32 0.0625, %v10263_v62  ;;  %v4190_v14 = vadd.f32 1e-05, %v4126_v24  ;;  %v4130_v53 = vmul.f32 0.0625, %v10265_v5 }
 0x4ee   :  { %v10477_v17 = vpop.eup %5744  ;;  %5764 = vrsqrt.f32 %v4183_v6  ;;  %v4191_v22 = vadd.f32 1e-05, %v4127_v31  ;;  %v4192_v62 = vadd.f32 1e-05, %v4128_v43  ;;  %v4132_v46 = vmul.f32 0.0625, %v10277_v38 }
 0x4ef   :  { %4542 = vadd.xlane.f32.xlu0 %v4541_v51  ;;  %v10481_v1 = vpop.eup %5746  ;;  %5766 = vrsqrt.f32 %v4184_v2  ;;  %v4131_v51 = vmul.f32 0.0625, %v10275_v3  ;;  %v4193_v5 = vadd.f32 1e-05, %v4129_v26  ;;  %v4133_v2 = vmul.f32 0.0625, %v10287_v54 }
 0x4f0   :  { %4545 = vadd.xlane.f32.xlu1 %v4544_v39  ;;  %v10473_v44 = vpop.xlane.xlu0 %4076  ;;  %v10485_v33 = vpop.eup %5748  ;;  %5768 = vrsqrt.f32 %v4185_v19  ;;  %v4194_v55 = vadd.f32 1e-05, %v4130_v53  ;;  %v4134_v19 = vmul.f32 0.0625, %v10289_v61  ;;  %v4196_v54 = vadd.f32 1e-05, %v4132_v46 }
 0x4f1   :  { %v10475_v4 = vpop.xlane.xlu1 %4079  ;;  %v10488_v32 = vpop.eup %5750  ;;  %5770 = vrsqrt.f32 %v4186_v21  ;;  %v4195_v38 = vadd.f32 1e-05, %v4131_v51  ;;  %v4135_v21 = vmul.f32 0.0625, %v10299_v58  ;;  %v4197_v61 = vadd.f32 1e-05, %v4133_v2 }
 0x4f2   :  { %v10495_v57 = vpop.eup %5752  ;;  %5772 = vrsqrt.f32 %v4187_v52  ;;  %v4136_v52 = vmul.f32 0.0625, %v10301_v12  ;;  %v4198_v43 = vadd.f32 1e-05, %v4134_v19  ;;  %v4142_v2 = vmul.f32 0.0625, %v10337_v30 }
 0x4f3   :  { %4548 = vadd.xlane.f32.xlu0 %v4547_v41  ;;  %v10498_v6 = vpop.eup %5754  ;;  %5774 = vrsqrt.f32 %v4188_v13  ;;  %v4137_v41 = vmul.f32 0.0625, %v10311_v42  ;;  %v4199_v12 = vadd.f32 1e-05, %v4135_v21 }
 0x4f4   :  { %4551 = vadd.xlane.f32.xlu1 %v4550_v49  ;;  %v10491_v34 = vpop.xlane.xlu0 %4082  ;;  %v10501_v39 = vpop.eup %5756  ;;  %5776 = vrsqrt.f32 %v4189_v60  ;;  %v4138_v49 = vmul.f32 0.0625, %v10313_v7  ;;  %v4200_v42 = vadd.f32 1e-05, %v4136_v52  ;;  %v4206_v30 = vadd.f32 1e-05, %v4142_v2 }
 0x4f5   :  { %v10493_v40 = vpop.xlane.xlu1 %4085  ;;  %v10504_v8 = vpop.eup %5758  ;;  %5778 = vrsqrt.f32 %v4190_v14  ;;  %v4139_v14 = vmul.f32 0.0625, %v10323_v56  ;;  %v4201_v7 = vadd.f32 1e-05, %v4137_v41  ;;  %v4144_v41 = vmul.f32 0.0625, %v10349_v28 }
 0x4f6   :  { %v10511_v20 = vpop.eup %5760  ;;  %5780 = vrsqrt.f32 %v4191_v22  ;;  %v4140_v22 = vmul.f32 0.0625, %v10325_v45 }
 0x4f7   :  { %v10514_v24 = vpop.eup %5762  ;;  %5782 = vrsqrt.f32 %v4192_v62  ;;  %v4141_v62 = vmul.f32 0.0625, %v10335_v11  ;;  %v4203_v45 = vadd.f32 1e-05, %v4139_v14  ;;  %v4143_v11 = vmul.f32 0.0625, %v10347_v10 }
 0x4f8   :  { %v10507_v25 = vpop.xlane.xlu0 %4088  ;;  %v10517_v31 = vpop.eup %5764  ;;  %5784 = vrsqrt.f32 %v4193_v5  ;;  %v4202_v5 = vadd.f32 1e-05, %v4138_v49  ;;  %v4204_v21 = vadd.f32 1e-05, %v4140_v22  ;;  %v4208_v28 = vadd.f32 1e-05, %v4144_v41 }
 0x4f9   :  { %12011 = vst [vmem:[#allocation12_spill] sm:$0xff] %v10507_v25  ;;  %v10509_v3 = vpop.xlane.xlu1 %4091  ;;  %v10520_v13 = vpop.eup %5766  ;;  %5786 = vrsqrt.f32 %v4194_v55  ;;  %v4205_v52 = vadd.f32 1e-05, %v4141_v62  ;;  %v4207_v10 = vadd.f32 1e-05, %v4143_v11 }
 0x4fa   :  { %12012 = vst [vmem:[#allocation89_spill] sm:$0xff] %v10509_v3  ;;  %v10527_v26 = vpop.eup %5768  ;;  %5788 = vrsqrt.f32 %v4195_v38 }
 0x4fb   :  { %v10530_v53 = vpop.eup %5770  ;;  %5790 = vrsqrt.f32 %v4196_v54 }
 0x4fc   :  { %v10523_v60 = vpop.xlane.xlu0 %4094  ;;  %v10533_v51 = vpop.eup %5772  ;;  %5792 = vrsqrt.f32 %v4197_v61 }
 0x4fd   :  { %12013 = vst [vmem:[#allocation91_spill] sm:$0xff] %v10523_v60  ;;  %v10525_v58 = vpop.xlane.xlu1 %4097  ;;  %v10536_v46 = vpop.eup %5774  ;;  %5794 = vrsqrt.f32 %v4198_v43  ;;  %v4148_v60 = vmul.f32 0.0625, %v10373_v0 }
 0x4fe   :  { %12014 = vst [vmem:[#allocation13_spill] sm:$0xff] %v10525_v58  ;;  %v10543_v19 = vpop.eup %5776  ;;  %5796 = vrsqrt.f32 %v4199_v12 }
 0x4ff   :  { %v10545_v38 = vpop.eup %5778  ;;  %5798 = vrsqrt.f32 %v4200_v42  ;;  %v4212_v0 = vadd.f32 1e-05, %v4148_v60  ;;  %v12024_v60 = vld [vmem:[#allocation92_spill] sm:$0xff] }
 0x500   :  { %v10539_v55 = vpop.xlane.xlu0 %4100  ;;  %v10548_v54 = vpop.eup %5780  ;;  %5800 = vrsqrt.f32 %v4201_v7  ;;  %v4145_v7 = vmul.f32 0.0625, %v10359_v15 }
 0x501   :  { %12015 = vst [vmem:[#allocation15_spill] sm:$0xff] %v10539_v55  ;;  %v10541_v56 = vpop.xlane.xlu1 %4103  ;;  %v10550_v61 = vpop.eup %5782  ;;  %5802 = vrsqrt.f32 %v4202_v5  ;;  %v4146_v55 = vmul.f32 0.0625, %v10361_v16 }
 0x502   :  { %12016 = vst [vmem:[#allocation94_spill] sm:$0xff] %v10541_v56  ;;  %v10553_v12 = vpop.eup %5784  ;;  %5804 = vrsqrt.f32 %v4203_v45 }
 0x503   :  { %v10555_v22 = vpop.eup %5786  ;;  %5806 = vrsqrt.f32 %v4204_v21  ;;  %v4210_v16 = vadd.f32 1e-05, %v4146_v55 }
 0x504   :  { %v4363_v43 = vpop.xlane.xlu0 %4362  ;;  %v10557_v56 = vpop.eup %5788  ;;  %5808 = vrsqrt.f32 %v4205_v52  ;;  %v4147_v52 = vmul.f32 0.0625, %v10371_v9 }
 0x505   :  { %v4366_v49 = vpop.xlane.xlu1 %4365  ;;  %v4553_v14 = vmul.f32 0.0625, %v4363_v43  ;;  %v10560_v2 = vpop.eup %5790  ;;  %5810 = vrsqrt.f32 %v4206_v30 }
 0x506   :  { %v4554_v42 = vmul.f32 0.0625, %v4366_v49  ;;  %v10563_v49 = vpop.eup %5792  ;;  %v4211_v25 = vadd.f32 1e-05, %v4147_v52 }
 0x507   :  { %v4617_v62 = vadd.f32 1e-05, %v4553_v14  ;;  %v10565_v58 = vpop.eup %5794  ;;  %v4209_v14 = vadd.f32 1e-05, %v4145_v7  ;;  %v4149_v7 = vmul.f32 0.0625, %v10385_v63 }
 0x508   :  { %v4618_v5 = vadd.f32 1e-05, %v4554_v42  ;;  %v4369_v45 = vpop.xlane.xlu0 %4368  ;;  %v10568_v15 = vpop.eup %5796 }
 0x509   :  { %v4372_v43 = vpop.xlane.xlu1 %4371  ;;  %5812 = vrsqrt.f32 %v4617_v62  ;;  %v4555_v21 = vmul.f32 0.0625, %v4369_v45  ;;  %v10570_v42 = vpop.eup %5798  ;;  %v4213_v63 = vadd.f32 1e-05, %v4149_v7 }
 0x50a   :  { %v4556_v11 = vmul.f32 0.0625, %v4372_v43  ;;  %5814 = vrsqrt.f32 %v4618_v5  ;;  %v10573_v43 = vpop.eup %5800 }
 0x50b   :  { %5816 = vrsqrt.f32 %v4207_v10  ;;  %v4619_v30 = vadd.f32 1e-05, %v4555_v21  ;;  %12017 = vst [vmem:[#allocation96_spill] sm:$0xff] %v10573_v43  ;;  %v10575_v5 = vpop.eup %5802 }
 0x50c   :  { %v4620_v41 = vadd.f32 1e-05, %v4556_v11  ;;  %5818 = vrsqrt.f32 %v4208_v28  ;;  %v4375_v62 = vpop.xlane.xlu0 %4374  ;;  %12018 = vst [vmem:[#allocation14_spill] sm:$0xff] %v10575_v5  ;;  %v10577_v10 = vpop.eup %5804 }
 0x50d   :  { %v4378_v45 = vpop.xlane.xlu1 %4377  ;;  %5820 = vrsqrt.f32 %v4619_v30  ;;  %v4557_v3 = vmul.f32 0.0625, %v4375_v62  ;;  %12019 = vst [vmem:[#allocation16_spill] sm:$0xff] %v10577_v10  ;;  %v10580_v21 = vpop.eup %5806 }
 0x50e   :  { %v4558_v9 = vmul.f32 0.0625, %v4378_v45  ;;  %5822 = vrsqrt.f32 %v4620_v41  ;;  %12020 = vst [vmem:[#allocation93_spill] sm:$0xff] %v10580_v21  ;;  %v10582_v30 = vpop.eup %5808  ;;  %v12023_v41 = vld [vmem:[#allocation90_spill] sm:$0xff] }
 0x50f   :  { %5824 = vrsqrt.f32 %v4209_v14  ;;  %v4621_v28 = vadd.f32 1e-05, %v4557_v3  ;;  %12021 = vst [vmem:[#allocation95_spill] sm:$0xff] %v10582_v30  ;;  %v10584_v52 = vpop.eup %5810  ;;  %v4150_v10 = vmul.f32 0.0625, %v12023_v41 }
 0x510   :  { %v4622_v55 = vadd.f32 1e-05, %v4558_v9  ;;  %5826 = vrsqrt.f32 %v4210_v16  ;;  %v4381_v11 = vpop.xlane.xlu0 %4380  ;;  %12022 = vst [vmem:[#allocation17_spill] sm:$0xff] %v10584_v52  ;;  %v4151_v16 = vmul.f32 0.0625, %v12024_v60  ;;  %v12026_v52 = vld [vmem:[#allocation18_spill] sm:$0xff] }
 0x511   :  { %v4384_v43 = vpop.xlane.xlu1 %4383  ;;  %5828 = vrsqrt.f32 %v4621_v28  ;;  %v4559_v62 = vmul.f32 0.0625, %v4381_v11 }
 0x512   :  { %v4560_v45 = vmul.f32 0.0625, %v4384_v43  ;;  %5830 = vrsqrt.f32 %v4622_v55 }
 0x513   :  { %v5813_v14 = vpop.eup %5812  ;;  %5832 = vrsqrt.f32 %v4211_v25  ;;  %v4623_v3 = vadd.f32 1e-05, %v4559_v62  ;;  %v12028_v62 = vld [vmem:[#allocation20_spill] sm:$0xff] }
 0x514   :  { %v4624_v9 = vadd.f32 1e-05, %v4560_v45  ;;  %v5815_v21 = vpop.eup %5814  ;;  %5834 = vrsqrt.f32 %v4212_v0  ;;  %v4745_v28 = vsel %vm86_vm1, %v5813_v14, %v10454_v47  ;;  %v4387_v11 = vpop.xlane.xlu0 %4386  ;;  %v4214_v0 = vadd.f32 1e-05, %v4150_v10  ;;  %v12029_v14 = vld [vmem:[#allocation10_spill] sm:$0xff] }
 0x515   :  { %v4390_v43 = vpop.xlane.xlu1 %4389  ;;  %v10591_v30 = vpop.eup %5816  ;;  %v4809_v41 = vmul.f32 %v4745_v28, %v12026_v52  ;;  %v4746_v25 = vsel %vm86_vm1, %v5815_v21, %v10458_v23  ;;  %5836 = vrsqrt.f32 %v4623_v3  ;;  %v4561_v7 = vmul.f32 0.0625, %v4387_v11  ;;  %v10604_v52 = vld [vmem:[%s11313_s2] ss:$0 sm:$0xff] }
 0x516   :  { %12025 = vst [vmem:[#allocation19_spill] sm:$0xff] %v10591_v30  ;;  %v10597_v55 = vpop.eup %5818  ;;  %v4810_v45 = vmul.f32 %v4746_v25, %v12028_v62  ;;  %5838 = vrsqrt.f32 %v4624_v9  ;;  %v4562_v60 = vmul.f32 0.0625, %v4390_v43  ;;  %v4152_v5 = vmul.f32 0.0625, %v12029_v14  ;;  %v10616_v62 = vld [vmem:[%s11314_s3] ss:$0 sm:$0xff] }
 0x517   :  { %12027 = vst [vmem:[#allocation98_spill] sm:$0xff] %v10597_v55  ;;  %v5821_v47 = vpop.eup %5820  ;;  %5840 = vrsqrt.f32 %v4213_v63  ;;  %v4873_v23 = vmul.f32 %v10604_v52, %v4809_v41  ;;  %v4625_v21 = vadd.f32 1e-05, %v4561_v7  ;;  %v4215_v28 = vadd.f32 1e-05, %v4151_v16  ;;  %v12031_v7 = vld [vmem:[#allocation21_spill] sm:$0xff] }
 0x518   :  { %v5823_v3 = vpop.eup %5822  ;;  %v4874_v10 = vmul.f32 %v10604_v52, %v4810_v45  ;;  %v4747_v9 = vsel %vm86_vm1, %v5821_v47, %v10464_v29  ;;  %v4626_v11 = vadd.f32 1e-05, %v4562_v60  ;;  %v4393_v63 = vpop.xlane.xlu0 %4392  ;;  %v12032_v47 = vld [vmem:[#allocation22_spill] sm:$0xff]  ;;  %v4216_v30 = vadd.f32 1e-05, %v4152_v5 }
 0x519   :  { %v4396_v43 = vpop.xlane.xlu1 %4395  ;;  %v10611_v25 = vpop.eup %5824  ;;  %v4937_v41 = vadd.f32 %v10616_v62, %v4873_v23  ;;  %v4811_v16 = vmul.f32 %v4747_v9, %v12031_v7  ;;  %v4748_v45 = vsel %vm86_vm1, %v5823_v3, %v10470_v27  ;;  %5842 = vrsqrt.f32 %v4625_v21 }
 0x51a   :  { %12030 = vst [vmem:[#allocation100_spill] sm:$0xff] %v10611_v25  ;;  %v10623_v29 = vpop.eup %5826  ;;  %v4938_v60 = vadd.f32 %v10616_v62, %v4874_v10  ;;  %v4812_v14 = vmul.f32 %v4748_v45, %v12032_v47  ;;  %5844 = vrsqrt.f32 %v4626_v11  ;;  %v4563_v25 = vmul.f32 0.0625, %v4393_v63 }
 0x51b   :  { %v5829_v55 = vpop.eup %5828  ;;  %5846 = vrsqrt.f32 %v4214_v0  ;;  %5176 = vst.msk [vmem:[%s11315_s4 + $0x10] sm:$0xff] %vm263_vm0, %v4937_v41  ;;  %v4875_v23 = vmul.f32 %v10604_v52, %v4811_v16  ;;  %v4564_v27 = vmul.f32 0.0625, %v4396_v43  ;;  %v12033_v43 = vld [vmem:[#allocation42_spill] sm:$0xff]  ;;  %v4153_v47 = vmul.f32 0.0625, %v10418_v59 }
 0x51c   :  { %v5831_v21 = vpop.eup %5830  ;;  %5848 = vrsqrt.f32 %v4215_v28  ;;  %5177 = vst.msk [vmem:[%s11315_s4 + $0x18] sm:$0xff] %vm263_vm0, %v4938_v60  ;;  %v4876_v3 = vmul.f32 %v10604_v52, %v4812_v14  ;;  %v4749_v5 = vsel %vm86_vm1, %v5829_v55, %v10477_v17  ;;  %v4627_v0 = vadd.f32 1e-05, %v4563_v25  ;;  %v4399_v10 = vpop.xlane.xlu0 %4398  ;;  %v12034_v60 = vld [vmem:[#allocation43_spill] sm:$0xff] }
 0x51d   :  { %v4402_v9 = vpop.xlane.xlu1 %4401  ;;  %v10640_v11 = vpop.eup %5832  ;;  %v4939_v63 = vadd.f32 %v10616_v62, %v4875_v23  ;;  %v4813_v28 = vmul.f32 %v4749_v5, %v12033_v43  ;;  %v4750_v41 = vsel %vm86_vm1, %v5831_v21, %v10481_v1  ;;  %v4628_v7 = vadd.f32 1e-05, %v4564_v27 }
 0x51e   :  { %v10647_v16 = vpop.eup %5834  ;;  %v4940_v45 = vadd.f32 %v10616_v62, %v4876_v3  ;;  %v4814_v17 = vmul.f32 %v4750_v41, %v12034_v60  ;;  %5850 = vrsqrt.f32 %v4627_v0  ;;  %v4565_v55 = vmul.f32 0.0625, %v4399_v10  ;;  %v12036_v41 = vld [vmem:[#allocation45_spill] sm:$0xff] }
 0x51f   :  { %v5837_v25 = vpop.eup %5836  ;;  %5178 = vst.msk [vmem:[%s11315_s4 + $0x30] sm:$0xff] %vm263_vm0, %v4939_v63  ;;  %v4877_v14 = vmul.f32 %v10604_v52, %v4813_v28  ;;  %5852 = vrsqrt.f32 %v4628_v7  ;;  %v4566_v1 = vmul.f32 0.0625, %v4402_v9  ;;  %v12035_v9 = vld [vmem:[#allocation44_spill] sm:$0xff]  ;;  %v4154_v60 = vmul.f32 0.0625, %v10420_v50 }
 0x520   :  { %v5839_v23 = vpop.eup %5838  ;;  %5854 = vrsqrt.f32 %v4216_v30  ;;  %5179 = vst.msk [vmem:[%s11315_s4 + $0x38] sm:$0xff] %vm263_vm0, %v4940_v45  ;;  %v4878_v27 = vmul.f32 %v10604_v52, %v4814_v17  ;;  %v4751_v59 = vsel %vm86_vm1, %v5837_v25, %v10485_v33  ;;  %v4629_v21 = vadd.f32 1e-05, %v4565_v55  ;;  %v4405_v3 = vpop.xlane.xlu0 %4404 }
 0x521   :  { %v4408_v5 = vpop.xlane.xlu1 %4407  ;;  %v10665_v0 = vpop.eup %5840  ;;  %v4941_v10 = vadd.f32 %v10616_v62, %v4877_v14  ;;  %v4815_v30 = vmul.f32 %v4751_v59, %v12035_v9  ;;  %v4752_v63 = vsel %vm86_vm1, %v5839_v23, %v10488_v32  ;;  %v4630_v43 = vadd.f32 1e-05, %v4566_v1 }
 0x522   :  { %v4942_v28 = vadd.f32 %v10616_v62, %v4878_v27  ;;  %v4816_v7 = vmul.f32 %v4752_v63, %v12036_v41  ;;  %5856 = vrsqrt.f32 %v4629_v21  ;;  %v4567_v33 = vmul.f32 0.0625, %v4405_v3  ;;  %v12037_v3 = vld [vmem:[#allocation46_spill] sm:$0xff]  ;;  %v12038_v63 = vld [vmem:[#allocation47_spill] sm:$0xff] }
 0x523   :  { %v5843_v45 = vpop.eup %5842  ;;  %5180 = vst.msk [vmem:[%s11315_s4 + $0x50] sm:$0xff] %vm263_vm0, %v4941_v10  ;;  %v4879_v17 = vmul.f32 %v10604_v52, %v4815_v30  ;;  %5858 = vrsqrt.f32 %v4630_v43  ;;  %v4568_v55 = vmul.f32 0.0625, %v4408_v5  ;;  %v4217_v25 = vadd.f32 1e-05, %v4153_v47 }
 0x524   :  { %v5845_v32 = vpop.eup %5844  ;;  %5181 = vst.msk [vmem:[%s11315_s4 + $0x58] sm:$0xff] %vm263_vm0, %v4942_v28  ;;  %v4880_v14 = vmul.f32 %v10604_v52, %v4816_v7  ;;  %v4753_v50 = vsel %vm86_vm1, %v5843_v45, %v10495_v57  ;;  %v4631_v1 = vadd.f32 1e-05, %v4567_v33  ;;  %v4411_v23 = vpop.xlane.xlu0 %4410 }
 0x525   :  { %v4414_v27 = vpop.xlane.xlu1 %4413  ;;  %v10688_v59 = vpop.eup %5846  ;;  %v4943_v21 = vadd.f32 %v10616_v62, %v4879_v17  ;;  %v4817_v47 = vmul.f32 %v4753_v50, %v12037_v3  ;;  %v4754_v5 = vsel %vm86_vm1, %v5845_v32, %v10498_v6  ;;  %v4632_v10 = vadd.f32 1e-05, %v4568_v55 }
 0x526   :  { %v10695_v9 = vpop.eup %5848  ;;  %v4944_v30 = vadd.f32 %v10616_v62, %v4880_v14  ;;  %v4818_v57 = vmul.f32 %v4754_v5, %v12038_v63  ;;  %5860 = vrsqrt.f32 %v4631_v1  ;;  %v4569_v43 = vmul.f32 0.0625, %v4411_v23 }
 0x527   :  { %5182 = vst.msk [vmem:[%s11315_s4 + $0x70] sm:$0xff] %vm263_vm0, %v4943_v21  ;;  %v4881_v28 = vmul.f32 %v10604_v52, %v4817_v47  ;;  %5862 = vrsqrt.f32 %v4632_v10  ;;  %v4570_v41 = vmul.f32 0.0625, %v4414_v27  ;;  %v4218_v6 = vadd.f32 1e-05, %v4154_v60  ;;  %v12039_v27 = vld [vmem:[#allocation48_spill] sm:$0xff]  ;;  %v12040_v47 = vld [vmem:[#allocation49_spill] sm:$0xff] }
 0x528   :  { %v5851_v7 = vpop.eup %5850  ;;  %5864 = vrsqrt.f32 %v4217_v25  ;;  %5183 = vst.msk [vmem:[%s11315_s4 + $0x78] sm:$0xff] %vm263_vm0, %v4944_v30  ;;  %v4882_v33 = vmul.f32 %v10604_v52, %v4818_v57  ;;  %v4633_v45 = vadd.f32 1e-05, %v4569_v43  ;;  %v4417_v17 = vpop.xlane.xlu0 %4416  ;;  %v4155_v63 = vmul.f32 0.0625, %v10434_v48 }
 0x529   :  { %v4420_v55 = vpop.xlane.xlu1 %4419  ;;  %v5853_v32 = vpop.eup %5852  ;;  %v4945_v14 = vadd.f32 %v10616_v62, %v4881_v28  ;;  %v4755_v50 = vsel %vm86_vm1, %v5851_v7, %v10501_v39  ;;  %v4634_v1 = vadd.f32 1e-05, %v4570_v41  ;;  %v4571_v25 = vmul.f32 0.0625, %v4417_v17 }
 0x52a   :  { %v10713_v60 = vpop.eup %5854  ;;  %v4946_v23 = vadd.f32 %v10616_v62, %v4882_v33  ;;  %v4819_v21 = vmul.f32 %v4755_v50, %v12039_v27  ;;  %v4756_v3 = vsel %vm86_vm1, %v5853_v32, %v10504_v8  ;;  %5866 = vrsqrt.f32 %v4633_v45  ;;  %v12041_v33 = vld [vmem:[#allocation53_spill] sm:$0xff] }
 0x52b   :  { %5184 = vst.msk [vmem:[%s11315_s4 + $0x90] sm:$0xff] %vm263_vm0, %v4945_v14  ;;  %v4820_v39 = vmul.f32 %v4756_v3, %v12040_v47  ;;  %5868 = vrsqrt.f32 %v4634_v1  ;;  %v4635_v5 = vadd.f32 1e-05, %v4571_v25  ;;  %v4572_v10 = vmul.f32 0.0625, %v4420_v55  ;;  %v12042_v14 = vld [vmem:[#allocation24_spill] sm:$0xff] }
 0x52c   :  { %v5857_v30 = vpop.eup %5856  ;;  %5870 = vrsqrt.f32 %v4218_v6  ;;  %v4156_v57 = vmul.f32 0.0625, %v10436_v37  ;;  %5185 = vst.msk [vmem:[%s11315_s4 + $0x98] sm:$0xff] %vm263_vm0, %v4946_v23  ;;  %v4883_v8 = vmul.f32 %v10604_v52, %v4819_v21  ;;  %v4423_v43 = vpop.xlane.xlu0 %4422  ;;  %v4219_v23 = vadd.f32 1e-05, %v4155_v63 }
 0x52d   :  { %v4426_v28 = vpop.xlane.xlu1 %4425  ;;  %v5859_v41 = vpop.eup %5858  ;;  %v4884_v7 = vmul.f32 %v10604_v52, %v4820_v39  ;;  %v4757_v6 = vsel %vm86_vm1, %v5857_v30, %v10511_v20  ;;  %5872 = vrsqrt.f32 %v4635_v5  ;;  %v4636_v48 = vadd.f32 1e-05, %v4572_v10 }
 0x52e   :  { %v4947_v37 = vadd.f32 %v10616_v62, %v4883_v8  ;;  %v4821_v45 = vmul.f32 %v4757_v6, %v12041_v33  ;;  %v4758_v17 = vsel %vm86_vm1, %v5859_v41, %v10514_v24  ;;  %v4573_v55 = vmul.f32 0.0625, %v4423_v43  ;;  %v12043_v8 = vld [vmem:[#allocation51_spill] sm:$0xff] }
 0x52f   :  { %v4948_v32 = vadd.f32 %v10616_v62, %v4884_v7  ;;  %v4822_v50 = vmul.f32 %v4758_v17, %v12042_v14  ;;  %5874 = vrsqrt.f32 %v4636_v48  ;;  %v4574_v1 = vmul.f32 0.0625, %v4426_v28  ;;  %v12044_v7 = vld [vmem:[#allocation58_spill] sm:$0xff] }
 0x530   :  { %v5861_v25 = vpop.eup %5860  ;;  %v10743_v20 = vadd.f32 1e-05, %v4156_v57  ;;  %5186 = vst.msk [vmem:[%s11315_s4 + $0xb0] sm:$0xff] %vm263_vm0, %v4947_v37  ;;  %v4885_v27 = vmul.f32 %v10604_v52, %v4821_v45  ;;  %v4637_v21 = vadd.f32 1e-05, %v4573_v55  ;;  %v4429_v24 = vpop.xlane.xlu0 %4428  ;;  %v4157_v37 = vmul.f32 0.0625, %v10449_v36 }
 0x531   :  { %v4432_v3 = vpop.xlane.xlu1 %4431  ;;  %v5863_v47 = vpop.eup %5862  ;;  %5187 = vst.msk [vmem:[%s11315_s4 + $0xb8] sm:$0xff] %vm263_vm0, %v4948_v32  ;;  %v4886_v39 = vmul.f32 %v10604_v52, %v4822_v50  ;;  %v4759_v5 = vsel %vm86_vm1, %v5861_v25, %v10517_v31  ;;  %v4638_v10 = vadd.f32 1e-05, %v4574_v1  ;;  %v4575_v30 = vmul.f32 0.0625, %v4429_v24  ;;  %v12045_v25 = vld [vmem:[#allocation60_spill] sm:$0xff] }
 0x532   :  { %v10758_v63 = vpop.eup %5864  ;;  %v4949_v57 = vadd.f32 %v10616_v62, %v4885_v27  ;;  %v4823_v43 = vmul.f32 %v4759_v5, %v12043_v8  ;;  %v4760_v28 = vsel %vm86_vm1, %v5863_v47, %v10520_v13  ;;  %5876 = vrsqrt.f32 %v4637_v21  ;;  %v12046_v47 = vld [vmem:[#allocation50_spill] sm:$0xff] }
 0x533   :  { %v4950_v41 = vadd.f32 %v10616_v62, %v4886_v39  ;;  %v4824_v6 = vmul.f32 %v4760_v28, %v12044_v7  ;;  %5878 = vrsqrt.f32 %v4638_v10  ;;  %v4639_v48 = vadd.f32 1e-05, %v4575_v30  ;;  %v12047_v28 = vld [vmem:[#allocation26_spill] sm:$0xff] }
 0x534   :  { %v5867_v31 = vpop.eup %5866  ;;  %5880 = vrsqrt.f32 %v4219_v23  ;;  %5188 = vst.msk [vmem:[%s11315_s4 + $0xd0] sm:$0xff] %vm263_vm0, %v4949_v57  ;;  %v4887_v33 = vmul.f32 %v10604_v52, %v4823_v43  ;;  %v4576_v45 = vmul.f32 0.0625, %v4432_v3  ;;  %v4435_v13 = vpop.xlane.xlu0 %4434  ;;  %v4158_v10 = vmul.f32 0.0625, %v10451_v18 }
 0x535   :  { %v4438_v17 = vpop.xlane.xlu1 %4437  ;;  %v5869_v55 = vpop.eup %5868  ;;  %5189 = vst.msk [vmem:[%s11315_s4 + $0xd8] sm:$0xff] %vm263_vm0, %v4950_v41  ;;  %v4888_v32 = vmul.f32 %v10604_v52, %v4824_v6  ;;  %v4761_v36 = vsel %vm86_vm1, %v5867_v31, %v10527_v26  ;;  %5882 = vrsqrt.f32 %v4639_v48  ;;  %v4577_v14 = vmul.f32 0.0625, %v4435_v13  ;;  %v12048_v13 = vld [vmem:[#allocation28_spill] sm:$0xff] }
 0x536   :  { %v10781_v50 = vpop.eup %5870  ;;  %v4951_v1 = vadd.f32 %v10616_v62, %v4887_v33  ;;  %v4825_v23 = vmul.f32 %v4761_v36, %v12045_v25  ;;  %v4762_v27 = vsel %vm86_vm1, %v5869_v55, %v10530_v53  ;;  %v4640_v21 = vadd.f32 1e-05, %v4576_v45 }
 0x537   :  { %v5873_v24 = vpop.eup %5872  ;;  %v4952_v3 = vadd.f32 %v10616_v62, %v4888_v32  ;;  %v4826_v39 = vmul.f32 %v4762_v27, %v12046_v47  ;;  %v4641_v5 = vadd.f32 1e-05, %v4577_v14  ;;  %v4578_v26 = vmul.f32 0.0625, %v4438_v17 }
 0x538   :  { %5190 = vst.msk [vmem:[%s11315_s4 + $0xf0] sm:$0xff] %vm263_vm0, %v4951_v1  ;;  %v4889_v30 = vmul.f32 %v10604_v52, %v4825_v23  ;;  %v4763_v53 = vsel %vm86_vm1, %v5873_v24, %v10533_v51  ;;  %5884 = vrsqrt.f32 %v4640_v21  ;;  %v4441_v57 = vpop.xlane.xlu0 %4440  ;;  %v4221_v32 = vadd.f32 1e-05, %v4157_v37  ;;  %v12049_v24 = vld [vmem:[#allocation25_spill] sm:$0xff] }
 0x539   :  { %v4444_v8 = vpop.xlane.xlu1 %4443  ;;  %v5875_v43 = vpop.eup %5874  ;;  %5191 = vst.msk [vmem:[%s11315_s4 + $0xf8] sm:$0xff] %vm263_vm0, %v4952_v3  ;;  %v4890_v18 = vmul.f32 %v10604_v52, %v4826_v39  ;;  %v4827_v41 = vmul.f32 %v4763_v53, %v12047_v28  ;;  %5886 = vrsqrt.f32 %v4641_v5  ;;  %v4642_v7 = vadd.f32 1e-05, %v4578_v26 }
 0x53a   :  { %v4953_v6 = vadd.f32 %v10616_v62, %v4889_v30  ;;  %v4764_v51 = vsel %vm86_vm1, %v5875_v43, %v10536_v46  ;;  %v4579_v48 = vmul.f32 0.0625, %v4441_v57  ;;  %v4580_v31 = vmul.f32 0.0625, %v4444_v8 }
 0x53b   :  { %v4954_v33 = vadd.f32 %v10616_v62, %v4890_v18  ;;  %v4891_v45 = vmul.f32 %v10604_v52, %v4827_v41  ;;  %v4828_v17 = vmul.f32 %v4764_v51, %v12048_v13  ;;  %5888 = vrsqrt.f32 %v4642_v7  ;;  %v12051_v41 = vld [vmem:[#allocation52_spill] sm:$0xff] }
 0x53c   :  { %v5877_v55 = vpop.eup %5876  ;;  %5890 = vrsqrt.f32 %v10743_v20  ;;  %5192 = vst.msk [vmem:[%s11315_s4 + $0x110] sm:$0xff] %vm263_vm0, %v4953_v6  ;;  %v4643_v36 = vadd.f32 1e-05, %v4579_v48  ;;  %v4644_v46 = vadd.f32 1e-05, %v4580_v31  ;;  %v4447_v14 = vpop.xlane.xlu0 %4446 }
 0x53d   :  { %v4450_v1 = vpop.xlane.xlu1 %4449  ;;  %v5879_v25 = vpop.eup %5878  ;;  %5193 = vst.msk [vmem:[%s11315_s4 + $0x118] sm:$0xff] %vm263_vm0, %v4954_v33  ;;  %v4955_v23 = vadd.f32 %v10616_v62, %v4891_v45  ;;  %v4892_v20 = vmul.f32 %v10604_v52, %v4828_v17  ;;  %v4765_v37 = vsel %vm86_vm1, %v5877_v55, %v10543_v19  ;;  %v4581_v27 = vmul.f32 0.0625, %v4447_v14  ;;  %v12050_v19 = vld [vmem:[#allocation27_spill] sm:$0xff] }
 0x53e   :  { %v10826_v21 = vpop.eup %5880  ;;  %v4829_v3 = vmul.f32 %v4765_v37, %v12049_v24  ;;  %v4766_v47 = vsel %vm86_vm1, %v5879_v25, %v10545_v38  ;;  %5892 = vrsqrt.f32 %v4643_v36  ;;  %v4582_v39 = vmul.f32 0.0625, %v4450_v1 }
 0x53f   :  { %v5883_v5 = vpop.eup %5882  ;;  %5194 = vst.msk [vmem:[%s11315_s4 + $0x130] sm:$0xff] %vm263_vm0, %v4955_v23  ;;  %v4956_v26 = vadd.f32 %v10616_v62, %v4892_v20  ;;  %v4830_v30 = vmul.f32 %v4766_v47, %v12050_v19  ;;  %5894 = vrsqrt.f32 %v4644_v46  ;;  %v4645_v53 = vadd.f32 1e-05, %v4581_v27 }
 0x540   :  { %5896 = vrsqrt.f32 %v4221_v32  ;;  %v4893_v57 = vmul.f32 %v10604_v52, %v4829_v3  ;;  %v4767_v38 = vsel %vm86_vm1, %v5883_v5, %v10548_v54  ;;  %v4646_v8 = vadd.f32 1e-05, %v4582_v39  ;;  %v4453_v43 = vpop.xlane.xlu0 %4452  ;;  %v12054_v5 = vld [vmem:[#allocation54_spill] sm:$0xff] }
 0x541   :  { %v4456_v18 = vpop.xlane.xlu1 %4455  ;;  %5195 = vst.msk [vmem:[%s11315_s4 + $0x138] sm:$0xff] %vm263_vm0, %v4956_v26  ;;  %v4894_v28 = vmul.f32 %v10604_v52, %v4830_v30  ;;  %v4831_v7 = vmul.f32 %v4767_v38, %v12051_v41  ;;  %5898 = vrsqrt.f32 %v4645_v53  ;;  %v4583_v6 = vmul.f32 0.0625, %v4453_v43 }
 0x542   :  { %v5885_v51 = vpop.eup %5884  ;;  %v4222_v48 = vadd.f32 1e-05, %v4158_v10  ;;  %v4957_v31 = vadd.f32 %v10616_v62, %v4893_v57  ;;  %5900 = vrsqrt.f32 %v4646_v8  ;;  %v4584_v54 = vmul.f32 0.0625, %v4456_v18  ;;  %v12052_v10 = vld [vmem:[#allocation55_spill] sm:$0xff] }
 0x543   :  { %v5887_v33 = vpop.eup %5886  ;;  %v4958_v45 = vadd.f32 %v10616_v62, %v4894_v28  ;;  %v4895_v13 = vmul.f32 %v10604_v52, %v4831_v7  ;;  %v4768_v17 = vsel %vm86_vm1, %v5885_v51, %v10550_v61  ;;  %v4647_v55 = vadd.f32 1e-05, %v4583_v6  ;;  %v12053_v61 = vld [vmem:[#allocation57_spill] sm:$0xff]  ;;  %v12055_v7 = vld [vmem:[#allocation56_spill] sm:$0xff] }
 0x544   :  { %v4159_v32 = vmul.f32 0.0625, %v10473_v44  ;;  %5196 = vst.msk [vmem:[%s11315_s4 + $0x150] sm:$0xff] %vm263_vm0, %v4957_v31  ;;  %v4832_v36 = vmul.f32 %v4768_v17, %v12052_v10  ;;  %v4769_v46 = vsel %vm86_vm1, %v5887_v33, %v10553_v12  ;;  %v4648_v14 = vadd.f32 1e-05, %v4584_v54  ;;  %v4459_v1 = vpop.xlane.xlu0 %4458  ;;  %v12056_v33 = vld [vmem:[#allocation63_spill] sm:$0xff] }
 0x545   :  { %v4462_v25 = vpop.xlane.xlu1 %4461  ;;  %v5889_v23 = vpop.eup %5888  ;;  %5197 = vst.msk [vmem:[%s11315_s4 + $0x158] sm:$0xff] %vm263_vm0, %v4958_v45  ;;  %v4959_v44 = vadd.f32 %v10616_v62, %v4895_v13  ;;  %v4833_v20 = vmul.f32 %v4769_v46, %v12053_v61  ;;  %5902 = vrsqrt.f32 %v4647_v55  ;;  %v4585_v37 = vmul.f32 0.0625, %v4459_v1 }
 0x546   :  { %v10869_v27 = vpop.eup %5890  ;;  %v4896_v24 = vmul.f32 %v10604_v52, %v4832_v36  ;;  %v4770_v12 = vsel %vm86_vm1, %v5889_v23, %v10555_v22  ;;  %5904 = vrsqrt.f32 %v4648_v14  ;;  %v4586_v3 = vmul.f32 0.0625, %v4462_v25  ;;  %v12057_v14 = vld [vmem:[#allocation65_spill] sm:$0xff] }
 0x547   :  { %v4160_v47 = vmul.f32 0.0625, %v10475_v4  ;;  %5198 = vst.msk [vmem:[%s11315_s4 + $0x170] sm:$0xff] %vm263_vm0, %v4959_v44  ;;  %v4897_v39 = vmul.f32 %v10604_v52, %v4833_v20  ;;  %v4834_v26 = vmul.f32 %v4770_v12, %v12054_v5  ;;  %v4649_v19 = vadd.f32 1e-05, %v4585_v37 }
 0x548   :  { %v5893_v30 = vpop.eup %5892  ;;  %5906 = vrsqrt.f32 %v4222_v48  ;;  %v4223_v53 = vadd.f32 1e-05, %v4159_v32  ;;  %v4960_v57 = vadd.f32 %v10616_v62, %v4896_v24  ;;  %v4650_v22 = vadd.f32 1e-05, %v4586_v3  ;;  %v4465_v38 = vpop.xlane.xlu0 %4464 }
 0x549   :  { %v4468_v8 = vpop.xlane.xlu1 %4467  ;;  %v5895_v43 = vpop.eup %5894  ;;  %v4961_v4 = vadd.f32 %v10616_v62, %v4897_v39  ;;  %v4898_v18 = vmul.f32 %v10604_v52, %v4834_v26  ;;  %v4771_v28 = vsel %vm86_vm1, %v5893_v30, %v10557_v56  ;;  %5908 = vrsqrt.f32 %v4649_v19 }
 0x54a   :  { %v10888_v41 = vpop.eup %5896  ;;  %5199 = vst.msk [vmem:[%s11315_s4 + $0x178] sm:$0xff] %vm263_vm0, %v4960_v57  ;;  %v4835_v6 = vmul.f32 %v4771_v28, %v12055_v7  ;;  %v4772_v51 = vsel %vm86_vm1, %v5895_v43, %v10560_v2  ;;  %5910 = vrsqrt.f32 %v4650_v22  ;;  %v4587_v48 = vmul.f32 0.0625, %v4465_v38  ;;  %v12060_v43 = vld [vmem:[#allocation69_spill] sm:$0xff] }
 0x54b   :  { %v5899_v31 = vpop.eup %5898  ;;  %v4224_v54 = vadd.f32 1e-05, %v4160_v47  ;;  %5200 = vst.msk [vmem:[%s11315_s4 + $0x190] sm:$0xff] %vm263_vm0, %v4961_v4  ;;  %v4962_v56 = vadd.f32 %v10616_v62, %v4898_v18  ;;  %v4836_v45 = vmul.f32 %v4772_v51, %v12056_v33  ;;  %v4588_v13 = vmul.f32 0.0625, %v4468_v8 }
 0x54c   :  { %v5901_v17 = vpop.eup %5900  ;;  %5912 = vrsqrt.f32 %v4223_v53  ;;  %v4899_v55 = vmul.f32 %v10604_v52, %v4835_v6  ;;  %v4773_v2 = vsel %vm86_vm1, %v5899_v31, %v10563_v49  ;;  %v4651_v32 = vadd.f32 1e-05, %v4587_v48  ;;  %v4471_v10 = vpop.xlane.xlu0 %4470  ;;  %v12058_v49 = vld [vmem:[#allocation62_spill] sm:$0xff]  ;;  %v12059_v53 = vld [vmem:[#allocation67_spill] sm:$0xff]  ;;  %v12061_v31 = vld [vmem:[#allocation96_spill] sm:$0xff] }
 0x54d   :  { %v4474_v36 = vpop.xlane.xlu1 %4473  ;;  %5201 = vst.msk [vmem:[%s11315_s4 + $0x198] sm:$0xff] %vm263_vm0, %v4962_v56  ;;  %v4900_v46 = vmul.f32 %v10604_v52, %v4836_v45  ;;  %v4837_v1 = vmul.f32 %v4773_v2, %v12057_v14  ;;  %v4774_v25 = vsel %vm86_vm1, %v5901_v17, %v10565_v58  ;;  %v4652_v23 = vadd.f32 1e-05, %v4588_v13  ;;  %v12062_v17 = vld [vmem:[#allocation3_spill] sm:$0xff]  ;;  %v12063_v2 = vld [vmem:[#allocation14_spill] sm:$0xff] }
 0x54e   :  { %v4963_v44 = vadd.f32 %v10616_v62, %v4899_v55  ;;  %v4838_v61 = vmul.f32 %v4774_v25, %v12058_v49  ;;  %5914 = vrsqrt.f32 %v4651_v32  ;;  %v4589_v20 = vmul.f32 0.0625, %v4471_v10 }
 0x54f   :  { %v5903_v37 = vpop.eup %5902  ;;  %v4964_v24 = vadd.f32 %v10616_v62, %v4900_v46  ;;  %v4901_v12 = vmul.f32 %v10604_v52, %v4837_v1  ;;  %5916 = vrsqrt.f32 %v4652_v23  ;;  %v4590_v3 = vmul.f32 0.0625, %v4474_v36  ;;  %v12064_v46 = vld [vmem:[#allocation66_spill] sm:$0xff] }
 0x550   :  { %v5905_v47 = vpop.eup %5904  ;;  %v4161_v39 = vmul.f32 0.0625, %v10491_v34  ;;  %5202 = vst.msk [vmem:[%s11315_s4 + $0x1b0] sm:$0xff] %vm263_vm0, %v4963_v44  ;;  %v4902_v58 = vmul.f32 %v10604_v52, %v4838_v61  ;;  %v4775_v5 = vsel %vm86_vm1, %v5903_v37, %v10568_v15  ;;  %v4653_v26 = vadd.f32 1e-05, %v4589_v20  ;;  %v4477_v19 = vpop.xlane.xlu0 %4476 }
 0x551   :  { %v4480_v30 = vpop.xlane.xlu1 %4479  ;;  %5203 = vst.msk [vmem:[%s11315_s4 + $0x1b8] sm:$0xff] %vm263_vm0, %v4964_v24  ;;  %v4965_v34 = vadd.f32 %v10616_v62, %v4901_v12  ;;  %v4839_v57 = vmul.f32 %v4775_v5, %v12059_v53  ;;  %v4776_v22 = vsel %vm86_vm1, %v5905_v47, %v10570_v42  ;;  %v4654_v38 = vadd.f32 1e-05, %v4590_v3  ;;  %v12067_v53 = vld [vmem:[#allocation93_spill] sm:$0xff] }
 0x552   :  { %v10939_v8 = vpop.eup %5906  ;;  %v4966_v15 = vadd.f32 %v10616_v62, %v4902_v58  ;;  %v4840_v4 = vmul.f32 %v4776_v22, %v12060_v43  ;;  %5918 = vrsqrt.f32 %v4653_v26  ;;  %v4591_v18 = vmul.f32 0.0625, %v4477_v19  ;;  %v12065_v58 = vld [vmem:[#allocation16_spill] sm:$0xff]  ;;  %v12068_v22 = vld [vmem:[#allocation2_spill] sm:$0xff] }
 0x553   :  { %v5909_v28 = vpop.eup %5908  ;;  %v4162_v7 = vmul.f32 0.0625, %v10493_v40  ;;  %5204 = vst.msk [vmem:[%s11315_s4 + $0x1d0] sm:$0xff] %vm263_vm0, %v4965_v34  ;;  %v4903_v6 = vmul.f32 %v10604_v52, %v4839_v57  ;;  %5920 = vrsqrt.f32 %v4654_v38  ;;  %v4592_v42 = vmul.f32 0.0625, %v4480_v30  ;;  %v12066_v30 = vld [vmem:[#allocation68_spill] sm:$0xff] }
 0x554   :  { %v5911_v51 = vpop.eup %5910  ;;  %5922 = vrsqrt.f32 %v4224_v54  ;;  %5205 = vst.msk [vmem:[%s11315_s4 + $0x1d8] sm:$0xff] %vm263_vm0, %v4966_v15  ;;  %v4904_v48 = vmul.f32 %v10604_v52, %v4840_v4  ;;  %v4777_v40 = vsel %vm86_vm1, %v5909_v28, %v12061_v31  ;;  %v4655_v56 = vadd.f32 1e-05, %v4591_v18  ;;  %v4483_v33 = vpop.xlane.xlu0 %4482  ;;  %v12069_v18 = vld [vmem:[#allocation12_spill] sm:$0xff] }
 0x555   :  { %v4486_v45 = vpop.xlane.xlu1 %4485  ;;  %v4967_v13 = vadd.f32 %v10616_v62, %v4903_v6  ;;  %v4841_v55 = vmul.f32 %v4777_v40, %v12062_v17  ;;  %v4778_v54 = vsel %vm86_vm1, %v5911_v51, %v12063_v2  ;;  %v4656_v32 = vadd.f32 1e-05, %v4592_v42 }
 0x556   :  { %v10962_v10 = vpop.eup %5912  ;;  %v4968_v36 = vadd.f32 %v10616_v62, %v4904_v48  ;;  %v4842_v14 = vmul.f32 %v4778_v54, %v12064_v46  ;;  %5924 = vrsqrt.f32 %v4655_v56  ;;  %v4593_v1 = vmul.f32 0.0625, %v4483_v33  ;;  %v12071_v56 = vld [vmem:[#allocation95_spill] sm:$0xff]  ;;  %v12073_v54 = vld [vmem:[#allocation17_spill] sm:$0xff] }
 0x557   :  { %5206 = vst.msk [vmem:[%s11315_s4 + $0x1f0] sm:$0xff] %vm263_vm0, %v4967_v13  ;;  %v4905_v25 = vmul.f32 %v10604_v52, %v4841_v55  ;;  %5926 = vrsqrt.f32 %v4656_v32  ;;  %v4594_v23 = vmul.f32 0.0625, %v4486_v45  ;;  %v4225_v49 = vadd.f32 1e-05, %v4161_v39  ;;  %v12072_v55 = vld [vmem:[#allocation30_spill] sm:$0xff] }
 0x558   :  { %v5915_v44 = vpop.eup %5914  ;;  %v4226_v61 = vadd.f32 1e-05, %v4162_v7  ;;  %5207 = vst.msk [vmem:[%s11315_s4 + $0x1f8] sm:$0xff] %vm263_vm0, %v4968_v36  ;;  %v4906_v20 = vmul.f32 %v10604_v52, %v4842_v14  ;;  %v4657_v37 = vadd.f32 1e-05, %v4593_v1  ;;  %v4489_v24 = vpop.xlane.xlu0 %4488  ;;  %v4163_v28 = vmul.f32 0.0625, %v12069_v18 }
 0x559   :  { %v4492_v12 = vpop.xlane.xlu1 %4491  ;;  %v5917_v3 = vpop.eup %5916  ;;  %v4969_v47 = vadd.f32 %v10616_v62, %v4905_v25  ;;  %v4779_v5 = vsel %vm86_vm1, %v5915_v44, %v12065_v58  ;;  %v4658_v26 = vadd.f32 1e-05, %v4594_v23  ;;  %v4595_v39 = vmul.f32 0.0625, %v4489_v24  ;;  %v12070_v7 = vld [vmem:[#allocation89_spill] sm:$0xff]  ;;  %v12074_v14 = vld [vmem:[#allocation71_spill] sm:$0xff] }
 0x55a   :  { %v4970_v19 = vadd.f32 %v10616_v62, %v4906_v20  ;;  %v4843_v34 = vmul.f32 %v4779_v5, %v12066_v30  ;;  %v4780_v57 = vsel %vm86_vm1, %v5917_v3, %v12067_v53  ;;  %5928 = vrsqrt.f32 %v4657_v37  ;;  %v12077_v30 = vld [vmem:[#allocation98_spill] sm:$0xff] }
 0x55b   :  { %5208 = vst.msk [vmem:[%s11315_s4 + $0x210] sm:$0xff] %vm263_vm0, %v4969_v47  ;;  %v4844_v38 = vmul.f32 %v4780_v57, %v12068_v22  ;;  %5930 = vrsqrt.f32 %v4658_v26  ;;  %v4659_v15 = vadd.f32 1e-05, %v4595_v39  ;;  %v4596_v43 = vmul.f32 0.0625, %v4492_v12  ;;  %v12076_v39 = vld [vmem:[#allocation59_spill] sm:$0xff]  ;;  %v12078_v57 = vld [vmem:[#allocation29_spill] sm:$0xff] }
 0x55c   :  { %v5919_v4 = vpop.eup %5918  ;;  %5932 = vrsqrt.f32 %v4225_v49  ;;  %v4164_v6 = vmul.f32 0.0625, %v12070_v7  ;;  %5209 = vst.msk [vmem:[%s11315_s4 + $0x218] sm:$0xff] %vm263_vm0, %v4970_v19  ;;  %v4907_v42 = vmul.f32 %v10604_v52, %v4843_v34  ;;  %v4495_v51 = vpop.xlane.xlu0 %4494  ;;  %v4227_v44 = vadd.f32 1e-05, %v4163_v28 }
 0x55d   :  { %v4498_v48 = vpop.xlane.xlu1 %4497  ;;  %v5921_v31 = vpop.eup %5920  ;;  %v4908_v40 = vmul.f32 %v10604_v52, %v4844_v38  ;;  %v4781_v33 = vsel %vm86_vm1, %v5919_v4, %v12071_v56  ;;  %5934 = vrsqrt.f32 %v4659_v15  ;;  %v4660_v45 = vadd.f32 1e-05, %v4596_v43 }
 0x55e   :  { %v11001_v13 = vpop.eup %5922  ;;  %v4971_v17 = vadd.f32 %v10616_v62, %v4907_v42  ;;  %v4845_v2 = vmul.f32 %v4781_v33, %v12072_v55  ;;  %v4782_v32 = vsel %vm86_vm1, %v5921_v31, %v12073_v54  ;;  %v4597_v36 = vmul.f32 0.0625, %v4495_v51  ;;  %v12080_v33 = vld [vmem:[#allocation61_spill] sm:$0xff] }
 0x55f   :  { %v4972_v46 = vadd.f32 %v10616_v62, %v4908_v40  ;;  %v4846_v1 = vmul.f32 %v4782_v32, %v12074_v14  ;;  %5936 = vrsqrt.f32 %v4660_v45  ;;  %v4598_v25 = vmul.f32 0.0625, %v4498_v48  ;;  %v12079_v48 = vld [vmem:[#allocation100_spill] sm:$0xff] }
 0x560   :  { %v5925_v23 = vpop.eup %5924  ;;  %5938 = vrsqrt.f32 %v4226_v61  ;;  %5210 = vst.msk [vmem:[%s11315_s4 + $0x230] sm:$0xff] %vm263_vm0, %v4971_v17  ;;  %v4909_v49 = vmul.f32 %v10604_v52, %v4845_v2  ;;  %v4661_v20 = vadd.f32 1e-05, %v4597_v36  ;;  %v4501_v37 = vpop.xlane.xlu0 %4500  ;;  %v12075_v61 = vld [vmem:[#allocation19_spill] sm:$0xff]  ;;  %v4228_v43 = vadd.f32 1e-05, %v4164_v6 }
 0x561   :  { %v4504_v24 = vpop.xlane.xlu1 %4503  ;;  %v5927_v12 = vpop.eup %5926  ;;  %5211 = vst.msk [vmem:[%s11315_s4 + $0x238] sm:$0xff] %vm263_vm0, %v4972_v46  ;;  %v4910_v3 = vmul.f32 %v10604_v52, %v4846_v1  ;;  %v4783_v47 = vsel %vm86_vm1, %v5925_v23, %v12075_v61  ;;  %v4662_v58 = vadd.f32 1e-05, %v4598_v25  ;;  %v4599_v5 = vmul.f32 0.0625, %v4501_v37  ;;  %v12081_v32 = vld [vmem:[#allocation32_spill] sm:$0xff]  ;;  %v12082_v1 = vld [vmem:[#allocation91_spill] sm:$0xff] }
 0x562   :  { %v4973_v26 = vadd.f32 %v10616_v62, %v4909_v49  ;;  %v4847_v19 = vmul.f32 %v4783_v47, %v12076_v39  ;;  %v4784_v34 = vsel %vm86_vm1, %v5927_v12, %v12077_v30  ;;  %5940 = vrsqrt.f32 %v4661_v20 }
 0x563   :  { %v4974_v53 = vadd.f32 %v10616_v62, %v4910_v3  ;;  %v4848_v22 = vmul.f32 %v4784_v34, %v12078_v57  ;;  %5942 = vrsqrt.f32 %v4662_v58  ;;  %v4663_v38 = vadd.f32 1e-05, %v4599_v5 }
 0x564   :  { %v5929_v15 = vpop.eup %5928  ;;  %5944 = vrsqrt.f32 %v4227_v44  ;;  %5212 = vst.msk [vmem:[%s11315_s4 + $0x250] sm:$0xff] %vm263_vm0, %v4973_v26  ;;  %v4911_v4 = vmul.f32 %v10604_v52, %v4847_v19  ;;  %v4600_v18 = vmul.f32 0.0625, %v4504_v24  ;;  %v4507_v28 = vpop.xlane.xlu0 %4506  ;;  %v4165_v25 = vmul.f32 0.0625, %v12082_v1  ;;  %v12083_v24 = vld [vmem:[#allocation4_spill] sm:$0xff]  ;;  %v12084_v19 = vld [vmem:[#allocation31_spill] sm:$0xff] }
 0x565   :  { %v4510_v7 = vpop.xlane.xlu1 %4509  ;;  %v5931_v42 = vpop.eup %5930  ;;  %5213 = vst.msk [vmem:[%s11315_s4 + $0x258] sm:$0xff] %vm263_vm0, %v4974_v53  ;;  %v4912_v51 = vmul.f32 %v10604_v52, %v4848_v22  ;;  %v4785_v6 = vsel %vm86_vm1, %v5929_v15, %v12079_v48  ;;  %5946 = vrsqrt.f32 %v4663_v38  ;;  %v4601_v31 = vmul.f32 0.0625, %v4507_v28  ;;  %v12085_v53 = vld [vmem:[#allocation13_spill] sm:$0xff] }
 0x566   :  { %v11043_v40 = vpop.eup %5932  ;;  %v4975_v56 = vadd.f32 %v10616_v62, %v4911_v4  ;;  %v4849_v45 = vmul.f32 %v4785_v6, %v12080_v33  ;;  %v4786_v17 = vsel %vm86_vm1, %v5931_v42, %v10623_v29  ;;  %v4664_v55 = vadd.f32 1e-05, %v4600_v18 }
 0x567   :  { %v5935_v2 = vpop.eup %5934  ;;  %v4976_v54 = vadd.f32 %v10616_v62, %v4912_v51  ;;  %v4850_v36 = vmul.f32 %v4786_v17, %v12081_v32  ;;  %v4665_v46 = vadd.f32 1e-05, %v4601_v31  ;;  %v4602_v14 = vmul.f32 0.0625, %v4510_v7  ;;  %v12086_v51 = vld [vmem:[#allocation72_spill] sm:$0xff] }
 0x568   :  { %5214 = vst.msk [vmem:[%s11315_s4 + $0x270] sm:$0xff] %vm263_vm0, %v4975_v56  ;;  %v4913_v23 = vmul.f32 %v10604_v52, %v4849_v45  ;;  %v4787_v29 = vsel %vm86_vm1, %v5935_v2, %v10640_v11  ;;  %5948 = vrsqrt.f32 %v4664_v55  ;;  %v4513_v44 = vpop.xlane.xlu0 %4512  ;;  %v4166_v57 = vmul.f32 0.0625, %v12085_v53 }
 0x569   :  { %v4516_v49 = vpop.xlane.xlu1 %4515  ;;  %v5937_v20 = vpop.eup %5936  ;;  %5215 = vst.msk [vmem:[%s11315_s4 + $0x278] sm:$0xff] %vm263_vm0, %v4976_v54  ;;  %v4914_v37 = vmul.f32 %v10604_v52, %v4850_v36  ;;  %v4851_v12 = vmul.f32 %v4787_v29, %v12083_v24  ;;  %5950 = vrsqrt.f32 %v4665_v46  ;;  %v4666_v3 = vadd.f32 1e-05, %v4602_v14  ;;  %v12088_v14 = vld [vmem:[#allocation75_spill] sm:$0xff] }
 0x56a   :  { %v11067_v61 = vpop.eup %5938  ;;  %v4977_v47 = vadd.f32 %v10616_v62, %v4913_v23  ;;  %v4788_v11 = vsel %vm86_vm1, %v5937_v20, %v10647_v16  ;;  %v4603_v58 = vmul.f32 0.0625, %v4513_v44  ;;  %v4604_v5 = vmul.f32 0.0625, %v4516_v49 }
 0x56b   :  { %v4978_v26 = vadd.f32 %v10616_v62, %v4914_v37  ;;  %v4915_v39 = vmul.f32 %v10604_v52, %v4851_v12  ;;  %v4852_v30 = vmul.f32 %v4788_v11, %v12084_v19  ;;  %5952 = vrsqrt.f32 %v4666_v3  ;;  %v11117_v37 = vld [vmem:[%s11313_s2] ss:$0 sm:$0xff]  ;;  %v12089_v3 = vld [vmem:[#allocation23_spill] sm:$0xff]  ;;  %v12090_v19 = vld [vmem:[#allocation33_spill] sm:$0xff] }
 0x56c   :  { %v5941_v34 = vpop.eup %5940  ;;  %5954 = vrsqrt.f32 %v4228_v43  ;;  %5216 = vst.msk [vmem:[%s11315_s4 + $0x290] sm:$0xff] %vm263_vm0, %v4977_v47  ;;  %v4667_v22 = vadd.f32 1e-05, %v4603_v58  ;;  %v4668_v16 = vadd.f32 1e-05, %v4604_v5  ;;  %v4519_v38 = vpop.xlane.xlu0 %4518 }
 0x56d   :  { %v4522_v15 = vpop.xlane.xlu1 %4521  ;;  %v5943_v4 = vpop.eup %5942  ;;  %5217 = vst.msk [vmem:[%s11315_s4 + $0x298] sm:$0xff] %vm263_vm0, %v4978_v26  ;;  %v4979_v18 = vadd.f32 %v10616_v62, %v4915_v39  ;;  %v4916_v43 = vmul.f32 %v10604_v52, %v4852_v30  ;;  %v4789_v28 = vsel %vm86_vm1, %v5941_v34, %v10665_v0  ;;  %v4605_v7 = vmul.f32 0.0625, %v4519_v38  ;;  %v12087_v0 = vld [vmem:[#allocation34_spill] sm:$0xff] }
 0x56e   :  { %v11090_v42 = vpop.eup %5944  ;;  %v4853_v48 = vmul.f32 %v4789_v28, %v12086_v51  ;;  %v4790_v6 = vsel %vm86_vm1, %v5943_v4, %v10688_v59  ;;  %5956 = vrsqrt.f32 %v4667_v22  ;;  %v4606_v31 = vmul.f32 0.0625, %v4522_v15  ;;  %v12092_v4 = vld [vmem:[#allocation74_spill] sm:$0xff] }
 0x56f   :  { %v5947_v56 = vpop.eup %5946  ;;  %5218 = vst.msk [vmem:[%s11315_s4 + $0x2b0] sm:$0xff] %vm263_vm0, %v4979_v18  ;;  %v4980_v33 = vadd.f32 %v10616_v62, %v4916_v43  ;;  %v4854_v45 = vmul.f32 %v4790_v6, %v12087_v0  ;;  %5958 = vrsqrt.f32 %v4668_v16  ;;  %v4669_v17 = vadd.f32 1e-05, %v4605_v7  ;;  %v12091_v16 = vld [vmem:[#allocation15_spill] sm:$0xff]  ;;  %v12093_v7 = vld [vmem:[#allocation94_spill] sm:$0xff] }
 0x570   :  { %v4229_v55 = vadd.f32 1e-05, %v4165_v25  ;;  %v4917_v2 = vmul.f32 %v10604_v52, %v4853_v48  ;;  %v4791_v59 = vsel %vm86_vm1, %v5947_v56, %v10695_v9  ;;  %v4670_v54 = vadd.f32 1e-05, %v4606_v31  ;;  %v4525_v32 = vpop.xlane.xlu0 %4524 }
 0x571   :  { %v4528_v36 = vpop.xlane.xlu1 %4527  ;;  %5219 = vst.msk [vmem:[%s11315_s4 + $0x2b8] sm:$0xff] %vm263_vm0, %v4980_v33  ;;  %v4918_v46 = vmul.f32 %v10604_v52, %v4854_v45  ;;  %v4855_v1 = vmul.f32 %v4791_v59, %v12088_v14  ;;  %5960 = vrsqrt.f32 %v4669_v17  ;;  %v4607_v25 = vmul.f32 0.0625, %v4525_v32  ;;  %v12094_v17 = vld [vmem:[#allocation35_spill] sm:$0xff] }
 0x572   :  { %v5949_v23 = vpop.eup %5948  ;;  %v4230_v29 = vadd.f32 1e-05, %v4166_v57  ;;  %v4981_v44 = vadd.f32 %v10616_v62, %v4917_v2  ;;  %5962 = vrsqrt.f32 %v4670_v54  ;;  %v4608_v9 = vmul.f32 0.0625, %v4528_v36  ;;  %v12095_v36 = vld [vmem:[#allocation76_spill] sm:$0xff] }
 0x573   :  { %v5951_v49 = vpop.eup %5950  ;;  %v4982_v20 = vadd.f32 %v10616_v62, %v4918_v46  ;;  %v4919_v52 = vmul.f32 %v11117_v37, %v4855_v1  ;;  %v4792_v24 = vsel %vm86_vm1, %v5949_v23, %v10713_v60  ;;  %v4671_v12 = vadd.f32 1e-05, %v4607_v25  ;;  %v11138_v60 = vld [vmem:[%s11314_s3] ss:$0 sm:$0xff] }
 0x574   :  { %5964 = vrsqrt.f32 %v4229_v55  ;;  %5220 = vst.msk [vmem:[%s11315_s4 + $0x2d0] sm:$0xff] %vm263_vm0, %v4981_v44  ;;  %v4856_v62 = vmul.f32 %v4792_v24, %v12089_v3  ;;  %v4793_v47 = vsel %vm86_vm1, %v5951_v49, %v10758_v63  ;;  %v4672_v11 = vadd.f32 1e-05, %v4608_v9  ;;  %v4531_v58 = vpop.xlane.xlu0 %4530 }
 0x575   :  { %v4534_v5 = vpop.xlane.xlu1 %4533  ;;  %v5953_v26 = vpop.eup %5952  ;;  %5221 = vst.msk [vmem:[%s11315_s4 + $0x2d8] sm:$0xff] %vm263_vm0, %v4982_v20  ;;  %v4983_v39 = vadd.f32 %v11138_v60, %v4919_v52  ;;  %v4857_v30 = vmul.f32 %v4793_v47, %v12090_v19  ;;  %5966 = vrsqrt.f32 %v4671_v12  ;;  %v4609_v63 = vmul.f32 0.0625, %v4531_v58  ;;  %v12096_v20 = vld [vmem:[#allocation37_spill] sm:$0xff] }
 0x576   :  { %v11142_v34 = vpop.eup %5954  ;;  %v4920_v53 = vmul.f32 %v11117_v37, %v4856_v62  ;;  %v4794_v57 = vsel %vm86_vm1, %v5953_v26, %v10781_v50  ;;  %5968 = vrsqrt.f32 %v4672_v11  ;;  %v4610_v22 = vmul.f32 0.0625, %v4534_v5  ;;  %v12097_v62 = vld [vmem:[#allocation78_spill] sm:$0xff] }
 0x577   :  { %v4167_v38 = vmul.f32 0.0625, %v12091_v16  ;;  %5222 = vst.msk [vmem:[%s11315_s4 + $0x2f0] sm:$0xff] %vm263_vm0, %v4983_v39  ;;  %v4921_v15 = vmul.f32 %v11117_v37, %v4857_v30  ;;  %v4858_v18 = vmul.f32 %v4794_v57, %v12092_v4  ;;  %v4673_v43 = vadd.f32 1e-05, %v4609_v63  ;;  %v12098_v16 = vld [vmem:[#allocation81_spill] sm:$0xff] }
 0x578   :  { %v5957_v28 = vpop.eup %5956  ;;  %5970 = vrsqrt.f32 %v4230_v29  ;;  %v4168_v51 = vmul.f32 0.0625, %v12093_v7  ;;  %v4984_v50 = vadd.f32 %v11138_v60, %v4920_v53  ;;  %v4674_v48 = vadd.f32 1e-05, %v4610_v22  ;;  %v4537_v6 = vpop.xlane.xlu0 %4536 }
 0x579   :  { %v4540_v31 = vpop.xlane.xlu1 %4539  ;;  %v5959_v56 = vpop.eup %5958  ;;  %v4985_v33 = vadd.f32 %v11138_v60, %v4921_v15  ;;  %v4922_v0 = vmul.f32 %v11117_v37, %v4858_v18  ;;  %v4795_v45 = vsel %vm86_vm1, %v5957_v28, %v10826_v21  ;;  %5972 = vrsqrt.f32 %v4673_v43  ;;  %v12099_v43 = vld [vmem:[#allocation7_spill] sm:$0xff] }
 0x57a   :  { %5223 = vst.msk [vmem:[%s11315_s4 + $0x2f8] sm:$0xff] %vm263_vm0, %v4984_v50  ;;  %v4859_v55 = vmul.f32 %v4795_v45, %v12094_v17  ;;  %v4796_v2 = vsel %vm86_vm1, %v5959_v56, %v10869_v27  ;;  %5974 = vrsqrt.f32 %v4674_v48  ;;  %v4611_v59 = vmul.f32 0.0625, %v4537_v6 }
 0x57b   :  { %v5961_v54 = vpop.eup %5960  ;;  %v4231_v32 = vadd.f32 1e-05, %v4167_v38  ;;  %5224 = vst.msk [vmem:[%s11315_s4 + $0x310] sm:$0xff] %vm263_vm0, %v4985_v33  ;;  %v4986_v21 = vadd.f32 %v11138_v60, %v4922_v0  ;;  %v4860_v46 = vmul.f32 %v4796_v2, %v12095_v36  ;;  %v4612_v14 = vmul.f32 0.0625, %v4540_v31  ;;  %v12100_v0 = vld [vmem:[#allocation41_spill] sm:$0xff] }
 0x57c   :  { %v5963_v1 = vpop.eup %5962  ;;  %v4232_v25 = vadd.f32 1e-05, %v4168_v51  ;;  %v4923_v23 = vmul.f32 %v11117_v37, %v4859_v55  ;;  %v4797_v27 = vsel %vm86_vm1, %v5961_v54, %v10888_v41  ;;  %v4675_v29 = vadd.f32 1e-05, %v4611_v59  ;;  %v4543_v44 = vpop.xlane.xlu0 %4542  ;;  %v12101_v59 = vld [vmem:[#allocation84_spill] sm:$0xff] }
 0x57d   :  { %v4546_v9 = vpop.xlane.xlu1 %4545  ;;  %5225 = vst.msk [vmem:[%s11315_s4 + $0x318] sm:$0xff] %vm263_vm0, %v4986_v21  ;;  %v4924_v49 = vmul.f32 %v11117_v37, %v4860_v46  ;;  %v4861_v52 = vmul.f32 %v4797_v27, %v12096_v20  ;;  %v4798_v24 = vsel %vm86_vm1, %v5963_v1, %v10939_v8  ;;  %v4676_v12 = vadd.f32 1e-05, %v4612_v14 }
 0x57e   :  { %v11189_v3 = vpop.eup %5964  ;;  %v4987_v41 = vadd.f32 %v11138_v60, %v4923_v23  ;;  %v4862_v47 = vmul.f32 %v4798_v24, %v12097_v62  ;;  %5976 = vrsqrt.f32 %v4675_v29  ;;  %v4613_v11 = vmul.f32 0.0625, %v4543_v44  ;;  %v12103_v29 = vld [vmem:[#allocation88_spill] sm:$0xff] }
 0x57f   :  { %v5967_v58 = vpop.eup %5966  ;;  %v4988_v5 = vadd.f32 %v11138_v60, %v4924_v49  ;;  %v4925_v26 = vmul.f32 %v11117_v37, %v4861_v52  ;;  %5978 = vrsqrt.f32 %v4676_v12  ;;  %v4614_v39 = vmul.f32 0.0625, %v4546_v9  ;;  %v12104_v12 = vld [vmem:[#allocation85_spill] sm:$0xff] }
 0x580   :  { %v5969_v19 = vpop.eup %5968  ;;  %5980 = vrsqrt.f32 %v4231_v32  ;;  %5226 = vst.msk [vmem:[%s11315_s4 + $0x330] sm:$0xff] %vm263_vm0, %v4987_v41  ;;  %v4926_v8 = vmul.f32 %v11117_v37, %v4862_v47  ;;  %v4799_v30 = vsel %vm86_vm1, %v5967_v58, %v10962_v10  ;;  %v4677_v63 = vadd.f32 1e-05, %v4613_v11  ;;  %v4549_v53 = vpop.xlane.xlu0 %4548  ;;  %v12105_v11 = vld [vmem:[#allocation87_spill] sm:$0xff] }
 0x581   :  { %v4552_v57 = vpop.xlane.xlu1 %4551  ;;  %5227 = vst.msk [vmem:[%s11315_s4 + $0x338] sm:$0xff] %vm263_vm0, %v4988_v5  ;;  %v4989_v22 = vadd.f32 %v11138_v60, %v4925_v26  ;;  %v4863_v38 = vmul.f32 %v4799_v30, %v12098_v16  ;;  %v4800_v15 = vsel %vm86_vm1, %v5969_v19, %v11001_v13  ;;  %v4678_v4 = vadd.f32 1e-05, %v4614_v39  ;;  %v12106_v30 = vld [vmem:[#allocation9_spill] sm:$0xff] }
 0x582   :  { %v5971_v18 = vpop.eup %5970  ;;  %v4990_v10 = vadd.f32 %v11138_v60, %v4926_v8  ;;  %v4864_v28 = vmul.f32 %v4800_v15, %v12099_v43  ;;  %5982 = vrsqrt.f32 %v4677_v63  ;;  %v4615_v7 = vmul.f32 0.0625, %v4549_v53 }
 0x583   :  { %v5973_v51 = vpop.eup %5972  ;;  %5228 = vst.msk [vmem:[%s11315_s4 + $0x350] sm:$0xff] %vm263_vm0, %v4989_v22  ;;  %v4927_v50 = vmul.f32 %v11117_v37, %v4863_v38  ;;  %5984 = vrsqrt.f32 %v4678_v4  ;;  %v4616_v48 = vmul.f32 0.0625, %v4552_v57  ;;  %v12107_v22 = vld [vmem:[#allocation11_spill] sm:$0xff] }
 0x584   :  { %v5975_v6 = vpop.eup %5974  ;;  %5986 = vrsqrt.f32 %v4232_v25  ;;  %5229 = vst.msk [vmem:[%s11315_s4 + $0x358] sm:$0xff] %vm263_vm0, %v4990_v10  ;;  %v4928_v13 = vmul.f32 %v11117_v37, %v4864_v28  ;;  %v4801_v31 = vsel %vm86_vm1, %v5973_v51, %v11043_v40  ;;  %v4679_v56 = vadd.f32 1e-05, %v4615_v7  ;;  %v12102_v25 = vld [vmem:[#allocation86_spill] sm:$0xff] }
 0x585   :  { %v4991_v33 = vadd.f32 %v11138_v60, %v4927_v50  ;;  %v4865_v45 = vmul.f32 %v4801_v31, %v12100_v0  ;;  %v4802_v17 = vsel %vm86_vm1, %v5975_v6, %v11067_v61  ;;  %v4680_v55 = vadd.f32 1e-05, %v4616_v48 }
 0x586   :  { %v4992_v2 = vadd.f32 %v11138_v60, %v4928_v13  ;;  %v4866_v54 = vmul.f32 %v4802_v17, %v12101_v59  ;;  %5988 = vrsqrt.f32 %v4679_v56 }
 0x587   :  { %5230 = vst.msk [vmem:[%s11315_s4 + $0x370] sm:$0xff] %vm263_vm0, %v4991_v33  ;;  %v4929_v40 = vmul.f32 %v11117_v37, %v4865_v45  ;;  %5990 = vrsqrt.f32 %v4680_v55 }
 0x588   :  { %v5977_v32 = vpop.eup %5976  ;;  %5231 = vst.msk [vmem:[%s11315_s4 + $0x378] sm:$0xff] %vm263_vm0, %v4992_v2  ;;  %v4930_v61 = vmul.f32 %v11117_v37, %v4866_v54 }
 0x589   :  { %v5979_v21 = vpop.eup %5978  ;;  %v4993_v36 = vadd.f32 %v11138_v60, %v4929_v40  ;;  %v4803_v46 = vsel %vm86_vm1, %v5977_v32, %v11090_v42 }
 0x58a   :  { %v5981_v14 = vpop.eup %5980  ;;  %v4994_v1 = vadd.f32 %v11138_v60, %v4930_v61  ;;  %v4867_v23 = vmul.f32 %v4803_v46, %v12102_v25  ;;  %v4804_v27 = vsel %vm86_vm1, %v5979_v21, %v11142_v34 }
 0x58b   :  { %5232 = vst.msk [vmem:[%s11315_s4 + $0x390] sm:$0xff] %vm263_vm0, %v4993_v36  ;;  %v4868_v44 = vmul.f32 %v4804_v27, %v12103_v29 }
 0x58c   :  { %v5983_v9 = vpop.eup %5982  ;;  %5233 = vst.msk [vmem:[%s11315_s4 + $0x398] sm:$0xff] %vm263_vm0, %v4994_v1  ;;  %v4931_v42 = vmul.f32 %v11117_v37, %v4867_v23 }
 0x58d   :  { %v5985_v49 = vpop.eup %5984  ;;  %v4932_v20 = vmul.f32 %v11117_v37, %v4868_v44  ;;  %v4805_v34 = vsel %vm86_vm1, %v5983_v9, %v11189_v3 }
 0x58e   :  { %v5987_v52 = vpop.eup %5986  ;;  %v4995_v24 = vadd.f32 %v11138_v60, %v4931_v42  ;;  %v4869_v41 = vmul.f32 %v4805_v34, %v12104_v12  ;;  %v4806_v62 = vsel %vm86_vm1, %v5985_v49, %v5971_v18 }
 0x58f   :  { %v4996_v47 = vadd.f32 %v11138_v60, %v4932_v20  ;;  %v4870_v58 = vmul.f32 %v4806_v62, %v12105_v11 }
 0x590   :  { %v5989_v5 = vpop.eup %5988  ;;  %5234 = vst.msk [vmem:[%s11315_s4 + $0x3b0] sm:$0xff] %vm263_vm0, %v4995_v24  ;;  %v4933_v3 = vmul.f32 %v11117_v37, %v4869_v41 }
 0x591   :  { %v5991_v26 = vpop.eup %5990  ;;  %5235 = vst.msk [vmem:[%s11315_s4 + $0x3b8] sm:$0xff] %vm263_vm0, %v4996_v47  ;;  %v4934_v39 = vmul.f32 %v11117_v37, %v4870_v58  ;;  %v4807_v19 = vsel %vm86_vm1, %v5989_v5, %v5981_v14 }
 0x592   :  { %v4997_v8 = vadd.f32 %v11138_v60, %v4933_v3  ;;  %v4871_v63 = vmul.f32 %v4807_v19, %v12106_v30  ;;  %v4808_v53 = vsel %vm86_vm1, %v5991_v26, %v5987_v52 }
 0x593   :  { %v4998_v57 = vadd.f32 %v11138_v60, %v4934_v39  ;;  %v4872_v16 = vmul.f32 %v4808_v53, %v12107_v22 }
 0x594   :  { %5236 = vst.msk [vmem:[%s11315_s4 + $0x3d0] sm:$0xff] %vm263_vm0, %v4997_v8  ;;  %v4935_v38 = vmul.f32 %v11117_v37, %v4871_v63 }
 0x595   :  { %5237 = vst.msk [vmem:[%s11315_s4 + $0x3d8] sm:$0xff] %vm263_vm0, %v4998_v57  ;;  %v4936_v15 = vmul.f32 %v11117_v37, %v4872_v16 }
 0x596   :  { %v4999_v35 = vadd.f32 %v11138_v60, %v4935_v38 }
 0x597   :  { %v5000_v4 = vadd.f32 %v11138_v60, %v4936_v15 }
 0x598   :  { %5238 = vst.msk [vmem:[%s11315_s4 + $0x3f0] sm:$0xff] %vm263_vm0, %v4999_v35 }
 0x599   :  { %5239 = vst.msk [vmem:[%s11315_s4 + $0x3f8] sm:$0xff] %vm263_vm0, %v5000_v4 }

</bundles_post_ra>
